<compile_context>
chip_gen: v6e
topology: v6e:2x2x1
jax: 0.10.0
libtpu: 0.0.40
codegen_flags: <defaults>
</compile_context>

<pallas_src>
import functools

import jax
import jax.numpy as jnp
from jax.experimental import pallas as pl
from jax.experimental.pallas import tpu as pltpu

# Target flattened rows per grid step. All per-tile buffers are linear in TBN now
# (P/Pt are [TB,TBN] bf16 ~ 1 MiB each at 2048 rows), so 2048 fits comfortably under
# every generation's scoped-VMEM default (incl. v7x's 64 MiB physical / 32 MiB scoped).
_MAX_TILE_ROWS = 2048


def _round_up(x, m):
    return ((x + m - 1) // m) * m


def _choose_tb(B, N):
    """Ray-tile size TB (multiple of 8). Big tiles amortize MXU fill/drain and the
    ~0.35us/step pipeline overhead; prefer >=2 grid steps so both v7x TensorCores get
    work (costs at most one extra tiny step on single-core v5e/v6e)."""
    tb = max(8, (_MAX_TILE_ROWS // max(N, 1)) // 8 * 8)
    b8 = _round_up(B, 8)
    tb = min(tb, b8)
    if b8 <= tb and B > 8:
        tb = min(tb, _round_up((B + 1) // 2, 8))
    return tb


# ----------------------------- Pallas kernel --------------------------------
def _render_kernel(penc_ref, dproj_ref, tdist_ref, p_ref, pt_ref, c_ref, g_ref,
                   a1_ref, a2_ref, asf_ref, w3f_ref, wrgb_ref, brgb_ref,
                   out_ref):
    """One ray tile: TB rays x N samples flattened to TBN = TB*N rows.

    penc_ref  : [TBN, Dp+1] bf16  positional encoding | constant-1 lane (folded biases)
    dproj_ref : [TBN, H]    bf16  hoisted direction branch (denc @ W3d + b3)
    tdist_ref : [TBN, 2]    f32   columns (t | delta)
    p_ref     : [TB, TBN]   bf16  ray selector         P[b, i]  = (i // N == b)
    pt_ref    : [TBN, TB]   bf16  its transpose        Pt[i, b] = (i // N == b)
    c_ref     : [TBN, N]    f32   sample-slot selector C[i, n]  = (i %  N == n)
    g_ref     : [TBN, N]    f32   strict-lower mask    G[i, n]  = (n <  i %  N)
    out_ref   : [TB, 4+N]   f32   packed (color rgb | depth | per-sample weights)
    """
    f32 = jnp.float32
    bf16 = jnp.bfloat16
    H = w3f_ref.shape[0]

    # ---------------- NeRF MLP (bf16 MXU operands, f32 accumulation) ----------------
    h = jnp.dot(penc_ref[...], a1_ref[...], preferred_element_type=f32)
    h = jnp.maximum(h, 0.0).astype(bf16)                       # [TBN, H+1], last lane == 1
    h = jnp.dot(h, a2_ref[...], preferred_element_type=f32)
    h = jnp.maximum(h, 0.0).astype(bf16)                       # [TBN, H+1], last lane == 1
    sf = jnp.dot(h, asf_ref[...], preferred_element_type=f32)  # [TBN, H+1] = [feature | sigma]
    sigma = sf[:, H:H + 1]                                      # [TBN, 1] f32
    feat = sf[:, :H].astype(bf16)                               # lane-aligned slice (no shuffle)
    h3 = jnp.dot(feat, w3f_ref[...], preferred_element_type=f32) + dproj_ref[...].astype(f32)
    h3 = jnp.maximum(h3, 0.0).astype(bf16)
    rgb_logits = jnp.dot(h3, wrgb_ref[...], preferred_element_type=f32) + brgb_ref[...]
    rgb = pl.reciprocal(1.0 + jnp.exp(-rgb_logits), approx=True)   # sigmoid via EUP recip

    # ---------------- volume rendering integration ----------------------------------
    td = tdist_ref[...]
    t_col = td[:, 0:1]
    delta = td[:, 1:2]
    s = jnp.maximum(sigma, 0.0) * delta                          # relu(sigma)*delta [TBN,1]

    # Exclusive per-ray cumsum without the old [TBN,TBN] matmul:
    #   s_mat[b, n] = s of ray b, sample n              (P  @ (s*C),  K=TBN, N lanes)
    #   s_ray[i, n] = s of ray i//N, sample n           (Pt @ s_mat,  K=TB,  N lanes)
    #   cum[i]      = sum_n s_ray[i, n] * (n < i % N)   (lane reduce on the XLU)
    s_b = (s * c_ref[...]).astype(bf16)                          # [TBN, N] one nonzero/row
    s_mat = jnp.dot(p_ref[...], s_b, preferred_element_type=f32)                   # [TB, N]
    s_ray = jnp.dot(pt_ref[...], s_mat.astype(bf16), preferred_element_type=f32)   # [TBN, N]
    cum = jnp.sum(s_ray * g_ref[...], axis=1, keepdims=True)                       # [TBN, 1]
    w = jnp.exp(-cum) * (1.0 - jnp.exp(-s))                                         # [TBN, 1]

    # Fused per-ray reduction: ONE bf16 matmul yields color, depth and per-sample weights.
    payload = jnp.concatenate([rgb, t_col, c_ref[...]], axis=1)                    # [TBN, 4+N]
    out_ref[...] = jnp.dot(p_ref[...], (w * payload).astype(bf16),
                           preferred_element_type=f32)


# ----------------------------- kernel wrapper --------------------------------
def _pallas_render(penc1, dproj, tdist, P, Pt, C, G, kernel_params, B_pad, N, TB):
    TBN = TB * N
    outw = 4 + N

    data_specs = [
        pl.BlockSpec((TBN, penc1.shape[1]), lambda i: (i, 0)),
        pl.BlockSpec((TBN, dproj.shape[1]), lambda i: (i, 0)),
        pl.BlockSpec((TBN, 2), lambda i: (i, 0)),
        # Constant-index tiles: re-DMA across grid steps is elided by the pipeline.
        pl.BlockSpec((TB, TBN), lambda i: (0, 0)),   # P
        pl.BlockSpec((TBN, TB), lambda i: (0, 0)),   # Pt
        pl.BlockSpec((TBN, N), lambda i: (0, 0)),    # C
        pl.BlockSpec((TBN, N), lambda i: (0, 0)),    # G
    ]
    param_specs = [pl.BlockSpec(p.shape, lambda i: (0, 0)) for p in kernel_params]

    out = pl.pallas_call(
        _render_kernel,
        out_shape=jax.ShapeDtypeStruct((B_pad, outw), jnp.float32),
        grid_spec=pltpu.PrefetchScalarGridSpec(
            num_scalar_prefetch=0,
            grid=(B_pad // TB,),
            in_specs=data_specs + param_specs,
            out_specs=pl.BlockSpec((TB, outw), lambda i: (i, 0))),
        compiler_params=pltpu.CompilerParams(
            dimension_semantics=("parallel",)),
    )(penc1, dproj, tdist, P, Pt, C, G, *kernel_params)
    return out


# ----------------------------- JAX glue --------------------------------------
def positional_encoding(x, L):
    feats = [x]
    for k in range(L):
        freq = (2.0 ** k) * jnp.pi
        feats.append(jnp.sin(freq * x))
        feats.append(jnp.cos(freq * x))
    return jnp.concatenate(feats, axis=-1)


def uniform_sample(tn, tf, bins):
    u = jnp.linspace(0.0, 1.0, bins, dtype=jnp.float32)[None, :]
    return tn + (tf - tn) * u                                            # [B, bins]


def resample(w, t, n_samples):
    # hierarchical inverse-CDF sampling (deterministic uniform u; ran under no_grad in torch)
    bins = 0.5 * (t[:, 1:] + t[:, :-1])                                  # [B, N-1]
    weights = w[:, 1:-1] + 1e-5                                          # [B, N-2]
    pdf = weights / jnp.sum(weights, axis=1, keepdims=True)
    cdf = jnp.cumsum(pdf, axis=1)
    cdf = jnp.concatenate([jnp.zeros_like(cdf[:, :1]), cdf], axis=1)     # [B, N-1]
    u = jnp.broadcast_to(jnp.linspace(0.0, 1.0, n_samples, dtype=jnp.float32),
                         (t.shape[0], n_samples))

    def per_ray(cdf_r, bins_r, u_r):
        inds = jnp.searchsorted(cdf_r, u_r, side='right')
        below = jnp.clip(inds - 1, 0, cdf_r.shape[0] - 1)
        above = jnp.clip(inds, 0, cdf_r.shape[0] - 1)
        diff = cdf_r[above] - cdf_r[below]
        denom = jnp.where(diff < 1e-5, 1.0, diff)
        return bins_r[below] + (u_r - cdf_r[below]) / denom * (bins_r[above] - bins_r[below])

    return jax.vmap(per_ray)(cdf, bins, u)


def _render_forward(params, rays, t, Lp, Ld, homogeneous_projection):
    B, N = t.shape
    H = params["W1"].shape[1]
    f32 = jnp.float32
    bf16 = jnp.bfloat16

    o = rays[:, 0:3]
    d = rays[:, 3:6]
    d = d / jnp.linalg.norm(d, axis=-1, keepdims=True)
    x = o[:, None, :] + t[:, :, None] * d[:, None, :]                    # [B, N, 3]
    if homogeneous_projection:
        xh = jnp.concatenate([x, jnp.ones_like(x[..., :1])], axis=-1)
        xh = xh / jnp.linalg.norm(xh, axis=-1, keepdims=True)
    else:
        xh = x
    Dp = xh.shape[-1] * (1 + 2 * Lp)
    penc = positional_encoding(xh, Lp).reshape(B * N, Dp)
    # constant-1 lane so b1/b2/bsig/bfeat ride through the MXU (K is padded anyway)
    penc1 = jnp.concatenate([penc, jnp.ones((B * N, 1), f32)], axis=1)   # [B*N, Dp+1]

    # Hoisted direction branch: per-ray projection through W3d (+ b3 folded in).
    denc = positional_encoding(d, Ld)                                    # [B, Dd]
    dproj = denc @ params["W3d"] + params["b3"]                          # [B, H]
    dproj = jnp.broadcast_to(dproj[:, None, :], (B, N, H)).reshape(B * N, H)

    dists = jnp.concatenate([t[:, 1:] - t[:, :-1],
                             jnp.full((B, 1), 1e10, t.dtype)], axis=1)
    tdist = jnp.stack([t, dists], axis=-1).reshape(B * N, 2).astype(f32)

    TB = _choose_tb(B, N)
    B_pad = _round_up(B, TB)
    if B_pad != B:
        pad = (B_pad - B) * N                 # zero rays: sigma=0, delta=0 -> w=0, sliced off
        penc1 = jnp.pad(penc1, ((0, pad), (0, 0)))
        dproj = jnp.pad(dproj, ((0, pad), (0, 0)))
        tdist = jnp.pad(tdist, ((0, pad), (0, 0)))
    TBN = TB * N

    # Per-tile constant selectors (compile-time constants under jit). 0/1 values are
    # exact in bf16, so the integration matmuls run as single bf16 MXU passes.
    idx = jnp.arange(TBN)
    ray_id = idx // N
    samp_id = idx % N
    P = (jnp.arange(TB)[:, None] == ray_id[None, :]).astype(bf16)        # [TB, TBN]
    Pt = (ray_id[:, None] == jnp.arange(TB)[None, :]).astype(bf16)       # [TBN, TB]
    C = (samp_id[:, None] == jnp.arange(N)[None, :]).astype(f32)         # [TBN, N]
    G = (jnp.arange(N)[None, :] < samp_id[:, None]).astype(f32)          # [TBN, N]

    # Bias-folded weight slabs; sigma is the LAST head column so the feature slice is
    # lane-aligned in the kernel (and no zero-row trick that could turn inf into NaN).
    def aug(w, b, add_ones_col):
        if add_ones_col:
            w = jnp.concatenate([w, jnp.zeros((w.shape[0], 1), f32)], axis=1)
            b = jnp.concatenate([b, jnp.ones((1, 1), f32)], axis=1)
        return jnp.concatenate([w, b], axis=0)

    A1 = aug(params["W1"], params["b1"], True)                           # [Dp+1, H+1]
    A2 = aug(params["W2"], params["b2"], True)                           # [H+1,  H+1]
    Asf = aug(jnp.concatenate([params["Wfeat"], params["Wsig"]], axis=1),
              jnp.concatenate([params["bfeat"], params["bsig"]], axis=1),
              False)                                                     # [H+1, H+1] -> [feat|sigma]

    kernel_params = [A1.astype(bf16), A2.astype(bf16), Asf.astype(bf16),
                     params["W3f"].astype(bf16), params["Wrgb"].astype(bf16),
                     params["brgb"]]

    out = _pallas_render(penc1.astype(bf16), dproj.astype(bf16), tdist,
                         P, Pt, C, G, kernel_params, B_pad, N, TB)
    out = out[:B]
    color = out[:, 0:3]
    # TODO(synk): depth is the unnormalized sum(w*t); normalize by sum(w) if the original
    # NerfRender does so.
    depth = out[:, 3:4]
    w = out[:, 4:]                                                       # [B, N]
    return color, depth, w, t


@functools.partial(jax.jit, static_argnums=(5, 6, 7, 8, 9))
def _nerf_forward(params_low, params_high, rays, tn, tf,
                  low_res_bins, high_res_bins, Lp, Ld, homogeneous_projection):
    t = uniform_sample(tn, tf, low_res_bins)
    color_low_res, _, w, t = _render_forward(params_low, rays, t, Lp, Ld,
                                             homogeneous_projection)
    # torch.no_grad() hierarchical resampling
    t_resamp = jax.lax.stop_gradient(resample(w, t, high_res_bins))
    t_resamp = jnp.concatenate((t, t_resamp), axis=1)
    # TODO(synk): original NerfRender may sort t internally; sort here so integration deltas are valid.
    t_resamp = jnp.sort(t_resamp, axis=1)
    color_high_res, depth, _, _ = _render_forward(params_high, rays, t_resamp, Lp, Ld,
                                                  homogeneous_projection)
    return {'color_high_res': color_high_res, 'depth': depth,
            'color_low_res': color_low_res}


# ----------------------------- module classes --------------------------------
class NerfRender:
    def __init__(self, Lp, Ld, homogeneous_projection, nerf_integration, key, hidden=32):
        self.Lp, self.Ld = int(Lp), int(Ld)
        self.homogeneous_projection = bool(homogeneous_projection)
        # TODO(synk): only the nerf_integration=True (classic NeRF alpha-compositing) path is implemented.
        self.nerf_integration = nerf_integration
        H = hidden
        p_dim = 4 if homogeneous_projection else 3
        self.Dp = p_dim * (1 + 2 * self.Lp)
        self.Dd = 3 * (1 + 2 * self.Ld)
        keys = jax.random.split(key, 7)

        def lin(k, fi, fo):
            return jax.random.normal(k, (fi, fo), jnp.float32) / jnp.sqrt(float(fi))

        self.params = {
            "W1": lin(keys[0], self.Dp, H), "b1": jnp.zeros((1, H), jnp.float32),
            "W2": lin(keys[1], H, H), "b2": jnp.zeros((1, H), jnp.float32),
            "Wsig": lin(keys[2], H, 1), "bsig": jnp.zeros((1, 1), jnp.float32),
            "Wfeat": lin(keys[3], H, H), "bfeat": jnp.zeros((1, H), jnp.float32),
            "W3f": lin(keys[4], H, H), "W3d": lin(keys[5], self.Dd, H),
            "b3": jnp.zeros((1, H), jnp.float32),
            "Wrgb": lin(keys[6], H, 3), "brgb": jnp.zeros((1, 3), jnp.float32),
        }

    def forward(self, rays, t):
        return _render_forward(self.params, rays, t, self.Lp, self.Ld,
                               self.homogeneous_projection)


class Nerf:
    def __init__(self, Lp, Ld, low_res_bins, high_res_bins,
                 homogeneous_projection, nerf_integration, key, **kwargs):
        self.low_res_bins = int(low_res_bins)
        self.high_res_bins = int(high_res_bins)
        self.Lp, self.Ld = int(Lp), int(Ld)
        self.homogeneous_projection = bool(homogeneous_projection)
        k1, k2 = jax.random.split(key)
        self.render = NerfRender(Lp, Ld, homogeneous_projection, nerf_integration, k1)
        self.render_low_res = NerfRender(Lp, Ld, homogeneous_projection, nerf_integration, k2)

    def forward(self, rays, tn, tf, step):
        del step  # unused, matches reference signature
        return _nerf_forward(self.render_low_res.params, self.render.params,
                             rays, tn, tf,
                             self.low_res_bins, self.high_res_bins,
                             self.Lp, self.Ld, self.homogeneous_projection)


if __name__ == "__main__":
    key = jax.random.PRNGKey(0)
    k_rays_o, k_rays_d, k_model = jax.random.split(key, 3)

    # 64 rays: small, but still yields a 2-step grid so both v7x TensorCores are used
    # and per-step pipeline overhead is amortized.
    B = 64
    origins = 0.1 * jax.random.normal(k_rays_o, (B, 3), jnp.float32)
    dirs = jax.random.normal(k_rays_d, (B, 3), jnp.float32)
    rays = jnp.concatenate([origins, dirs], axis=1)                      # [B, 6]
    tn = jnp.full((B, 1), 0.5, jnp.float32)
    tf = jnp.full((B, 1), 4.0, jnp.float32)

    model = Nerf(Lp=4, Ld=2, low_res_bins=8, high_res_bins=8,
                 homogeneous_projection=True, nerf_integration=True, key=k_model)

    out = model.forward(rays, tn, tf, step=0)
    out = jax.tree_util.tree_map(jax.block_until_ready, out)

    assert out['color_high_res'].shape == (B, 3)
    assert out['color_low_res'].shape == (B, 3)
    assert out['depth'].shape == (B, 1)
    assert all(bool(jnp.all(jnp.isfinite(v))) for v in out.values())
    print("KERNEL_OK")
</pallas_src>

<mosaic_0001>
module attributes {stable_mosaic.version = 11 : i64} {
  func.func @_render_kernel(%arg0: i32, %arg1: memref<256x37xbf16, #tpu.memory_space<vmem>>, %arg2: memref<256x32xbf16, #tpu.memory_space<vmem>>, %arg3: memref<256x2xf32, #tpu.memory_space<vmem>>, %arg4: memref<32x256xbf16, #tpu.memory_space<vmem>>, %arg5: memref<256x32xbf16, #tpu.memory_space<vmem>>, %arg6: memref<256x8xf32, #tpu.memory_space<vmem>>, %arg7: memref<256x8xf32, #tpu.memory_space<vmem>>, %arg8: memref<37x33xbf16, #tpu.memory_space<vmem>>, %arg9: memref<33x33xbf16, #tpu.memory_space<vmem>>, %arg10: memref<33x33xbf16, #tpu.memory_space<vmem>>, %arg11: memref<32x32xbf16, #tpu.memory_space<vmem>>, %arg12: memref<32x3xbf16, #tpu.memory_space<vmem>>, %arg13: memref<1x3xf32, #tpu.memory_space<vmem>>, %arg14: memref<32x12xf32, #tpu.memory_space<vmem>>) attributes {dimension_semantics = [#tpu.dimension_semantics<parallel>], iteration_bounds = array<i64: 2>, scalar_prefetch = 0 : i64, scratch_operands = 0 : i64, tpu.core_type = #tpu.core_type<tc>, window_params = [{transform_indices = @transform_0, window_bounds = array<i64: 256, 37>}, {transform_indices = @transform_1, window_bounds = array<i64: 256, 32>}, {transform_indices = @transform_2, window_bounds = array<i64: 256, 2>}, {pipeline_mode = #tpu.pipeline_mode<synchronous>, transform_indices = @transform_3, window_bounds = array<i64: 32, 256>}, {pipeline_mode = #tpu.pipeline_mode<synchronous>, transform_indices = @transform_4, window_bounds = array<i64: 256, 32>}, {pipeline_mode = #tpu.pipeline_mode<synchronous>, transform_indices = @transform_5, window_bounds = array<i64: 256, 8>}, {pipeline_mode = #tpu.pipeline_mode<synchronous>, transform_indices = @transform_6, window_bounds = array<i64: 256, 8>}, {pipeline_mode = #tpu.pipeline_mode<synchronous>, transform_indices = @transform_7, window_bounds = array<i64: 37, 33>}, {pipeline_mode = #tpu.pipeline_mode<synchronous>, transform_indices = @transform_8, window_bounds = array<i64: 33, 33>}, {pipeline_mode = #tpu.pipeline_mode<synchronous>, transform_indices = @transform_9, window_bounds = array<i64: 33, 33>}, {pipeline_mode = #tpu.pipeline_mode<synchronous>, transform_indices = @transform_10, window_bounds = array<i64: 32, 32>}, {pipeline_mode = #tpu.pipeline_mode<synchronous>, transform_indices = @transform_11, window_bounds = array<i64: 32, 3>}, {pipeline_mode = #tpu.pipeline_mode<synchronous>, transform_indices = @transform_12, window_bounds = array<i64: 1, 3>}, {transform_indices = @transform_13, window_bounds = array<i64: 32, 12>}]} {
    %c0 = arith.constant 0 : index
    %c0_0 = arith.constant 0 : index
    %0 = vector.load %arg1[%c0, %c0_0] : memref<256x37xbf16, #tpu.memory_space<vmem>>, vector<256x37xbf16>
    %c0_1 = arith.constant 0 : index
    %c0_2 = arith.constant 0 : index
    %1 = vector.load %arg8[%c0_1, %c0_2] : memref<37x33xbf16, #tpu.memory_space<vmem>>, vector<37x33xbf16>
    %cst = arith.constant dense<0.000000e+00> : vector<256x33xf32>
    %2 = tpu.matmul %0, %1, %cst {dimension_numbers = #tpu.dot_dimension_numbers<[1], [0], [0], [1], [0, 0, 1, 1], [], []>} : vector<256x37xbf16>, vector<37x33xbf16>, vector<256x33xf32> -> vector<256x33xf32>
    %cst_3 = arith.constant 0.000000e+00 : f32
    %3 = vector.broadcast %cst_3 : f32 to vector<256x33xf32>
    %4 = arith.maximumf %2, %3 : vector<256x33xf32>
    %5 = arith.truncf %4 : vector<256x33xf32> to vector<256x33xbf16>
    %c0_4 = arith.constant 0 : index
    %c0_5 = arith.constant 0 : index
    %6 = vector.load %arg9[%c0_4, %c0_5] : memref<33x33xbf16, #tpu.memory_space<vmem>>, vector<33x33xbf16>
    %cst_6 = arith.constant dense<0.000000e+00> : vector<256x33xf32>
    %7 = tpu.matmul %5, %6, %cst_6 {dimension_numbers = #tpu.dot_dimension_numbers<[1], [0], [0], [1], [0, 0, 1, 1], [], []>} : vector<256x33xbf16>, vector<33x33xbf16>, vector<256x33xf32> -> vector<256x33xf32>
    %cst_7 = arith.constant 0.000000e+00 : f32
    %8 = vector.broadcast %cst_7 : f32 to vector<256x33xf32>
    %9 = arith.maximumf %7, %8 : vector<256x33xf32>
    %10 = arith.truncf %9 : vector<256x33xf32> to vector<256x33xbf16>
    %c0_8 = arith.constant 0 : index
    %c0_9 = arith.constant 0 : index
    %11 = vector.load %arg10[%c0_8, %c0_9] : memref<33x33xbf16, #tpu.memory_space<vmem>>, vector<33x33xbf16>
    %cst_10 = arith.constant dense<0.000000e+00> : vector<256x33xf32>
    %12 = tpu.matmul %10, %11, %cst_10 {dimension_numbers = #tpu.dot_dimension_numbers<[1], [0], [0], [1], [0, 0, 1, 1], [], []>} : vector<256x33xbf16>, vector<33x33xbf16>, vector<256x33xf32> -> vector<256x33xf32>
    %13 = vector.extract_strided_slice %12 {offsets = [0, 32], sizes = [256, 1], strides = [1, 1]} : vector<256x33xf32> to vector<256x1xf32>
    %14 = vector.extract_strided_slice %12 {offsets = [0, 0], sizes = [256, 32], strides = [1, 1]} : vector<256x33xf32> to vector<256x32xf32>
    %15 = arith.truncf %14 : vector<256x32xf32> to vector<256x32xbf16>
    %c0_11 = arith.constant 0 : index
    %c0_12 = arith.constant 0 : index
    %16 = vector.load %arg11[%c0_11, %c0_12] : memref<32x32xbf16, #tpu.memory_space<vmem>>, vector<32x32xbf16>
    %cst_13 = arith.constant dense<0.000000e+00> : vector<256x32xf32>
    %17 = tpu.matmul %15, %16, %cst_13 {dimension_numbers = #tpu.dot_dimension_numbers<[1], [0], [0], [1], [0, 0, 1, 1], [], []>} : vector<256x32xbf16>, vector<32x32xbf16>, vector<256x32xf32> -> vector<256x32xf32>
    %c0_14 = arith.constant 0 : index
    %c0_15 = arith.constant 0 : index
    %18 = vector.load %arg2[%c0_14, %c0_15] : memref<256x32xbf16, #tpu.memory_space<vmem>>, vector<256x32xbf16>
    %19 = arith.extf %18 : vector<256x32xbf16> to vector<256x32xf32>
    %20 = arith.addf %17, %19 : vector<256x32xf32>
    %cst_16 = arith.constant 0.000000e+00 : f32
    %21 = vector.broadcast %cst_16 : f32 to vector<256x32xf32>
    %22 = arith.maximumf %20, %21 : vector<256x32xf32>
    %23 = arith.truncf %22 : vector<256x32xf32> to vector<256x32xbf16>
    %c0_17 = arith.constant 0 : index
    %c0_18 = arith.constant 0 : index
    %24 = vector.load %arg12[%c0_17, %c0_18] : memref<32x3xbf16, #tpu.memory_space<vmem>>, vector<32x3xbf16>
    %cst_19 = arith.constant dense<0.000000e+00> : vector<256x3xf32>
    %25 = tpu.matmul %23, %24, %cst_19 {dimension_numbers = #tpu.dot_dimension_numbers<[1], [0], [0], [1], [0, 0, 1, 1], [], []>} : vector<256x32xbf16>, vector<32x3xbf16>, vector<256x3xf32> -> vector<256x3xf32>
    %c0_20 = arith.constant 0 : index
    %c0_21 = arith.constant 0 : index
    %26 = vector.load %arg13[%c0_20, %c0_21] : memref<1x3xf32, #tpu.memory_space<vmem>>, vector<1x3xf32>
    %27 = vector.broadcast %26 : vector<1x3xf32> to vector<256x3xf32>
    %28 = arith.addf %25, %27 : vector<256x3xf32>
    %cst_22 = arith.constant 0.000000e+00 : f32
    %29 = vector.broadcast %cst_22 : f32 to vector<256x3xf32>
    %30 = arith.subf %29, %28 : vector<256x3xf32>
    %31 = math.exp %30 : vector<256x3xf32>
    %cst_23 = arith.constant 1.000000e+00 : f32
    %32 = vector.broadcast %cst_23 : f32 to vector<256x3xf32>
    %33 = arith.addf %32, %31 : vector<256x3xf32>
    %34 = tpu.reciprocal %33 {approx = true} : vector<256x3xf32> -> vector<256x3xf32>
    %c0_24 = arith.constant 0 : index
    %c0_25 = arith.constant 0 : index
    %35 = vector.load %arg3[%c0_24, %c0_25] : memref<256x2xf32, #tpu.memory_space<vmem>>, vector<256x2xf32>
    %36 = vector.extract_strided_slice %35 {offsets = [0, 0], sizes = [256, 1], strides = [1, 1]} : vector<256x2xf32> to vector<256x1xf32>
    %37 = vector.extract_strided_slice %35 {offsets = [0, 1], sizes = [256, 1], strides = [1, 1]} : vector<256x2xf32> to vector<256x1xf32>
    %cst_26 = arith.constant 0.000000e+00 : f32
    %38 = vector.broadcast %cst_26 : f32 to vector<256x1xf32>
    %39 = arith.maximumf %13, %38 : vector<256x1xf32>
    %40 = arith.mulf %39, %37 : vector<256x1xf32>
    %c0_27 = arith.constant 0 : index
    %c0_28 = arith.constant 0 : index
    %41 = vector.load %arg6[%c0_27, %c0_28] : memref<256x8xf32, #tpu.memory_space<vmem>>, vector<256x8xf32>
    %42 = vector.broadcast %40 : vector<256x1xf32> to vector<256x8xf32>
    %43 = arith.mulf %42, %41 : vector<256x8xf32>
    %44 = arith.truncf %43 : vector<256x8xf32> to vector<256x8xbf16>
    %c0_29 = arith.constant 0 : index
    %c0_30 = arith.constant 0 : index
    %45 = vector.load %arg4[%c0_29, %c0_30] : memref<32x256xbf16, #tpu.memory_space<vmem>>, vector<32x256xbf16>
    %cst_31 = arith.constant dense<0.000000e+00> : vector<32x8xf32>
    %46 = tpu.matmul %45, %44, %cst_31 {dimension_numbers = #tpu.dot_dimension_numbers<[1], [0], [0], [1], [0, 0, 1, 1], [], []>} : vector<32x256xbf16>, vector<256x8xbf16>, vector<32x8xf32> -> vector<32x8xf32>
    %c0_32 = arith.constant 0 : index
    %c0_33 = arith.constant 0 : index
    %47 = vector.load %arg5[%c0_32, %c0_33] : memref<256x32xbf16, #tpu.memory_space<vmem>>, vector<256x32xbf16>
    %48 = arith.truncf %46 : vector<32x8xf32> to vector<32x8xbf16>
    %cst_34 = arith.constant dense<0.000000e+00> : vector<256x8xf32>
    %49 = tpu.matmul %47, %48, %cst_34 {dimension_numbers = #tpu.dot_dimension_numbers<[1], [0], [0], [1], [0, 0, 1, 1], [], []>} : vector<256x32xbf16>, vector<32x8xbf16>, vector<256x8xf32> -> vector<256x8xf32>
    %c0_35 = arith.constant 0 : index
    %c0_36 = arith.constant 0 : index
    %50 = vector.load %arg7[%c0_35, %c0_36] : memref<256x8xf32, #tpu.memory_space<vmem>>, vector<256x8xf32>
    %51 = arith.mulf %49, %50 : vector<256x8xf32>
    %cst_37 = arith.constant dense<0.000000e+00> : vector<256xf32>
    %52 = vector.multi_reduction <add>, %51, %cst_37 [1] : vector<256x8xf32> to vector<256xf32>
    %53 = vector.shape_cast %52 : vector<256xf32> to vector<256x1xf32>
    %cst_38 = arith.constant 0.000000e+00 : f32
    %54 = vector.broadcast %cst_38 : f32 to vector<256x1xf32>
    %55 = arith.subf %54, %53 : vector<256x1xf32>
    %56 = math.exp %55 : vector<256x1xf32>
    %cst_39 = arith.constant 0.000000e+00 : f32
    %57 = vector.broadcast %cst_39 : f32 to vector<256x1xf32>
    %58 = arith.subf %57, %40 : vector<256x1xf32>
    %59 = math.exp %58 : vector<256x1xf32>
    %cst_40 = arith.constant 1.000000e+00 : f32
    %60 = vector.broadcast %cst_40 : f32 to vector<256x1xf32>
    %61 = arith.subf %60, %59 : vector<256x1xf32>
    %62 = arith.mulf %56, %61 : vector<256x1xf32>
    %c0_41 = arith.constant 0 : index
    %c0_42 = arith.constant 0 : index
    %63 = vector.load %arg6[%c0_41, %c0_42] : memref<256x8xf32, #tpu.memory_space<vmem>>, vector<256x8xf32>
    %64 = tpu.concatenate %34, %36, %63 in 1 : vector<256x3xf32>, vector<256x1xf32>, vector<256x8xf32> -> vector<256x12xf32>
    %c0_43 = arith.constant 0 : index
    %c0_44 = arith.constant 0 : index
    %65 = vector.load %arg4[%c0_43, %c0_44] : memref<32x256xbf16, #tpu.memory_space<vmem>>, vector<32x256xbf16>
    %66 = vector.broadcast %62 : vector<256x1xf32> to vector<256x12xf32>
    %67 = arith.mulf %66, %64 : vector<256x12xf32>
    %68 = arith.truncf %67 : vector<256x12xf32> to vector<256x12xbf16>
    %cst_45 = arith.constant dense<0.000000e+00> : vector<32x12xf32>
    %69 = tpu.matmul %65, %68, %cst_45 {dimension_numbers = #tpu.dot_dimension_numbers<[1], [0], [0], [1], [0, 0, 1, 1], [], []>} : vector<32x256xbf16>, vector<256x12xbf16>, vector<32x12xf32> -> vector<32x12xf32>
    %c0_46 = arith.constant 0 : index
    %c0_47 = arith.constant 0 : index
    %70 = vector.load %arg14[%c0_46, %c0_47] : memref<32x12xf32, #tpu.memory_space<vmem>>, vector<32x12xf32>
    tpu.vector_store %arg14[%c0_46, %c0_47], %69 {strides = array<i32>} : memref<32x12xf32, #tpu.memory_space<vmem>>, vector<32x12xf32>,
    return
  }
  func.func @transform_0(%arg0: i32) -> (i32, i32) {
    %c0_i32 = arith.constant 0 : i32
    %c0_i32_0 = arith.constant 0 : i32
    return %arg0, %c0_i32 : i32, i32
  }
  func.func @transform_1(%arg0: i32) -> (i32, i32) {
    %c0_i32 = arith.constant 0 : i32
    %c0_i32_0 = arith.constant 0 : i32
    return %arg0, %c0_i32 : i32, i32
  }
  func.func @transform_2(%arg0: i32) -> (i32, i32) {
    %c0_i32 = arith.constant 0 : i32
    %c0_i32_0 = arith.constant 0 : i32
    return %arg0, %c0_i32 : i32, i32
  }
  func.func @transform_3(%arg0: i32) -> (i32, i32) {
    %c0_i32 = arith.constant 0 : i32
    %c0_i32_0 = arith.constant 0 : i32
    %c0_i32_1 = arith.constant 0 : i32
    return %c0_i32, %c0_i32_0 : i32, i32
  }
  func.func @transform_4(%arg0: i32) -> (i32, i32) {
    %c0_i32 = arith.constant 0 : i32
    %c0_i32_0 = arith.constant 0 : i32
    %c0_i32_1 = arith.constant 0 : i32
    return %c0_i32, %c0_i32_0 : i32, i32
  }
  func.func @transform_5(%arg0: i32) -> (i32, i32) {
    %c0_i32 = arith.constant 0 : i32
    %c0_i32_0 = arith.constant 0 : i32
    %c0_i32_1 = arith.constant 0 : i32
    return %c0_i32, %c0_i32_0 : i32, i32
  }
  func.func @transform_6(%arg0: i32) -> (i32, i32) {
    %c0_i32 = arith.constant 0 : i32
    %c0_i32_0 = arith.constant 0 : i32
    %c0_i32_1 = arith.constant 0 : i32
    return %c0_i32, %c0_i32_0 : i32, i32
  }
  func.func @transform_7(%arg0: i32) -> (i32, i32) {
    %c0_i32 = arith.constant 0 : i32
    %c0_i32_0 = arith.constant 0 : i32
    %c0_i32_1 = arith.constant 0 : i32
    return %c0_i32, %c0_i32_0 : i32, i32
  }
  func.func @transform_8(%arg0: i32) -> (i32, i32) {
    %c0_i32 = arith.constant 0 : i32
    %c0_i32_0 = arith.constant 0 : i32
    %c0_i32_1 = arith.constant 0 : i32
    return %c0_i32, %c0_i32_0 : i32, i32
  }
  func.func @transform_9(%arg0: i32) -> (i32, i32) {
    %c0_i32 = arith.constant 0 : i32
    %c0_i32_0 = arith.constant 0 : i32
    %c0_i32_1 = arith.constant 0 : i32
    return %c0_i32, %c0_i32_0 : i32, i32
  }
  func.func @transform_10(%arg0: i32) -> (i32, i32) {
    %c0_i32 = arith.constant 0 : i32
    %c0_i32_0 = arith.constant 0 : i32
    %c0_i32_1 = arith.constant 0 : i32
    return %c0_i32, %c0_i32_0 : i32, i32
  }
  func.func @transform_11(%arg0: i32) -> (i32, i32) {
    %c0_i32 = arith.constant 0 : i32
    %c0_i32_0 = arith.constant 0 : i32
    %c0_i32_1 = arith.constant 0 : i32
    return %c0_i32, %c0_i32_0 : i32, i32
  }
  func.func @transform_12(%arg0: i32) -> (i32, i32) {
    %c0_i32 = arith.constant 0 : i32
    %c0_i32_0 = arith.constant 0 : i32
    %c0_i32_1 = arith.constant 0 : i32
    return %c0_i32, %c0_i32_0 : i32, i32
  }
  func.func @transform_13(%arg0: i32) -> (i32, i32) {
    %c0_i32 = arith.constant 0 : i32
    %c0_i32_0 = arith.constant 0 : i32
    return %arg0, %c0_i32 : i32, i32
  }
}

module attributes {stable_mosaic.version = 11 : i64} {
  func.func @_render_kernel(%arg0: i32, %arg1: memref<512x37xbf16, #tpu.memory_space<vmem>>, %arg2: memref<512x32xbf16, #tpu.memory_space<vmem>>, %arg3: memref<512x2xf32, #tpu.memory_space<vmem>>, %arg4: memref<32x512xbf16, #tpu.memory_space<vmem>>, %arg5: memref<512x32xbf16, #tpu.memory_space<vmem>>, %arg6: memref<512x16xf32, #tpu.memory_space<vmem>>, %arg7: memref<512x16xf32, #tpu.memory_space<vmem>>, %arg8: memref<37x33xbf16, #tpu.memory_space<vmem>>, %arg9: memref<33x33xbf16, #tpu.memory_space<vmem>>, %arg10: memref<33x33xbf16, #tpu.memory_space<vmem>>, %arg11: memref<32x32xbf16, #tpu.memory_space<vmem>>, %arg12: memref<32x3xbf16, #tpu.memory_space<vmem>>, %arg13: memref<1x3xf32, #tpu.memory_space<vmem>>, %arg14: memref<32x20xf32, #tpu.memory_space<vmem>>) attributes {dimension_semantics = [#tpu.dimension_semantics<parallel>], iteration_bounds = array<i64: 2>, scalar_prefetch = 0 : i64, scratch_operands = 0 : i64, tpu.core_type = #tpu.core_type<tc>, window_params = [{transform_indices = @transform_0, window_bounds = array<i64: 512, 37>}, {transform_indices = @transform_1, window_bounds = array<i64: 512, 32>}, {transform_indices = @transform_2, window_bounds = array<i64: 512, 2>}, {pipeline_mode = #tpu.pipeline_mode<synchronous>, transform_indices = @transform_3, window_bounds = array<i64: 32, 512>}, {pipeline_mode = #tpu.pipeline_mode<synchronous>, transform_indices = @transform_4, window_bounds = array<i64: 512, 32>}, {pipeline_mode = #tpu.pipeline_mode<synchronous>, transform_indices = @transform_5, window_bounds = array<i64: 512, 16>}, {pipeline_mode = #tpu.pipeline_mode<synchronous>, transform_indices = @transform_6, window_bounds = array<i64: 512, 16>}, {pipeline_mode = #tpu.pipeline_mode<synchronous>, transform_indices = @transform_7, window_bounds = array<i64: 37, 33>}, {pipeline_mode = #tpu.pipeline_mode<synchronous>, transform_indices = @transform_8, window_bounds = array<i64: 33, 33>}, {pipeline_mode = #tpu.pipeline_mode<synchronous>, transform_indices = @transform_9, window_bounds = array<i64: 33, 33>}, {pipeline_mode = #tpu.pipeline_mode<synchronous>, transform_indices = @transform_10, window_bounds = array<i64: 32, 32>}, {pipeline_mode = #tpu.pipeline_mode<synchronous>, transform_indices = @transform_11, window_bounds = array<i64: 32, 3>}, {pipeline_mode = #tpu.pipeline_mode<synchronous>, transform_indices = @transform_12, window_bounds = array<i64: 1, 3>}, {transform_indices = @transform_13, window_bounds = array<i64: 32, 20>}]} {
    %c0 = arith.constant 0 : index
    %c0_0 = arith.constant 0 : index
    %0 = vector.load %arg1[%c0, %c0_0] : memref<512x37xbf16, #tpu.memory_space<vmem>>, vector<512x37xbf16>
    %c0_1 = arith.constant 0 : index
    %c0_2 = arith.constant 0 : index
    %1 = vector.load %arg8[%c0_1, %c0_2] : memref<37x33xbf16, #tpu.memory_space<vmem>>, vector<37x33xbf16>
    %cst = arith.constant dense<0.000000e+00> : vector<512x33xf32>
    %2 = tpu.matmul %0, %1, %cst {dimension_numbers = #tpu.dot_dimension_numbers<[1], [0], [0], [1], [0, 0, 1, 1], [], []>} : vector<512x37xbf16>, vector<37x33xbf16>, vector<512x33xf32> -> vector<512x33xf32>
    %cst_3 = arith.constant 0.000000e+00 : f32
    %3 = vector.broadcast %cst_3 : f32 to vector<512x33xf32>
    %4 = arith.maximumf %2, %3 : vector<512x33xf32>
    %5 = arith.truncf %4 : vector<512x33xf32> to vector<512x33xbf16>
    %c0_4 = arith.constant 0 : index
    %c0_5 = arith.constant 0 : index
    %6 = vector.load %arg9[%c0_4, %c0_5] : memref<33x33xbf16, #tpu.memory_space<vmem>>, vector<33x33xbf16>
    %cst_6 = arith.constant dense<0.000000e+00> : vector<512x33xf32>
    %7 = tpu.matmul %5, %6, %cst_6 {dimension_numbers = #tpu.dot_dimension_numbers<[1], [0], [0], [1], [0, 0, 1, 1], [], []>} : vector<512x33xbf16>, vector<33x33xbf16>, vector<512x33xf32> -> vector<512x33xf32>
    %cst_7 = arith.constant 0.000000e+00 : f32
    %8 = vector.broadcast %cst_7 : f32 to vector<512x33xf32>
    %9 = arith.maximumf %7, %8 : vector<512x33xf32>
    %10 = arith.truncf %9 : vector<512x33xf32> to vector<512x33xbf16>
    %c0_8 = arith.constant 0 : index
    %c0_9 = arith.constant 0 : index
    %11 = vector.load %arg10[%c0_8, %c0_9] : memref<33x33xbf16, #tpu.memory_space<vmem>>, vector<33x33xbf16>
    %cst_10 = arith.constant dense<0.000000e+00> : vector<512x33xf32>
    %12 = tpu.matmul %10, %11, %cst_10 {dimension_numbers = #tpu.dot_dimension_numbers<[1], [0], [0], [1], [0, 0, 1, 1], [], []>} : vector<512x33xbf16>, vector<33x33xbf16>, vector<512x33xf32> -> vector<512x33xf32>
    %13 = vector.extract_strided_slice %12 {offsets = [0, 32], sizes = [512, 1], strides = [1, 1]} : vector<512x33xf32> to vector<512x1xf32>
    %14 = vector.extract_strided_slice %12 {offsets = [0, 0], sizes = [512, 32], strides = [1, 1]} : vector<512x33xf32> to vector<512x32xf32>
    %15 = arith.truncf %14 : vector<512x32xf32> to vector<512x32xbf16>
    %c0_11 = arith.constant 0 : index
    %c0_12 = arith.constant 0 : index
    %16 = vector.load %arg11[%c0_11, %c0_12] : memref<32x32xbf16, #tpu.memory_space<vmem>>, vector<32x32xbf16>
    %cst_13 = arith.constant dense<0.000000e+00> : vector<512x32xf32>
    %17 = tpu.matmul %15, %16, %cst_13 {dimension_numbers = #tpu.dot_dimension_numbers<[1], [0], [0], [1], [0, 0, 1, 1], [], []>} : vector<512x32xbf16>, vector<32x32xbf16>, vector<512x32xf32> -> vector<512x32xf32>
    %c0_14 = arith.constant 0 : index
    %c0_15 = arith.constant 0 : index
    %18 = vector.load %arg2[%c0_14, %c0_15] : memref<512x32xbf16, #tpu.memory_space<vmem>>, vector<512x32xbf16>
    %19 = arith.extf %18 : vector<512x32xbf16> to vector<512x32xf32>
    %20 = arith.addf %17, %19 : vector<512x32xf32>
    %cst_16 = arith.constant 0.000000e+00 : f32
    %21 = vector.broadcast %cst_16 : f32 to vector<512x32xf32>
    %22 = arith.maximumf %20, %21 : vector<512x32xf32>
    %23 = arith.truncf %22 : vector<512x32xf32> to vector<512x32xbf16>
    %c0_17 = arith.constant 0 : index
    %c0_18 = arith.constant 0 : index
    %24 = vector.load %arg12[%c0_17, %c0_18] : memref<32x3xbf16, #tpu.memory_space<vmem>>, vector<32x3xbf16>
    %cst_19 = arith.constant dense<0.000000e+00> : vector<512x3xf32>
    %25 = tpu.matmul %23, %24, %cst_19 {dimension_numbers = #tpu.dot_dimension_numbers<[1], [0], [0], [1], [0, 0, 1, 1], [], []>} : vector<512x32xbf16>, vector<32x3xbf16>, vector<512x3xf32> -> vector<512x3xf32>
    %c0_20 = arith.constant 0 : index
    %c0_21 = arith.constant 0 : index
    %26 = vector.load %arg13[%c0_20, %c0_21] : memref<1x3xf32, #tpu.memory_space<vmem>>, vector<1x3xf32>
    %27 = vector.broadcast %26 : vector<1x3xf32> to vector<512x3xf32>
    %28 = arith.addf %25, %27 : vector<512x3xf32>
    %cst_22 = arith.constant 0.000000e+00 : f32
    %29 = vector.broadcast %cst_22 : f32 to vector<512x3xf32>
    %30 = arith.subf %29, %28 : vector<512x3xf32>
    %31 = math.exp %30 : vector<512x3xf32>
    %cst_23 = arith.constant 1.000000e+00 : f32
    %32 = vector.broadcast %cst_23 : f32 to vector<512x3xf32>
    %33 = arith.addf %32, %31 : vector<512x3xf32>
    %34 = tpu.reciprocal %33 {approx = true} : vector<512x3xf32> -> vector<512x3xf32>
    %c0_24 = arith.constant 0 : index
    %c0_25 = arith.constant 0 : index
    %35 = vector.load %arg3[%c0_24, %c0_25] : memref<512x2xf32, #tpu.memory_space<vmem>>, vector<512x2xf32>
    %36 = vector.extract_strided_slice %35 {offsets = [0, 0], sizes = [512, 1], strides = [1, 1]} : vector<512x2xf32> to vector<512x1xf32>
    %37 = vector.extract_strided_slice %35 {offsets = [0, 1], sizes = [512, 1], strides = [1, 1]} : vector<512x2xf32> to vector<512x1xf32>
    %cst_26 = arith.constant 0.000000e+00 : f32
    %38 = vector.broadcast %cst_26 : f32 to vector<512x1xf32>
    %39 = arith.maximumf %13, %38 : vector<512x1xf32>
    %40 = arith.mulf %39, %37 : vector<512x1xf32>
    %c0_27 = arith.constant 0 : index
    %c0_28 = arith.constant 0 : index
    %41 = vector.load %arg6[%c0_27, %c0_28] : memref<512x16xf32, #tpu.memory_space<vmem>>, vector<512x16xf32>
    %42 = vector.broadcast %40 : vector<512x1xf32> to vector<512x16xf32>
    %43 = arith.mulf %42, %41 : vector<512x16xf32>
    %44 = arith.truncf %43 : vector<512x16xf32> to vector<512x16xbf16>
    %c0_29 = arith.constant 0 : index
    %c0_30 = arith.constant 0 : index
    %45 = vector.load %arg4[%c0_29, %c0_30] : memref<32x512xbf16, #tpu.memory_space<vmem>>, vector<32x512xbf16>
    %cst_31 = arith.constant dense<0.000000e+00> : vector<32x16xf32>
    %46 = tpu.matmul %45, %44, %cst_31 {dimension_numbers = #tpu.dot_dimension_numbers<[1], [0], [0], [1], [0, 0, 1, 1], [], []>} : vector<32x512xbf16>, vector<512x16xbf16>, vector<32x16xf32> -> vector<32x16xf32>
    %c0_32 = arith.constant 0 : index
    %c0_33 = arith.constant 0 : index
    %47 = vector.load %arg5[%c0_32, %c0_33] : memref<512x32xbf16, #tpu.memory_space<vmem>>, vector<512x32xbf16>
    %48 = arith.truncf %46 : vector<32x16xf32> to vector<32x16xbf16>
    %cst_34 = arith.constant dense<0.000000e+00> : vector<512x16xf32>
    %49 = tpu.matmul %47, %48, %cst_34 {dimension_numbers = #tpu.dot_dimension_numbers<[1], [0], [0], [1], [0, 0, 1, 1], [], []>} : vector<512x32xbf16>, vector<32x16xbf16>, vector<512x16xf32> -> vector<512x16xf32>
    %c0_35 = arith.constant 0 : index
    %c0_36 = arith.constant 0 : index
    %50 = vector.load %arg7[%c0_35, %c0_36] : memref<512x16xf32, #tpu.memory_space<vmem>>, vector<512x16xf32>
    %51 = arith.mulf %49, %50 : vector<512x16xf32>
    %cst_37 = arith.constant dense<0.000000e+00> : vector<512xf32>
    %52 = vector.multi_reduction <add>, %51, %cst_37 [1] : vector<512x16xf32> to vector<512xf32>
    %53 = vector.shape_cast %52 : vector<512xf32> to vector<512x1xf32>
    %cst_38 = arith.constant 0.000000e+00 : f32
    %54 = vector.broadcast %cst_38 : f32 to vector<512x1xf32>
    %55 = arith.subf %54, %53 : vector<512x1xf32>
    %56 = math.exp %55 : vector<512x1xf32>
    %cst_39 = arith.constant 0.000000e+00 : f32
    %57 = vector.broadcast %cst_39 : f32 to vector<512x1xf32>
    %58 = arith.subf %57, %40 : vector<512x1xf32>
    %59 = math.exp %58 : vector<512x1xf32>
    %cst_40 = arith.constant 1.000000e+00 : f32
    %60 = vector.broadcast %cst_40 : f32 to vector<512x1xf32>
    %61 = arith.subf %60, %59 : vector<512x1xf32>
    %62 = arith.mulf %56, %61 : vector<512x1xf32>
    %c0_41 = arith.constant 0 : index
    %c0_42 = arith.constant 0 : index
    %63 = vector.load %arg6[%c0_41, %c0_42] : memref<512x16xf32, #tpu.memory_space<vmem>>, vector<512x16xf32>
    %64 = tpu.concatenate %34, %36, %63 in 1 : vector<512x3xf32>, vector<512x1xf32>, vector<512x16xf32> -> vector<512x20xf32>
    %c0_43 = arith.constant 0 : index
    %c0_44 = arith.constant 0 : index
    %65 = vector.load %arg4[%c0_43, %c0_44] : memref<32x512xbf16, #tpu.memory_space<vmem>>, vector<32x512xbf16>
    %66 = vector.broadcast %62 : vector<512x1xf32> to vector<512x20xf32>
    %67 = arith.mulf %66, %64 : vector<512x20xf32>
    %68 = arith.truncf %67 : vector<512x20xf32> to vector<512x20xbf16>
    %cst_45 = arith.constant dense<0.000000e+00> : vector<32x20xf32>
    %69 = tpu.matmul %65, %68, %cst_45 {dimension_numbers = #tpu.dot_dimension_numbers<[1], [0], [0], [1], [0, 0, 1, 1], [], []>} : vector<32x512xbf16>, vector<512x20xbf16>, vector<32x20xf32> -> vector<32x20xf32>
    %c0_46 = arith.constant 0 : index
    %c0_47 = arith.constant 0 : index
    %70 = vector.load %arg14[%c0_46, %c0_47] : memref<32x20xf32, #tpu.memory_space<vmem>>, vector<32x20xf32>
    tpu.vector_store %arg14[%c0_46, %c0_47], %69 {strides = array<i32>} : memref<32x20xf32, #tpu.memory_space<vmem>>, vector<32x20xf32>,
    return
  }
  func.func @transform_0(%arg0: i32) -> (i32, i32) {
    %c0_i32 = arith.constant 0 : i32
    %c0_i32_0 = arith.constant 0 : i32
    return %arg0, %c0_i32 : i32, i32
  }
  func.func @transform_1(%arg0: i32) -> (i32, i32) {
    %c0_i32 = arith.constant 0 : i32
    %c0_i32_0 = arith.constant 0 : i32
    return %arg0, %c0_i32 : i32, i32
  }
  func.func @transform_2(%arg0: i32) -> (i32, i32) {
    %c0_i32 = arith.constant 0 : i32
    %c0_i32_0 = arith.constant 0 : i32
    return %arg0, %c0_i32 : i32, i32
  }
  func.func @transform_3(%arg0: i32) -> (i32, i32) {
    %c0_i32 = arith.constant 0 : i32
    %c0_i32_0 = arith.constant 0 : i32
    %c0_i32_1 = arith.constant 0 : i32
    return %c0_i32, %c0_i32_0 : i32, i32
  }
  func.func @transform_4(%arg0: i32) -> (i32, i32) {
    %c0_i32 = arith.constant 0 : i32
    %c0_i32_0 = arith.constant 0 : i32
    %c0_i32_1 = arith.constant 0 : i32
    return %c0_i32, %c0_i32_0 : i32, i32
  }
  func.func @transform_5(%arg0: i32) -> (i32, i32) {
    %c0_i32 = arith.constant 0 : i32
    %c0_i32_0 = arith.constant 0 : i32
    %c0_i32_1 = arith.constant 0 : i32
    return %c0_i32, %c0_i32_0 : i32, i32
  }
  func.func @transform_6(%arg0: i32) -> (i32, i32) {
    %c0_i32 = arith.constant 0 : i32
    %c0_i32_0 = arith.constant 0 : i32
    %c0_i32_1 = arith.constant 0 : i32
    return %c0_i32, %c0_i32_0 : i32, i32
  }
  func.func @transform_7(%arg0: i32) -> (i32, i32) {
    %c0_i32 = arith.constant 0 : i32
    %c0_i32_0 = arith.constant 0 : i32
    %c0_i32_1 = arith.constant 0 : i32
    return %c0_i32, %c0_i32_0 : i32, i32
  }
  func.func @transform_8(%arg0: i32) -> (i32, i32) {
    %c0_i32 = arith.constant 0 : i32
    %c0_i32_0 = arith.constant 0 : i32
    %c0_i32_1 = arith.constant 0 : i32
    return %c0_i32, %c0_i32_0 : i32, i32
  }
  func.func @transform_9(%arg0: i32) -> (i32, i32) {
    %c0_i32 = arith.constant 0 : i32
    %c0_i32_0 = arith.constant 0 : i32
    %c0_i32_1 = arith.constant 0 : i32
    return %c0_i32, %c0_i32_0 : i32, i32
  }
  func.func @transform_10(%arg0: i32) -> (i32, i32) {
    %c0_i32 = arith.constant 0 : i32
    %c0_i32_0 = arith.constant 0 : i32
    %c0_i32_1 = arith.constant 0 : i32
    return %c0_i32, %c0_i32_0 : i32, i32
  }
  func.func @transform_11(%arg0: i32) -> (i32, i32) {
    %c0_i32 = arith.constant 0 : i32
    %c0_i32_0 = arith.constant 0 : i32
    %c0_i32_1 = arith.constant 0 : i32
    return %c0_i32, %c0_i32_0 : i32, i32
  }
  func.func @transform_12(%arg0: i32) -> (i32, i32) {
    %c0_i32 = arith.constant 0 : i32
    %c0_i32_0 = arith.constant 0 : i32
    %c0_i32_1 = arith.constant 0 : i32
    return %c0_i32, %c0_i32_0 : i32, i32
  }
  func.func @transform_13(%arg0: i32) -> (i32, i32) {
    %c0_i32 = arith.constant 0 : i32
    %c0_i32_0 = arith.constant 0 : i32
    return %arg0, %c0_i32 : i32, i32
  }
}

</mosaic_0001>

<bundles_post_ra>
// kernel: mul.73
= control target key start
LH: loop header
LB: loop body
LE: loop exit
PB: predicated region body
PF: predicated region fallthrough
CT: control target
= control target key end

     0   :  { %s102_s0 = inlined_call_operand.vmem [shape: f32[64], index: 0, kind: input, shape index: {}]   ;;  %s103_s1 = inlined_call_operand.vmem [shape: f32[64,8], index: 1, kind: output, shape index: {}]  }
   0x1   :  { %v16_v0 = vld [vmem:[%s102_s0] ss:$0 sm:$0xff] }
   0x2   :  { %19 = vbcast.lane.b32.xlu1 %v16_v0, 272  ;;  %6 = vbcast.lane.b32.xlu0 %v16_v0, 256 }
   0x6   :  { %26 = vbcast.lane.b32.xlu1 %v16_v0, 280  ;;  %12 = vbcast.lane.b32.xlu0 %v16_v0, 264 }
   0xa   :  { %40 = vbcast.lane.b32.xlu1 %v16_v0, 296  ;;  %33 = vbcast.lane.b32.xlu0 %v16_v0, 288 }
   0xe   :  { %54 = vbcast.lane.b32.xlu1 %v16_v0, 312  ;;  %47 = vbcast.lane.b32.xlu0 %v16_v0, 304 }
  0x74   :  { %v20_v1 = vpop.permute.xlu1 %19  ;;  %v7_v2 = vpop.permute.xlu0 %6 }
  0x75   :  { %59 = vst [vmem:[%s103_s1 + $0x10] sm:$0xff] %v20_v1  ;;  %8 = vst [vmem:[%s103_s1] sm:$0xff] %v7_v2 }
  0x78   :  { %v27_v3 = vpop.permute.xlu1 %26  ;;  %v13_v4 = vpop.permute.xlu0 %12 }
  0x79   :  { %60 = vst [vmem:[%s103_s1 + $0x18] sm:$0xff] %v27_v3  ;;  %58 = vst [vmem:[%s103_s1 + $0x8] sm:$0xff] %v13_v4 }
  0x7c   :  { %v41_v5 = vpop.permute.xlu1 %40  ;;  %v34_v6 = vpop.permute.xlu0 %33 }
  0x7d   :  { %62 = vst [vmem:[%s103_s1 + $0x28] sm:$0xff] %v41_v5  ;;  %61 = vst [vmem:[%s103_s1 + $0x20] sm:$0xff] %v34_v6 }
  0x80   :  { %v55_v7 = vpop.permute.xlu1 %54  ;;  %v48_v8 = vpop.permute.xlu0 %47 }
  0x81   :  { %64 = vst [vmem:[%s103_s1 + $0x38] sm:$0xff] %v55_v7  ;;  %63 = vst [vmem:[%s103_s1 + $0x30] sm:$0xff] %v48_v8 }

// kernel: custom-call.11
= control target key start
LH: loop header
LB: loop body
LE: loop exit
PB: predicated region body
PF: predicated region fallthrough
CT: control target
= control target key end

     0   :  { %s6_s0 = inlined_call_operand.vmem [shape: u32[64,8], index: 0, kind: output, shape index: {}]  }

// kernel: squeeze.7
= control target key start
LH: loop header
LB: loop body
LE: loop exit
PB: predicated region body
PF: predicated region fallthrough
CT: control target
= control target key end

     0   :  { %s177_s8 = smov 104   ;;  %s178_s9 = smov 112   ;;  %vm8_vm0 = vcmask 64512   ;;  %s332_s0 = inlined_call_operand.vmem [shape: f32[512], index: 0, kind: input, shape index: {}]   ;;  %s333_s1 = inlined_call_operand.vmem [shape: f32[64,8], index: 1, kind: output, shape index: {}]  }
   0x1   :  { %v5_v0 = vld [vmem:[%s332_s0] sm:$0xf]  ;;  %s176_s0 = smov 120   ;;  %s179_s10 = smov 96  }
   0x2   :  { %6 = vst [vmem:[#allocation0] sm:$0xf] %v5_v0  ;;  %s180_s11 = smov 88   ;;  %s181_s12 = smov 80  }
   0x3   :  { %s182_s13 = smov 72   ;;  %s183_s14 = smov 64  }
   0x4   :  { %s184_s19 = smov 56   ;;  %s185_s20 = smov 48  }
   0x5   :  { %s186_s21 = smov 40   ;;  %s187_s22 = smov 32  }
   0x6   :  { %s188_s23 = smov 24   ;;  %s189_s24 = smov 16  }
   0x7   :  { %s190_s25 = smov 8  }
   0x9   :  { %v11_v1 = vld [vmem:[#allocation0] sm:$0xf]  }
   0xa   :  { %v27_v2 = vld [vmem:[#allocation0] sm:$0xf]   ;;  %12 = vrot.lane.b32.xlu0 %v11_v1, %s176_s0 }
   0xb   :  { %28 = vrot.lane.b32.xlu1 %v27_v2, %s177_s8  ;;  %v19_v3 = vld [vmem:[#allocation0] sm:$0xf]  }
   0xc   :  { %v35_v4 = vld [vmem:[#allocation0] sm:$0xf]  }
   0xd   :  { %v43_v5 = vld [vmem:[#allocation0] sm:$0xf]  }
   0xe   :  { %20 = vrot.lane.b32.xlu0 %v19_v3, %s178_s9  ;;  %v51_v6 = vld [vmem:[#allocation0] sm:$0xf]  }
   0xf   :  { %36 = vrot.lane.b32.xlu1 %v35_v4, %s179_s10  ;;  %v59_v7 = vld [vmem:[#allocation0] sm:$0xf]  }
  0x10   :  { %v67_v8 = vld [vmem:[#allocation0] sm:$0xf]  }
  0x11   :  { %v75_v9 = vld [vmem:[#allocation0] sm:$0xf]  }
  0x12   :  { %44 = vrot.lane.b32.xlu0 %v43_v5, %s180_s11  ;;  %v83_v10 = vld [vmem:[#allocation0] sm:$0xf]  }
  0x13   :  { %52 = vrot.lane.b32.xlu1 %v51_v6, %s181_s12  ;;  %v7_v11 = vld [vmem:[#allocation0] sm:$0xf]  }
  0x14   :  { %9 = vst.msk [vmem:[%s333_s1] ss:$16 sm:$0x3] %vm8_vm0, %v7_v11   ;;  %10 = vst.msk [vmem:[%s333_s1] ss:$16 sm:$0xc] %vm8_vm0, %v7_v11  }
  0x15   :  { %v91_v12 = vld [vmem:[#allocation0] sm:$0xf]  }
  0x16   :  { %60 = vrot.lane.b32.xlu0 %v59_v7, %s182_s13  ;;  %v99_v13 = vld [vmem:[#allocation0] sm:$0xf]  }
  0x17   :  { %68 = vrot.lane.b32.xlu1 %v67_v8, %s183_s14  ;;  %v107_v14 = vld [vmem:[#allocation0] sm:$0xf]  }
  0x18   :  { %v115_v15 = vld [vmem:[#allocation0] sm:$0xf]  }
  0x19   :  { %v123_v16 = vld [vmem:[#allocation0] sm:$0xf]  }
  0x1a   :  { %76 = vrot.lane.b32.xlu0 %v75_v9, %s184_s19 }
  0x1b   :  { %84 = vrot.lane.b32.xlu1 %v83_v10, %s185_s20 }
  0x1e   :  { %92 = vrot.lane.b32.xlu0 %v91_v12, %s186_s21 }
  0x1f   :  { %100 = vrot.lane.b32.xlu1 %v99_v13, %s187_s22 }
  0x22   :  { %108 = vrot.lane.b32.xlu0 %v107_v14, %s188_s23 }
  0x23   :  { %116 = vrot.lane.b32.xlu1 %v115_v15, %s189_s24 }
  0x26   :  { %124 = vrot.lane.b32.xlu0 %v123_v16, %s190_s25 }
  0x7c   :  { %v13_v17 = vpop.permute.xlu0 %12  }
  0x7d   :  { %v29_v18 = vpop.permute.xlu1 %28   ;;  %131 = vst.msk [vmem:[%s333_s1 + $0x1] ss:$16 sm:$0x3] %vm8_vm0, %v13_v17   ;;  %132 = vst.msk [vmem:[%s333_s1 + $0x1] ss:$16 sm:$0xc] %vm8_vm0, %v13_v17  }
  0x7e   :  { %135 = vst.msk [vmem:[%s333_s1 + $0x3] ss:$16 sm:$0x3] %vm8_vm0, %v29_v18   ;;  %136 = vst.msk [vmem:[%s333_s1 + $0x3] ss:$16 sm:$0xc] %vm8_vm0, %v29_v18  }
  0x80   :  { %v21_v19 = vpop.permute.xlu0 %20  }
  0x81   :  { %v37_v20 = vpop.permute.xlu1 %36   ;;  %133 = vst.msk [vmem:[%s333_s1 + $0x2] ss:$16 sm:$0x3] %vm8_vm0, %v21_v19   ;;  %134 = vst.msk [vmem:[%s333_s1 + $0x2] ss:$16 sm:$0xc] %vm8_vm0, %v21_v19  }
  0x82   :  { %137 = vst.msk [vmem:[%s333_s1 + $0x4] ss:$16 sm:$0x3] %vm8_vm0, %v37_v20   ;;  %138 = vst.msk [vmem:[%s333_s1 + $0x4] ss:$16 sm:$0xc] %vm8_vm0, %v37_v20  }
  0x84   :  { %v45_v21 = vpop.permute.xlu0 %44  }
  0x85   :  { %v53_v22 = vpop.permute.xlu1 %52   ;;  %139 = vst.msk [vmem:[%s333_s1 + $0x5] ss:$16 sm:$0x3] %vm8_vm0, %v45_v21   ;;  %140 = vst.msk [vmem:[%s333_s1 + $0x5] ss:$16 sm:$0xc] %vm8_vm0, %v45_v21  }
  0x86   :  { %141 = vst.msk [vmem:[%s333_s1 + $0x6] ss:$16 sm:$0x3] %vm8_vm0, %v53_v22   ;;  %142 = vst.msk [vmem:[%s333_s1 + $0x6] ss:$16 sm:$0xc] %vm8_vm0, %v53_v22  }
  0x88   :  { %v61_v23 = vpop.permute.xlu0 %60  }
  0x89   :  { %v69_v24 = vpop.permute.xlu1 %68   ;;  %143 = vst.msk [vmem:[%s333_s1 + $0x7] ss:$16 sm:$0x3] %vm8_vm0, %v61_v23   ;;  %144 = vst.msk [vmem:[%s333_s1 + $0x7] ss:$16 sm:$0xc] %vm8_vm0, %v61_v23  }
  0x8a   :  { %145 = vst.msk [vmem:[%s333_s1 + $0x8] ss:$16 sm:$0x3] %vm8_vm0, %v69_v24   ;;  %146 = vst.msk [vmem:[%s333_s1 + $0x8] ss:$16 sm:$0xc] %vm8_vm0, %v69_v24  }
  0x8c   :  { %v77_v25 = vpop.permute.xlu0 %76  }
  0x8d   :  { %v85_v26 = vpop.permute.xlu1 %84   ;;  %147 = vst.msk [vmem:[%s333_s1 + $0x9] ss:$16 sm:$0x3] %vm8_vm0, %v77_v25   ;;  %148 = vst.msk [vmem:[%s333_s1 + $0x9] ss:$16 sm:$0xc] %vm8_vm0, %v77_v25  }
  0x8e   :  { %149 = vst.msk [vmem:[%s333_s1 + $0xa] ss:$16 sm:$0x3] %vm8_vm0, %v85_v26   ;;  %150 = vst.msk [vmem:[%s333_s1 + $0xa] ss:$16 sm:$0xc] %vm8_vm0, %v85_v26  }
  0x90   :  { %v93_v27 = vpop.permute.xlu0 %92  }
  0x91   :  { %v101_v28 = vpop.permute.xlu1 %100   ;;  %151 = vst.msk [vmem:[%s333_s1 + $0xb] ss:$16 sm:$0x3] %vm8_vm0, %v93_v27   ;;  %152 = vst.msk [vmem:[%s333_s1 + $0xb] ss:$16 sm:$0xc] %vm8_vm0, %v93_v27  }
  0x92   :  { %153 = vst.msk [vmem:[%s333_s1 + $0xc] ss:$16 sm:$0x3] %vm8_vm0, %v101_v28   ;;  %154 = vst.msk [vmem:[%s333_s1 + $0xc] ss:$16 sm:$0xc] %vm8_vm0, %v101_v28  }
  0x94   :  { %v109_v29 = vpop.permute.xlu0 %108  }
  0x95   :  { %v117_v30 = vpop.permute.xlu1 %116   ;;  %155 = vst.msk [vmem:[%s333_s1 + $0xd] ss:$16 sm:$0x3] %vm8_vm0, %v109_v29   ;;  %156 = vst.msk [vmem:[%s333_s1 + $0xd] ss:$16 sm:$0xc] %vm8_vm0, %v109_v29  }
  0x96   :  { %157 = vst.msk [vmem:[%s333_s1 + $0xe] ss:$16 sm:$0x3] %vm8_vm0, %v117_v30   ;;  %158 = vst.msk [vmem:[%s333_s1 + $0xe] ss:$16 sm:$0xc] %vm8_vm0, %v117_v30  }
  0x98   :  { %v125_v31 = vpop.permute.xlu0 %124  }
  0x99   :  { %159 = vst.msk [vmem:[%s333_s1 + $0xf] ss:$16 sm:$0x3] %vm8_vm0, %v125_v31   ;;  %160 = vst.msk [vmem:[%s333_s1 + $0xf] ss:$16 sm:$0xc] %vm8_vm0, %v125_v31  }

// kernel: _nerf_forward.2
= control target key start
LH: loop header
LB: loop body
LE: loop exit
PB: predicated region body
PF: predicated region fallthrough
CT: control target
= control target key end

     0   :  { %s5112_s25 = smov 0   ;;  %s6600_s0 = inlined_call_operand.vmem [shape: bf16[512,37], index: 0, kind: input, shape index: {}]   ;;  %s6601_s1 = inlined_call_operand.vmem [shape: bf16[512,32], index: 1, kind: input, shape index: {}]   ;;  %s6602_s2 = inlined_call_operand.vmem [shape: f32[512,2], index: 2, kind: input, shape index: {}]   ;;  %s6603_s3 = inlined_call_operand.vmem [shape: bf16[32,256], index: 3, kind: input, shape index: {}]   ;;  %s6604_s4 = inlined_call_operand.vmem [shape: bf16[256,32], index: 4, kind: input, shape index: {}]   ;;  %s6605_s5 = inlined_call_operand.vmem [shape: f32[256,8], index: 5, kind: input, shape index: {}]   ;;  %s6606_s6 = inlined_call_operand.vmem [shape: f32[256,8], index: 6, kind: input, shape index: {}]   ;;  %s6607_s7 = inlined_call_operand.vmem [shape: bf16[37,33], index: 7, kind: input, shape index: {}]   ;;  %s6608_s8 = inlined_call_operand.vmem [shape: bf16[33,33], index: 8, kind: input, shape index: {}]   ;;  %s6609_s9 = inlined_call_operand.vmem [shape: bf16[33,33], index: 9, kind: input, shape index: {}]   ;;  %s6610_s10 = inlined_call_operand.vmem [shape: bf16[32,32], index: 10, kind: input, shape index: {}]   ;;  %s6611_s11 = inlined_call_operand.vmem [shape: bf16[32,3], index: 11, kind: input, shape index: {}]   ;;  %s6612_s12 = inlined_call_operand.vmem [shape: f32[1,3], index: 12, kind: input, shape index: {}]   ;;  %s6613_s13 = inlined_call_operand.vmem [shape: f32[64,12], index: 13, kind: output, shape index: {}]  }
   0x1 LB: > { %s4057_s26 = sadd.s32 4294967295, %s5034_s25   ;;  %p4061_p0 = scmp.ge.s32.totalorder %s5034_s25, 1  ;;  %s5034_s25 = sphi %s5112_s25, %s23_s25  }
   0x2   : > { %p410_p1 = scmp.lt.s32.totalorder %s5034_s25, 3 }
   0x4   : > { %p411_p2 = pnand %p4061_p0, %p410_p1 }
   0x6   : > { %414 = sbr.rel (%p411_p2) target bundleno = 1876 (0x754), region = 72 }
   0xb   : > { %v4702_v0 = vld [vmem:[%s6607_s7 + $0x10] ss:$0 sps:$4 sm:$0x77]   ;;  %vm670_vm0 = vcmask 1041408   ;;  %vm671_vm1 = vcmask 1042432   ;;  %v5036_v1 = vmov 65535  }
   0xc   : > { %v672_v2 = vsel %vm670_vm0, 4294967295, %v5036_v1  ;;  %v4703_v4 = vld [vmem:[%s6607_s7 + $0x8] sm:$0xff]   ;;  %s4062_s14 = sshll.u32 %s4057_s26, 5  ;;  %vm621_vm2 = vcmask 302080   ;;  %v4704_v6 = vld [vmem:[%s6607_s7] sm:$0xff]   ;;  %vm955_vm3 = vcmask 1040384  }
   0xd   : > { %v673_v3 = vsel %vm671_vm1, %v672_v2, 0  ;;  %p465_p3 = scmp.lt.s32.totalorder %s4062_s14, 63  ;;  %v4721_v23 = vld [vmem:[%s6608_s8 + $0x10] ss:$0 sps:$4 sm:$0x11]   ;;  %v5037_v24 = vmov 0  }
   0xe   : > { %v675_v5 = vand.u32 %v4702_v0, %v673_v3  ;;  %v957_v25 = vsel %vm955_vm3, 65535, %v5037_v24  ;;  %v4722_v27 = vld [vmem:[%s6609_s9 + $0x10] ss:$0 sps:$4 sm:$0x11]   ;;  %v4723_v28 = vld [vmem:[%s6608_s8 + $0x8] sm:$0xff]   ;;  %v4724_v30 = vld [vmem:[%s6608_s8] sm:$0xff]  }
   0xf   : > { %s6716_s14 = smov (!%p465_p3, %s4062_s14), 63  ;;  %v959_v26 = vand.u32 %v4721_v23, %v957_v25  ;;  %v1239_v29 = vand.u32 %v4722_v27, %v957_v25  ;;  %v4725_v31 = vld [vmem:[%s6609_s9 + $0x8] sm:$0xff]   ;;  %vm906_vm4 = vcmask 269312   ;;  %s5038_s24 = smov 31   ;;  %vm1498_vm5 = vcmask 261120  }
  0x10   : > { %4464 = vmatprep.subr.bf16.mxu0 %v675_v5  ;;  %s4063_s17 = sshll.u32 %s6716_s14, 2  ;;  %s5040_s22 = smov 3   ;;  %vm3072_vm6 = vcmask 64512   ;;  %vm3649_vm7 = vcmask 23552   ;;  %vm3682_vm8 = vcmask 31744   ;;  %vm3972_vm9 = vcmask 97280  }
  0x11   : > { %4465 = vmatpush3.bf16.msra.mxu0 %v675_v5  ;;  %s5139_s20 = scalar_lea.vmem %s6600_s0, %s4063_s17  ;;  %4502 = vmatprep.subr.bf16.mxu1 %v959_v26  ;;  %s5041_s30 = smov 4  }
  0x12   : > { %4466 = vmatprep.subr.bf16.mxu0 %v4703_v4  ;;  %v4705_v7 = vld [vmem:[%s5139_s20] sm:$0xff]   ;;  %v4706_v8 = vld [vmem:[%s5139_s20 + $0x8] sm:$0xff]   ;;  %v4707_v9 = vld [vmem:[%s5139_s20 + $0x10] sm:$0xff]   ;;  %4503 = vmatpush3.bf16.msra.mxu1 %v959_v26  ;;  %s5735_s28 = scalar_lea.vmem %s6601_s1, %s4063_s17  ;;  %s4068_s18 = sshll.u32 %s4057_s26, 2 }
  0x13   : > { %4470 = vmatprep.mubr.msk.bf16.mxu0 %vm621_vm2, %v4705_v7  ;;  %v4708_v10 = vld [vmem:[%s5139_s20 + $0x18] sm:$0xff]   ;;  %v4709_v11 = vld [vmem:[%s5139_s20 + $0x20] sm:$0xff]   ;;  %v4710_v12 = vld [vmem:[%s5139_s20 + $0x28] sm:$0xff]   ;;  %4504 = vmatprep.subr.bf16.mxu1 %v4723_v28  ;;  %p483_p4 = scmp.lt.s32.totalorder %s4068_s18, 7 }
  0x14   : > { %v4711_v13 = vld [vmem:[%s5139_s20 + $0x30] sm:$0xff]   ;;  %v4712_v14 = vld [vmem:[%s5139_s20 + $0x38] sm:$0xff]   ;;  %v4713_v15 = vld [vmem:[%s5139_s20 + $0x40] sm:$0xff]  }
  0x15   : > { %4467 = vmatpush3.bf16.msra.mxu0 %v4703_v4  ;;  %v4714_v16 = vld [vmem:[%s5139_s20 + $0x48] sm:$0xff]   ;;  %v4715_v17 = vld [vmem:[%s5139_s20 + $0x50] sm:$0xff]   ;;  %v4716_v18 = vld [vmem:[%s5139_s20 + $0x58] sm:$0xff]   ;;  %s6718_s18 = smov (!%p483_p4, %s4068_s18), 7 }
  0x16   : > { %4468 = vmatprep.subr.bf16.mxu0 %v4704_v6  ;;  %v4717_v19 = vld [vmem:[%s5139_s20 + $0x60] sm:$0xff]   ;;  %v4718_v20 = vld [vmem:[%s5139_s20 + $0x68] sm:$0xff]   ;;  %v4719_v21 = vld [vmem:[%s5139_s20 + $0x70] sm:$0xff]   ;;  %4505 = vmatpush3.bf16.msra.mxu1 %v4723_v28  ;;  %s4069_s19 = sshll.u32 %s6718_s18, 3 }
  0x17   : > { %v4720_v22 = vld [vmem:[%s5139_s20 + $0x78] sm:$0xff]   ;;  %4506 = vmatprep.subr.bf16.mxu1 %v4724_v30  ;;  %s4067_s20 = sshll.u32 %s6716_s14, 3  ;;  %s486_s21 = scalar_lea.vmem %s6613_s13, %s4069_s19 }
  0x18   : > { %s5211_s23 = scalar_lea.vmem %s6602_s2, %s4067_s20 }
  0x19   : > { %4469 = vmatpush3.bf16.msra.mxu0 %v4704_v6 }
  0x1a   : > { %4540 = vmatprep.subr.bf16.mxu0 %v1239_v29  ;;  %4507 = vmatpush3.bf16.msra.mxu1 %v4724_v30 }
  0x1c   : > { %4471 = vmatmul.mubr.msk.bf16.vlgmr.msra.gmra.mxu0 %vm621_vm2, %v4706_v8 }
  0x1d   : > { %4474 = vmatprep.mubr.msk.bf16.mxu0 %vm621_vm2, %v4707_v9  ;;  %4541 = vmatpush3.bf16.msra.mxu0 %v1239_v29 }
  0x1e   : > { %4542 = vmatprep.subr.bf16.mxu0 %v4725_v31 }
  0x21   : > { %4543 = vmatpush3.bf16.msra.mxu0 %v4725_v31 }
  0x24   : > { %4475 = vmatmul.mubr.msk.bf16.gmra.mxu0 %vm621_vm2, %v4708_v10 }
  0x25   : > { %4478 = vmatprep.mubr.msk.bf16.mxu0 %vm621_vm2, %v4709_v11 }
  0x2c   : > { %4479 = vmatmul.mubr.msk.bf16.gmra.mxu0 %vm621_vm2, %v4710_v12 }
  0x2d   : > { %4482 = vmatprep.mubr.msk.bf16.mxu0 %vm621_vm2, %v4711_v13 }
  0x34   : > { %4483 = vmatmul.mubr.msk.bf16.gmra.mxu0 %vm621_vm2, %v4712_v14 }
  0x35   : > { %4486 = vmatprep.mubr.msk.bf16.mxu0 %vm621_vm2, %v4713_v15 }
  0x3c   : > { %4487 = vmatmul.mubr.msk.bf16.gmra.mxu0 %vm621_vm2, %v4714_v16 }
  0x3d   : > { %4490 = vmatprep.mubr.msk.bf16.mxu0 %vm621_vm2, %v4715_v17 }
  0x44   : > { %4491 = vmatmul.mubr.msk.bf16.gmra.mxu0 %vm621_vm2, %v4716_v18 }
  0x45   : > { %4494 = vmatprep.mubr.msk.bf16.mxu0 %vm621_vm2, %v4717_v19 }
  0x4c   : > { %4495 = vmatmul.mubr.msk.bf16.gmra.mxu0 %vm621_vm2, %v4718_v20 }
  0x4d   : > { %4498 = vmatprep.mubr.msk.bf16.mxu0 %vm621_vm2, %v4719_v21 }
  0x54   : > { %4499 = vmatmul.mubr.msk.bf16.gmra.mxu0 %vm621_vm2, %v4720_v22 }
  0xdc   : > { %v4472_v32 = vpop.f32.mrf.mxu0 }
  0xdd   : > { %v840_v39 = vmax.f32 %v4472_v32, 0.0 }
  0xde   : > { %v711_v33 = vpop.f32.mrf.mxu0 }
  0xdf   : > { %v838_v37 = vmax.f32 %v711_v33, 0.0 }
  0xe0   : > { %v4473_v34 = vpop.f32.mrf.mxu0 }
  0xe1   : > { %v841_v35 = vmax.f32 %v4473_v34, 0.0 }
  0xe2   : > { %v714_v36 = vpop.f32.mrf.mxu0 }
  0xe3   : > { %v839_v38 = vmax.f32 %v714_v36, 0.0  ;;  %v871_v42 = vpack.c.bf16 %v841_v35, %v840_v39 }
  0xe4   : > { %v4476_v40 = vpop.f32.mrf.mxu0 }
  0xe5   : > { %v870_v41 = vpack.c.bf16 %v839_v38, %v838_v37  ;;  %v844_v49 = vmax.f32 %v4476_v40, 0.0 }
  0xe6   : > { %v727_v43 = vpop.f32.mrf.mxu0 }
  0xe7   : > { %4508 = vmatprep.mubr.msk.bf16.mxu1 %vm906_vm4, %v870_v41  ;;  %v842_v47 = vmax.f32 %v727_v43, 0.0 }
  0xe8   : > { %v4477_v44 = vpop.f32.mrf.mxu0  ;;  %4509 = vmatmul.mubr.msk.bf16.vlgmr.msra.gmra.mxu1 %vm906_vm4, %v871_v42 }
  0xe9   : > { %v845_v45 = vmax.f32 %v4477_v44, 0.0 }
  0xea   : > { %v730_v46 = vpop.f32.mrf.mxu0 }
  0xeb   : > { %v843_v48 = vmax.f32 %v730_v46, 0.0  ;;  %v873_v52 = vpack.c.bf16 %v845_v45, %v844_v49  ;;  %v5214_v49 = vld [vmem:[%s5211_s23 + $0xf0] sm:$0xff] }
  0xec   : > { %v4480_v50 = vpop.f32.mrf.mxu0  ;;  %2304 = vrot.lane.b32.xlu0 %v5214_v49, %s5038_s24 }
  0xed   : > { %v872_v51 = vpack.c.bf16 %v843_v48, %v842_v47  ;;  %v848_v59 = vmax.f32 %v4480_v50, 0.0  ;;  %v4726_v48 = vld [vmem:[%s6609_s9] sm:$0xff]   ;;  %v5219_v50 = vld [vmem:[%s5211_s23 + $0xf8] sm:$0xff] }
  0xee   : > { %v743_v53 = vpop.f32.mrf.mxu0  ;;  %4544 = vmatprep.subr.bf16.mxu0 %v4726_v48 }
  0xef   : > { %4512 = vmatprep.mubr.msk.bf16.mxu1 %vm906_vm4, %v872_v51  ;;  %v846_v57 = vmax.f32 %v743_v53, 0.0  ;;  %4545 = vmatpush3.bf16.msra.mxu0 %v4726_v48  ;;  %v5222_v51 = vld [vmem:[%s5211_s23 + $0x70] sm:$0xff]  ;;  %v5232_v53 = vld [vmem:[%s5211_s23 + $0x78] sm:$0xff] }
  0xf0   : > { %v4481_v54 = vpop.f32.mrf.mxu0  ;;  %4513 = vmatmul.mubr.msk.bf16.gmra.mxu1 %vm906_vm4, %v873_v52  ;;  %2306 = vrot.lane.b32.xlu0 %v5219_v50, %s5038_s24  ;;  %v5229_v52 = vld [vmem:[%s5211_s23 + $0xe0] sm:$0xff] }
  0xf1   : > { %v849_v55 = vmax.f32 %v4481_v54, 0.0  ;;  %2272 = vrot.lane.b32.xlu1 %v5222_v51, %s5038_s24  ;;  %v5239_v54 = vld [vmem:[%s5211_s23 + $0xe8] sm:$0xff] }
  0xf2   : > { %v746_v56 = vpop.f32.mrf.mxu0 }
  0xf3   : > { %v847_v58 = vmax.f32 %v746_v56, 0.0  ;;  %v875_v62 = vpack.c.bf16 %v849_v55, %v848_v59  ;;  %v5242_v55 = vld [vmem:[%s5211_s23 + $0x60] sm:$0xff]  ;;  %v5249_v56 = vld [vmem:[%s5211_s23 + $0x68] sm:$0xff]  ;;  %v5262_v59 = vld [vmem:[%s5211_s23 + $0x50] sm:$0xff] }
  0xf4   : > { %v4484_v60 = vpop.f32.mrf.mxu0  ;;  %2300 = vrot.lane.b32.xlu0 %v5229_v52, %s5038_s24 }
  0xf5   : > { %v874_v61 = vpack.c.bf16 %v847_v58, %v846_v57  ;;  %v852_v5 = vmax.f32 %v4484_v60, 0.0  ;;  %2274 = vrot.lane.b32.xlu1 %v5232_v53, %s5038_s24  ;;  %v5252_v57 = vld [vmem:[%s5211_s23 + $0xd0] sm:$0xff]  ;;  %v5259_v58 = vld [vmem:[%s5211_s23 + $0xd8] sm:$0xff] }
  0xf6   : > { %v759_v63 = vpop.f32.mrf.mxu0  ;;  %v5269_v60 = vld [vmem:[%s5211_s23 + $0x58] sm:$0xff] }
  0xf7   : > { %4516 = vmatprep.mubr.msk.bf16.mxu1 %vm906_vm4, %v874_v61  ;;  %v850_v3 = vmax.f32 %v759_v63, 0.0  ;;  %v5272_v61 = vld [vmem:[%s5211_s23 + $0xc0] sm:$0xff] }
  0xf8   : > { %v4485_v0 = vpop.f32.mrf.mxu0  ;;  %4517 = vmatmul.mubr.msk.bf16.gmra.mxu1 %vm906_vm4, %v875_v62  ;;  %2268 = vrot.lane.b32.xlu0 %v5242_v55, %s5038_s24  ;;  %v5279_v62 = vld [vmem:[%s5211_s23 + $0xc8] sm:$0xff]  ;;  %v5282_v63 = vld [vmem:[%s5211_s23 + $0x40] sm:$0xff] }
  0xf9   : > { %v853_v1 = vmax.f32 %v4485_v0, 0.0  ;;  %2302 = vrot.lane.b32.xlu1 %v5239_v54, %s5038_s24  ;;  %v5289_v0 = vld [vmem:[%s5211_s23 + $0x48] sm:$0xff] }
  0xfa   : > { %v762_v2 = vpop.f32.mrf.mxu0 }
  0xfb   : > { %v851_v4 = vmax.f32 %v762_v2, 0.0  ;;  %v877_v8 = vpack.c.bf16 %v853_v1, %v852_v5  ;;  %v5292_v1 = vld [vmem:[%s5211_s23 + $0xb0] sm:$0xff]  ;;  %v5299_v2 = vld [vmem:[%s5211_s23 + $0xb8] sm:$0xff]  ;;  %v5312_v5 = vld [vmem:[%s5211_s23 + $0xa0] sm:$0xff] }
  0xfc   : > { %v4488_v6 = vpop.f32.mrf.mxu0  ;;  %2296 = vrot.lane.b32.xlu0 %v5252_v57, %s5038_s24 }
  0xfd   : > { %v876_v7 = vpack.c.bf16 %v851_v4, %v850_v3  ;;  %v856_v15 = vmax.f32 %v4488_v6, 0.0  ;;  %2270 = vrot.lane.b32.xlu1 %v5249_v56, %s5038_s24  ;;  %v5302_v3 = vld [vmem:[%s5211_s23 + $0x30] sm:$0xff]  ;;  %v5309_v4 = vld [vmem:[%s5211_s23 + $0x38] sm:$0xff]  ;;  %v5319_v6 = vld [vmem:[%s5211_s23 + $0xa8] sm:$0xff] }
  0xfe   : > { %v775_v9 = vpop.f32.mrf.mxu0 }
  0xff   : > { %4520 = vmatprep.mubr.msk.bf16.mxu1 %vm906_vm4, %v876_v7  ;;  %v854_v13 = vmax.f32 %v775_v9, 0.0  ;;  %v5322_v7 = vld [vmem:[%s5211_s23 + $0x20] sm:$0xff]  ;;  %v2166_v9 = vld [vmem:[%s5211_s23 + $0x90] sm:$0xff] }
 0x100   : > { %v4489_v10 = vpop.f32.mrf.mxu0  ;;  %4521 = vmatmul.mubr.msk.bf16.gmra.mxu1 %vm906_vm4, %v877_v8  ;;  %2264 = vrot.lane.b32.xlu0 %v5262_v59, %s5038_s24  ;;  %v5329_v8 = vld [vmem:[%s5211_s23 + $0x28] sm:$0xff] }
 0x101   : > { %v857_v11 = vmax.f32 %v4489_v10, 0.0  ;;  %2298 = vrot.lane.b32.xlu1 %v5259_v58, %s5038_s24  ;;  %v2167_v10 = vld [vmem:[%s5211_s23 + $0x98] sm:$0xff] }
 0x102   : > { %v778_v12 = vpop.f32.mrf.mxu0 }
 0x103   : > { %v855_v14 = vmax.f32 %v778_v12, 0.0  ;;  %v879_v18 = vpack.c.bf16 %v857_v11, %v856_v15  ;;  %v2150_v11 = vld [vmem:[%s5211_s23 + $0x10] sm:$0xff]  ;;  %v2151_v12 = vld [vmem:[%s5211_s23 + $0x18] sm:$0xff]  ;;  %v2148_v15 = vld [vmem:[%s5211_s23] sm:$0xff] }
 0x104   : > { %v4492_v16 = vpop.f32.mrf.mxu0  ;;  %2292 = vrot.lane.b32.xlu0 %v5272_v61, %s5038_s24 }
 0x105   : > { %v878_v17 = vpack.c.bf16 %v855_v14, %v854_v13  ;;  %v860_v25 = vmax.f32 %v4492_v16, 0.0  ;;  %2266 = vrot.lane.b32.xlu1 %v5269_v60, %s5038_s24  ;;  %v2164_v13 = vld [vmem:[%s5211_s23 + $0x80] sm:$0xff]  ;;  %v2165_v14 = vld [vmem:[%s5211_s23 + $0x88] sm:$0xff] }
 0x106   : > { %v791_v19 = vpop.f32.mrf.mxu0  ;;  %v2149_v16 = vld [vmem:[%s5211_s23 + $0x8] sm:$0xff] }
 0x107   : > { %4524 = vmatprep.mubr.msk.bf16.mxu1 %vm906_vm4, %v878_v17  ;;  %v858_v23 = vmax.f32 %v791_v19, 0.0 }
 0x108   : > { %v4493_v20 = vpop.f32.mrf.mxu0  ;;  %4525 = vmatmul.mubr.msk.bf16.gmra.mxu1 %vm906_vm4, %v879_v18  ;;  %2260 = vrot.lane.b32.xlu0 %v5282_v63, %s5038_s24 }
 0x109   : > { %v861_v21 = vmax.f32 %v4493_v20, 0.0  ;;  %2294 = vrot.lane.b32.xlu1 %v5279_v62, %s5038_s24 }
 0x10a   : > { %v794_v22 = vpop.f32.mrf.mxu0 }
 0x10b   : > { %v859_v24 = vmax.f32 %v794_v22, 0.0  ;;  %v881_v28 = vpack.c.bf16 %v861_v21, %v860_v25 }
 0x10c   : > { %v4496_v26 = vpop.f32.mrf.mxu0  ;;  %2288 = vrot.lane.b32.xlu0 %v5292_v1, %s5038_s24 }
 0x10d   : > { %v880_v27 = vpack.c.bf16 %v859_v24, %v858_v23  ;;  %v864_v35 = vmax.f32 %v4496_v26, 0.0  ;;  %2262 = vrot.lane.b32.xlu1 %v5289_v0, %s5038_s24 }
 0x10e   : > { %v807_v29 = vpop.f32.mrf.mxu0 }
 0x10f   : > { %4528 = vmatprep.mubr.msk.bf16.mxu1 %vm906_vm4, %v880_v27  ;;  %v862_v33 = vmax.f32 %v807_v29, 0.0 }
 0x110   : > { %v4497_v30 = vpop.f32.mrf.mxu0  ;;  %4529 = vmatmul.mubr.msk.bf16.gmra.mxu1 %vm906_vm4, %v881_v28  ;;  %2256 = vrot.lane.b32.xlu0 %v5302_v3, %s5038_s24 }
 0x111   : > { %v865_v31 = vmax.f32 %v4497_v30, 0.0  ;;  %2290 = vrot.lane.b32.xlu1 %v5299_v2, %s5038_s24 }
 0x112   : > { %v810_v32 = vpop.f32.mrf.mxu0 }
 0x113   : > { %v863_v34 = vmax.f32 %v810_v32, 0.0  ;;  %v883_v38 = vpack.c.bf16 %v865_v31, %v864_v35 }
 0x114   : > { %v4500_v36 = vpop.f32.mrf.mxu0  ;;  %2284 = vrot.lane.b32.xlu0 %v5312_v5, %s5038_s24 }
 0x115   : > { %v882_v37 = vpack.c.bf16 %v863_v34, %v862_v33  ;;  %v868_v45 = vmax.f32 %v4500_v36, 0.0  ;;  %2258 = vrot.lane.b32.xlu1 %v5309_v4, %s5038_s24 }
 0x116   : > { %v823_v39 = vpop.f32.mrf.mxu0 }
 0x117   : > { %4532 = vmatprep.mubr.msk.bf16.mxu1 %vm906_vm4, %v882_v37  ;;  %v866_v43 = vmax.f32 %v823_v39, 0.0 }
 0x118   : > { %v4501_v40 = vpop.f32.mrf.mxu0  ;;  %4533 = vmatmul.mubr.msk.bf16.gmra.mxu1 %vm906_vm4, %v883_v38  ;;  %2252 = vrot.lane.b32.xlu0 %v5322_v7, %s5038_s24 }
 0x119   : > { %v869_v41 = vmax.f32 %v4501_v40, 0.0  ;;  %2286 = vrot.lane.b32.xlu1 %v5319_v6, %s5038_s24 }
 0x11a   : > { %v826_v42 = vpop.f32.mrf.mxu0 }
 0x11b   : > { %v867_v44 = vmax.f32 %v826_v42, 0.0  ;;  %v885_v47 = vpack.c.bf16 %v869_v41, %v868_v45 }
 0x11c   : > { %2280 = vrot.lane.b32.xlu0 %v2166_v9, %s5038_s24 }
 0x11d   : > { %v884_v46 = vpack.c.bf16 %v867_v44, %v866_v43  ;;  %2254 = vrot.lane.b32.xlu1 %v5329_v8, %s5038_s24 }
 0x11f   : > { %4536 = vmatprep.mubr.msk.bf16.mxu1 %vm906_vm4, %v884_v46 }
 0x120   : > { %4537 = vmatmul.mubr.msk.bf16.gmra.mxu1 %vm906_vm4, %v885_v47  ;;  %2248 = vrot.lane.b32.xlu0 %v2150_v11, %s5038_s24 }
 0x121   : > { %2282 = vrot.lane.b32.xlu1 %v2167_v10, %s5038_s24 }
 0x124   : > { %2276 = vrot.lane.b32.xlu0 %v2164_v13, %s5038_s24 }
 0x125   : > { %2250 = vrot.lane.b32.xlu1 %v2151_v12, %s5038_s24 }
 0x128   : > { %2244 = vrot.lane.b32.xlu0 %v2148_v15, %s5038_s24 }
 0x129   : > { %2278 = vrot.lane.b32.xlu1 %v2165_v14, %s5038_s24 }
 0x12d   : > { %2246 = vrot.lane.b32.xlu1 %v2149_v16, %s5038_s24 }
 0x1a8   : > { %v4510_v17 = vpop.f32.mrf.mxu1 }
 0x1a9   : > { %v1124_v24 = vmax.f32 %v4510_v17, 0.0 }
 0x1aa   : > { %v995_v18 = vpop.f32.mrf.mxu1 }
 0x1ab   : > { %v1122_v22 = vmax.f32 %v995_v18, 0.0 }
 0x1ac   : > { %v4511_v19 = vpop.f32.mrf.mxu1 }
 0x1ad   : > { %v1125_v20 = vmax.f32 %v4511_v19, 0.0 }
 0x1ae   : > { %v998_v21 = vpop.f32.mrf.mxu1 }
 0x1af   : > { %v1123_v23 = vmax.f32 %v998_v21, 0.0  ;;  %v1155_v27 = vpack.c.bf16 %v1125_v20, %v1124_v24 }
 0x1b0   : > { %v4514_v25 = vpop.f32.mrf.mxu1 }
 0x1b1   : > { %v1154_v26 = vpack.c.bf16 %v1123_v23, %v1122_v22  ;;  %v1128_v34 = vmax.f32 %v4514_v25, 0.0 }
 0x1b2   : > { %v1011_v28 = vpop.f32.mrf.mxu1 }
 0x1b3   : > { %4546 = vmatprep.mubr.msk.bf16.mxu0 %vm906_vm4, %v1154_v26  ;;  %v1126_v32 = vmax.f32 %v1011_v28, 0.0 }
 0x1b4   : > { %v4515_v29 = vpop.f32.mrf.mxu1  ;;  %4547 = vmatmul.mubr.msk.bf16.vlgmr.msra.gmra.mxu0 %vm906_vm4, %v1155_v27 }
 0x1b5   : > { %v1129_v30 = vmax.f32 %v4515_v29, 0.0 }
 0x1b6   : > { %v1014_v31 = vpop.f32.mrf.mxu1 }
 0x1b7   : > { %v1127_v33 = vmax.f32 %v1014_v31, 0.0  ;;  %v1157_v37 = vpack.c.bf16 %v1129_v30, %v1128_v34 }
 0x1b8   : > { %v4518_v35 = vpop.f32.mrf.mxu1 }
 0x1b9   : > { %v1156_v36 = vpack.c.bf16 %v1127_v33, %v1126_v32  ;;  %v1132_v44 = vmax.f32 %v4518_v35, 0.0 }
 0x1ba   : > { %v1027_v38 = vpop.f32.mrf.mxu1 }
 0x1bb   : > { %4550 = vmatprep.mubr.msk.bf16.mxu0 %vm906_vm4, %v1156_v36  ;;  %v1130_v42 = vmax.f32 %v1027_v38, 0.0 }
 0x1bc   : > { %v4519_v39 = vpop.f32.mrf.mxu1  ;;  %4551 = vmatmul.mubr.msk.bf16.gmra.mxu0 %vm906_vm4, %v1157_v37 }
 0x1bd   : > { %v1133_v40 = vmax.f32 %v4519_v39, 0.0 }
 0x1be   : > { %v1030_v41 = vpop.f32.mrf.mxu1 }
 0x1bf   : > { %v1131_v43 = vmax.f32 %v1030_v41, 0.0  ;;  %v1159_v47 = vpack.c.bf16 %v1133_v40, %v1132_v44 }
 0x1c0   : > { %v4522_v45 = vpop.f32.mrf.mxu1 }
 0x1c1   : > { %v1158_v46 = vpack.c.bf16 %v1131_v43, %v1130_v42  ;;  %v1136_v14 = vmax.f32 %v4522_v45, 0.0 }
 0x1c2   : > { %v1043_v48 = vpop.f32.mrf.mxu1 }
 0x1c3   : > { %4554 = vmatprep.mubr.msk.bf16.mxu0 %vm906_vm4, %v1158_v46  ;;  %v1134_v12 = vmax.f32 %v1043_v48, 0.0 }
 0x1c4   : > { %v4523_v9 = vpop.f32.mrf.mxu1  ;;  %4555 = vmatmul.mubr.msk.bf16.gmra.mxu0 %vm906_vm4, %v1159_v47 }
 0x1c5   : > { %v1137_v10 = vmax.f32 %v4523_v9, 0.0 }
 0x1c6   : > { %v1046_v11 = vpop.f32.mrf.mxu1 }
 0x1c7   : > { %v1135_v13 = vmax.f32 %v1046_v11, 0.0  ;;  %v1161_v17 = vpack.c.bf16 %v1137_v10, %v1136_v14 }
 0x1c8   : > { %v4526_v15 = vpop.f32.mrf.mxu1 }
 0x1c9   : > { %v1160_v16 = vpack.c.bf16 %v1135_v13, %v1134_v12  ;;  %v1140_v24 = vmax.f32 %v4526_v15, 0.0 }
 0x1ca   : > { %v1059_v18 = vpop.f32.mrf.mxu1 }
 0x1cb   : > { %4558 = vmatprep.mubr.msk.bf16.mxu0 %vm906_vm4, %v1160_v16  ;;  %v1138_v22 = vmax.f32 %v1059_v18, 0.0  ;;  %v4728_v18 = vld [vmem:[%s6610_s10] sm:$0xff]  }
 0x1cc   : > { %v4527_v19 = vpop.f32.mrf.mxu1  ;;  %4559 = vmatmul.mubr.msk.bf16.gmra.mxu0 %vm906_vm4, %v1161_v17  ;;  %v4727_v17 = vld [vmem:[%s6610_s10 + $0x8] sm:$0xff]  }
 0x1cd   : > { %v1141_v20 = vmax.f32 %v4527_v19, 0.0  ;;  %4578 = vmatprep.subr.bf16.mxu1 %v4727_v17  ;;  %v5039_v19 = vmov 32  }
 0x1ce   : > { %v1062_v21 = vpop.f32.mrf.mxu1  ;;  %4579 = vmatpush3.bf16.msra.mxu1 %v4727_v17  ;;  %4700 = vset.pattern.permute.xlu1 %v5039_v19 }
 0x1cf   : > { %v1139_v23 = vmax.f32 %v1062_v21, 0.0  ;;  %v1163_v27 = vpack.c.bf16 %v1141_v20, %v1140_v24  ;;  %4580 = vmatprep.subr.bf16.mxu1 %v4728_v18  ;;  %4701 = vset.pattern.permute.xlu0 %v5039_v19  ;;  %v5371_v20 = vpop.permute.xlu0 %2304  ;;  %v2273_v21 = vpop.permute.xlu1 %2272 }
 0x1d0   : > { %v4530_v25 = vpop.f32.mrf.mxu1 }
 0x1d1   : > { %v1162_v26 = vpack.c.bf16 %v1139_v23, %v1138_v22  ;;  %v1144_v34 = vmax.f32 %v4530_v25, 0.0 }
 0x1d2   : > { %v1075_v28 = vpop.f32.mrf.mxu1  ;;  %4581 = vmatpush3.bf16.msra.mxu1 %v4728_v18 }
 0x1d3   : > { %4562 = vmatprep.mubr.msk.bf16.mxu0 %vm906_vm4, %v1162_v26  ;;  %v1142_v32 = vmax.f32 %v1075_v28, 0.0  ;;  %v5373_v22 = vpop.permute.xlu0 %2306  ;;  %v2275_v23 = vpop.permute.xlu1 %2274 }
 0x1d4   : > { %v4531_v29 = vpop.f32.mrf.mxu1  ;;  %4563 = vmatmul.mubr.msk.bf16.gmra.mxu0 %vm906_vm4, %v1163_v27 }
 0x1d5   : > { %v1145_v30 = vmax.f32 %v4531_v29, 0.0 }
 0x1d6   : > { %v1078_v31 = vpop.f32.mrf.mxu1 }
 0x1d7   : > { %v1143_v33 = vmax.f32 %v1078_v31, 0.0  ;;  %v1165_v37 = vpack.c.bf16 %v1145_v30, %v1144_v34  ;;  %v5375_v24 = vpop.permute.xlu0 %2300  ;;  %v5377_v25 = vpop.permute.xlu1 %2302 }
 0x1d8   : > { %v4534_v35 = vpop.f32.mrf.mxu1 }
 0x1d9   : > { %v1164_v36 = vpack.c.bf16 %v1143_v33, %v1142_v32  ;;  %v1148_v44 = vmax.f32 %v4534_v35, 0.0 }
 0x1da   : > { %v1091_v38 = vpop.f32.mrf.mxu1 }
 0x1db   : > { %4566 = vmatprep.mubr.msk.bf16.mxu0 %vm906_vm4, %v1164_v36  ;;  %v1146_v42 = vmax.f32 %v1091_v38, 0.0  ;;  %v2269_v26 = vpop.permute.xlu0 %2268  ;;  %v5383_v29 = vpop.permute.xlu1 %2270 }
 0x1dc   : > { %v4535_v39 = vpop.f32.mrf.mxu1  ;;  %4567 = vmatmul.mubr.msk.bf16.gmra.mxu0 %vm906_vm4, %v1165_v37 }
 0x1dd   : > { %v1149_v40 = vmax.f32 %v4535_v39, 0.0 }
 0x1de   : > { %v1094_v41 = vpop.f32.mrf.mxu1 }
 0x1df   : > { %v1147_v43 = vmax.f32 %v1094_v41, 0.0  ;;  %v1167_v47 = vpack.c.bf16 %v1149_v40, %v1148_v44  ;;  %v5385_v30 = vpop.permute.xlu0 %2296  ;;  %v5397_v36 = vpop.permute.xlu1 %2298 }
 0x1e0   : > { %v4538_v45 = vpop.f32.mrf.mxu1 }
 0x1e1   : > { %v1166_v46 = vpack.c.bf16 %v1147_v43, %v1146_v42  ;;  %v1152_v14 = vmax.f32 %v4538_v45, 0.0 }
 0x1e2   : > { %v1107_v48 = vpop.f32.mrf.mxu1 }
 0x1e3   : > { %4570 = vmatprep.mubr.msk.bf16.mxu0 %vm906_vm4, %v1166_v46  ;;  %v1150_v12 = vmax.f32 %v1107_v48, 0.0  ;;  %v2265_v37 = vpop.permute.xlu0 %2264  ;;  %v2267_v41 = vpop.permute.xlu1 %2266 }
 0x1e4   : > { %v4539_v9 = vpop.f32.mrf.mxu1  ;;  %4571 = vmatmul.mubr.msk.bf16.gmra.mxu0 %vm906_vm4, %v1167_v47 }
 0x1e5   : > { %v1153_v10 = vmax.f32 %v4539_v9, 0.0 }
 0x1e6   : > { %v1110_v11 = vpop.f32.mrf.mxu1 }
 0x1e7   : > { %v1151_v13 = vmax.f32 %v1110_v11, 0.0  ;;  %v1169_v16 = vpack.c.bf16 %v1153_v10, %v1152_v14  ;;  %v5409_v43 = vpop.permute.xlu0 %2292  ;;  %v5417_v11 = vpop.permute.xlu1 %2294 }
 0x1e9   : > { %v1168_v15 = vpack.c.bf16 %v1151_v13, %v1150_v12 }
 0x1eb   : > { %4574 = vmatprep.mubr.msk.bf16.mxu0 %vm906_vm4, %v1168_v15  ;;  %v2261_v12 = vpop.permute.xlu0 %2260 }
 0x1ec   : > { %4575 = vmatmul.mubr.msk.bf16.gmra.mxu0 %vm906_vm4, %v1169_v16 }
 0x274   : > { %v5379_v27 = vpop.f32.mrf.mxu0 }
 0x276   : > { %v5381_v28 = vpop.f32.mrf.mxu0 }
 0x278   : > { %v5387_v31 = vpop.f32.mrf.mxu0 }
 0x279   : > { %v1403_v34 = vpack.c.bf16 %v5387_v31, %v5379_v27 }
 0x27a   : > { %v5389_v32 = vpop.f32.mrf.mxu0 }
 0x27b   : > { %v1402_v33 = vpack.c.bf16 %v5389_v32, %v5381_v28 }
 0x27c   : > { %v5395_v35 = vpop.f32.mrf.mxu0 }
 0x27d   : > { %4582 = vmatprep.mubr.msk.bf16.mxu1 %vm1498_vm5, %v1402_v33 }
 0x27e   : > { %v5400_v38 = vpop.f32.mrf.mxu0  ;;  %4583 = vmatmul.mubr.msk.bf16.vlgmr.msra.gmra.mxu1 %vm1498_vm5, %v1403_v34 }
 0x280   : > { %v5403_v39 = vpop.f32.mrf.mxu0 }
 0x281   : > { %v1405_v44 = vpack.c.bf16 %v5403_v39, %v5395_v35 }
 0x282   : > { %v5405_v40 = vpop.f32.mrf.mxu0 }
 0x283   : > { %v1404_v42 = vpack.c.bf16 %v5405_v40, %v5400_v38 }
 0x284   : > { %v4556_v45 = vpop.f32.mrf.mxu0 }
 0x285   : > { %v2190_v46 = vmax.f32 %v4556_v45, 0.0  ;;  %4586 = vmatprep.mubr.msk.bf16.mxu1 %vm1498_vm5, %v1404_v42  ;;  %v2263_v42 = vpop.permute.xlu1 %2262 }
 0x286   : > { %v1307_v47 = vpop.f32.mrf.mxu0  ;;  %4587 = vmatmul.mubr.msk.bf16.gmra.mxu1 %vm1498_vm5, %v1405_v44 }
 0x287   : > { %v5415_v48 = vmul.f32 %v2265_v37, %v2190_v46  ;;  %v2188_v9 = vmax.f32 %v1307_v47, 0.0 }
 0x288   : > { %v4557_v10 = vpop.f32.mrf.mxu0 }
 0x289   : > { %6628 = vst [vmem:[#allocation2_spill] sm:$0xff] %v5415_v48  ;;  %2456 = vperm.xlu1 %4700, %v5415_v48   ;;  %v2191_v13 = vmax.f32 %v4557_v10, 0.0  ;;  %v5420_v15 = vmul.f32 %v2261_v12, %v2188_v9  ;;  %v1407_v17 = vpack.c.bf16 %v4557_v10, %v4556_v45 }
 0x28a   : > { %v1310_v14 = vpop.f32.mrf.mxu0 }
 0x28b   : > { %6629 = vst [vmem:[#allocation3_spill] sm:$0xff] %v5420_v15  ;;  %v1406_v16 = vpack.c.bf16 %v1310_v14, %v1307_v47  ;;  %v5422_v18 = vmul.f32 %v2267_v41, %v2191_v13  ;;  %v2189_v19 = vmax.f32 %v1310_v14, 0.0 }
 0x28c   : > { %v4560_v33 = vpop.f32.mrf.mxu0 }
 0x28d   : > { %6630 = vst [vmem:[#allocation4_spill] sm:$0xff] %v5422_v18  ;;  %v2194_v34 = vmax.f32 %v4560_v33, 0.0  ;;  %2446 = vperm.xlu1 %4700, %v5420_v15   ;;  %4590 = vmatprep.mubr.msk.bf16.mxu1 %vm1498_vm5, %v1406_v16  ;;  %v5430_v47 = vmul.f32 %v2263_v42, %v2189_v19 }
 0x28e   : > { %2461 = vperm.xlu0 %4701, %v5422_v18   ;;  %v1323_v37 = vpop.f32.mrf.mxu0  ;;  %4591 = vmatmul.mubr.msk.bf16.gmra.mxu1 %vm1498_vm5, %v1407_v17 }
 0x28f   : > { %v5428_v44 = vmul.f32 %v2273_v21, %v2194_v34  ;;  %v2192_v46 = vmax.f32 %v1323_v37, 0.0  ;;  %6632 = vst [vmem:[#allocation6_spill] sm:$0xff] %v5430_v47 }
 0x290   : > { %v4561_v41 = vpop.f32.mrf.mxu0 }
 0x291   : > { %6631 = vst [vmem:[#allocation5_spill] sm:$0xff] %v5428_v44  ;;  %v2195_v45 = vmax.f32 %v4561_v41, 0.0  ;;  %2476 = vperm.xlu1 %4700, %v5428_v44   ;;  %v5434_v10 = vmul.f32 %v2269_v26, %v2192_v46  ;;  %v1409_v14 = vpack.c.bf16 %v4561_v41, %v4560_v33 }
 0x292   : > { %2451 = vperm.xlu0 %4701, %v5430_v47   ;;  %v1326_v9 = vpop.f32.mrf.mxu0 }
 0x293   : > { %6633 = vst [vmem:[#allocation7_spill] sm:$0xff] %v5434_v10  ;;  %v5436_v12 = vmul.f32 %v2275_v23, %v2195_v45  ;;  %v1408_v13 = vpack.c.bf16 %v1326_v9, %v1323_v37  ;;  %v2193_v16 = vmax.f32 %v1326_v9, 0.0 }
 0x294   : > { %v5438_v17 = vpop.f32.mrf.mxu0 }
 0x295   : > { %6634 = vst [vmem:[#allocation8_spill] sm:$0xff] %v5436_v12  ;;  %2466 = vperm.xlu1 %4700, %v5434_v10   ;;  %4594 = vmatprep.mubr.msk.bf16.mxu1 %vm1498_vm5, %v1408_v13  ;;  %v5447_v26 = vmul.f32 %v5383_v29, %v2193_v16  ;;  %v2291_v10 = vpop.permute.xlu1 %2290 }
 0x296   : > { %2481 = vperm.xlu0 %4701, %v5436_v12   ;;  %v5443_v21 = vpop.f32.mrf.mxu0  ;;  %4595 = vmatmul.mubr.msk.bf16.gmra.mxu1 %vm1498_vm5, %v1409_v14 }
 0x297   : > { %6635 = vst [vmem:[#allocation9_spill] sm:$0xff] %v5447_v26 }
 0x298   : > { %v5449_v23 = vpop.f32.mrf.mxu0 }
 0x299   : > { %v1411_v34 = vpack.c.bf16 %v5449_v23, %v5438_v17 }
 0x29a   : > { %2471 = vperm.xlu0 %4701, %v5447_v26   ;;  %v5452_v19 = vpop.f32.mrf.mxu0  ;;  %v2289_v26 = vpop.permute.xlu0 %2288 }
 0x29b   : > { %v1410_v33 = vpack.c.bf16 %v5452_v19, %v5443_v21 }
 0x29c   : > { %v4568_v37 = vpop.f32.mrf.mxu0 }
 0x29d   : > { %4598 = vmatprep.mubr.msk.bf16.mxu1 %vm1498_vm5, %v1410_v33 }
 0x29e   : > { %v5459_v42 = vpop.f32.mrf.mxu0  ;;  %4599 = vmatmul.mubr.msk.bf16.gmra.mxu1 %vm1498_vm5, %v1411_v34 }
 0x2a0   : > { %v4569_v29 = vpop.f32.mrf.mxu0 }
 0x2a1   : > { %v1413_v45 = vpack.c.bf16 %v4569_v29, %v4568_v37 }
 0x2a2   : > { %v5462_v46 = vpop.f32.mrf.mxu0 }
 0x2a3   : > { %v1412_v41 = vpack.c.bf16 %v5462_v46, %v5459_v42 }
 0x2a4   : > { %v4572_v9 = vpop.f32.mrf.mxu0 }
 0x2a5   : > { %v2206_v13 = vmax.f32 %v4572_v9, 0.0  ;;  %4602 = vmatprep.mubr.msk.bf16.mxu1 %vm1498_vm5, %v1412_v41 }
 0x2a6   : > { %v1371_v14 = vpop.f32.mrf.mxu0  ;;  %4603 = vmatmul.mubr.msk.bf16.gmra.mxu1 %vm1498_vm5, %v1413_v45 }
 0x2a7   : > { %v5469_v16 = vmul.f32 %v5385_v30, %v2206_v13  ;;  %v2204_v33 = vmax.f32 %v1371_v14, 0.0  ;;  %v2257_v30 = vpop.permute.xlu0 %2256 }
 0x2a8   : > { %v4573_v34 = vpop.f32.mrf.mxu0 }
 0x2a9   : > { %6636 = vst [vmem:[#allocation10_spill] sm:$0xff] %v5469_v16  ;;  %v2207_v12 = vmax.f32 %v4573_v34, 0.0  ;;  %2536 = vperm.xlu1 %4700, %v5469_v16   ;;  %v5473_v47 = vmul.f32 %v5409_v43, %v2204_v33  ;;  %v1415_v48 = vpack.c.bf16 %v4573_v34, %v4572_v9  ;;  %v2203_v34 = vmax.f32 %v4569_v29, 0.0 }
 0x2aa   : > { %v1374_v44 = vpop.f32.mrf.mxu0 }
 0x2ab   : > { %6637 = vst [vmem:[#allocation11_spill] sm:$0xff] %v5473_v47  ;;  %v5476_v18 = vmul.f32 %v5397_v36, %v2207_v12  ;;  %v1414_v41 = vpack.c.bf16 %v1374_v44, %v1371_v14  ;;  %v2205_v15 = vmax.f32 %v1374_v44, 0.0  ;;  %v2259_v36 = vpop.permute.xlu1 %2258 }
 0x2ac   : > { %v4576_v45 = vpop.f32.mrf.mxu0 }
 0x2ad   : > { %6638 = vst [vmem:[#allocation12_spill] sm:$0xff] %v5476_v18  ;;  %2526 = vperm.xlu1 %4700, %v5473_v47   ;;  %2541 = vperm.xlu0 %4701, %v5476_v18   ;;  %v5482_v16 = vmul.f32 %v5417_v11, %v2205_v15  ;;  %v2210_v43 = vmax.f32 %v4576_v45, 0.0  ;;  %v2285_v11 = vpop.permute.xlu0 %2284  ;;  %v2202_v15 = vmax.f32 %v4568_v37, 0.0  ;;  %v2187_v37 = vmax.f32 %v5403_v39, 0.0 }
 0x2ae   : > { %4606 = vmatprep.mubr.msk.bf16.mxu1 %vm1498_vm5, %v1414_v41  ;;  %v1387_v13 = vpop.f32.mrf.mxu0  ;;  %v2184_v39 = vmax.f32 %v5400_v38, 0.0 }
 0x2af   : > { %v2208_v33 = vmax.f32 %v1387_v13, 0.0  ;;  %4607 = vmatmul.mubr.msk.bf16.gmra.mxu1 %vm1498_vm5, %v1415_v48  ;;  %v5490_v41 = vmul.f32 %v5371_v20, %v2210_v43  ;;  %v2186_v20 = vmax.f32 %v5395_v35, 0.0  ;;  %v5515_v35 = vmul.f32 %v2259_v36, %v2187_v37 }
 0x2b0   : > { %v4577_v12 = vpop.f32.mrf.mxu0  ;;  %v2198_v36 = vmax.f32 %v5438_v17, 0.0  ;;  %v2183_v17 = vmax.f32 %v5387_v31, 0.0  ;;  %v2180_v31 = vmax.f32 %v5381_v28, 0.0  ;;  %v5575_v28 = vld [vmem:[%s6603_s3 + $0x4] ss:$8 sps:$4 sm:$0xff]  }
 0x2b1   : > { %v5486_v44 = vmul.f32 %v5375_v24, %v2208_v33  ;;  %2531 = vperm.xlu0 %4701, %v5482_v16   ;;  %v2211_v9 = vmax.f32 %v4577_v12, 0.0  ;;  %v1417_v47 = vpack.c.bf16 %v4577_v12, %v4576_v45  ;;  %v2287_v24 = vpop.permute.xlu1 %2286  ;;  %v5498_v33 = vmul.f32 %v2291_v10, %v2203_v34  ;;  %v4730_v34 = vld [vmem:[%s6611_s11] sm:$0xff]  }
 0x2b2   : > { %v1390_v14 = vpop.f32.mrf.mxu0  ;;  %v5511_v10 = vmul.f32 %v2257_v30, %v2186_v20  ;;  %v2185_v30 = vmax.f32 %v5405_v40, 0.0  ;;  %v2199_v40 = vmax.f32 %v5449_v23, 0.0 }
 0x2b3   : > { %v1416_v18 = vpack.c.bf16 %v1390_v14, %v1387_v13  ;;  %2546 = vperm.xlu1 %4700, %v5486_v44   ;;  %v5494_v48 = vmul.f32 %v5373_v22, %v2211_v9  ;;  %v2209_v29 = vmax.f32 %v1390_v14, 0.0  ;;  %v5503_v13 = vmul.f32 %v2289_v26, %v2202_v15  ;;  %v2253_v22 = vpop.permute.xlu0 %2252 }
 0x2b4   : > { %v2201_v26 = vmax.f32 %v5462_v46, 0.0  ;;  %v5530_v46 = vmul.f32 %v2253_v22, %v2184_v39  ;;  %v2182_v15 = vmax.f32 %v5379_v27, 0.0  ;;  %v2196_v22 = vmax.f32 %v5443_v21, 0.0 }
 0x2b5   : > { %2556 = vperm.xlu0 %4701, %v5490_v41   ;;  %4610 = vmatprep.mubr.msk.bf16.mxu1 %vm1498_vm5, %v1416_v18  ;;  %v5508_v45 = vmul.f32 %v5377_v25, %v2209_v29  ;;  %v2255_v18 = vpop.permute.xlu1 %2254 }
 0x2b6   : > { %v5524_v9 = vmul.f32 %v2287_v24, %v2201_v26  ;;  %v5534_v14 = vmul.f32 %v2255_v18, %v2185_v30  ;;  %v2197_v18 = vmax.f32 %v5452_v19, 0.0  ;;  %v5594_v30 = vld [vmem:[%s6605_s5 + $0xf8] sm:$0xff] }
 0x2b7   : > { %4611 = vmatmul.mubr.msk.bf16.gmra.mxu1 %vm1498_vm5, %v1417_v47  ;;  %2561 = vperm.xlu1 %4700, %v5494_v48   ;;  %v2200_v47 = vmax.f32 %v5459_v42, 0.0  ;;  %v2281_v43 = vpop.permute.xlu0 %2280  ;;  %v4729_v42 = vld [vmem:[%s6611_s11 + $0x8] sm:$0xff]  }
 0x2b8   : > { %4614 = vmatprep.subr.bf16.mxu0 %v4729_v42  ;;  %v5542_v24 = vmul.f32 %v2281_v43, %v2198_v36  ;;  %v2181_v43 = vmax.f32 %v5389_v32, 0.0  ;;  %2668 = vmatprep.mubr.bf16.mxu1 %v5575_v28  ;;  %v5589_v32 = vld [vmem:[%s6605_s5 + $0xf0] sm:$0xff] }
 0x2b9   : > { %2521 = vperm.xlu0 %4701, %v5498_v33   ;;  %v5520_v25 = vmul.f32 %v2285_v11, %v2200_v47  ;;  %v2283_v12 = vpop.permute.xlu1 %2282  ;;  %4615 = vmatpush3.bf16.msra.mxu0 %v4729_v42  ;;  %v2398_v36 = vld [vmem:[%s6605_s5 + $0xd0] sm:$0xff] }
 0x2ba   : > { %4616 = vmatprep.subr.bf16.mxu0 %v4730_v34  ;;  %v5546_v29 = vmul.f32 %v2283_v12, %v2199_v40 }
 0x2bb   : > { %2516 = vperm.xlu1 %4700, %v5503_v13   ;;  %v2249_v38 = vpop.permute.xlu0 %2248 }
 0x2bc   : > { %v5549_v20 = vmul.f32 %v2249_v38, %v2182_v15 }
 0x2bd   : > { %2551 = vperm.xlu0 %4701, %v5508_v45   ;;  %v2251_v11 = vpop.permute.xlu1 %2250  ;;  %4617 = vmatpush3.bf16.msra.mxu0 %v4730_v34 }
 0x2be   : > { %v5553_v37 = vmul.f32 %v2251_v11, %v2183_v17  ;;  %v2396_v17 = vld [vmem:[%s6605_s5 + $0xc0] sm:$0xff] }
 0x2bf   : > { %2436 = vperm.xlu1 %4700, %v5511_v10   ;;  %v2277_v23 = vpop.permute.xlu0 %2276 }
 0x2c0   : > { %v5558_v47 = vmul.f32 %v2277_v23, %v2196_v22 }
 0x2c1   : > { %2441 = vperm.xlu0 %4701, %v5515_v35   ;;  %v2279_v27 = vpop.permute.xlu1 %2278 }
 0x2c2   : > { %v5562_v39 = vmul.f32 %v2279_v27, %v2197_v18 }
 0x2c3   : > { %2506 = vperm.xlu1 %4700, %v5520_v25   ;;  %v2245_v26 = vpop.permute.xlu0 %2244 }
 0x2c4   : > { %6639 = vst [vmem:[#allocation13_spill] sm:$0xff] %v5562_v39  ;;  %v5565_v12 = vmul.f32 %v2245_v26, %v2180_v31 }
 0x2c5   : > { %2511 = vperm.xlu0 %4701, %v5524_v9   ;;  %v2247_v21 = vpop.permute.xlu1 %2246 }
 0x2c6   : > { %6640 = vst [vmem:[#allocation14_spill] sm:$0xff] %v5565_v12  ;;  %v5568_v19 = vmul.f32 %v2247_v21, %v2181_v43 }
 0x2c7   : > { %2426 = vperm.xlu1 %4700, %v5530_v46  }
 0x2c8   : > { %6641 = vst [vmem:[#allocation15_spill] sm:$0xff] %v5568_v19 }
 0x2c9   : > { %2431 = vperm.xlu0 %4701, %v5534_v14  }
 0x2cb   : > { %2496 = vperm.xlu1 %4700, %v5542_v24  }
 0x2cd   : > { %2501 = vperm.xlu0 %4701, %v5546_v29  }
 0x2cf   : > { %2416 = vperm.xlu1 %4700, %v5549_v20  }
 0x2d1   : > { %2421 = vperm.xlu0 %4701, %v5553_v37  }
 0x2d3   : > { %2486 = vperm.xlu1 %4700, %v5558_v47  }
 0x2d5   : > { %2491 = vperm.xlu0 %4701, %v5562_v39  }
 0x2d7   : > { %2406 = vperm.xlu1 %4700, %v5565_v12  }
 0x2d9   : > { %2411 = vperm.xlu0 %4701, %v5568_v19  }
 0x2db   : > { %3485 = vrot.lane.b32.xlu1 %v5214_v49, %s5040_s22  ;;  %v2386_v49 = vld [vmem:[%s6605_s5 + $0x70] sm:$0xff] }
 0x2dd   : > { %3487 = vrot.lane.b32.xlu0 %v5219_v50, %s5040_s22  ;;  %v2387_v50 = vld [vmem:[%s6605_s5 + $0x78] sm:$0xff] }
 0x2df   : > { %3453 = vrot.lane.b32.xlu1 %v5222_v51, %s5040_s22  ;;  %v5619_v51 = vld [vmem:[%s6605_s5 + $0xe0] sm:$0xff] }
 0x2e1   : > { %3455 = vrot.lane.b32.xlu0 %v5232_v53, %s5040_s22  ;;  %v5624_v53 = vld [vmem:[%s6605_s5 + $0xe8] sm:$0xff] }
 0x2e3   : > { %3613 = vrot.lane.b32.xlu1 %v5589_v32, %s5041_s30 }
 0x2e5   : > { %3615 = vrot.lane.b32.xlu0 %v5594_v30, %s5041_s30 }
 0x2e7   : > { %3581 = vrot.lane.b32.xlu1 %v2386_v49, %s5041_s30 }
 0x2e9   : > { %3583 = vrot.lane.b32.xlu0 %v2387_v50, %s5041_s30 }
 0x2eb   : > { %3481 = vrot.lane.b32.xlu1 %v5229_v52, %s5040_s22  ;;  %v5633_v52 = vld [vmem:[%s6605_s5 + $0x60] sm:$0xff] }
 0x2ed   : > { %3483 = vrot.lane.b32.xlu0 %v5239_v54, %s5040_s22  ;;  %v2385_v54 = vld [vmem:[%s6605_s5 + $0x68] sm:$0xff] }
 0x2ef   : > { %3449 = vrot.lane.b32.xlu1 %v5242_v55, %s5040_s22 }
 0x2f1   : > { %3451 = vrot.lane.b32.xlu0 %v5249_v56, %s5040_s22 }
 0x2f3   : > { %3609 = vrot.lane.b32.xlu1 %v5619_v51, %s5041_s30 }
 0x2f5   : > { %3611 = vrot.lane.b32.xlu0 %v5624_v53, %s5041_s30 }
 0x2f7   : > { %3577 = vrot.lane.b32.xlu1 %v5633_v52, %s5041_s30 }
 0x2f9   : > { %3579 = vrot.lane.b32.xlu0 %v2385_v54, %s5041_s30 }
 0x2fb   : > { %3477 = vrot.lane.b32.xlu1 %v5252_v57, %s5040_s22  ;;  %v2399_v57 = vld [vmem:[%s6605_s5 + $0xd8] sm:$0xff] }
 0x2fd   : > { %3479 = vrot.lane.b32.xlu0 %v5259_v58, %s5040_s22 }
 0x2ff   : > { %3445 = vrot.lane.b32.xlu1 %v5262_v59, %s5040_s22  ;;  %v5668_v59 = vld [vmem:[%s6605_s5 + $0x50] sm:$0xff] }
 0x301   : > { %3447 = vrot.lane.b32.xlu0 %v5269_v60, %s5040_s22  ;;  %v2383_v60 = vld [vmem:[%s6605_s5 + $0x58] sm:$0xff] }
 0x303   : > { %3605 = vrot.lane.b32.xlu1 %v2398_v36, %s5041_s30 }
 0x304   : > { %v5641_v55 = vpop.permute.xlu1 %2456 }
 0x305   : > { %3607 = vrot.lane.b32.xlu0 %v2399_v57, %s5041_s30 }
 0x307   : > { %3573 = vrot.lane.b32.xlu1 %v5668_v59, %s5041_s30 }
 0x308   : > { %v5653_v42 = vpop.permute.xlu1 %2446 }
 0x309   : > { %v5647_v56 = vpop.permute.xlu0 %2461  ;;  %3575 = vrot.lane.b32.xlu0 %v2383_v60, %s5041_s30 }
 0x30b   : > { %3473 = vrot.lane.b32.xlu1 %v5272_v61, %s5040_s22  ;;  %v2397_v61 = vld [vmem:[%s6605_s5 + $0xc8] sm:$0xff] }
 0x30c   : > { %v2477_v38 = vpop.permute.xlu1 %2476 }
 0x30d   : > { %v5663_v58 = vpop.permute.xlu0 %2451  ;;  %3475 = vrot.lane.b32.xlu0 %v5279_v62, %s5040_s22  ;;  %v2578_v19 = vmul.f32 %v2477_v38, %v2386_v49 }
 0x30f   : > { %3441 = vrot.lane.b32.xlu1 %v5282_v63, %s5040_s22  ;;  %v5695_v63 = vld [vmem:[%s6605_s5 + $0x40] sm:$0xff] }
 0x310   : > { %v2467_v34 = vpop.permute.xlu1 %2466 }
 0x311   : > { %v2482_v40 = vpop.permute.xlu0 %2481  ;;  %3443 = vrot.lane.b32.xlu0 %v5289_v0, %s5040_s22  ;;  %v2381_v0 = vld [vmem:[%s6605_s5 + $0x48] sm:$0xff] }
 0x312   : > { %v2579_v31 = vmul.f32 %v2482_v40, %v2387_v50  ;;  %v2378_v40 = vld [vmem:[%s6605_s5 + $0x30] sm:$0xff] }
 0x313   : > { %3601 = vrot.lane.b32.xlu1 %v2396_v17, %s5041_s30 }
 0x315   : > { %v2472_v11 = vpop.permute.xlu0 %2471  ;;  %3603 = vrot.lane.b32.xlu0 %v2397_v61, %s5041_s30 }
 0x317   : > { %3569 = vrot.lane.b32.xlu1 %v5695_v63, %s5041_s30 }
 0x319   : > { %3571 = vrot.lane.b32.xlu0 %v2381_v0, %s5041_s30 }
 0x31b   : > { %3469 = vrot.lane.b32.xlu1 %v5292_v1, %s5040_s22  ;;  %v2395_v1 = vld [vmem:[%s6605_s5 + $0xb8] sm:$0xff] }
 0x31d   : > { %3471 = vrot.lane.b32.xlu0 %v5299_v2, %s5040_s22  ;;  %v2394_v2 = vld [vmem:[%s6605_s5 + $0xb0] sm:$0xff] }
 0x31f   : > { %3437 = vrot.lane.b32.xlu1 %v5302_v3, %s5040_s22  ;;  %v2603_v3 = vpack.c.bf16 %v2579_v31, %v2578_v19  ;;  %v2379_v19 = vld [vmem:[%s6605_s5 + $0x38] sm:$0xff] }
 0x321   : > { %3439 = vrot.lane.b32.xlu0 %v5309_v4, %s5040_s22  ;;  %v2577_v4 = vmul.f32 %v2472_v11, %v2385_v54 }
 0x323   : > { %3597 = vrot.lane.b32.xlu1 %v2394_v2, %s5041_s30 }
 0x324   : > { %v2537_v15 = vpop.permute.xlu1 %2536 }
 0x325   : > { %3599 = vrot.lane.b32.xlu0 %v2395_v1, %s5041_s30 }
 0x327   : > { %3565 = vrot.lane.b32.xlu1 %v2378_v40, %s5041_s30 }
 0x328   : > { %v2542_v62 = vpop.permute.xlu0 %2541  ;;  %v2527_v23 = vpop.permute.xlu1 %2526 }
 0x329   : > { %3567 = vrot.lane.b32.xlu0 %v2379_v19, %s5041_s30 }
 0x32b   : > { %3465 = vrot.lane.b32.xlu1 %v5312_v5, %s5040_s22  ;;  %v2572_v5 = vmul.f32 %v5653_v42, %v5695_v63 }
 0x32c   : > { %v2532_v22 = vpop.permute.xlu0 %2531 }
 0x32d   : > { %v2589_v11 = vmul.f32 %v2532_v22, %v2397_v61  ;;  %3467 = vrot.lane.b32.xlu0 %v5319_v6, %s5040_s22  ;;  %v2573_v61 = vmul.f32 %v5663_v58, %v2381_v0 }
 0x32e   : > { %v2547_v27 = vpop.permute.xlu1 %2546 }
 0x32f   : > { %v2592_v49 = vmul.f32 %v2547_v27, %v5619_v51  ;;  %v2574_v27 = vmul.f32 %v5641_v55, %v5668_v59  ;;  %3433 = vrot.lane.b32.xlu1 %v5322_v7, %s5040_s22  ;;  %v2600_v42 = vpack.c.bf16 %v2573_v61, %v2572_v5 }
 0x330   : > { %v2557_v18 = vpop.permute.xlu0 %2556 }
 0x331   : > { %v2594_v43 = vmul.f32 %v2557_v18, %v5589_v32  ;;  %v2576_v18 = vmul.f32 %v2467_v34, %v5633_v52  ;;  %v4219_v52 = vld [vmem:[%s5735_s28] sm:$0xff]   ;;  %3435 = vrot.lane.b32.xlu0 %v5329_v8, %s5040_s22 }
 0x332   : > { %v2562_v26 = vpop.permute.xlu1 %2561 }
 0x333   : > { %v2595_v21 = vmul.f32 %v2562_v26, %v5594_v30  ;;  %v2591_v30 = vmul.f32 %v2542_v62, %v2399_v57  ;;  %v2602_v54 = vpack.c.bf16 %v2577_v4, %v2576_v18  ;;  %v4282_v62 = vld [vmem:[%s5735_s28 + $0x8] sm:$0xff]   ;;  %v4221_v4 = vunpack.c.h.bf16 %v4219_v52 }
 0x334   : > { %v2522_v12 = vpop.permute.xlu0 %2521  ;;  %v4224_v22 = vunpack.c.l.bf16 %v4282_v62 }
 0x335   : > { %v2611_v39 = vpack.c.bf16 %v2595_v21, %v2594_v43  ;;  %v2587_v6 = vmul.f32 %v2522_v12, %v2395_v1  ;;  %v2377_v1 = vld [vmem:[%s6605_s5 + $0x28] sm:$0xff] }
 0x336   : > { %v2517_v50 = vpop.permute.xlu1 %2516 }
 0x337   : > { %4390 = vmatprep.subr.bf16.mxu1 %v2611_v39  ;;  %v2590_v39 = vmul.f32 %v2537_v15, %v2398_v36  ;;  %v2588_v36 = vmul.f32 %v2527_v23, %v2396_v17  ;;  %v4220_v15 = vunpack.c.l.bf16 %v4219_v52  ;;  %v2393_v17 = vld [vmem:[%s6605_s5 + $0xa8] sm:$0xff] }
 0x338   : > { %4391 = vmatpush3.bf16.msra.mxu1 %v2603_v3  ;;  %v2552_v32 = vpop.permute.xlu0 %2551  ;;  %v2586_v3 = vmul.f32 %v2517_v50, %v2394_v2  ;;  %v4283_v2 = vld [vmem:[%s5735_s28 + $0x10] sm:$0xff]   ;;  %3595 = vrot.lane.b32.xlu0 %v2393_v17, %s5041_s30 }
 0x339   : > { %v2593_v38 = vmul.f32 %v2552_v32, %v5624_v53  ;;  %v2575_v53 = vmul.f32 %v5647_v56, %v2383_v60  ;;  %v2609_v34 = vpack.c.bf16 %v2591_v30, %v2590_v39  ;;  %v4225_v56 = vunpack.c.h.bf16 %v4282_v62  ;;  %v2392_v30 = vld [vmem:[%s6605_s5 + $0xa0] sm:$0xff]  ;;  %v4284_v39 = vld [vmem:[%s5735_s28 + $0x18] sm:$0xff]  }
 0x33a   : > { %v2437_v31 = vpop.permute.xlu1 %2436  ;;  %v2608_v59 = vpack.c.bf16 %v2589_v11, %v2588_v36  ;;  %v2607_v18 = vpack.c.bf16 %v2587_v6, %v2586_v3  ;;  %3593 = vrot.lane.b32.xlu1 %v2392_v30, %s5041_s30  ;;  %v2376_v11 = vld [vmem:[%s6605_s5 + $0x20] sm:$0xff]  ;;  %v4232_v36 = vunpack.c.l.bf16 %v4284_v39 }
 0x33b   : > { %v2610_v51 = vpack.c.bf16 %v2593_v38, %v2592_v49  ;;  %v2601_v60 = vpack.c.bf16 %v2575_v53, %v2574_v27 }
 0x33c   : > { %v2442_v57 = vpop.permute.xlu0 %2441  ;;  %3563 = vrot.lane.b32.xlu0 %v2377_v1, %s5041_s30 }
 0x33d   : > { %4392 = vmatprep.subr.bf16.mxu1 %v2610_v51  ;;  %v2571_v63 = vmul.f32 %v2442_v57, %v2379_v19  ;;  %v2570_v51 = vmul.f32 %v2437_v31, %v2378_v40  ;;  %v4228_v19 = vunpack.c.l.bf16 %v4283_v2  ;;  %v2391_v57 = vld [vmem:[%s6605_s5 + $0x98] sm:$0xff]  ;;  %v4233_v40 = vunpack.c.h.bf16 %v4284_v39  ;;  %v2388_v39 = vld [vmem:[%s6605_s5 + $0x80] sm:$0xff] }
 0x33e   : > { %v4584_v26 = vpop.f32.mrf.mxu1  ;;  %v2507_v43 = vpop.permute.xlu1 %2506  ;;  %4393 = vmatpush3.bf16.msra.mxu1 %v2602_v54  ;;  %3561 = vrot.lane.b32.xlu1 %v2376_v11, %s5041_s30 }
 0x33f   : > { %4394 = vmatprep.subr.bf16.mxu1 %v2609_v34  ;;  %v1590_v50 = vadd.f32 %v4584_v26, %v4224_v22  ;;  %v2584_v52 = vmul.f32 %v2507_v43, %v2392_v30  ;;  %v2599_v31 = vpack.c.bf16 %v2571_v63, %v2570_v51 }
 0x340   : > { %v1581_v21 = vpop.f32.mrf.mxu1  ;;  %v2512_v55 = vpop.permute.xlu0 %2511 }
 0x341   : > { %v1582_v58 = vadd.f32 %v4220_v15, %v1581_v21  ;;  %v2585_v7 = vmul.f32 %v2512_v55, %v2393_v17  ;;  %v1710_v27 = vmax.f32 %v1590_v50, 0.0  ;;  %v2390_v15 = vld [vmem:[%s6605_s5 + $0x90] sm:$0xff]  ;;  %v4229_v21 = vunpack.c.h.bf16 %v4283_v2  ;;  %v2375_v17 = vld [vmem:[%s6605_s5 + $0x18] sm:$0xff] }
 0x342   : > { %v4585_v23 = vpop.f32.mrf.mxu1  ;;  %v2427_v32 = vpop.permute.xlu1 %2426  ;;  %4395 = vmatpush3.bf16.msra.mxu1 %v2601_v60 }
 0x343   : > { %v1593_v0 = vadd.f32 %v4585_v23, %v4225_v56  ;;  %4396 = vmatprep.subr.bf16.mxu1 %v2608_v59  ;;  %v1708_v34 = vmax.f32 %v1582_v58, 0.0  ;;  %v2606_v60 = vpack.c.bf16 %v2585_v7, %v2584_v52  ;;  %v2568_v59 = vmul.f32 %v2427_v32, %v2376_v11  ;;  %v4285_v32 = vld [vmem:[%s5735_s28 + $0x20] sm:$0xff]  }
 0x344   : > { %v1584_v49 = vpop.f32.mrf.mxu1  ;;  %v2432_v38 = vpop.permute.xlu0 %2431 }
 0x345   : > { %v1585_v12 = vadd.f32 %v4221_v4, %v1584_v49  ;;  %v1711_v53 = vmax.f32 %v1593_v0, 0.0  ;;  %v2569_v26 = vmul.f32 %v2432_v38, %v2377_v1  ;;  %v2374_v4 = vld [vmem:[%s6605_s5 + $0x10] sm:$0xff] }
 0x346   : > { %v4588_v8 = vpop.f32.mrf.mxu1  ;;  %v2497_v54 = vpop.permute.xlu1 %2496  ;;  %4397 = vmatpush3.bf16.msra.mxu1 %v2600_v42  ;;  %v5009_v1 = vld [vmem:[%s5211_s23 + $0x90] sm:$0xff] }
 0x347   : > { %v1709_v62 = vmax.f32 %v1585_v12, 0.0  ;;  %4398 = vmatprep.subr.bf16.mxu1 %v2607_v18  ;;  %v1741_v55 = vpack.c.bf16 %v1711_v53, %v1710_v27  ;;  %v2582_v23 = vmul.f32 %v2497_v54, %v2390_v15  ;;  %v2598_v0 = vpack.c.bf16 %v2569_v26, %v2568_v59  ;;  %v4286_v18 = vld [vmem:[%s5735_s28 + $0x28] sm:$0xff]   ;;  %3461 = vrot.lane.b32.xlu1 %v5009_v1, %s5040_s22 }
 0x348   : > { %v1597_v56 = vpop.f32.mrf.mxu1  ;;  %v2502_v43 = vpop.permute.xlu0 %2501  ;;  %v1606_v2 = vadd.f32 %v4588_v8, %v4232_v36  ;;  %v4236_v53 = vunpack.c.l.bf16 %v4285_v32  ;;  %v2389_v8 = vld [vmem:[%s6605_s5 + $0x88] sm:$0xff]  ;;  %v4241_v52 = vunpack.c.h.bf16 %v4286_v18  ;;  %v4240_v11 = vunpack.c.l.bf16 %v4286_v18 }
 0x349   : > { %v1740_v61 = vpack.c.bf16 %v1709_v62, %v1708_v34  ;;  %v2583_v22 = vmul.f32 %v2502_v43, %v2391_v57  ;;  %v1598_v6 = vadd.f32 %v4228_v19, %v1597_v56  ;;  %v4237_v15 = vunpack.c.h.bf16 %v4285_v32  ;;  %v4288_v32 = vld [vmem:[%s5735_s28 + $0x38] sm:$0xff]  }
 0x34a   : > { %v4589_v3 = vpop.f32.mrf.mxu1  ;;  %v2417_v5 = vpop.permute.xlu1 %2416  ;;  %4399 = vmatpush3.bf16.msra.mxu1 %v2599_v31  ;;  %v1714_v34 = vmax.f32 %v1606_v2, 0.0  ;;  %v5010_v31 = vld [vmem:[%s5211_s23 + $0x98] sm:$0xff]  ;;  %v4248_v18 = vunpack.c.l.bf16 %v4288_v32 }
 0x34b   : > { %v1609_v58 = vadd.f32 %v4589_v3, %v4233_v40  ;;  %4618 = vmatprep.mubr.msk.bf16.mxu0 %vm1498_vm5, %v1740_v61  ;;  %4400 = vmatprep.subr.bf16.mxu1 %v2606_v60  ;;  %v2605_v50 = vpack.c.bf16 %v2583_v22, %v2582_v23  ;;  %v2566_v30 = vmul.f32 %v2417_v5, %v2374_v4  ;;  %v1712_v54 = vmax.f32 %v1598_v6, 0.0  ;;  %v2372_v60 = vld [vmem:[%s6605_s5] sm:$0xff]  ;;  %v2373_v22 = vld [vmem:[%s6605_s5 + $0x8] sm:$0xff]  ;;  %v4287_v3 = vld [vmem:[%s5735_s28 + $0x30] sm:$0xff]  }
 0x34c   : > { %v1600_v42 = vpop.f32.mrf.mxu1  ;;  %4619 = vmatmul.mubr.msk.bf16.vlgmr.msra.gmra.mxu0 %vm1498_vm5, %v1741_v55  ;;  %v2422_v63 = vpop.permute.xlu0 %2421  ;;  %3463 = vrot.lane.b32.xlu0 %v5010_v31, %s5040_s22 }
 0x34d   : > { %v1601_v49 = vadd.f32 %v4229_v21, %v1600_v42  ;;  %v2567_v38 = vmul.f32 %v2422_v63, %v2375_v17  ;;  %v1715_v7 = vmax.f32 %v1609_v58, 0.0  ;;  %v4244_v42 = vunpack.c.l.bf16 %v4287_v3 }
 0x34e   : > { %v4592_v12 = vpop.f32.mrf.mxu1  ;;  %v2487_v51 = vpop.permute.xlu1 %2486  ;;  %4401 = vmatpush3.bf16.msra.mxu1 %v2598_v0 }
 0x34f   : > { %v1713_v19 = vmax.f32 %v1601_v49, 0.0  ;;  %v2597_v57 = vpack.c.bf16 %v2567_v38, %v2566_v30  ;;  %4402 = vmatprep.subr.bf16.mxu1 %v2605_v50  ;;  %v2580_v26 = vmul.f32 %v2487_v51, %v2388_v39  ;;  %v1743_v56 = vpack.c.bf16 %v1715_v7, %v1714_v34  ;;  %v4289_v34 = vld [vmem:[%s5735_s28 + $0x40] sm:$0xff]  }
 0x350   : > { %v1613_v62 = vpop.f32.mrf.mxu1  ;;  %v2492_v40 = vpop.permute.xlu0 %2491  ;;  %v1622_v4 = vadd.f32 %v4592_v12, %v4240_v11  ;;  %v4249_v49 = vunpack.c.h.bf16 %v4288_v32  ;;  %v4731_v12 = vld [vmem:[%s6603_s3] ss:$8 sps:$4 sm:$0xff]   ;;  %v4245_v51 = vunpack.c.h.bf16 %v4287_v3 }
 0x351   : > { %v1742_v27 = vpack.c.bf16 %v1713_v19, %v1712_v54  ;;  %v2581_v36 = vmul.f32 %v2492_v40, %v2389_v8  ;;  %v1614_v21 = vadd.f32 %v4236_v53, %v1613_v62  ;;  %v4734_v53 = vld [vmem:[%s6603_s3 + $0x14] ss:$8 sps:$4 sm:$0xff]   ;;  %v4290_v62 = vld [vmem:[%s5735_s28 + $0x48] sm:$0xff]  }
 0x352   : > { %v4593_v43 = vpop.f32.mrf.mxu1  ;;  %v2407_v61 = vpop.permute.xlu1 %2406  ;;  %4403 = vmatpush3.bf16.msra.mxu1 %v2597_v57  ;;  %v1718_v38 = vmax.f32 %v1622_v4, 0.0 }
 0x353   : > { %v2604_v55 = vpack.c.bf16 %v2581_v36, %v2580_v26  ;;  %v1625_v59 = vadd.f32 %v4593_v43, %v4241_v52  ;;  %4622 = vmatprep.mubr.msk.bf16.mxu0 %vm1498_vm5, %v1742_v27  ;;  %v2564_v23 = vmul.f32 %v2407_v61, %v2372_v60  ;;  %v1716_v63 = vmax.f32 %v1614_v21, 0.0  ;;  %v4736_v61 = vld [vmem:[%s6603_s3 + $0x10] ss:$8 sps:$4 sm:$0xff]  }
 0x354   : > { %v1616_v5 = vpop.f32.mrf.mxu1  ;;  %4623 = vmatmul.mubr.msk.bf16.gmra.mxu0 %vm1498_vm5, %v1743_v56  ;;  %v2412_v17 = vpop.permute.xlu0 %2411  ;;  %v4252_v36 = vunpack.c.l.bf16 %v4289_v34  ;;  %v4256_v43 = vunpack.c.l.bf16 %v4290_v62  ;;  %v4253_v21 = vunpack.c.h.bf16 %v4289_v34 }
 0x355   : > { %v1617_v6 = vadd.f32 %v4237_v15, %v1616_v5  ;;  %v2565_v58 = vmul.f32 %v2412_v17, %v2373_v22  ;;  %4404 = vmatprep.subr.bf16.mxu1 %v2604_v55  ;;  %v1719_v0 = vmax.f32 %v1625_v59, 0.0  ;;  %v4257_v15 = vunpack.c.h.bf16 %v4290_v62 }
 0x356   : > { %v4596_v2 = vpop.f32.mrf.mxu1 }
 0x357   : > { %v1717_v50 = vmax.f32 %v1617_v6, 0.0  ;;  %v2596_v30 = vpack.c.bf16 %v2565_v58, %v2564_v23  ;;  %v1745_v8 = vpack.c.bf16 %v1719_v0, %v1718_v38  ;;  %v1638_v57 = vadd.f32 %v4596_v2, %v4248_v18  ;;  %v4291_v23 = vld [vmem:[%s5735_s28 + $0x50] sm:$0xff]   ;;  %v4292_v58 = vld [vmem:[%s5735_s28 + $0x58] sm:$0xff]  }
 0x358   : > { %v1629_v7 = vpop.f32.mrf.mxu1 }
 0x359   : > { %v1744_v39 = vpack.c.bf16 %v1717_v50, %v1716_v63  ;;  %4405 = vmatpush3.bf16.msra.mxu1 %v2596_v30  ;;  %v1630_v54 = vadd.f32 %v4244_v42, %v1629_v7  ;;  %v1722_v56 = vmax.f32 %v1638_v57, 0.0  ;;  %v4260_v63 = vunpack.c.l.bf16 %v4291_v23 }
 0x35a   : > { %v4597_v1 = vpop.f32.mrf.mxu1  ;;  %v4265_v50 = vunpack.c.h.bf16 %v4292_v58  ;;  %v4261_v7 = vunpack.c.h.bf16 %v4291_v23 }
 0x35b   : > { %v1641_v19 = vadd.f32 %v4597_v1, %v4249_v49  ;;  %4626 = vmatprep.mubr.msk.bf16.mxu0 %vm1498_vm5, %v1744_v39  ;;  %v1720_v27 = vmax.f32 %v1630_v54, 0.0  ;;  %v4264_v49 = vunpack.c.l.bf16 %v4292_v58 }
 0x35c   : > { %v1632_v52 = vpop.f32.mrf.mxu1  ;;  %4627 = vmatmul.mubr.msk.bf16.gmra.mxu0 %vm1498_vm5, %v1745_v8  ;;  %2669 = vmatmul.mubr.bf16.vlgmr.msra.gmra.mxu1 %v4731_v12 }
 0x35d   : > { %v1633_v11 = vadd.f32 %v4245_v51, %v1632_v52  ;;  %2676 = vmatprep.mubr.bf16.mxu1 %v4734_v53  ;;  %v1723_v40 = vmax.f32 %v1641_v19, 0.0  ;;  %v4293_v19 = vld [vmem:[%s5735_s28 + $0x60] sm:$0xff]   ;;  %v4294_v52 = vld [vmem:[%s5735_s28 + $0x68] sm:$0xff]  }
 0x35e   : > { %v4600_v31 = vpop.f32.mrf.mxu1 }
 0x35f   : > { %v1721_v26 = vmax.f32 %v1633_v11, 0.0  ;;  %v1747_v55 = vpack.c.bf16 %v1723_v40, %v1722_v56  ;;  %v1654_v5 = vadd.f32 %v4600_v31, %v4256_v43  ;;  %v4268_v31 = vunpack.c.l.bf16 %v4293_v19 }
 0x360   : > { %v1645_v60 = vpop.f32.mrf.mxu1  ;;  %v4269_v43 = vunpack.c.h.bf16 %v4293_v19 }
 0x361   : > { %v1746_v22 = vpack.c.bf16 %v1721_v26, %v1720_v27  ;;  %v1646_v3 = vadd.f32 %v4252_v36, %v1645_v60  ;;  %v1726_v30 = vmax.f32 %v1654_v5, 0.0  ;;  %v4273_v27 = vunpack.c.h.bf16 %v4294_v52 }
 0x362   : > { %v4601_v59 = vpop.f32.mrf.mxu1  ;;  %v4272_v36 = vunpack.c.l.bf16 %v4294_v52 }
 0x363   : > { %v1657_v4 = vadd.f32 %v4601_v59, %v4257_v15  ;;  %4630 = vmatprep.mubr.msk.bf16.mxu0 %vm1498_vm5, %v1746_v22  ;;  %v1724_v2 = vmax.f32 %v1646_v3, 0.0  ;;  %v4295_v59 = vld [vmem:[%s5735_s28 + $0x70] sm:$0xff]  }
 0x364   : > { %v1648_v17 = vpop.f32.mrf.mxu1  ;;  %4631 = vmatmul.mubr.msk.bf16.gmra.mxu0 %vm1498_vm5, %v1747_v55  ;;  %2677 = vmatmul.mubr.bf16.gmra.mxu1 %v4736_v61  ;;  %v4276_v58 = vunpack.c.l.bf16 %v4295_v59 }
 0x365   : > { %v1649_v6 = vadd.f32 %v4253_v21, %v1648_v17  ;;  %v1727_v32 = vmax.f32 %v1657_v4, 0.0  ;;  %v4296_v4 = vld [vmem:[%s5735_s28 + $0x78] sm:$0xff]  }
 0x366   : > { %v4604_v0 = vpop.f32.mrf.mxu1 }
 0x367   : > { %v1725_v42 = vmax.f32 %v1649_v6, 0.0  ;;  %v1749_v12 = vpack.c.bf16 %v1727_v32, %v1726_v30  ;;  %v1670_v8 = vadd.f32 %v4604_v0, %v4264_v49  ;;  %v4281_v32 = vunpack.c.h.bf16 %v4296_v4 }
 0x368   : > { %v1661_v38 = vpop.f32.mrf.mxu1 }
 0x369   : > { %v1748_v18 = vpack.c.bf16 %v1725_v42, %v1724_v2  ;;  %v1662_v51 = vadd.f32 %v4260_v63, %v1661_v38  ;;  %v1730_v40 = vmax.f32 %v1670_v8, 0.0  ;;  %v4280_v2 = vunpack.c.l.bf16 %v4296_v4  ;;  %v4744_v4 = vld [vmem:[%s6604_s4 + $0x38] sm:$0xff]  }
 0x36a   : > { %v4605_v39 = vpop.f32.mrf.mxu1 }
 0x36b   : > { %v1673_v53 = vadd.f32 %v4605_v39, %v4265_v50  ;;  %4634 = vmatprep.mubr.msk.bf16.mxu0 %vm1498_vm5, %v1748_v18  ;;  %v1728_v34 = vmax.f32 %v1662_v51, 0.0  ;;  %v4277_v50 = vunpack.c.h.bf16 %v4295_v59  ;;  %v4742_v59 = vld [vmem:[%s6604_s4 + $0x28] sm:$0xff]  }
 0x36c   : > { %v1664_v1 = vpop.f32.mrf.mxu1  ;;  %4635 = vmatmul.mubr.msk.bf16.gmra.mxu0 %vm1498_vm5, %v1749_v12 }
 0x36d   : > { %v1665_v54 = vadd.f32 %v4261_v7, %v1664_v1  ;;  %v1731_v57 = vmax.f32 %v1673_v53, 0.0 }
 0x36f   : > { %v1729_v11 = vmax.f32 %v1665_v54, 0.0  ;;  %v4608_v62 = vpop.f32.mrf.mxu1  ;;  %v1751_v56 = vpack.c.bf16 %v1731_v57, %v1730_v40  ;;  %v4737_v57 = vld [vmem:[%s6604_s4] sm:$0xff]  }
 0x370   : > { %v1686_v21 = vadd.f32 %v4608_v62, %v4272_v36  ;;  %4654 = vmatprep.mubr.msk.bf16.mxu1 %vm1498_vm5, %v4737_v57  ;;  %v3014_v57 = vld [vmem:[%s6606_s6 + $0x30] sm:$0xff] }
 0x371   : > { %v1750_v26 = vpack.c.bf16 %v1729_v11, %v1728_v34  ;;  %v1677_v15 = vpop.f32.mrf.mxu1 }
 0x372   : > { %v1678_v61 = vadd.f32 %v4268_v31, %v1677_v15  ;;  %v1734_v0 = vmax.f32 %v1686_v21, 0.0  ;;  %v4740_v21 = vld [vmem:[%s6604_s4 + $0x18] sm:$0xff]  }
 0x373   : > { %v4609_v60 = vpop.f32.mrf.mxu1  ;;  %4638 = vmatprep.mubr.msk.bf16.mxu0 %vm1498_vm5, %v1750_v26 }
 0x374   : > { %v1689_v22 = vadd.f32 %v4609_v60, %v4273_v27  ;;  %4639 = vmatmul.mubr.msk.bf16.gmra.mxu0 %vm1498_vm5, %v1751_v56  ;;  %v1732_v23 = vmax.f32 %v1678_v61, 0.0  ;;  %v4738_v61 = vld [vmem:[%s6604_s4 + $0x8] sm:$0xff]  }
 0x375   : > { %v1680_v55 = vpop.f32.mrf.mxu1 }
 0x376   : > { %v1681_v3 = vadd.f32 %v4269_v43, %v1680_v55  ;;  %v1735_v5 = vmax.f32 %v1689_v22, 0.0  ;;  %v4739_v22 = vld [vmem:[%s6604_s4 + $0x10] sm:$0xff]   ;;  %v4741_v55 = vld [vmem:[%s6604_s4 + $0x20] sm:$0xff]  }
 0x377   : > { %v4612_v17 = vpop.f32.mrf.mxu1 }
 0x378   : > { %v1733_v6 = vmax.f32 %v1681_v3, 0.0  ;;  %v1753_v30 = vpack.c.bf16 %v1735_v5, %v1734_v0  ;;  %v1702_v7 = vadd.f32 %v4612_v17, %v4280_v2  ;;  %v4743_v3 = vld [vmem:[%s6604_s4 + $0x30] sm:$0xff]   ;;  %v4745_v5 = vld [vmem:[%s6604_s4 + $0x40] sm:$0xff]   ;;  %v4746_v17 = vld [vmem:[%s6604_s4 + $0x48] sm:$0xff]  }
 0x379   : > { %v1693_v42 = vpop.f32.mrf.mxu1  ;;  %v4751_v0 = vld [vmem:[%s6604_s4 + $0x70] sm:$0xff]   ;;  %v4752_v2 = vld [vmem:[%s6604_s4 + $0x78] sm:$0xff]  }
 0x37a   : > { %v1752_v63 = vpack.c.bf16 %v1733_v6, %v1732_v23  ;;  %v1694_v38 = vadd.f32 %v4276_v58, %v1693_v42  ;;  %v1738_v1 = vmax.f32 %v1702_v7, 0.0  ;;  %v4747_v23 = vld [vmem:[%s6604_s4 + $0x50] sm:$0xff]   ;;  %v4748_v6 = vld [vmem:[%s6604_s4 + $0x58] sm:$0xff]   ;;  %v4749_v58 = vld [vmem:[%s6604_s4 + $0x60] sm:$0xff]   ;;  %v5903_v42 = vpop.permute.xlu0 %3487 }
 0x37b   : > { %v4613_v49 = vpop.f32.mrf.mxu1 }
 0x37c   : > { %v1705_v18 = vadd.f32 %v4613_v49, %v4281_v32  ;;  %4642 = vmatprep.mubr.msk.bf16.mxu0 %vm1498_vm5, %v1752_v63  ;;  %v1736_v53 = vmax.f32 %v1694_v38, 0.0  ;;  %v4750_v32 = vld [vmem:[%s6604_s4 + $0x68] sm:$0xff]   ;;  %v3010_v63 = vld [vmem:[%s6606_s6 + $0x10] sm:$0xff]  ;;  %v3008_v49 = vld [vmem:[%s6606_s6] sm:$0xff] }
 0x37d   : > { %v1696_v12 = vpop.f32.mrf.mxu1  ;;  %4643 = vmatmul.mubr.msk.bf16.gmra.mxu0 %vm1498_vm5, %v1753_v30 }
 0x37e   : > { %v1697_v39 = vadd.f32 %v4277_v50, %v1696_v12  ;;  %v1739_v51 = vmax.f32 %v1705_v18, 0.0  ;;  %v5908_v50 = vpop.permute.xlu1 %3485  ;;  %v5913_v38 = vpop.permute.xlu0 %3455  ;;  %v3011_v12 = vld [vmem:[%s6606_s6 + $0x18] sm:$0xff] }
 0x380   : > { %v1737_v8 = vmax.f32 %v1697_v39, 0.0  ;;  %v1755_v19 = vpack.c.bf16 %v1739_v51, %v1738_v1 }
 0x382   : > { %v1754_v54 = vpack.c.bf16 %v1737_v8, %v1736_v53  ;;  %v3009_v8 = vld [vmem:[%s6606_s6 + $0x8] sm:$0xff]  ;;  %v5922_v1 = vpop.permute.xlu1 %3453 }
 0x384   : > { %4646 = vmatprep.mubr.msk.bf16.mxu0 %vm1498_vm5, %v1754_v54 }
 0x385   : > { %4647 = vmatmul.mubr.msk.bf16.gmra.mxu0 %vm1498_vm5, %v1755_v19 }
 0x386   : > { %3955 = vmatprep.mubr.bf16.mxu0 %v5575_v28 }
 0x41c   : > { %v4406_v52 = vpop.f32.mrf.mxu1 }
 0x41e   : > { %v4407_v34 = vpop.f32.mrf.mxu1 }
 0x41f   : > { %v4408_v43 = vadd.f32 %v4407_v34, %v4406_v52  ;;  %v5927_v52 = vpop.permute.xlu0 %3615 }
 0x420   : > { %v4409_v11 = vpop.f32.mrf.mxu1 }
 0x422   : > { %v4410_v62 = vpop.f32.mrf.mxu1 }
 0x423   : > { %v4411_v36 = vadd.f32 %v4410_v62, %v4409_v11 }
 0x424   : > { %v4412_v40 = vpop.f32.mrf.mxu1 }
 0x425   : > { %v2717_v28 = vpack.c.bf16 %v4411_v36, %v4408_v43  ;;  %v3015_v36 = vld [vmem:[%s6606_s6 + $0x38] sm:$0xff] }
 0x426   : > { %v4413_v31 = vpop.f32.mrf.mxu1 }
 0x427   : > { %v4414_v15 = vadd.f32 %v4413_v31, %v4412_v40  ;;  %v3012_v31 = vld [vmem:[%s6606_s6 + $0x20] sm:$0xff] }
 0x428   : > { %v4415_v27 = vpop.f32.mrf.mxu1 }
 0x42a   : > { %v4416_v26 = vpop.f32.mrf.mxu1 }
 0x42b   : > { %v4417_v56 = vadd.f32 %v4416_v26, %v4415_v27 }
 0x42d   : > { %v2718_v60 = vpack.c.bf16 %v4417_v56, %v4414_v15  ;;  %v5937_v15 = vpop.permute.xlu1 %3613 }
 0x42f   : > { %4650 = vmatprep.subr.bf16.mxu1 %v2718_v60 }
 0x430   : > { %4651 = vmatpush3.bf16.msra.mxu1 %v2718_v60 }
 0x431   : > { %4652 = vmatprep.subr.bf16.mxu1 %v2717_v28 }
 0x434   : > { %4653 = vmatpush3.bf16.msra.mxu1 %v2717_v28 }
 0x437   : > { %4655 = vmatmul.mubr.msk.bf16.vlgmr.msra.gmra.mxu1 %vm1498_vm5, %v4738_v61  ;;  %v3013_v61 = vld [vmem:[%s6606_s6 + $0x28] sm:$0xff] }
 0x438   : > { %4658 = vmatprep.mubr.msk.bf16.mxu1 %vm1498_vm5, %v4739_v22  ;;  %v5944_v22 = vpop.permute.xlu0 %3583 }
 0x43f   : > { %4659 = vmatmul.mubr.msk.bf16.gmra.mxu1 %vm1498_vm5, %v4740_v21 }
 0x440   : > { %4662 = vmatprep.mubr.msk.bf16.mxu1 %vm1498_vm5, %v4741_v55 }
 0x447   : > { %4663 = vmatmul.mubr.msk.bf16.gmra.mxu1 %vm1498_vm5, %v4742_v59  ;;  %v3018_v59 = vld [vmem:[%s6606_s6 + $0x50] sm:$0xff] }
 0x448   : > { %4666 = vmatprep.mubr.msk.bf16.mxu1 %vm1498_vm5, %v4743_v3 }
 0x44f   : > { %4667 = vmatmul.mubr.msk.bf16.gmra.mxu1 %vm1498_vm5, %v4744_v4 }
 0x450   : > { %4670 = vmatprep.mubr.msk.bf16.mxu1 %vm1498_vm5, %v4745_v5 }
 0x457   : > { %4671 = vmatmul.mubr.msk.bf16.gmra.mxu1 %vm1498_vm5, %v4746_v17 }
 0x458   : > { %4674 = vmatprep.mubr.msk.bf16.mxu1 %vm1498_vm5, %v4747_v23  ;;  %v3016_v23 = vld [vmem:[%s6606_s6 + $0x40] sm:$0xff] }
 0x45f   : > { %4675 = vmatmul.mubr.msk.bf16.gmra.mxu1 %vm1498_vm5, %v4748_v6  ;;  %v5954_v6 = vpop.permute.xlu1 %3581 }
 0x460   : > { %4678 = vmatprep.mubr.msk.bf16.mxu1 %vm1498_vm5, %v4749_v58 }
 0x467   : > { %4679 = vmatmul.mubr.msk.bf16.gmra.mxu1 %vm1498_vm5, %v4750_v32 }
 0x468   : > { %4682 = vmatprep.mubr.msk.bf16.mxu1 %vm1498_vm5, %v4751_v0  ;;  %v3019_v0 = vld [vmem:[%s6606_s6 + $0x58] sm:$0xff] }
 0x46f   : > { %4683 = vmatmul.mubr.msk.bf16.gmra.mxu1 %vm1498_vm5, %v4752_v2  ;;  %v5959_v2 = vpop.permute.xlu0 %3483 }
 0x4f7   : > { %v4656_v30 = vpop.f32.mrf.mxu1 }
 0x4f8   : > { %v3042_v18 = vmul.f32 %v4656_v30, %v3010_v63 }
 0x4f9   : > { %v2881_v7 = vpop.f32.mrf.mxu1 }
 0x4fa   : > { %v3040_v39 = vmul.f32 %v3008_v49, %v2881_v7  ;;  %v3079_v51 = vsel %vm3072_vm6, %v3042_v18, 0.0  ;;  %v3017_v7 = vld [vmem:[%s6606_s6 + $0x48] sm:$0xff] }
 0x4fb   : > { %3080 = vadd.xlane.f32.xlu0 %v3079_v51  ;;  %v4657_v53 = vpop.f32.mrf.mxu1  ;;  %v3022_v51 = vld [vmem:[%s6606_s6 + $0x70] sm:$0xff] }
 0x4fc   : > { %v3043_v54 = vmul.f32 %v4657_v53, %v3011_v12  ;;  %v3073_v11 = vsel %vm3072_vm6, %v3040_v39, 0.0  ;;  %v5969_v53 = vpop.permute.xlu1 %3481 }
 0x4fd   : > { %v2884_v19 = vpop.f32.mrf.mxu1 }
 0x4fe   : > { %v3041_v34 = vmul.f32 %v3009_v8, %v2884_v19  ;;  %v3082_v62 = vsel %vm3072_vm6, %v3043_v54, 0.0 }
 0x4ff   : > { %3074 = vadd.xlane.f32.xlu0 %v3073_v11  ;;  %3083 = vadd.xlane.f32.xlu1 %v3082_v62  ;;  %v4660_v40 = vpop.f32.mrf.mxu1  ;;  %v5976_v11 = vpop.permute.xlu0 %3451 }
 0x500   : > { %v3046_v27 = vmul.f32 %v4660_v40, %v3014_v57  ;;  %v3076_v43 = vsel %vm3072_vm6, %v3041_v34, 0.0  ;;  %v3020_v34 = vld [vmem:[%s6606_s6 + $0x60] sm:$0xff] }
 0x501   : > { %v2897_v26 = vpop.f32.mrf.mxu1 }
 0x502   : > { %v3044_v56 = vmul.f32 %v3012_v31, %v2897_v26  ;;  %v3091_v60 = vsel %vm3072_vm6, %v3046_v27, 0.0  ;;  %v3023_v31 = vld [vmem:[%s6606_s6 + $0x78] sm:$0xff] }
 0x503   : > { %3077 = vadd.xlane.f32.xlu1 %v3076_v43  ;;  %3092 = vadd.xlane.f32.xlu0 %v3091_v60  ;;  %v4661_v28 = vpop.f32.mrf.mxu1  ;;  %v3021_v43 = vld [vmem:[%s6606_s6 + $0x68] sm:$0xff]  ;;  %v5986_v60 = vpop.permute.xlu1 %3449 }
 0x504   : > { %v3047_v21 = vmul.f32 %v4661_v28, %v3015_v36  ;;  %v3085_v4 = vsel %vm3072_vm6, %v3044_v56, 0.0 }
 0x505   : > { %v2900_v55 = vpop.f32.mrf.mxu1 }
 0x506   : > { %v3045_v3 = vmul.f32 %v3013_v61, %v2900_v55  ;;  %v3094_v5 = vsel %vm3072_vm6, %v3047_v21, 0.0  ;;  %v3026_v21 = vld [vmem:[%s6606_s6 + $0x90] sm:$0xff]  ;;  %v5991_v55 = vpop.permute.xlu0 %3611 }
 0x507   : > { %3086 = vadd.xlane.f32.xlu0 %v3085_v4  ;;  %3095 = vadd.xlane.f32.xlu1 %v3094_v5  ;;  %v4664_v17 = vpop.f32.mrf.mxu1  ;;  %6642 = vst [vmem:[#allocation16_spill] sm:$0xff] %v5991_v55 }
 0x508   : > { %v3050_v58 = vmul.f32 %v4664_v17, %v3018_v59  ;;  %v3088_v30 = vsel %vm3072_vm6, %v3045_v3, 0.0  ;;  %v3024_v17 = vld [vmem:[%s6606_s6 + $0x80] sm:$0xff] }
 0x509   : > { %v2913_v32 = vpop.f32.mrf.mxu1 }
 0x50a   : > { %v3048_v63 = vmul.f32 %v3016_v23, %v2913_v32  ;;  %v3103_v49 = vsel %vm3072_vm6, %v3050_v58, 0.0  ;;  %v3027_v32 = vld [vmem:[%s6606_s6 + $0x98] sm:$0xff] }
 0x50b   : > { %3089 = vadd.xlane.f32.xlu1 %v3088_v30  ;;  %3104 = vadd.xlane.f32.xlu0 %v3103_v49  ;;  %v4665_v18 = vpop.f32.mrf.mxu1 }
 0x50c   : > { %v3051_v12 = vmul.f32 %v4665_v18, %v3019_v0  ;;  %v3097_v54 = vsel %vm3072_vm6, %v3048_v63, 0.0  ;;  %v6001_v0 = vpop.permute.xlu1 %3609 }
 0x50d   : > { %v2916_v39 = vpop.f32.mrf.mxu1  ;;  %6643 = vst [vmem:[#allocation17_spill] sm:$0xff] %v6001_v0  ;;  %v6672_v0 = vld [vmem:[#allocation6_spill] sm:$0xff] }
 0x50e   : > { %v3049_v8 = vmul.f32 %v3017_v7, %v2916_v39  ;;  %v3106_v19 = vsel %vm3072_vm6, %v3051_v12, 0.0  ;;  %v3025_v7 = vld [vmem:[%s6606_s6 + $0x88] sm:$0xff]  ;;  %v6008_v12 = vpop.permute.xlu0 %3579 }
 0x50f   : > { %3098 = vadd.xlane.f32.xlu0 %v3097_v54  ;;  %3107 = vadd.xlane.f32.xlu1 %v3106_v19  ;;  %v4668_v57 = vpop.f32.mrf.mxu1  ;;  %6644 = vst [vmem:[#allocation18_spill] sm:$0xff] %v6008_v12 }
 0x510   : > { %v3054_v62 = vmul.f32 %v4668_v57, %v3022_v51  ;;  %v3100_v26 = vsel %vm3072_vm6, %v3049_v8, 0.0  ;;  %v3030_v8 = vld [vmem:[%s6606_s6 + $0xb0] sm:$0xff] }
 0x511   : > { %v2929_v40 = vpop.f32.mrf.mxu1 }
 0x512   : > { %v3052_v27 = vmul.f32 %v3020_v34, %v2929_v40  ;;  %v3115_v36 = vsel %vm3072_vm6, %v3054_v62, 0.0  ;;  %v3028_v62 = vld [vmem:[%s6606_s6 + $0xa0] sm:$0xff]  ;;  %v6018_v40 = vpop.permute.xlu1 %3577 }
 0x513   : > { %3101 = vadd.xlane.f32.xlu1 %v3100_v26  ;;  %3116 = vadd.xlane.f32.xlu0 %v3115_v36  ;;  %v4669_v56 = vpop.f32.mrf.mxu1  ;;  %6645 = vst [vmem:[#allocation19_spill] sm:$0xff] %v6018_v40  ;;  %v3031_v26 = vld [vmem:[%s6606_s6 + $0xb8] sm:$0xff]  ;;  %v6023_v36 = vpop.permute.xlu0 %3479 }
 0x514   : > { %v3055_v28 = vmul.f32 %v4669_v56, %v3023_v31  ;;  %v3109_v3 = vsel %vm3072_vm6, %v3052_v27, 0.0 }
 0x515   : > { %v2932_v61 = vpop.f32.mrf.mxu1 }
 0x516   : > { %v3053_v59 = vmul.f32 %v3021_v43, %v2932_v61  ;;  %v3118_v4 = vsel %vm3072_vm6, %v3055_v28, 0.0 }
 0x517   : > { %3110 = vadd.xlane.f32.xlu0 %v3109_v3  ;;  %3119 = vadd.xlane.f32.xlu1 %v3118_v4  ;;  %v4672_v5 = vpop.f32.mrf.mxu1  ;;  %v3034_v4 = vld [vmem:[%s6606_s6 + $0xd0] sm:$0xff] }
 0x518   : > { %v3058_v23 = vmul.f32 %v4672_v5, %v3026_v21  ;;  %v3112_v30 = vsel %vm3072_vm6, %v3053_v59, 0.0  ;;  %v3029_v21 = vld [vmem:[%s6606_s6 + $0xa8] sm:$0xff]  ;;  %v6033_v5 = vpop.permute.xlu1 %3477 }
 0x519   : > { %v2945_v58 = vpop.f32.mrf.mxu1  ;;  %6646 = vst [vmem:[#allocation20_spill] sm:$0xff] %v6033_v5 }
 0x51a   : > { %v3056_v63 = vmul.f32 %v3024_v17, %v2945_v58  ;;  %v3127_v49 = vsel %vm3072_vm6, %v3058_v23, 0.0 }
 0x51b   : > { %3113 = vadd.xlane.f32.xlu1 %v3112_v30  ;;  %3128 = vadd.xlane.f32.xlu0 %v3127_v49  ;;  %v4673_v18 = vpop.f32.mrf.mxu1  ;;  %v6040_v30 = vpop.permute.xlu0 %3447 }
 0x51c   : > { %v3059_v39 = vmul.f32 %v4673_v18, %v3027_v32  ;;  %v3121_v19 = vsel %vm3072_vm6, %v3056_v63, 0.0  ;;  %v3032_v63 = vld [vmem:[%s6606_s6 + $0xc0] sm:$0xff]  ;;  %6647 = vst [vmem:[#allocation21_spill] sm:$0xff] %v6040_v30 }
 0x51d   : > { %v2948_v51 = vpop.f32.mrf.mxu1 }
 0x51e   : > { %v3057_v54 = vmul.f32 %v3025_v7, %v2948_v51  ;;  %v3130_v57 = vsel %vm3072_vm6, %v3059_v39, 0.0  ;;  %v3035_v7 = vld [vmem:[%s6606_s6 + $0xd8] sm:$0xff] }
 0x51f   : > { %3122 = vadd.xlane.f32.xlu0 %v3121_v19  ;;  %3131 = vadd.xlane.f32.xlu1 %v3130_v57  ;;  %v4676_v34 = vpop.f32.mrf.mxu1  ;;  %v3033_v19 = vld [vmem:[%s6606_s6 + $0xc8] sm:$0xff]  ;;  %v6050_v57 = vpop.permute.xlu1 %3445 }
 0x520   : > { %v3062_v31 = vmul.f32 %v4676_v34, %v3030_v8  ;;  %v3124_v43 = vsel %vm3072_vm6, %v3057_v54, 0.0 }
 0x521   : > { %v2961_v27 = vpop.f32.mrf.mxu1 }
 0x522   : > { %v3060_v56 = vmul.f32 %v3028_v62, %v2961_v27  ;;  %v3139_v28 = vsel %vm3072_vm6, %v3062_v31, 0.0  ;;  %v6052_v31 = vpop.permute.xlu0 %3607 }
 0x523   : > { %3125 = vadd.xlane.f32.xlu1 %v3124_v43  ;;  %3140 = vadd.xlane.f32.xlu0 %v3139_v28  ;;  %v4677_v61 = vpop.f32.mrf.mxu1  ;;  %6648 = vst [vmem:[#allocation22_spill] sm:$0xff] %v6052_v31  ;;  %v3038_v28 = vld [vmem:[%s6606_s6 + $0xf0] sm:$0xff] }
 0x524   : > { %v3063_v59 = vmul.f32 %v4677_v61, %v3031_v26  ;;  %v3133_v23 = vsel %vm3072_vm6, %v3060_v56, 0.0  ;;  %v3036_v61 = vld [vmem:[%s6606_s6 + $0xe0] sm:$0xff] }
 0x525   : > { %v2964_v3 = vpop.f32.mrf.mxu1 }
 0x526   : > { %v3061_v17 = vmul.f32 %v3029_v21, %v2964_v3  ;;  %v3142_v58 = vsel %vm3072_vm6, %v3063_v59, 0.0  ;;  %v3039_v59 = vld [vmem:[%s6606_s6 + $0xf8] sm:$0xff]  ;;  %v6065_v3 = vpop.permute.xlu1 %3605 }
 0x527   : > { %3134 = vadd.xlane.f32.xlu0 %v3133_v23  ;;  %3143 = vadd.xlane.f32.xlu1 %v3142_v58  ;;  %v4680_v32 = vpop.f32.mrf.mxu1  ;;  %6649 = vst [vmem:[#allocation23_spill] sm:$0xff] %v6065_v3 }
 0x528   : > { %v3066_v49 = vmul.f32 %v4680_v32, %v3034_v4  ;;  %v3136_v51 = vsel %vm3072_vm6, %v3061_v17, 0.0  ;;  %v3037_v32 = vld [vmem:[%s6606_s6 + $0xe8] sm:$0xff] }
 0x529   : > { %v2977_v18 = vpop.f32.mrf.mxu1 }
 0x52a   : > { %v3064_v39 = vmul.f32 %v3032_v63, %v2977_v18  ;;  %v3151_v8 = vsel %vm3072_vm6, %v3066_v49, 0.0  ;;  %v6071_v63 = vpop.permute.xlu0 %3575 }
 0x52b   : > { %3137 = vadd.xlane.f32.xlu1 %v3136_v51  ;;  %3152 = vadd.xlane.f32.xlu0 %v3151_v8  ;;  %v4681_v54 = vpop.f32.mrf.mxu1  ;;  %6650 = vst [vmem:[#allocation24_spill] sm:$0xff] %v6071_v63  ;;  %v6075_v8 = vpop.permute.xlu1 %3573 }
 0x52c   : > { %v3067_v34 = vmul.f32 %v4681_v54, %v3035_v7  ;;  %v3145_v26 = vsel %vm3072_vm6, %v3064_v39, 0.0 }
 0x52d   : > { %v2980_v62 = vpop.f32.mrf.mxu1 }
 0x52e   : > { %v3065_v27 = vmul.f32 %v3033_v19, %v2980_v62  ;;  %v3154_v56 = vsel %vm3072_vm6, %v3067_v34, 0.0  ;;  %v6078_v19 = vpop.permute.xlu0 %3475 }
 0x52f   : > { %3146 = vadd.xlane.f32.xlu0 %v3145_v26  ;;  %3155 = vadd.xlane.f32.xlu1 %v3154_v56  ;;  %v4684_v43 = vpop.f32.mrf.mxu1  ;;  %6651 = vst [vmem:[#allocation25_spill] sm:$0xff] %v6078_v19  ;;  %v6081_v62 = vpop.permute.xlu1 %3473 }
 0x530   : > { %v3070_v4 = vmul.f32 %v4684_v43, %v3038_v28  ;;  %v3148_v23 = vsel %vm3072_vm6, %v3065_v27, 0.0  ;;  %6652 = vst [vmem:[#allocation26_spill] sm:$0xff] %v6081_v62 }
 0x531   : > { %v2993_v21 = vpop.f32.mrf.mxu1 }
 0x532   : > { %v3068_v17 = vmul.f32 %v3036_v61, %v2993_v21  ;;  %v3163_v51 = vsel %vm3072_vm6, %v3070_v4, 0.0  ;;  %v6083_v27 = vpop.permute.xlu0 %3443 }
 0x533   : > { %3149 = vadd.xlane.f32.xlu1 %v3148_v23  ;;  %v4685_v58 = vpop.f32.mrf.mxu1  ;;  %6653 = vst [vmem:[#allocation27_spill] sm:$0xff] %v6083_v27  ;;  %v6085_v26 = vpop.permute.xlu1 %3441 }
 0x534   : > { %v3071_v49 = vmul.f32 %v4685_v58, %v3039_v59  ;;  %v3157_v18 = vsel %vm3072_vm6, %v3068_v17, 0.0  ;;  %6654 = vst [vmem:[#allocation28_spill] sm:$0xff] %v6085_v26 }
 0x535   : > { %3158 = vadd.xlane.f32.xlu0 %v3157_v18  ;;  %v2996_v7 = vpop.f32.mrf.mxu1 }
 0x536   : > { %v3069_v39 = vmul.f32 %v3037_v32, %v2996_v7  ;;  %v3166_v54 = vsel %vm3072_vm6, %v3071_v49, 0.0  ;;  %v6087_v56 = vpop.permute.xlu0 %3603 }
 0x537   : > { %3164 = vadd.xlane.f32.xlu1 %v3163_v51  ;;  %6655 = vst [vmem:[#allocation29_spill] sm:$0xff] %v6087_v56  ;;  %v6089_v43 = vpop.permute.xlu1 %3601 }
 0x538   : > { %v3160_v34 = vsel %vm3072_vm6, %v3069_v39, 0.0  ;;  %6656 = vst [vmem:[#allocation30_spill] sm:$0xff] %v6089_v43 }
 0x539   : > { %3167 = vadd.xlane.f32.xlu0 %v3166_v54 }
 0x53a   : > { %v6091_v28 = vpop.permute.xlu0 %3571 }
 0x53b   : > { %3161 = vadd.xlane.f32.xlu1 %v3160_v34  ;;  %6657 = vst [vmem:[#allocation31_spill] sm:$0xff] %v6091_v28  ;;  %v6093_v61 = vpop.permute.xlu1 %3569 }
 0x53c   : > { %6658 = vst [vmem:[#allocation32_spill] sm:$0xff] %v6093_v61  ;;  %v3271_v61 = vsub.f32 0.0, %v5511_v10 }
 0x53e   : > { %v6095_v21 = vpop.permute.xlu0 %3471 }
 0x53f   : > { %6659 = vst [vmem:[#allocation33_spill] sm:$0xff] %v6095_v21  ;;  %v6097_v59 = vpop.permute.xlu1 %3469 }
 0x540   : > { %6660 = vst [vmem:[#allocation34_spill] sm:$0xff] %v6097_v59 }
 0x542   : > { %v6099_v4 = vpop.permute.xlu0 %3439 }
 0x543   : > { %v6101_v17 = vpop.permute.xlu1 %3437 }
 0x546   : > { %v6103_v23 = vpop.permute.xlu0 %3599 }
 0x547   : > { %6661 = vst [vmem:[#allocation35_spill] sm:$0xff] %v6103_v23  ;;  %v6105_v58 = vpop.permute.xlu1 %3597 }
 0x548   : > { %6662 = vst [vmem:[#allocation36_spill] sm:$0xff] %v6105_v58  ;;  %v3267_v58 = vsub.f32 0.0, %v5549_v20  ;;  %v3272_v20 = vsub.f32 0.0, %v5515_v35 }
 0x54a   : > { %v6107_v32 = vpop.permute.xlu0 %3567  ;;  %v3301_v43 = vmul.f32 1.442695, %v3267_v58  ;;  %v3270_v58 = vsub.f32 0.0, %v5534_v14 }
 0x54b   : > { %v6109_v49 = vpop.permute.xlu1 %3565 }
 0x54c   : > { %4753 = vpow2.f32 %v3301_v43  ;;  %v6669_v43 = vld [vmem:[#allocation2_spill] sm:$0xff]  ;;  %v3307_v35 = vmul.f32 1.442695, %v3270_v58 }
 0x54d   : > { %v3275_v3 = vsub.f32 0.0, %v6669_v43 }
 0x54e   : > { %v6111_v18 = vpop.permute.xlu0 %3467 }
 0x54f   : > { %6663 = vst [vmem:[#allocation37_spill] sm:$0xff] %v6111_v18  ;;  %v6113_v7 = vpop.permute.xlu1 %3465  ;;  %v3268_v18 = vsub.f32 0.0, %v5553_v37 }
 0x550   : > { %6664 = vst [vmem:[#allocation38_spill] sm:$0xff] %v6113_v7 }
 0x551   : > { %v3303_v56 = vmul.f32 1.442695, %v3268_v18  ;;  %v6670_v18 = vld [vmem:[#allocation3_spill] sm:$0xff] }
 0x552   : > { %v6115_v39 = vpop.permute.xlu0 %3435  ;;  %v3273_v19 = vsub.f32 0.0, %v6670_v18 }
 0x553   : > { %v6117_v51 = vpop.permute.xlu1 %3433 }
 0x556   : > { %v6119_v54 = vpop.permute.xlu0 %3595 }
 0x557   : > { %6665 = vst [vmem:[#allocation39_spill] sm:$0xff] %v6119_v54  ;;  %v6121_v34 = vpop.permute.xlu1 %3593 }
 0x558   : > { %6666 = vst [vmem:[#allocation40_spill] sm:$0xff] %v6121_v34  ;;  %v3269_v34 = vsub.f32 0.0, %v5530_v46 }
 0x559   : > { %v4754_v18 = vpop.eup %4753 }
 0x55a   : > { %v6123_v59 = vpop.permute.xlu0 %3563  ;;  %v3363_v31 = vsub.f32 1.0, %v4754_v18 }
 0x55b   : > { %v6126_v23 = vpop.permute.xlu1 %3561 }
 0x55e   : > { %v6128_v28 = vpop.permute.xlu0 %3463 }
 0x55f   : > { %6667 = vst [vmem:[#allocation41_spill] sm:$0xff] %v6128_v28  ;;  %v6131_v7 = vpop.permute.xlu1 %3461  ;;  %v3309_v28 = vmul.f32 1.442695, %v3271_v61  ;;  %v3317_v61 = vmul.f32 1.442695, %v3275_v3  ;;  %v6673_v3 = vld [vmem:[#allocation5_spill] sm:$0xff] }
 0x560   : > { %6668 = vst [vmem:[#allocation42_spill] sm:$0xff] %v6131_v7  ;;  %v3305_v7 = vmul.f32 1.442695, %v3269_v34 }
 0x584   : > { %v3081_v21 = vpop.xlane.xlu0 %3080 }
 0x585   : > { %v3171_v54 = vsub.f32 0.0, %v3081_v21  ;;  %v3311_v21 = vmul.f32 1.442695, %v3272_v20 }
 0x587   : > { %v3205_v27 = vmul.f32 1.442695, %v3171_v54 }
 0x588   : > { %v6136_v62 = vpop.xlane.xlu0 %3074  ;;  %v3084_v63 = vpop.xlane.xlu1 %3083 }
 0x589   : > { %4755 = vpow2.f32 %v3205_v27  ;;  %v3172_v37 = vsub.f32 0.0, %v3084_v63  ;;  %v3313_v63 = vmul.f32 1.442695, %v3273_v19  ;;  %v6671_v27 = vld [vmem:[#allocation4_spill] sm:$0xff] }
 0x58a   : > { %4757 = vpow2.f32 %v3303_v56  ;;  %v3276_v56 = vsub.f32 0.0, %v6671_v27 }
 0x58b   : > { %v3207_v10 = vmul.f32 1.442695, %v3172_v37  ;;  %4759 = vpow2.f32 %v3309_v28  ;;  %v3274_v28 = vsub.f32 0.0, %v6672_v0 }
 0x58c   : > { %v6141_v46 = vpop.xlane.xlu1 %3077  ;;  %v3093_v54 = vpop.xlane.xlu0 %3092 }
 0x58d   : > { %v3175_v55 = vsub.f32 0.0, %v3093_v54  ;;  %4761 = vpow2.f32 %v3207_v10 }
 0x58e   : > { %4763 = vpow2.f32 %v3305_v7  ;;  %v3319_v7 = vmul.f32 1.442695, %v3276_v56  ;;  %v6675_v56 = vld [vmem:[#allocation8_spill] sm:$0xff] }
 0x58f   : > { %v3213_v14 = vmul.f32 1.442695, %v3175_v55  ;;  %4765 = vpow2.f32 %v3311_v21  ;;  %v3279_v55 = vsub.f32 0.0, %v6673_v3 }
 0x590   : > { %v3087_v34 = vpop.xlane.xlu0 %3086  ;;  %v3096_v43 = vpop.xlane.xlu1 %3095  ;;  %4767 = vpow2.f32 %v3307_v35 }
 0x591   : > { %v3173_v20 = vsub.f32 0.0, %v3087_v34  ;;  %v3176_v37 = vsub.f32 0.0, %v3096_v43  ;;  %4769 = vpow2.f32 %v3213_v14  ;;  %v6674_v34 = vld [vmem:[#allocation7_spill] sm:$0xff] }
 0x592   : > { %4771 = vpow2.f32 %v3317_v61  ;;  %v3277_v43 = vsub.f32 0.0, %v6674_v34  ;;  %v3315_v61 = vmul.f32 1.442695, %v3274_v28  ;;  %v6676_v28 = vld [vmem:[#allocation9_spill] sm:$0xff] }
 0x593   : > { %v3209_v58 = vmul.f32 1.442695, %v3173_v20  ;;  %v3215_v54 = vmul.f32 1.442695, %v3176_v37  ;;  %4773 = vpow2.f32 %v3313_v63  ;;  %v3325_v63 = vmul.f32 1.442695, %v3279_v55 }
 0x594   : > { %v3090_v10 = vpop.xlane.xlu1 %3089  ;;  %v3105_v19 = vpop.xlane.xlu0 %3104  ;;  %v3280_v37 = vsub.f32 0.0, %v6675_v56 }
 0x595   : > { %4775 = vpow2.f32 %v3209_v58  ;;  %v3174_v21 = vsub.f32 0.0, %v3090_v10  ;;  %v3179_v27 = vsub.f32 0.0, %v3105_v19  ;;  %v3321_v19 = vmul.f32 1.442695, %v3277_v43 }
 0x596   : > { %v4756_v35 = vpop.eup %4755  ;;  %4777 = vpow2.f32 %v3215_v54  ;;  %v3327_v55 = vmul.f32 1.442695, %v3280_v37 }
 0x597   : > { %v4758_v14 = vpop.eup %4757  ;;  %v3211_v5 = vmul.f32 1.442695, %v3174_v21  ;;  %v3221_v0 = vmul.f32 1.442695, %v3179_v27  ;;  %v3395_v20 = vmul.f32 %v4756_v35, %v3363_v31  ;;  %4779 = vpow2.f32 %v3319_v7 }
 0x598   : > { %v3099_v3 = vpop.xlane.xlu0 %3098  ;;  %v3108_v12 = vpop.xlane.xlu1 %3107  ;;  %v3364_v34 = vsub.f32 1.0, %v4758_v14  ;;  %v3278_v21 = vsub.f32 0.0, %v6676_v28  ;;  %v3283_v35 = vsub.f32 0.0, %v5542_v24  ;;  %v3284_v24 = vsub.f32 0.0, %v5546_v29 }
 0x599   : > { %4781 = vpow2.f32 %v3211_v5  ;;  %v3177_v58 = vsub.f32 0.0, %v3099_v3  ;;  %v3180_v10 = vsub.f32 0.0, %v3108_v12  ;;  %3727 = vperm.xlu1 %4700, %v3395_v20   ;;  %v4760_v18 = vpop.eup %4759 }
 0x59a   : > { %4783 = vpow2.f32 %v3221_v0  ;;  %v4762_v54 = vpop.eup %4761  ;;  %v3367_v14 = vsub.f32 1.0, %v4760_v18  ;;  %v3333_v37 = vmul.f32 1.442695, %v3283_v35  ;;  %v3335_v29 = vmul.f32 1.442695, %v3284_v24 }
 0x59b   : > { %4785 = vpow2.f32 %v3315_v61  ;;  %v3217_v27 = vmul.f32 1.442695, %v3177_v58  ;;  %v3223_v31 = vmul.f32 1.442695, %v3180_v10  ;;  %v4764_v7 = vpop.eup %4763  ;;  %v3396_v3 = vmul.f32 %v4762_v54, %v3364_v34 }
 0x59c   : > { %4787 = vpow2.f32 %v3325_v63  ;;  %v3102_v56 = vpop.xlane.xlu1 %3101  ;;  %v3117_v5 = vpop.xlane.xlu0 %3116  ;;  %v3323_v58 = vmul.f32 1.442695, %v3278_v21 }
 0x59d   : > { %v4766_v12 = vpop.eup %4765  ;;  %4789 = vpow2.f32 %v3217_v27  ;;  %v3178_v20 = vsub.f32 0.0, %v3102_v56  ;;  %v3183_v43 = vsub.f32 0.0, %v3117_v5  ;;  %3732 = vperm.xlu0 %4701, %v3396_v3   ;;  %v6151_v21 = vpop.f32.mrf.mxu0 }
 0x59e   : > { %v4768_v0 = vpop.eup %4767  ;;  %4791 = vpow2.f32 %v3223_v31  ;;  %v3365_v31 = vsub.f32 1.0, %v4764_v7  ;;  %v3368_v18 = vsub.f32 1.0, %v4766_v12  ;;  %v3287_v7 = vsub.f32 0.0, %v5503_v13 }
 0x59f   : > { %v4770_v61 = vpop.eup %4769  ;;  %4793 = vpow2.f32 %v3321_v19  ;;  %v3219_v10 = vmul.f32 1.442695, %v3178_v20  ;;  %v3229_v28 = vmul.f32 1.442695, %v3183_v43  ;;  %v3288_v13 = vsub.f32 0.0, %v5498_v33 }
 0x5a0   : > { %v4772_v63 = vpop.eup %4771  ;;  %4795 = vpow2.f32 %v3327_v55  ;;  %v3111_v40 = vpop.xlane.xlu0 %3110  ;;  %v3399_v54 = vmul.f32 %v4770_v61, %v3367_v14 }
 0x5a1   : > { %v3120_v34 = vpop.xlane.xlu1 %3119  ;;  %v4774_v27 = vpop.eup %4773  ;;  %4797 = vpow2.f32 %v3219_v10  ;;  %v3181_v56 = vsub.f32 0.0, %v3111_v40  ;;  %v3366_v10 = vsub.f32 1.0, %v4768_v0 }
 0x5a2   : > { %v3184_v5 = vsub.f32 0.0, %v3120_v34  ;;  %v4776_v3 = vpop.eup %4775  ;;  %4799 = vpow2.f32 %v3229_v28  ;;  %3747 = vperm.xlu1 %4700, %v3399_v54  }
 0x5a3   : > { %v4778_v19 = vpop.eup %4777  ;;  %4801 = vpow2.f32 %v3323_v58  ;;  %v3225_v55 = vmul.f32 1.442695, %v3181_v56  ;;  %v3397_v20 = vmul.f32 %v4776_v3, %v3365_v31  ;;  %v3371_v58 = vsub.f32 1.0, %v4772_v63 }
 0x5a4   : > { %v3231_v35 = vmul.f32 1.442695, %v3184_v5  ;;  %4803 = vpow2.f32 %v3333_v37  ;;  %v3129_v14 = vpop.xlane.xlu0 %3128  ;;  %v3400_v61 = vmul.f32 %v4778_v19, %v3368_v18  ;;  %v4780_v40 = vpop.eup %4779  ;;  %v3285_v56 = vsub.f32 0.0, %v5520_v25 }
 0x5a5   : > { %v3114_v43 = vpop.xlane.xlu1 %3113  ;;  %4805 = vpow2.f32 %v3225_v55  ;;  %v3187_v34 = vsub.f32 0.0, %v3129_v14  ;;  %v6155_v37 = vpop.f32.mrf.mxu0  ;;  %v3369_v55 = vsub.f32 1.0, %v4774_v27  ;;  %v3286_v63 = vsub.f32 0.0, %v5524_v9 }
 0x5a6   : > { %v3182_v28 = vsub.f32 0.0, %v3114_v43  ;;  %v4782_v12 = vpop.eup %4781  ;;  %4807 = vpow2.f32 %v3231_v35  ;;  %3752 = vperm.xlu0 %4701, %v3400_v61   ;;  %3737 = vperm.xlu1 %4700, %v3397_v20   ;;  %v3341_v20 = vmul.f32 1.442695, %v3287_v7  ;;  %v3372_v14 = vsub.f32 1.0, %v4780_v40  ;;  %v6678_v7 = vld [vmem:[#allocation11_spill] sm:$0xff] }
 0x5a7   : > { %v4784_v54 = vpop.eup %4783  ;;  %v3237_v5 = vmul.f32 1.442695, %v3187_v34  ;;  %v3398_v31 = vmul.f32 %v4782_v12, %v3366_v10  ;;  %4809 = vpow2.f32 %v3335_v29  ;;  %v3337_v29 = vmul.f32 1.442695, %v3285_v56  ;;  %v6677_v10 = vld [vmem:[#allocation10_spill] sm:$0xff] }
 0x5a8   : > { %v3227_v24 = vmul.f32 1.442695, %v3182_v28  ;;  %v4786_v0 = vpop.eup %4785  ;;  %v6158_v3 = vpop.xlane.xlu0 %3122  ;;  %v3403_v19 = vmul.f32 %v4784_v54, %v3371_v58  ;;  %v3291_v33 = vsub.f32 0.0, %v6677_v10  ;;  %v3343_v58 = vmul.f32 1.442695, %v3288_v13 }
 0x5a9   : > { %v3132_v18 = vpop.xlane.xlu1 %3131  ;;  %v4788_v35 = vpop.eup %4787  ;;  %v3289_v54 = vsub.f32 0.0, %v6678_v7 }
 0x5aa   : > { %4811 = vpow2.f32 %v3227_v24  ;;  %v3188_v25 = vsub.f32 0.0, %v3132_v18  ;;  %v4790_v43 = vpop.eup %4789  ;;  %3742 = vperm.xlu0 %4701, %v3398_v31   ;;  %3767 = vperm.xlu1 %4700, %v3403_v19   ;;  %v6162_v28 = vpop.f32.mrf.mxu0  ;;  %v3339_v31 = vmul.f32 1.442695, %v3286_v63  ;;  %v3370_v19 = vsub.f32 1.0, %v4786_v0 }
 0x5ab   : > { %4813 = vpow2.f32 %v3237_v5  ;;  %v4792_v61 = vpop.eup %4791  ;;  %v3401_v12 = vmul.f32 %v4790_v43, %v3369_v55  ;;  %v3375_v10 = vsub.f32 1.0, %v4788_v35  ;;  %v3349_v55 = vmul.f32 1.442695, %v3291_v33 }
 0x5ac   : > { %v3239_v34 = vmul.f32 1.442695, %v3188_v25  ;;  %v4794_v27 = vpop.eup %4793  ;;  %v3141_v24 = vpop.xlane.xlu0 %3140  ;;  %v3404_v18 = vmul.f32 %v4792_v61, %v3372_v14  ;;  %4815 = vpow2.f32 %v3341_v20  ;;  %v3345_v14 = vmul.f32 1.442695, %v3289_v54  ;;  %v6679_v61 = vld [vmem:[#allocation12_spill] sm:$0xff] }
 0x5ad   : > { %v6165_v9 = vpop.xlane.xlu1 %3125  ;;  %v4796_v5 = vpop.eup %4795  ;;  %v3191_v40 = vsub.f32 0.0, %v3141_v24  ;;  %v3292_v20 = vsub.f32 0.0, %v6679_v61  ;;  %v3373_v35 = vsub.f32 1.0, %v4794_v27 }
 0x5ae   : > { %v4798_v56 = vpop.eup %4797  ;;  %4817 = vpow2.f32 %v3239_v34  ;;  %3772 = vperm.xlu0 %4701, %v3404_v18   ;;  %3757 = vperm.xlu1 %4700, %v3401_v12   ;;  %v6167_v13 = vpop.f32.mrf.mxu0 }
 0x5af   : > { %v4800_v25 = vpop.eup %4799  ;;  %4819 = vpow2.f32 %v3337_v29  ;;  %v3245_v43 = vmul.f32 1.442695, %v3191_v40  ;;  %v3402_v7 = vmul.f32 %v4798_v56, %v3370_v19  ;;  %v3376_v29 = vsub.f32 1.0, %v4796_v5 }
 0x5b0   : > { %v4802_v26 = vpop.eup %4801  ;;  %4821 = vpow2.f32 %v3343_v58  ;;  %v3135_v63 = vpop.xlane.xlu0 %3134  ;;  %v3407_v0 = vmul.f32 %v4800_v25, %v3375_v10  ;;  %v3351_v56 = vmul.f32 1.442695, %v3292_v20  ;;  %v3290_v10 = vsub.f32 0.0, %v5482_v16 }
 0x5b1   : > { %v3144_v24 = vpop.xlane.xlu1 %3143  ;;  %v4804_v30 = vpop.eup %4803  ;;  %4823 = vpow2.f32 %v3339_v31  ;;  %v3189_v34 = vsub.f32 0.0, %v3135_v63  ;;  %v3374_v63 = vsub.f32 1.0, %v4802_v26 }
 0x5b2   : > { %v3192_v12 = vsub.f32 0.0, %v3144_v24  ;;  %v4806_v18 = vpop.eup %4805  ;;  %4825 = vpow2.f32 %v3245_v43  ;;  %3762 = vperm.xlu0 %4701, %v3402_v7   ;;  %3787 = vperm.xlu1 %4700, %v3407_v0   ;;  %v6170_v40 = vpop.f32.mrf.mxu0  ;;  %v3293_v0 = vsub.f32 0.0, %v5486_v44 }
 0x5b3   : > { %v4808_v33 = vpop.eup %4807  ;;  %4827 = vpow2.f32 %v3349_v55  ;;  %v3241_v58 = vmul.f32 1.442695, %v3189_v34  ;;  %v3405_v19 = vmul.f32 %v4806_v18, %v3373_v35  ;;  %v3379_v55 = vsub.f32 1.0, %v4804_v30 }
 0x5b4   : > { %v3247_v54 = vmul.f32 1.442695, %v3192_v12  ;;  %4829 = vpow2.f32 %v3345_v14  ;;  %v3153_v25 = vpop.xlane.xlu0 %3152  ;;  %v3408_v61 = vmul.f32 %v4808_v33, %v3376_v29  ;;  %v4810_v27 = vpop.eup %4809  ;;  %v3347_v12 = vmul.f32 1.442695, %v3290_v10 }
 0x5b5   : > { %v3138_v31 = vpop.xlane.xlu1 %3137  ;;  %4831 = vpow2.f32 %v3241_v58  ;;  %v3195_v7 = vsub.f32 0.0, %v3153_v25  ;;  %v6174_v14 = vpop.f32.mrf.mxu0  ;;  %v3295_v35 = vsub.f32 0.0, %v5490_v41  ;;  %v3296_v30 = vsub.f32 0.0, %v5494_v48 }
 0x5b6   : > { %v3190_v43 = vsub.f32 0.0, %v3138_v31  ;;  %4833 = vpow2.f32 %v3247_v54  ;;  %3792 = vperm.xlu0 %4701, %v3408_v61   ;;  %3777 = vperm.xlu1 %4700, %v3405_v19   ;;  %v3380_v44 = vsub.f32 1.0, %v4810_v27  ;;  %v3353_v31 = vmul.f32 1.442695, %v3293_v0 }
 0x5b7   : > { %v4812_v5 = vpop.eup %4811  ;;  %v3253_v16 = vmul.f32 1.442695, %v3195_v7  ;;  %4835 = vpow2.f32 %v3351_v56  ;;  %v3357_v41 = vmul.f32 1.442695, %v3295_v35  ;;  %v6178_v61 = vpop.f32.mrf.mxu0  ;;  %v3359_v48 = vmul.f32 1.442695, %v3296_v30 }
 0x5b8   : > { %v4814_v24 = vpop.eup %4813  ;;  %v3243_v20 = vmul.f32 1.442695, %v3190_v43  ;;  %v3406_v34 = vmul.f32 %v4812_v5, %v3374_v63  ;;  %v3147_v18 = vpop.xlane.xlu0 %3146 }
 0x5b9   : > { %v3156_v29 = vpop.xlane.xlu1 %3155  ;;  %v3411_v26 = vmul.f32 %v4814_v24, %v3379_v55  ;;  %v3193_v33 = vsub.f32 0.0, %v3147_v18  ;;  %v4816_v54 = vpop.eup %4815 }
 0x5ba   : > { %4837 = vpow2.f32 %v3243_v20  ;;  %v3196_v58 = vsub.f32 0.0, %v3156_v29  ;;  %3782 = vperm.xlu0 %4701, %v3406_v34   ;;  %v3383_v27 = vsub.f32 1.0, %v4816_v54 }
 0x5bb   : > { %4839 = vpow2.f32 %v3253_v16  ;;  %3807 = vperm.xlu1 %4700, %v3411_v26   ;;  %v4818_v19 = vpop.eup %4817  ;;  %v3249_v25 = vmul.f32 1.442695, %v3193_v33 }
 0x5bc   : > { %v3255_v56 = vmul.f32 1.442695, %v3196_v58  ;;  %v4820_v10 = vpop.eup %4819  ;;  %4841 = vpow2.f32 %v3347_v12  ;;  %v3412_v7 = vmul.f32 %v4818_v19, %v3380_v44  ;;  %v6180_v12 = vpop.f32.mrf.mxu0 }
 0x5bd   : > { %v3150_v43 = vpop.xlane.xlu1 %3149  ;;  %v4822_v63 = vpop.eup %4821  ;;  %4843 = vpow2.f32 %v3249_v25  ;;  %v3381_v58 = vsub.f32 1.0, %v4820_v10  ;;  %v3294_v10 = vsub.f32 0.0, %v5508_v45 }
 0x5be   : > { %v3194_v5 = vsub.f32 0.0, %v3150_v43  ;;  %v4824_v55 = vpop.eup %4823  ;;  %4845 = vpow2.f32 %v3255_v56  ;;  %3812 = vperm.xlu0 %4701, %v3412_v7   ;;  %v3159_v24 = vpop.xlane.xlu0 %3158  ;;  %v3384_v54 = vsub.f32 1.0, %v4822_v63 }
 0x5bf   : > { %v4826_v20 = vpop.eup %4825  ;;  %4847 = vpow2.f32 %v3353_v31  ;;  %v3197_v16 = vsub.f32 0.0, %v3159_v24  ;;  %v3355_v45 = vmul.f32 1.442695, %v3294_v10 }
 0x5c0   : > { %v3251_v0 = vmul.f32 1.442695, %v3194_v5  ;;  %v4828_v34 = vpop.eup %4827  ;;  %4849 = vpow2.f32 %v3357_v41  ;;  %v3415_v18 = vmul.f32 %v4826_v20, %v3383_v27  ;;  %v6182_v41 = vpop.f32.mrf.mxu0  ;;  %v3382_v27 = vsub.f32 1.0, %v4824_v55 }
 0x5c1   : > { %v3165_v35 = vpop.xlane.xlu1 %3164  ;;  %v4830_v29 = vpop.eup %4829  ;;  %v3257_v26 = vmul.f32 1.442695, %v3197_v16 }
 0x5c2   : > { %4851 = vpow2.f32 %v3251_v0  ;;  %v3199_v33 = vsub.f32 0.0, %v3165_v35  ;;  %v4832_v30 = vpop.eup %4831  ;;  %3827 = vperm.xlu1 %4700, %v3415_v18   ;;  %v3168_v44 = vpop.xlane.xlu0 %3167  ;;  %v3281_v0 = vsub.f32 0.0, %v5558_v47 }
 0x5c3   : > { %4853 = vpow2.f32 %v3359_v48  ;;  %v4834_v19 = vpop.eup %4833  ;;  %v3200_v25 = vsub.f32 0.0, %v3168_v44  ;;  %v3413_v56 = vmul.f32 %v4832_v30, %v3381_v58  ;;  %v3387_v48 = vsub.f32 1.0, %v4828_v34  ;;  %v6186_v35 = vpop.f32.mrf.mxu0  ;;  %v6680_v44 = vld [vmem:[#allocation13_spill] sm:$0xff] }
 0x5c4   : > { %4855 = vpow2.f32 %v3257_v26  ;;  %v3261_v31 = vmul.f32 1.442695, %v3199_v33  ;;  %v3416_v43 = vmul.f32 %v4834_v19, %v3384_v54  ;;  %v4836_v7 = vpop.eup %4835  ;;  %v3185_v58 = vsub.f32 0.0, %v6158_v3 }
 0x5c5   : > { %v3263_v5 = vmul.f32 1.442695, %v3200_v25  ;;  %v3162_v24 = vpop.xlane.xlu1 %3161  ;;  %v3385_v30 = vsub.f32 1.0, %v4830_v29  ;;  %v3282_v54 = vsub.f32 0.0, %v6680_v44  ;;  %v3388_v34 = vsub.f32 1.0, %v4836_v7  ;;  %v6681_v7 = vld [vmem:[#allocation14_spill] sm:$0xff] }
 0x5c6   : > { %4857 = vpow2.f32 %v3261_v31  ;;  %3832 = vperm.xlu0 %4701, %v3416_v43   ;;  %3817 = vperm.xlu1 %4700, %v3413_v56   ;;  %v3198_v18 = vsub.f32 0.0, %v3162_v24  ;;  %v3329_v31 = vmul.f32 1.442695, %v3281_v0  ;;  %v6190_v56 = vpop.f32.mrf.mxu0  ;;  %v3186_v43 = vsub.f32 0.0, %v6165_v9  ;;  %v6682_v44 = vld [vmem:[#allocation15_spill] sm:$0xff] }
 0x5c7   : > { %v4838_v20 = vpop.eup %4837  ;;  %4859 = vpow2.f32 %v3263_v5  ;;  %v3233_v3 = vmul.f32 1.442695, %v3185_v58 }
 0x5c8   : > { %v4840_v63 = vpop.eup %4839  ;;  %v3414_v16 = vmul.f32 %v4838_v20, %v3382_v27  ;;  %v3259_v5 = vmul.f32 1.442695, %v3198_v18  ;;  %4861 = vpow2.f32 %v3355_v45  ;;  %v3235_v9 = vmul.f32 1.442695, %v3186_v43 }
 0x5c9   : > { %v3419_v26 = vmul.f32 %v4840_v63, %v3387_v48  ;;  %v4842_v33 = vpop.eup %4841  ;;  %v3331_v48 = vmul.f32 1.442695, %v3282_v54  ;;  %v3265_v63 = vsub.f32 0.0, %v6681_v7  ;;  %4863 = vpow2.f32 %v3329_v31 }
 0x5ca   : > { %v4844_v55 = vpop.eup %4843  ;;  %3822 = vperm.xlu0 %4701, %v3414_v16   ;;  %v3386_v29 = vsub.f32 1.0, %v4842_v33  ;;  %4865 = vpow2.f32 %v3259_v5  ;;  %v3169_v18 = vsub.f32 0.0, %v6136_v62  ;;  %v3266_v54 = vsub.f32 0.0, %v6682_v44 }
 0x5cb   : > { %3847 = vperm.xlu1 %4700, %v3419_v26   ;;  %v4846_v19 = vpop.eup %4845  ;;  %v3417_v47 = vmul.f32 %v4844_v55, %v3385_v30  ;;  %v6194_v30 = vpop.f32.mrf.mxu0  ;;  %4867 = vpow2.f32 %v3233_v3  ;;  %v3297_v45 = vmul.f32 1.442695, %v3265_v63  ;;  %v5011_v3 = vld [vmem:[%s5211_s23 + $0x18] sm:$0xff] }
 0x5cc   : > { %v4848_v25 = vpop.eup %4847  ;;  %v3420_v24 = vmul.f32 %v4846_v19, %v3388_v34  ;;  %4869 = vpow2.f32 %v3331_v48  ;;  %v3201_v62 = vmul.f32 1.442695, %v3169_v18  ;;  %v3299_v5 = vmul.f32 1.442695, %v3266_v54  ;;  %v5013_v63 = vld [vmem:[%s6605_s5 + $0x98] sm:$0xff] }
 0x5cd   : > { %v4850_v27 = vpop.eup %4849  ;;  %v3389_v16 = vsub.f32 1.0, %v4848_v25  ;;  %v3170_v25 = vsub.f32 0.0, %v6141_v46  ;;  %4871 = vpow2.f32 %v3235_v9 }
 0x5ce   : > { %3852 = vperm.xlu0 %4701, %v3420_v24   ;;  %v3391_v58 = vsub.f32 1.0, %v4850_v27  ;;  %4873 = vpow2.f32 %v3297_v45 }
 0x5cf   : > { %v4852_v20 = vpop.eup %4851  ;;  %3837 = vperm.xlu1 %4700, %v3417_v47   ;;  %v6198_v47 = vpop.f32.mrf.mxu0  ;;  %v3203_v27 = vmul.f32 1.442695, %v3170_v25  ;;  %4875 = vpow2.f32 %v3201_v62  ;;  %v5015_v62 = vld [vmem:[%s6605_s5 + $0x10] sm:$0xff] }
 0x5d0   : > { %v4854_v10 = vpop.eup %4853  ;;  %v3418_v0 = vmul.f32 %v4852_v20, %v3386_v29  ;;  %4877 = vpow2.f32 %v3299_v5  ;;  %v5012_v20 = vld [vmem:[%s5211_s23 + $0x10] sm:$0xff] }
 0x5d1   : > { %v4856_v26 = vpop.eup %4855  ;;  %v3392_v19 = vsub.f32 1.0, %v4854_v10  ;;  %v6201_v24 = vpop.f32.mrf.mxu0  ;;  %4879 = vpow2.f32 %v3203_v27  ;;  %v6230_v27 = vld [vmem:[%s6612_s12] ss:$0 sm:$0xff] }
 0x5d2   : > { %v3421_v33 = vmul.f32 %v4856_v26, %v3389_v16  ;;  %3842 = vperm.xlu0 %4701, %v3418_v0   ;;  %v5014_v26 = vld [vmem:[%s6605_s5 + $0x90] sm:$0xff] }
 0x5d3   : > { %v4858_v55 = vpop.eup %4857  ;;  %v6207_v48 = vpop.f32.mrf.mxu0 }
 0x5d4   : > { %3857 = vperm.xlu1 %4700, %v3421_v33   ;;  %v3423_v34 = vmul.f32 %v4858_v55, %v3391_v58  ;;  %v4860_v31 = vpop.eup %4859 }
 0x5d5   : > { %v3424_v43 = vmul.f32 %v4860_v31, %v3392_v19  ;;  %v4862_v29 = vpop.eup %4861  ;;  %v6217_v18 = vpop.f32.mrf.mxu0 }
 0x5d6   : > { %3867 = vperm.xlu0 %4701, %v3423_v34   ;;  %v4864_v46 = vpop.eup %4863  ;;  %v3390_v0 = vsub.f32 1.0, %v4862_v29 }
 0x5d7   : > { %v4866_v10 = vpop.eup %4865  ;;  %v3377_v9 = vsub.f32 1.0, %v4864_v46  ;;  %v6219_v45 = vpop.f32.mrf.mxu0  ;;  %v5016_v46 = vld [vmem:[%s6605_s5 + $0x18] sm:$0xff] }
 0x5d8   : > { %3872 = vperm.xlu1 %4700, %v3424_v43   ;;  %v4868_v7 = vpop.eup %4867  ;;  %v3422_v33 = vmul.f32 %v4866_v10, %v3390_v0 }
 0x5d9   : > { %v4870_v16 = vpop.eup %4869  ;;  %v3409_v55 = vmul.f32 %v4868_v7, %v3377_v9  ;;  %v6225_v43 = vpop.f32.mrf.mxu0 }
 0x5da   : > { %3431 = vrot.lane.b32.xlu0 %v5011_v3, %s5040_s22  ;;  %v4872_v58 = vpop.eup %4871  ;;  %v3378_v44 = vsub.f32 1.0, %v4870_v16  ;;  %v1889_v16 = vadd.f32 %v6178_v61, %v6230_v27 }
 0x5db   : > { %v4874_v54 = vpop.eup %4873  ;;  %v6238_v10 = vpop.f32.mrf.mxu0 }
 0x5dc   : > { %3429 = vrot.lane.b32.xlu1 %v5012_v20, %s5040_s22  ;;  %v3410_v34 = vmul.f32 %v4872_v58, %v3378_v44  ;;  %v4876_v19 = vpop.eup %4875  ;;  %v3361_v25 = vsub.f32 1.0, %v4874_v54  ;;  %v1886_v20 = vadd.f32 %v6170_v40, %v6230_v27  ;;  %v5017_v40 = vld [vmem:[%s5211_s23 + $0x80] sm:$0xff]  ;;  %v1995_v58 = vsub.f32 0.0, %v1889_v16  ;;  %v5018_v44 = vld [vmem:[%s5211_s23 + $0x88] sm:$0xff] }
 0x5dd   : > { %v4878_v31 = vpop.eup %4877 }
 0x5de   : > { %3591 = vrot.lane.b32.xlu0 %v5013_v63, %s5041_s30  ;;  %v4880_v5 = vpop.eup %4879  ;;  %v3393_v3 = vmul.f32 %v4876_v19, %v3361_v25  ;;  %v3362_v29 = vsub.f32 1.0, %v4878_v31  ;;  %v1878_v63 = vadd.f32 %v6230_v27, %v6174_v14  ;;  %v1994_v0 = vsub.f32 0.0, %v1886_v20  ;;  %v5019_v14 = vld [vmem:[%s5211_s23] sm:$0xff]  ;;  %v5020_v31 = vld [vmem:[%s5211_s23 + $0x8] sm:$0xff] }
 0x5df   : > { %v5021_v25 = vld [vmem:[%s6605_s5 + $0x80] sm:$0xff]  ;;  %v5024_v20 = vld [vmem:[%s6605_s5 + $0x8] sm:$0xff] }
 0x5e0   : > { %3589 = vrot.lane.b32.xlu1 %v5014_v26, %s5041_s30  ;;  %v3394_v7 = vmul.f32 %v4880_v5, %v3362_v29  ;;  %v6246_v26 = vpop.f32.mrf.mxu0  ;;  %v1992_v9 = vsub.f32 0.0, %v1878_v63  ;;  %v5022_v5 = vld [vmem:[%s6605_s5 + $0x88] sm:$0xff] }
 0x5e2   : > { %3862 = vperm.xlu0 %4701, %v3422_v33   ;;  %v2032_v33 = vmul.f32 1.442695, %v1994_v0  ;;  %v6254_v61 = vpop.f32.mrf.mxu0  ;;  %v2028_v54 = vmul.f32 1.442695, %v1992_v9 }
 0x5e4   : > { %3797 = vperm.xlu1 %4700, %v3409_v55   ;;  %v1881_v55 = vadd.f32 %v6230_v27, %v6180_v12  ;;  %4881 = vpow2.f32 %v2032_v33  ;;  %v6262_v12 = vpop.f32.mrf.mxu0 }
 0x5e5   : > { %4883 = vpow2.f32 %v2028_v54 }
 0x5e6   : > { %3802 = vperm.xlu0 %4701, %v3410_v34   ;;  %v2034_v34 = vmul.f32 1.442695, %v1995_v58  ;;  %v1993_v19 = vsub.f32 0.0, %v1881_v55  ;;  %v6272_v29 = vpop.f32.mrf.mxu0 }
 0x5e8   : > { %3557 = vrot.lane.b32.xlu1 %v5015_v62, %s5041_s30  ;;  %4885 = vpow2.f32 %v2034_v34  ;;  %v2030_v62 = vmul.f32 1.442695, %v1993_v19  ;;  %v1902_v34 = vadd.f32 %v6182_v41, %v6230_v27 }
 0x5ea   : > { %3559 = vrot.lane.b32.xlu0 %v5016_v46, %s5041_s30  ;;  %4887 = vpow2.f32 %v2030_v62  ;;  %v6278_v46 = vpop.f32.mrf.mxu0  ;;  %v1998_v62 = vsub.f32 0.0, %v1902_v34 }
 0x5ec   : > { %3717 = vperm.xlu1 %4700, %v3393_v3   ;;  %v5023_v3 = vld [vmem:[%s6605_s5] sm:$0xff]  ;;  %v6280_v63 = vpop.f32.mrf.mxu0 }
 0x5ee   : > { %3722 = vperm.xlu0 %4701, %v3394_v7   ;;  %v6282_v9 = vpop.f32.mrf.mxu0 }
 0x5f0   : > { %3457 = vrot.lane.b32.xlu1 %v5017_v40, %s5040_s22 }
 0x5f1   : > { %v4882_v7 = vpop.eup %4881 }
 0x5f2   : > { %3459 = vrot.lane.b32.xlu0 %v5018_v44, %s5040_s22  ;;  %v4884_v0 = vpop.eup %4883  ;;  %v2090_v16 = vadd.f32 1.0, %v4882_v7  ;;  %v6284_v44 = vpop.f32.mrf.mxu0 }
 0x5f3   : > { %v2088_v33 = vadd.f32 1.0, %v4884_v0 }
 0x5f4   : > { %3425 = vrot.lane.b32.xlu1 %v5019_v14, %s5040_s22  ;;  %4889 = vrcp.f32 %v2090_v16  ;;  %v6286_v54 = vpop.f32.mrf.mxu0 }
 0x5f5   : > { %v4886_v40 = vpop.eup %4885  ;;  %4891 = vrcp.f32 %v2088_v33  ;;  %v1862_v33 = vadd.f32 %v6230_v27, %v6155_v37 }
 0x5f6   : > { %3427 = vrot.lane.b32.xlu0 %v5020_v31, %s5040_s22  ;;  %v2091_v58 = vadd.f32 1.0, %v4886_v40  ;;  %v4648_v19 = vpop.f32.mrf.mxu0  ;;  %v2040_v40 = vmul.f32 1.442695, %v1998_v62 }
 0x5f7   : > { %v4888_v55 = vpop.eup %4887 }
 0x5f8   : > { %3585 = vrot.lane.b32.xlu1 %v5021_v25, %s5041_s30  ;;  %4893 = vrcp.f32 %v2091_v58  ;;  %v2089_v14 = vadd.f32 1.0, %v4888_v55  ;;  %v1870_v25 = vadd.f32 %v6151_v21, %v6230_v27  ;;  %v1921_v21 = vadd.f32 %v6207_v48, %v6230_v27 }
 0x5fa   : > { %3587 = vrot.lane.b32.xlu0 %v5022_v5, %s5041_s30  ;;  %4895 = vrcp.f32 %v2089_v14  ;;  %v6292_v5 = vpop.f32.mrf.mxu0  ;;  %v1990_v16 = vsub.f32 0.0, %v1870_v25  ;;  %v1982_v25 = vadd.f32 %v4648_v19, %v6230_v27 }
 0x5fb   : > { %4897 = vpow2.f32 %v2040_v40 }
 0x5fc   : > { %3553 = vrot.lane.b32.xlu1 %v5023_v3, %s5041_s30  ;;  %v1918_v3 = vadd.f32 %v6198_v47, %v6230_v27  ;;  %v4649_v58 = vpop.f32.mrf.mxu0  ;;  %v2024_v37 = vmul.f32 1.442695, %v1990_v16 }
 0x5fe   : > { %3555 = vrot.lane.b32.xlu0 %v5024_v20, %s5041_s30  ;;  %v2002_v55 = vsub.f32 0.0, %v1918_v3  ;;  %v2003_v3 = vsub.f32 0.0, %v1921_v21  ;;  %v2018_v21 = vsub.f32 0.0, %v1982_v25  ;;  %4899 = vpow2.f32 %v2024_v37 }
 0x600   : > { %v2080_v25 = vmul.f32 1.442695, %v2018_v21 }
 0x601   : > { %v4890_v31 = vpop.eup %4889 }
 0x602   : > { %v4892_v7 = vpop.eup %4891  ;;  %v3656_v0 = vsel %vm3649_vm7, %v4890_v31, %v6101_v17 }
 0x603   : > { %v3689_v47 = vsel %vm3682_vm8, %v3656_v0, %v6109_v49  ;;  %v3654_v31 = vsel %vm3649_vm7, %v4892_v7, %v6117_v51  ;;  %v1873_v49 = vadd.f32 %v6162_v28, %v6230_v27  ;;  %v1894_v51 = vadd.f32 %v6230_v27, %v6186_v35 }
 0x604   : > { %v2048_v7 = vmul.f32 1.442695, %v2002_v55  ;;  %v2050_v35 = vmul.f32 1.442695, %v2003_v3  ;;  %v1976_v3 = vpop.f32.mrf.mxu0 }
 0x605   : > { %v4894_v41 = vpop.eup %4893  ;;  %v1991_v55 = vsub.f32 0.0, %v1873_v49 }
 0x606   : > { %v3657_v17 = vsel %vm3649_vm7, %v4894_v41, %v6099_v4  ;;  %v1865_v4 = vadd.f32 %v6230_v27, %v6167_v13  ;;  %v3687_v41 = vsel %vm3682_vm8, %v3654_v31, %v6126_v23  ;;  %v1905_v13 = vadd.f32 %v6190_v56, %v6230_v27 }
 0x607   : > { %v4896_v62 = vpop.eup %4895  ;;  %v3690_v19 = vsel %vm3682_vm8, %v3657_v17, %v6107_v32  ;;  %v1897_v23 = vadd.f32 %v6230_v27, %v6194_v30  ;;  %4901 = vpow2.f32 %v2048_v7  ;;  %v2026_v49 = vmul.f32 1.442695, %v1991_v55 }
 0x608   : > { %v3655_v40 = vsel %vm3649_vm7, %v4896_v62, %v6115_v39  ;;  %v1996_v39 = vsub.f32 0.0, %v1894_v51  ;;  %v1999_v62 = vsub.f32 0.0, %v1905_v13  ;;  %4903 = vpow2.f32 %v2050_v35  ;;  %v4898_v13 = vpop.eup %4897 }
 0x609   : > { %v3688_v17 = vsel %vm3682_vm8, %v3655_v40, %v6123_v59  ;;  %v1997_v51 = vsub.f32 0.0, %v1897_v23  ;;  %v1977_v40 = vadd.f32 %v6230_v27, %v1976_v3 }
 0x60a   : > { %v2042_v21 = vmul.f32 1.442695, %v1999_v62 }
 0x60b   : > { %v2038_v35 = vmul.f32 1.442695, %v1997_v51 }
 0x614   : > { %v6296_v20 = vpop.permute.xlu1 %3727 }
 0x615   : > { %6683 = vst [vmem:[#allocation2_spill] sm:$0xff] %v6296_v20  ;;  %v1988_v20 = vsub.f32 0.0, %v1862_v33 }
 0x617   : > { %v2020_v32 = vmul.f32 1.442695, %v1988_v20  ;;  %v1913_v20 = vadd.f32 %v6230_v27, %v6217_v18  ;;  %v1974_v18 = vadd.f32 %v6230_v27, %v6292_v5  ;;  %v1966_v5 = vadd.f32 %v6280_v63, %v6230_v27 }
 0x618   : > { %v6304_v14 = vpop.permute.xlu0 %3732 }
 0x619   : > { %6684 = vst [vmem:[#allocation3_spill] sm:$0xff] %v6304_v14  ;;  %v1985_v14 = vadd.f32 %v4649_v58, %v6230_v27  ;;  %4905 = vpow2.f32 %v2020_v32  ;;  %v2016_v55 = vsub.f32 0.0, %v1974_v18  ;;  %v2014_v63 = vsub.f32 0.0, %v1966_v5 }
 0x61a   : > { %4907 = vpow2.f32 %v2080_v25  ;;  %v1958_v25 = vadd.f32 %v6230_v27, %v6282_v9  ;;  %v1950_v9 = vadd.f32 %v6254_v61, %v6230_v27 }
 0x61b   : > { %v2019_v58 = vsub.f32 0.0, %v1985_v14  ;;  %v1989_v14 = vsub.f32 0.0, %v1865_v4  ;;  %v2036_v4 = vmul.f32 1.442695, %v1996_v39  ;;  %v2076_v3 = vmul.f32 1.442695, %v2016_v55 }
 0x61c   : > { %v2010_v55 = vsub.f32 0.0, %v1950_v9 }
 0x61d   : > { %v3748_v34 = vpop.permute.xlu1 %3747  ;;  %v2082_v37 = vmul.f32 1.442695, %v2019_v58 }
 0x61e   : > { %v6313_v48 = vmul.f32 %v3748_v34, %v3689_v47  ;;  %v1910_v34 = vadd.f32 %v6230_v27, %v6201_v24  ;;  %v1969_v24 = vadd.f32 %v6284_v44, %v6230_v27  ;;  %v1934_v44 = vadd.f32 %v6219_v45, %v6230_v27 }
 0x61f   : > { %4909 = vpow2.f32 %v2082_v37  ;;  %v1961_v45 = vadd.f32 %v6230_v27, %v6286_v54  ;;  %v1953_v37 = vadd.f32 %v6272_v29, %v6230_v27 }
 0x620   : > { %v2000_v7 = vsub.f32 0.0, %v1910_v34  ;;  %4911 = vpow2.f32 %v2026_v49  ;;  %v2015_v58 = vsub.f32 0.0, %v1969_v24 }
 0x621   : > { %v3753_v0 = vpop.permute.xlu0 %3752  ;;  %v3738_v16 = vpop.permute.xlu1 %3737  ;;  %4913 = vpow2.f32 %v2036_v4  ;;  %v2013_v51 = vsub.f32 0.0, %v1961_v45  ;;  %v2011_v29 = vsub.f32 0.0, %v1953_v37 }
 0x622   : > { %v6328_v28 = vmul.f32 %v3753_v0, %v3690_v19  ;;  %v6330_v33 = vmul.f32 %v3738_v16, %v3687_v41  ;;  %v2022_v41 = vmul.f32 1.442695, %v1989_v14  ;;  %v2001_v16 = vsub.f32 0.0, %v1913_v20  ;;  %v6369_v20 = vpop.eup %4899 }
 0x623   : > { %v2044_v32 = vmul.f32 1.442695, %v2000_v7  ;;  %v2006_v14 = vsub.f32 0.0, %v1934_v44  ;;  %v2074_v62 = vmul.f32 1.442695, %v2015_v58  ;;  %v4902_v54 = vpop.eup %4901  ;;  %v1945_v44 = vadd.f32 %v6230_v27, %v6278_v46 }
 0x624   : > { %v3910_v47 = vpack.c.bf16 %v6328_v28, %v6313_v48  ;;  %4915 = vpow2.f32 %v2022_v41  ;;  %v2046_v34 = vmul.f32 1.442695, %v2001_v16  ;;  %v4904_v18 = vpop.eup %4903  ;;  %v2072_v41 = vmul.f32 1.442695, %v2014_v63 }
 0x625   : > { %v3743_v31 = vpop.permute.xlu0 %3742  ;;  %v6342_v56 = vpop.permute.xlu1 %3767  ;;  %4917 = vpow2.f32 %v2042_v21  ;;  %v2056_v4 = vmul.f32 1.442695, %v2006_v14  ;;  %v2012_v16 = vsub.f32 0.0, %v1958_v25  ;;  %v2099_v5 = vadd.f32 1.0, %v4904_v18 }
 0x626   : > { %v6346_v30 = vmul.f32 %v3743_v31, %v3688_v17  ;;  %v2017_v17 = vsub.f32 0.0, %v1977_v40  ;;  %v2094_v31 = vadd.f32 1.0, %v4898_v13  ;;  %4919 = vpow2.f32 %v2038_v35  ;;  %v6381_v21 = vpop.eup %4905 }
 0x627   : > { %4921 = vpow2.f32 %v2044_v32  ;;  %v2098_v40 = vadd.f32 1.0, %v4902_v54  ;;  %v2070_v13 = vmul.f32 1.442695, %v2013_v51  ;;  %v4908_v35 = vpop.eup %4907  ;;  %v1926_v58 = vadd.f32 %v6230_v27, %v6225_v43 }
 0x628   : > { %4923 = vpow2.f32 %v2046_v34  ;;  %v2078_v24 = vmul.f32 1.442695, %v2017_v17  ;;  %v1942_v34 = vadd.f32 %v6230_v27, %v6262_v12  ;;  %v2068_v45 = vmul.f32 1.442695, %v2012_v16 }
 0x629   : > { %v6354_v19 = vpop.permute.xlu0 %3772  ;;  %v6356_v0 = vpop.permute.xlu1 %3757  ;;  %4925 = vrcp.f32 %v2094_v31  ;;  %v1937_v46 = vadd.f32 %v6238_v10, %v6230_v27  ;;  %v2066_v31 = vmul.f32 1.442695, %v2011_v29  ;;  %v2009_v43 = vsub.f32 0.0, %v1945_v44 }
 0x62a   : > { %4927 = vpow2.f32 %v2074_v62  ;;  %v2114_v25 = vadd.f32 1.0, %v4908_v35  ;;  %v2004_v37 = vsub.f32 0.0, %v1926_v58  ;;  %v2064_v54 = vmul.f32 1.442695, %v2010_v55 }
 0x62b   : > { %4929 = vpow2.f32 %v2076_v3  ;;  %v2008_v51 = vsub.f32 0.0, %v1942_v34  ;;  %v2007_v18 = vsub.f32 0.0, %v1937_v46  ;;  %v2062_v16 = vmul.f32 1.442695, %v2009_v43 }
 0x62c   : > { %4931 = vpow2.f32 %v2078_v24  ;;  %v4910_v32 = vpop.eup %4909  ;;  %v2052_v29 = vmul.f32 1.442695, %v2004_v37 }
 0x62d   : > { %v6363_v23 = vpop.permute.xlu0 %3762  ;;  %v6365_v39 = vpop.permute.xlu1 %3787  ;;  %4933 = vpow2.f32 %v2056_v4  ;;  %v2115_v12 = vadd.f32 1.0, %v4910_v32 }
 0x62e   : > { %4935 = vpow2.f32 %v2072_v41  ;;  %v6391_v17 = vpop.eup %4911 }
 0x62f   : > { %4937 = vrcp.f32 %v2098_v40  ;;  %v4914_v63 = vpop.eup %4913 }
 0x630   : > { %4939 = vpow2.f32 %v2070_v13  ;;  %v2092_v4 = vadd.f32 1.0, %v4914_v63  ;;  %v2060_v13 = vmul.f32 1.442695, %v2008_v51 }
 0x631   : > { %v6375_v49 = vpop.permute.xlu0 %3792  ;;  %v6377_v7 = vpop.permute.xlu1 %3777  ;;  %4941 = vrcp.f32 %v2099_v5  ;;  %v2058_v5 = vmul.f32 1.442695, %v2007_v18 }
 0x632   : > { %v6397_v62 = vpop.eup %4915  ;;  %4943 = vpow2.f32 %v2068_v45 }
 0x633   : > { %v4918_v3 = vpop.eup %4917  ;;  %4945 = vpow2.f32 %v2066_v31  ;;  %v1929_v31 = vadd.f32 %v6230_v27, %v6246_v26 }
 0x634   : > { %v4920_v24 = vpop.eup %4919  ;;  %4947 = vrcp.f32 %v2114_v25 }
 0x635   : > { %v6387_v61 = vpop.permute.xlu0 %3782  ;;  %v4922_v41 = vpop.eup %4921  ;;  %4949 = vrcp.f32 %v2115_v12 }
 0x636   : > { %v6395_v14 = vpop.permute.xlu1 %3807  ;;  %v4924_v40 = vpop.eup %4923  ;;  %4951 = vpow2.f32 %v2064_v54  ;;  %v2096_v34 = vadd.f32 1.0, %v4922_v41  ;;  %v2095_v41 = vadd.f32 1.0, %v4918_v3 }
 0x637   : > { %v6403_v44 = vpop.eup %4925  ;;  %4953 = vrcp.f32 %v2092_v4  ;;  %v2097_v46 = vadd.f32 1.0, %v4924_v40 }
 0x638   : > { %v4928_v35 = vpop.eup %4927  ;;  %4955 = vpow2.f32 %v2062_v16  ;;  %v2005_v16 = vsub.f32 0.0, %v1929_v31 }
 0x639   : > { %v6399_v10 = vpop.permute.xlu0 %3812  ;;  %v4930_v55 = vpop.eup %4929  ;;  %4957 = vpow2.f32 %v2052_v29  ;;  %v2111_v43 = vadd.f32 1.0, %v4928_v35  ;;  %v2093_v29 = vadd.f32 1.0, %v4920_v24 }
 0x63a   : > { %v4932_v45 = vpop.eup %4931  ;;  %4959 = vpow2.f32 %v2060_v13  ;;  %v2112_v37 = vadd.f32 1.0, %v4930_v55 }
 0x63b   : > { %v6411_v63 = vpop.eup %4933  ;;  %4961 = vpow2.f32 %v2058_v5  ;;  %v2113_v4 = vadd.f32 1.0, %v4932_v45 }
 0x63c   : > { %v4936_v25 = vpop.eup %4935  ;;  %4963 = vrcp.f32 %v2096_v34  ;;  %v2054_v34 = vmul.f32 1.442695, %v2005_v16 }
 0x63d   : > { %v6401_v9 = vpop.permute.xlu1 %3827  ;;  %v4938_v51 = vpop.eup %4937  ;;  %4965 = vrcp.f32 %v2097_v46  ;;  %v2110_v27 = vadd.f32 1.0, %v4936_v25 }
 0x63e   : > { %v4940_v18 = vpop.eup %4939  ;;  %4967 = vrcp.f32 %v2111_v43 }
 0x63f   : > { %v4942_v40 = vpop.eup %4941  ;;  %4969 = vrcp.f32 %v2112_v37  ;;  %v2109_v5 = vadd.f32 1.0, %v4940_v18 }
 0x640   : > { %v4944_v26 = vpop.eup %4943  ;;  %4971 = vrcp.f32 %v2113_v4  ;;  %v3665_v25 = vsel %vm3649_vm7, %v4942_v40, %v5913_v38 }
 0x641   : > { %v6405_v58 = vpop.permute.xlu0 %3832  ;;  %v6407_v32 = vpop.permute.xlu1 %3817  ;;  %4973 = vrcp.f32 %v2095_v41  ;;  %v2108_v3 = vadd.f32 1.0, %v4944_v26  ;;  %v3664_v26 = vsel %vm3649_vm7, %v4938_v51, %v5922_v1  ;;  %v3698_v38 = vsel %vm3682_vm8, %v3665_v25, %v5944_v22 }
 0x642   : > { %v4946_v35 = vpop.eup %4945  ;;  %4975 = vrcp.f32 %v2110_v27  ;;  %v2087_v51 = vadd.f32 1.0, %v6391_v17 }
 0x643   : > { %v4948_v59 = vpop.eup %4947  ;;  %4977 = vrcp.f32 %v2093_v29  ;;  %v2107_v31 = vadd.f32 1.0, %v4946_v35  ;;  %v2086_v35 = vadd.f32 1.0, %v6369_v20  ;;  %v3697_v20 = vsel %vm3682_vm8, %v3664_v26, %v5954_v6 }
 0x644   : > { %v4950_v45 = vpop.eup %4949  ;;  %4979 = vrcp.f32 %v2109_v5  ;;  %v3680_v18 = vsel %vm3649_vm7, %v4948_v59, %v5908_v50  ;;  %v3890_v50 = vmul.f32 %v6375_v49, %v3698_v38  ;;  %v3889_v49 = vmul.f32 %v6365_v39, %v3697_v20  ;;  %v6688_v20 = vld [vmem:[#allocation18_spill] sm:$0xff] }
 0x645   : > { %v6413_v12 = vpop.permute.xlu0 %3822  ;;  %v4952_v46 = vpop.eup %4951  ;;  %4981 = vpow2.f32 %v2054_v34  ;;  %v3681_v41 = vsel %vm3649_vm7, %v4950_v45, %v5903_v42  ;;  %v3713_v42 = vsel %vm3682_vm8, %v3680_v18, %v5937_v15  ;;  %v3660_v39 = vsel %vm3649_vm7, %v6403_v44, %v6050_v57 }
 0x646   : > { %v6415_v54 = vpop.permute.xlu1 %3847  ;;  %v6423_v24 = vpop.eup %4953  ;;  %v2106_v27 = vadd.f32 1.0, %v4952_v46  ;;  %4983 = vrcp.f32 %v2108_v3  ;;  %v3714_v45 = vsel %vm3682_vm8, %v3681_v41, %v5927_v52  ;;  %v2102_v52 = vadd.f32 1.0, %v6411_v63 }
 0x647   : > { %v4956_v4 = vpop.eup %4955  ;;  %4985 = vrcp.f32 %v2107_v31  ;;  %v3914_v17 = vpack.c.bf16 %v3890_v50, %v3889_v49  ;;  %v6459_v63 = vadd.f32 1.0, %v6397_v62  ;;  %v6691_v49 = vld [vmem:[#allocation17_spill] sm:$0xff] }
 0x648   : > { %v4958_v16 = vpop.eup %4957  ;;  %v2105_v34 = vadd.f32 1.0, %v4956_v4  ;;  %4987 = vrcp.f32 %v2106_v27 }
 0x649   : > { %v6417_v13 = vpop.permute.xlu0 %3852  ;;  %v4960_v29 = vpop.eup %4959  ;;  %4989 = vrcp.f32 %v2086_v35  ;;  %v6456_v35 = vadd.f32 1.0, %v6381_v21 }
 0x64a   : > { %v6419_v55 = vpop.permute.xlu1 %3837  ;;  %v4962_v5 = vpop.eup %4961  ;;  %v2104_v31 = vadd.f32 1.0, %v4960_v29  ;;  %4991 = vrcp.f32 %v2105_v34 }
 0x64b   : > { %v4964_v1 = vpop.eup %4963  ;;  %4993 = vrcp.f32 %v2087_v51  ;;  %v2103_v27 = vadd.f32 1.0, %v4962_v5 }
 0x64c   : > { %v4966_v46 = vpop.eup %4965  ;;  %4995 = vrcp.f32 %v2104_v31  ;;  %v3662_v38 = vsel %vm3649_vm7, %v4964_v1, %v5986_v60  ;;  %v2100_v60 = vadd.f32 1.0, %v4958_v16 }
 0x64d   : > { %v6421_v43 = vpop.permute.xlu0 %3842  ;;  %v4968_v25 = vpop.eup %4967  ;;  %4997 = vrcp.f32 %v2102_v52 }
 0x64e   : > { %v4970_v18 = vpop.eup %4969  ;;  %v3677_v57 = vsel %vm3649_vm7, %v4968_v25, %v6023_v36  ;;  %4999 = vrcp.f32 %v2103_v27 }
 0x64f   : > { %v6427_v37 = vpop.permute.xlu1 %3857  ;;  %v4972_v6 = vpop.eup %4971  ;;  %v3678_v21 = vsel %vm3649_vm7, %v4970_v18, %v5969_v53  ;;  %v6687_v53 = vld [vmem:[#allocation19_spill] sm:$0xff]  ;;  %5001 = vrcp.f32 %v2100_v60 }
 0x650   : > { %v4974_v26 = vpop.eup %4973  ;;  %v3679_v62 = vsel %vm3649_vm7, %v4972_v6, %v5959_v2  ;;  %v3695_v51 = vsel %vm3682_vm8, %v3662_v38, %v6687_v53  ;;  %v6693_v6 = vld [vmem:[#allocation25_spill] sm:$0xff] }
 0x651   : > { %v3868_v40 = vpop.permute.xlu0 %3867  ;;  %v4976_v29 = vpop.eup %4975  ;;  %v3887_v38 = vmul.f32 %v6377_v7, %v3695_v51  ;;  %v6698_v7 = vld [vmem:[#allocation29_spill] sm:$0xff] }
 0x652   : > { %v3905_v3 = vmul.f32 %v3868_v40, %v3713_v42  ;;  %v3663_v40 = vsel %vm3649_vm7, %v4966_v46, %v5976_v11  ;;  %v4978_v34 = vpop.eup %4977  ;;  %v3693_v11 = vsel %vm3682_vm8, %v3660_v39, %v6075_v8  ;;  %v6685_v42 = vld [vmem:[#allocation21_spill] sm:$0xff]  ;;  %v6690_v46 = vld [vmem:[#allocation22_spill] sm:$0xff] }
 0x653   : > { %v3873_v59 = vpop.permute.xlu1 %3872  ;;  %v4980_v50 = vpop.eup %4979  ;;  %v3696_v2 = vsel %vm3682_vm8, %v3663_v40, %v6688_v20  ;;  %v3710_v31 = vsel %vm3682_vm8, %v3677_v57, %v6690_v46  ;;  %v6694_v40 = vld [vmem:[#allocation23_spill] sm:$0xff] }
 0x654   : > { %v3906_v22 = vmul.f32 %v3873_v59, %v3714_v45  ;;  %v3661_v59 = vsel %vm3649_vm7, %v4974_v26, %v6685_v42  ;;  %v6686_v45 = vld [vmem:[#allocation28_spill] sm:$0xff]  ;;  %v4982_v1 = vpop.eup %4981  ;;  %v3888_v8 = vmul.f32 %v6387_v61, %v3696_v2  ;;  %v3675_v26 = vsel %vm3649_vm7, %v4980_v50, %v6693_v6  ;;  %v6696_v42 = vld [vmem:[#allocation26_spill] sm:$0xff]  ;;  %v6697_v20 = vld [vmem:[#allocation27_spill] sm:$0xff] }
 0x655   : > { %v6447_v4 = vpop.permute.xlu0 %3431  ;;  %v3658_v36 = vsel %vm3649_vm7, %v6423_v24, %v6686_v45  ;;  %v3711_v24 = vsel %vm3682_vm8, %v3678_v21, %v6691_v49  ;;  %v6695_v21 = vld [vmem:[#allocation24_spill] sm:$0xff]  ;;  %v3659_v60 = vsel %vm3649_vm7, %v4978_v34, %v6697_v20  ;;  %v3708_v51 = vsel %vm3682_vm8, %v3675_v26, %v6698_v7  ;;  %v6709_v20 = vld [vmem:[#allocation38_spill] sm:$0xff] }
 0x656   : > { %v3922_v15 = vpack.c.bf16 %v3906_v22, %v3905_v3  ;;  %v6689_v3 = vld [vmem:[#allocation20_spill] sm:$0xff]  ;;  %v4984_v22 = vpop.eup %4983  ;;  %v3903_v27 = vmul.f32 %v6427_v37, %v3711_v24  ;;  %v3885_v34 = vmul.f32 %v6342_v56, %v3693_v11 }
 0x657   : > { %v6450_v41 = vpop.permute.xlu1 %3429  ;;  %v3676_v16 = vsel %vm3649_vm7, %v4976_v29, %v6689_v3  ;;  %v4986_v52 = vpop.eup %4985  ;;  %v2101_v29 = vadd.f32 1.0, %v4982_v1  ;;  %v3674_v50 = vsel %vm3649_vm7, %v4984_v22, %v6696_v42  ;;  %v3913_v1 = vpack.c.bf16 %v3888_v8, %v3887_v38  ;;  %v6701_v8 = vld [vmem:[#allocation30_spill] sm:$0xff] }
 0x658   : > { %4436 = vmatprep.subr.bf16.mxu0 %v3922_v15  ;;  %v6692_v15 = vld [vmem:[#allocation16_spill] sm:$0xff]  ;;  %v3709_v57 = vsel %vm3682_vm8, %v3676_v16, %v6694_v40  ;;  %v4988_v37 = vpop.eup %4987  ;;  %v6700_v16 = vld [vmem:[#allocation33_spill] sm:$0xff]  ;;  %v3707_v24 = vsel %vm3682_vm8, %v3674_v50, %v6701_v8 }
 0x659   : > { %4437 = vmatpush3.bf16.msra.mxu0 %v3914_v17  ;;  %v6465_v5 = vpop.permute.xlu0 %3591  ;;  %v3712_v18 = vsel %vm3682_vm8, %v3679_v62, %v6692_v15  ;;  %v3902_v17 = vmul.f32 %v6417_v13, %v3710_v31  ;;  %v3694_v62 = vsel %vm3682_vm8, %v3661_v59, %v6695_v21  ;;  %v3901_v13 = vmul.f32 %v6415_v54, %v3709_v57  ;;  %v4990_v3 = vpop.eup %4989  ;;  %v6699_v59 = vld [vmem:[#allocation32_spill] sm:$0xff]  ;;  %v6702_v15 = vld [vmem:[#allocation31_spill] sm:$0xff]  ;;  %v6705_v40 = vld [vmem:[#allocation37_spill] sm:$0xff] }
 0x65a   : > { %v3886_v53 = vmul.f32 %v6354_v19, %v3694_v62  ;;  %v3691_v54 = vsel %vm3682_vm8, %v3658_v36, %v6699_v59  ;;  %v3673_v22 = vsel %vm3649_vm7, %v4986_v52, %v6700_v16  ;;  %v3900_v31 = vmul.f32 %v6421_v43, %v3708_v51  ;;  %v4992_v49 = vpop.eup %4991  ;;  %v6703_v52 = vld [vmem:[#allocation34_spill] sm:$0xff]  ;;  %v6710_v51 = vld [vmem:[#allocation39_spill] sm:$0xff] }
 0x65b   : > { %v6471_v44 = vpop.permute.xlu1 %3589  ;;  %v3920_v46 = vpack.c.bf16 %v3902_v17, %v3901_v13  ;;  %5003 = vrcp.f32 %v2101_v29  ;;  %v4994_v36 = vpop.eup %4993  ;;  %v3672_v43 = vsel %vm3649_vm7, %v4988_v37, %v6703_v52  ;;  %v3899_v17 = vmul.f32 %v6419_v55, %v3707_v24 }
 0x65c   : > { %v4996_v56 = vpop.eup %4995  ;;  %v3912_v11 = vpack.c.bf16 %v3886_v53, %v3885_v34  ;;  %v3671_v57 = vsel %vm3649_vm7, %v4992_v49, %v6705_v40  ;;  %v3883_v42 = vmul.f32 %v6356_v0, %v3691_v54  ;;  %v6708_v53 = vld [vmem:[#allocation3_spill] sm:$0xff]  ;;  %5005 = vrcp.f32 %v6456_v35  ;;  %v6711_v54 = vld [vmem:[#allocation42_spill] sm:$0xff]  ;;  %v6713_v34 = vld [vmem:[#allocation41_spill] sm:$0xff] }
 0x65d   : > { %v3863_v25 = vpop.permute.xlu0 %3862  ;;  %v3919_v55 = vpack.c.bf16 %v3900_v31, %v3899_v17  ;;  %v4998_v13 = vpop.eup %4997  ;;  %v3704_v0 = vsel %vm3682_vm8, %v3671_v57, %v6710_v51  ;;  %5007 = vrcp.f32 %v6459_v63  ;;  %v6712_v31 = vld [vmem:[#allocation40_spill] sm:$0xff] }
 0x65e   : > { %v3904_v39 = vmul.f32 %v3863_v25, %v3712_v18  ;;  %v3652_v25 = vsel %vm3649_vm7, %v4990_v3, %v6450_v41  ;;  %v3692_v18 = vsel %vm3682_vm8, %v3659_v60, %v6702_v15  ;;  %v3670_v60 = vsel %vm3649_vm7, %v4996_v56, %v6709_v20 }
 0x65f   : > { %v6499_v61 = vpop.permute.xlu1 %3797  ;;  %v3884_v26 = vmul.f32 %v6363_v23, %v3692_v18  ;;  %v6706_v23 = vld [vmem:[#allocation36_spill] sm:$0xff]  ;;  %v3668_v16 = vsel %vm3649_vm7, %v4998_v13, %v6711_v54 }
 0x660   : > { %v3921_v45 = vpack.c.bf16 %v3904_v39, %v3903_v27  ;;  %v6704_v27 = vld [vmem:[#allocation35_spill] sm:$0xff]  ;;  %v3653_v39 = vsel %vm3649_vm7, %v4994_v36, %v6447_v4  ;;  %v3705_v50 = vsel %vm3682_vm8, %v3672_v43, %v6706_v23  ;;  %v3701_v35 = vsel %vm3682_vm8, %v3668_v16, %v6471_v44 }
 0x661   : > { %v6514_v2 = vpop.permute.xlu0 %3802  ;;  %v3706_v41 = vsel %vm3682_vm8, %v3673_v22, %v6704_v27  ;;  %v3911_v7 = vpack.c.bf16 %v3884_v26, %v3883_v42  ;;  %v3893_v63 = vmul.f32 %v6395_v14, %v3701_v35 }
 0x662   : > { %4438 = vmatprep.subr.bf16.mxu0 %v3921_v45  ;;  %v3898_v38 = vmul.f32 %v6405_v58, %v3706_v41  ;;  %v6707_v45 = vld [vmem:[#allocation2_spill] sm:$0xff]  ;;  %v3897_v58 = vmul.f32 %v6401_v9, %v3705_v50 }
 0x663   : > { %v3558_v19 = vpop.permute.xlu1 %3557  ;;  %4439 = vmatpush3.bf16.msra.mxu0 %v3913_v1  ;;  %v5000_v1 = vpop.eup %4999 }
 0x664   : > { %v3685_v6 = vsel %vm3682_vm8, %v3652_v25, %v3558_v19  ;;  %4440 = vmatprep.subr.bf16.mxu0 %v3920_v46  ;;  %v3918_v22 = vpack.c.bf16 %v3898_v38, %v3897_v58  ;;  %v3896_v46 = vmul.f32 %v6413_v12, %v3704_v0  ;;  %v3703_v19 = vsel %vm3682_vm8, %v3670_v60, %v6712_v31  ;;  %v5002_v49 = vpop.eup %5001 }
 0x665   : > { %v3560_v29 = vpop.permute.xlu0 %3559  ;;  %v3877_v37 = vmul.f32 %v6707_v45, %v3685_v6  ;;  %v3669_v8 = vsel %vm3649_vm7, %v5000_v1, %v6713_v34  ;;  %v3895_v24 = vmul.f32 %v6407_v32, %v3703_v19 }
 0x666   : > { %v3686_v21 = vsel %vm3682_vm8, %v3653_v39, %v3560_v29  ;;  %v3702_v12 = vsel %vm3682_vm8, %v3669_v8, %v6465_v5  ;;  %v6714_v5 = vpack.c.bf16 %v6346_v30, %v6330_v33 }
 0x667   : > { %v3718_v62 = vpop.permute.xlu1 %3717  ;;  %v3878_v4 = vmul.f32 %v6708_v53, %v3686_v21  ;;  %4441 = vmatpush3.bf16.msra.mxu0 %v3912_v11  ;;  %v3917_v36 = vpack.c.bf16 %v3896_v46, %v3895_v24  ;;  %v3894_v18 = vmul.f32 %v6399_v10, %v3702_v12 }
 0x668   : > { %4442 = vmatprep.subr.bf16.mxu0 %v3919_v55  ;;  %v5004_v44 = vpop.eup %5003  ;;  %v5027_v55 = vld [vmem:[%s6603_s3 + $0x10] ss:$8 sps:$4 sm:$0xff]  }
 0x669   : > { %v3908_v3 = vpack.c.bf16 %v3878_v4, %v3877_v37  ;;  %v3723_v59 = vpop.permute.xlu0 %3722  ;;  %v3916_v32 = vpack.c.bf16 %v3894_v18, %v3893_v63  ;;  %v5006_v28 = vpop.eup %5005 }
 0x66a   : > { %v5008_v27 = vpop.eup %5007 }
 0x66b   : > { %v3458_v9 = vpop.permute.xlu1 %3457  ;;  %4443 = vmatpush3.bf16.msra.mxu0 %v3911_v7 }
 0x66c   : > { %4444 = vmatprep.subr.bf16.mxu0 %v3918_v22  ;;  %v3666_v17 = vsel %vm3649_vm7, %v5002_v49, %v3458_v9 }
 0x66d   : > { %v3460_v25 = vpop.permute.xlu0 %3459 }
 0x66e   : > { %v3667_v6 = vsel %vm3649_vm7, %v5004_v44, %v3460_v25 }
 0x66f   : > { %v3426_v15 = vpop.permute.xlu1 %3425  ;;  %4445 = vmatpush3.bf16.msra.mxu0 %v3910_v47 }
 0x670   : > { %4446 = vmatprep.subr.bf16.mxu0 %v3917_v36  ;;  %v3650_v56 = vsel %vm3649_vm7, %v5006_v28, %v3426_v15 }
 0x671   : > { %v3428_v52 = vpop.permute.xlu0 %3427 }
 0x672   : > { %v3651_v30 = vsel %vm3649_vm7, %v5008_v27, %v3428_v52 }
 0x673   : > { %v3586_v43 = vpop.permute.xlu1 %3585  ;;  %4447 = vmatpush3.bf16.msra.mxu0 %v6714_v5 }
 0x674   : > { %v3699_v14 = vsel %vm3682_vm8, %v3666_v17, %v3586_v43  ;;  %4448 = vmatprep.subr.bf16.mxu0 %v3916_v32 }
 0x675   : > { %v3588_v48 = vpop.permute.xlu0 %3587  ;;  %v3891_v11 = vmul.f32 %v6499_v61, %v3699_v14  ;;  %v5025_v61 = vld [vmem:[%s6603_s3] ss:$8 sps:$4 sm:$0xff]  }
 0x676   : > { %v3700_v47 = vsel %vm3682_vm8, %v3667_v6, %v3588_v48 }
 0x677   : > { %v3554_v10 = vpop.permute.xlu1 %3553  ;;  %v3892_v26 = vmul.f32 %v6514_v2, %v3700_v47  ;;  %4449 = vmatpush3.bf16.msra.mxu0 %v3908_v3  ;;  %v5026_v2 = vld [vmem:[%s6603_s3 + $0x14] ss:$8 sps:$4 sm:$0xff]  }
 0x678   : > { %v3683_v33 = vsel %vm3682_vm8, %v3650_v56, %v3554_v10 }
 0x679   : > { %v3556_v41 = vpop.permute.xlu0 %3555  ;;  %v3915_v39 = vpack.c.bf16 %v3892_v26, %v3891_v11  ;;  %v3875_v38 = vmul.f32 %v3718_v62, %v3683_v33 }
 0x67a   : > { %v3684_v29 = vsel %vm3682_vm8, %v3651_v30, %v3556_v41 }
 0x67b   : > { %v3876_v40 = vmul.f32 %v3723_v59, %v3684_v29  ;;  %4450 = vmatprep.subr.bf16.mxu0 %v3915_v39 }
 0x67d   : > { %v3907_v57 = vpack.c.bf16 %v3876_v40, %v3875_v38 }
 0x67f   : > { %4451 = vmatpush3.bf16.msra.mxu0 %v3907_v57 }
 0x682   : > { %3956 = vmatmul.mubr.bf16.vlgmr.msra.gmra.mxu0 %v5025_v61 }
 0x683   : > { %3963 = vmatprep.mubr.bf16.mxu0 %v5026_v2 }
 0x68a   : > { %3964 = vmatmul.mubr.bf16.gmra.mxu0 %v5027_v55 }
 0x742   : > { %v4452_v21 = vpop.f32.mrf.mxu0 }
 0x744   : > { %v4453_v62 = vpop.f32.mrf.mxu0 }
 0x745   : > { %v4454_v13 = vadd.f32 %v4453_v62, %v4452_v21 }
 0x746   : > { %v4455_v42 = vpop.f32.mrf.mxu0 }
 0x747   : > { %3973 = vst.msk [vmem:[%s486_s21] sm:$0xff] %vm3972_vm9, %v4454_v13 }
 0x748   : > { %v4456_v23 = vpop.f32.mrf.mxu0 }
 0x749   : > { %v4457_v50 = vadd.f32 %v4456_v23, %v4455_v42 }
 0x74a   : > { %v4458_v45 = vpop.f32.mrf.mxu0 }
 0x74b   : > { %3974 = vst.msk [vmem:[%s486_s21 + $0x8] sm:$0xff] %vm3972_vm9, %v4457_v50 }
 0x74c   : > { %v4459_v37 = vpop.f32.mrf.mxu0 }
 0x74d   : > { %v4460_v53 = vadd.f32 %v4459_v37, %v4458_v45 }
 0x74e   : > { %v4461_v4 = vpop.f32.mrf.mxu0 }
 0x74f   : > { %3975 = vst.msk [vmem:[%s486_s21 + $0x10] sm:$0xff] %vm3972_vm9, %v4460_v53 }
 0x750   : > { %v4462_v58 = vpop.f32.mrf.mxu0 }
 0x751   : > { %v4463_v20 = vadd.f32 %v4462_v58, %v4461_v4 }
 0x753   : > { %3976 = vst.msk [vmem:[%s486_s21 + $0x18] sm:$0xff] %vm3972_vm9, %v4463_v20 }
 0x754 PF: > { %s23_s25 = sadd.s32 1, %s5034_s25  }
 0x755   : > { %p20_p5 = scmp.ge.s32.totalorder %s23_s25, 4  }
 0x757   :  { %22 = sbr.rel (!%p20_p5) target bundleno = 1 (0x1), region = 108 }

// kernel: _nerf_forward.3
= control target key start
LH: loop header
LB: loop body
LE: loop exit
PB: predicated region body
PF: predicated region fallthrough
CT: control target
= control target key end

     0   :  { %s9213_s25 = smov 0   ;;  %s12574_s0 = inlined_call_operand.vmem [shape: bf16[1024,37], index: 0, kind: input, shape index: {}]   ;;  %s12575_s1 = inlined_call_operand.vmem [shape: bf16[1024,32], index: 1, kind: input, shape index: {}]   ;;  %s12576_s2 = inlined_call_operand.vmem [shape: f32[1024,2], index: 2, kind: input, shape index: {}]   ;;  %s12577_s3 = inlined_call_operand.vmem [shape: bf16[32,512], index: 3, kind: input, shape index: {}]   ;;  %s12578_s4 = inlined_call_operand.vmem [shape: bf16[512,32], index: 4, kind: input, shape index: {}]   ;;  %s12579_s5 = inlined_call_operand.vmem [shape: f32[512,16], index: 5, kind: input, shape index: {}]   ;;  %s12580_s6 = inlined_call_operand.vmem [shape: f32[512,16], index: 6, kind: input, shape index: {}]   ;;  %s12581_s7 = inlined_call_operand.vmem [shape: bf16[37,33], index: 7, kind: input, shape index: {}]   ;;  %s12582_s8 = inlined_call_operand.vmem [shape: bf16[33,33], index: 8, kind: input, shape index: {}]   ;;  %s12583_s9 = inlined_call_operand.vmem [shape: bf16[33,33], index: 9, kind: input, shape index: {}]   ;;  %s12584_s10 = inlined_call_operand.vmem [shape: bf16[32,32], index: 10, kind: input, shape index: {}]   ;;  %s12585_s11 = inlined_call_operand.vmem [shape: bf16[32,3], index: 11, kind: input, shape index: {}]   ;;  %s12586_s12 = inlined_call_operand.vmem [shape: f32[1,3], index: 12, kind: input, shape index: {}]   ;;  %s12587_s13 = inlined_call_operand.vmem [shape: f32[64,20], index: 13, kind: output, shape index: {}]  }
   0x1 LB: > { %s7219_s26 = sadd.s32 4294967295, %s9135_s25   ;;  %p7223_p0 = scmp.ge.s32.totalorder %s9135_s25, 1  ;;  %s9135_s25 = sphi %s9213_s25, %s23_s25  }
   0x2   : > { %p410_p1 = scmp.lt.s32.totalorder %s9135_s25, 3 }
   0x4   : > { %p411_p2 = pnand %p7223_p0, %p410_p1 }
   0x6   : > { %414 = sbr.rel (%p411_p2) target bundleno = 2000 (0x7d0), region = 72 }
   0xb   : > { %v8420_v0 = vld [vmem:[%s12581_s7 + $0x10] ss:$0 sps:$4 sm:$0x77]   ;;  %vm830_vm0 = vcmask 1041408   ;;  %vm831_vm1 = vcmask 1042432   ;;  %v9137_v1 = vmov 65535  }
   0xc   : > { %v832_v2 = vsel %vm830_vm0, 4294967295, %v9137_v1  ;;  %v8421_v4 = vld [vmem:[%s12581_s7 + $0x8] sm:$0xff]   ;;  %s7224_s14 = sshll.u32 %s7219_s26, 6  ;;  %vm733_vm2 = vcmask 302080   ;;  %v8422_v6 = vld [vmem:[%s12581_s7] sm:$0xff]   ;;  %vm1339_vm3 = vcmask 1040384  }
   0xd   : > { %v833_v3 = vsel %vm831_vm1, %v832_v2, 0  ;;  %p465_p3 = scmp.lt.s32.totalorder %s7224_s14, 127  ;;  %v8455_v25 = vld [vmem:[%s12582_s8 + $0x10] ss:$0 sps:$4 sm:$0x11]   ;;  %v9138_v27 = vmov 0  }
   0xe   : > { %v835_v5 = vand.u32 %v8420_v0, %v833_v3  ;;  %v1341_v28 = vsel %vm1339_vm3, 65535, %v9138_v27  ;;  %v8456_v30 = vld [vmem:[%s12583_s9 + $0x10] ss:$0 sps:$4 sm:$0x11]   ;;  %v8457_v31 = vld [vmem:[%s12582_s8 + $0x8] sm:$0xff]   ;;  %v8458_v35 = vld [vmem:[%s12582_s8] sm:$0xff]  }
   0xf   : > { %s13100_s14 = smov (!%p465_p3, %s7224_s14), 127  ;;  %v1343_v29 = vand.u32 %v8455_v25, %v1341_v28  ;;  %v1847_v32 = vand.u32 %v8456_v30, %v1341_v28  ;;  %v8459_v50 = vld [vmem:[%s12583_s9 + $0x8] sm:$0xff]   ;;  %vm1242_vm4 = vcmask 269312   ;;  %s9139_s24 = smov 31   ;;  %vm2314_vm5 = vcmask 261120  }
  0x10   : > { %7990 = vmatprep.subr.bf16.mxu0 %v835_v5  ;;  %s7225_s17 = sshll.u32 %s13100_s14, 2  ;;  %s9141_s22 = smov 3   ;;  %vm5337_vm6 = vcmask 130048   ;;  %vm6490_vm7 = vcmask 23552   ;;  %vm6555_vm8 = vcmask 31744   ;;  %vm7134_vm9 = vcmask 162816  }
  0x11   : > { %7991 = vmatpush3.bf16.msra.mxu0 %v835_v5  ;;  %s9240_s20 = scalar_lea.vmem %s12574_s0, %s7225_s17  ;;  %8060 = vmatprep.subr.bf16.mxu1 %v1343_v29  ;;  %s10110_s21 = scalar_lea.vmem %s12575_s1, %s7225_s17 }
  0x12   : > { %7992 = vmatprep.subr.bf16.mxu0 %v8421_v4  ;;  %v8423_v7 = vld [vmem:[%s9240_s20] sm:$0xff]   ;;  %v8424_v8 = vld [vmem:[%s9240_s20 + $0x8] sm:$0xff]   ;;  %v8425_v9 = vld [vmem:[%s9240_s20 + $0x10] sm:$0xff]   ;;  %8061 = vmatpush3.bf16.msra.mxu1 %v1343_v29  ;;  %s9142_s28 = smov 4   ;;  %s7230_s17 = sshll.u32 %s7219_s26, 2 }
  0x13   : > { %7996 = vmatprep.mubr.msk.bf16.mxu0 %vm733_vm2, %v8423_v7  ;;  %v8426_v10 = vld [vmem:[%s9240_s20 + $0x18] sm:$0xff]   ;;  %v8427_v11 = vld [vmem:[%s9240_s20 + $0x20] sm:$0xff]   ;;  %v8428_v12 = vld [vmem:[%s9240_s20 + $0x28] sm:$0xff]   ;;  %8062 = vmatprep.subr.bf16.mxu1 %v8457_v31  ;;  %p483_p4 = scmp.lt.s32.totalorder %s7230_s17, 7 }
  0x14   : > { %v8429_v13 = vld [vmem:[%s9240_s20 + $0x30] sm:$0xff]   ;;  %v8430_v14 = vld [vmem:[%s9240_s20 + $0x38] sm:$0xff]   ;;  %v8431_v15 = vld [vmem:[%s9240_s20 + $0x40] sm:$0xff]  }
  0x15   : > { %7993 = vmatpush3.bf16.msra.mxu0 %v8421_v4  ;;  %v8432_v16 = vld [vmem:[%s9240_s20 + $0x48] sm:$0xff]   ;;  %v8433_v17 = vld [vmem:[%s9240_s20 + $0x50] sm:$0xff]   ;;  %v8434_v18 = vld [vmem:[%s9240_s20 + $0x58] sm:$0xff]   ;;  %s13102_s17 = smov (!%p483_p4, %s7230_s17), 7 }
  0x16   : > { %7994 = vmatprep.subr.bf16.mxu0 %v8422_v6  ;;  %v8435_v19 = vld [vmem:[%s9240_s20 + $0x60] sm:$0xff]   ;;  %v8436_v20 = vld [vmem:[%s9240_s20 + $0x68] sm:$0xff]   ;;  %v8437_v21 = vld [vmem:[%s9240_s20 + $0x70] sm:$0xff]   ;;  %8063 = vmatpush3.bf16.msra.mxu1 %v8457_v31 }
  0x17   : > { %v8438_v22 = vld [vmem:[%s9240_s20 + $0x78] sm:$0xff]   ;;  %v8439_v23 = vld [vmem:[%s9240_s20 + $0x80] sm:$0xff]   ;;  %v8440_v24 = vld [vmem:[%s9240_s20 + $0x88] sm:$0xff]   ;;  %8064 = vmatprep.subr.bf16.mxu1 %v8458_v35 }
  0x18   : > { %v8441_v26 = vld [vmem:[%s9240_s20 + $0x90] sm:$0xff]   ;;  %v8442_v33 = vld [vmem:[%s9240_s20 + $0x98] sm:$0xff]   ;;  %v8443_v34 = vld [vmem:[%s9240_s20 + $0xa0] sm:$0xff]  }
  0x19   : > { %7995 = vmatpush3.bf16.msra.mxu0 %v8422_v6  ;;  %v8444_v36 = vld [vmem:[%s9240_s20 + $0xa8] sm:$0xff]   ;;  %v8445_v37 = vld [vmem:[%s9240_s20 + $0xb0] sm:$0xff]   ;;  %v8446_v38 = vld [vmem:[%s9240_s20 + $0xb8] sm:$0xff]  }
  0x1a   : > { %8130 = vmatprep.subr.bf16.mxu0 %v1847_v32  ;;  %8065 = vmatpush3.bf16.msra.mxu1 %v8458_v35  ;;  %v8447_v39 = vld [vmem:[%s9240_s20 + $0xc0] sm:$0xff]   ;;  %v8448_v40 = vld [vmem:[%s9240_s20 + $0xc8] sm:$0xff]   ;;  %v8449_v41 = vld [vmem:[%s9240_s20 + $0xd0] sm:$0xff]  }
  0x1b   : > { %v8450_v42 = vld [vmem:[%s9240_s20 + $0xd8] sm:$0xff]   ;;  %v8451_v43 = vld [vmem:[%s9240_s20 + $0xe0] sm:$0xff]   ;;  %v8452_v44 = vld [vmem:[%s9240_s20 + $0xe8] sm:$0xff]  }
  0x1c   : > { %7997 = vmatmul.mubr.msk.bf16.vlgmr.msra.gmra.mxu0 %vm733_vm2, %v8424_v8  ;;  %v8453_v45 = vld [vmem:[%s9240_s20 + $0xf0] sm:$0xff]   ;;  %v8454_v46 = vld [vmem:[%s9240_s20 + $0xf8] sm:$0xff]   ;;  %s7229_s20 = sshll.u32 %s13100_s14, 3 }
  0x1d   : > { %8000 = vmatprep.mubr.msk.bf16.mxu0 %vm733_vm2, %v8425_v9  ;;  %8131 = vmatpush3.bf16.msra.mxu0 %v1847_v32  ;;  %s9354_s23 = scalar_lea.vmem %s12576_s2, %s7229_s20 }
  0x1e   : > { %8132 = vmatprep.subr.bf16.mxu0 %v8459_v50 }
  0x21   : > { %8133 = vmatpush3.bf16.msra.mxu0 %v8459_v50 }
  0x24   : > { %8001 = vmatmul.mubr.msk.bf16.gmra.mxu0 %vm733_vm2, %v8426_v10 }
  0x25   : > { %8004 = vmatprep.mubr.msk.bf16.mxu0 %vm733_vm2, %v8427_v11 }
  0x2c   : > { %8005 = vmatmul.mubr.msk.bf16.gmra.mxu0 %vm733_vm2, %v8428_v12 }
  0x2d   : > { %8008 = vmatprep.mubr.msk.bf16.mxu0 %vm733_vm2, %v8429_v13 }
  0x34   : > { %8009 = vmatmul.mubr.msk.bf16.gmra.mxu0 %vm733_vm2, %v8430_v14 }
  0x35   : > { %8012 = vmatprep.mubr.msk.bf16.mxu0 %vm733_vm2, %v8431_v15 }
  0x3c   : > { %8013 = vmatmul.mubr.msk.bf16.gmra.mxu0 %vm733_vm2, %v8432_v16 }
  0x3d   : > { %8016 = vmatprep.mubr.msk.bf16.mxu0 %vm733_vm2, %v8433_v17 }
  0x44   : > { %8017 = vmatmul.mubr.msk.bf16.gmra.mxu0 %vm733_vm2, %v8434_v18 }
  0x45   : > { %8020 = vmatprep.mubr.msk.bf16.mxu0 %vm733_vm2, %v8435_v19 }
  0x4c   : > { %8021 = vmatmul.mubr.msk.bf16.gmra.mxu0 %vm733_vm2, %v8436_v20 }
  0x4d   : > { %8024 = vmatprep.mubr.msk.bf16.mxu0 %vm733_vm2, %v8437_v21 }
  0x54   : > { %8025 = vmatmul.mubr.msk.bf16.gmra.mxu0 %vm733_vm2, %v8438_v22 }
  0x55   : > { %8028 = vmatprep.mubr.msk.bf16.mxu0 %vm733_vm2, %v8439_v23 }
  0x5c   : > { %8029 = vmatmul.mubr.msk.bf16.gmra.mxu0 %vm733_vm2, %v8440_v24 }
  0x5d   : > { %8032 = vmatprep.mubr.msk.bf16.mxu0 %vm733_vm2, %v8441_v26 }
  0x64   : > { %8033 = vmatmul.mubr.msk.bf16.gmra.mxu0 %vm733_vm2, %v8442_v33 }
  0x65   : > { %8036 = vmatprep.mubr.msk.bf16.mxu0 %vm733_vm2, %v8443_v34 }
  0x6c   : > { %8037 = vmatmul.mubr.msk.bf16.gmra.mxu0 %vm733_vm2, %v8444_v36 }
  0x6d   : > { %8040 = vmatprep.mubr.msk.bf16.mxu0 %vm733_vm2, %v8445_v37 }
  0x74   : > { %8041 = vmatmul.mubr.msk.bf16.gmra.mxu0 %vm733_vm2, %v8446_v38 }
  0x75   : > { %8044 = vmatprep.mubr.msk.bf16.mxu0 %vm733_vm2, %v8447_v39 }
  0x7c   : > { %8045 = vmatmul.mubr.msk.bf16.gmra.mxu0 %vm733_vm2, %v8448_v40 }
  0x7d   : > { %8048 = vmatprep.mubr.msk.bf16.mxu0 %vm733_vm2, %v8449_v41 }
  0x84   : > { %8049 = vmatmul.mubr.msk.bf16.gmra.mxu0 %vm733_vm2, %v8450_v42 }
  0x85   : > { %8052 = vmatprep.mubr.msk.bf16.mxu0 %vm733_vm2, %v8451_v43 }
  0x8c   : > { %8053 = vmatmul.mubr.msk.bf16.gmra.mxu0 %vm733_vm2, %v8452_v44 }
  0x8d   : > { %8056 = vmatprep.mubr.msk.bf16.mxu0 %vm733_vm2, %v8453_v45 }
  0x94   : > { %8057 = vmatmul.mubr.msk.bf16.gmra.mxu0 %vm733_vm2, %v8454_v46 }
  0xdc   : > { %v7998_v47 = vpop.f32.mrf.mxu0 }
  0xdd   : > { %v1128_v55 = vmax.f32 %v7998_v47, 0.0 }
  0xde   : > { %v871_v48 = vpop.f32.mrf.mxu0 }
  0xdf   : > { %v1126_v53 = vmax.f32 %v871_v48, 0.0 }
  0xe0   : > { %v7999_v49 = vpop.f32.mrf.mxu0 }
  0xe1   : > { %v1129_v51 = vmax.f32 %v7999_v49, 0.0 }
  0xe2   : > { %v874_v52 = vpop.f32.mrf.mxu0 }
  0xe3   : > { %v1127_v54 = vmax.f32 %v874_v52, 0.0  ;;  %v1191_v58 = vpack.c.bf16 %v1129_v51, %v1128_v55 }
  0xe4   : > { %v8002_v56 = vpop.f32.mrf.mxu0 }
  0xe5   : > { %v1190_v57 = vpack.c.bf16 %v1127_v54, %v1126_v53  ;;  %v1132_v1 = vmax.f32 %v8002_v56, 0.0 }
  0xe6   : > { %v887_v59 = vpop.f32.mrf.mxu0 }
  0xe7   : > { %8066 = vmatprep.mubr.msk.bf16.mxu1 %vm1242_vm4, %v1190_v57  ;;  %v1130_v63 = vmax.f32 %v887_v59, 0.0 }
  0xe8   : > { %v8003_v60 = vpop.f32.mrf.mxu0  ;;  %8067 = vmatmul.mubr.msk.bf16.vlgmr.msra.gmra.mxu1 %vm1242_vm4, %v1191_v58 }
  0xe9   : > { %v1133_v61 = vmax.f32 %v8003_v60, 0.0 }
  0xea   : > { %v890_v62 = vpop.f32.mrf.mxu0 }
  0xeb   : > { %v1131_v0 = vmax.f32 %v890_v62, 0.0  ;;  %v1193_v4 = vpack.c.bf16 %v1133_v61, %v1132_v1 }
  0xec   : > { %v8006_v2 = vpop.f32.mrf.mxu0 }
  0xed   : > { %v1192_v3 = vpack.c.bf16 %v1131_v0, %v1130_v63  ;;  %v1136_v11 = vmax.f32 %v8006_v2, 0.0 }
  0xee   : > { %v903_v5 = vpop.f32.mrf.mxu0 }
  0xef   : > { %8070 = vmatprep.mubr.msk.bf16.mxu1 %vm1242_vm4, %v1192_v3  ;;  %v1134_v9 = vmax.f32 %v903_v5, 0.0 }
  0xf0   : > { %v8007_v6 = vpop.f32.mrf.mxu0  ;;  %8071 = vmatmul.mubr.msk.bf16.gmra.mxu1 %vm1242_vm4, %v1193_v4 }
  0xf1   : > { %v1137_v7 = vmax.f32 %v8007_v6, 0.0 }
  0xf2   : > { %v906_v8 = vpop.f32.mrf.mxu0 }
  0xf3   : > { %v1135_v10 = vmax.f32 %v906_v8, 0.0  ;;  %v1195_v14 = vpack.c.bf16 %v1137_v7, %v1136_v11 }
  0xf4   : > { %v8010_v12 = vpop.f32.mrf.mxu0 }
  0xf5   : > { %v1194_v13 = vpack.c.bf16 %v1135_v10, %v1134_v9  ;;  %v1140_v21 = vmax.f32 %v8010_v12, 0.0 }
  0xf6   : > { %v919_v15 = vpop.f32.mrf.mxu0 }
  0xf7   : > { %8074 = vmatprep.mubr.msk.bf16.mxu1 %vm1242_vm4, %v1194_v13  ;;  %v1138_v19 = vmax.f32 %v919_v15, 0.0 }
  0xf8   : > { %v8011_v16 = vpop.f32.mrf.mxu0  ;;  %8075 = vmatmul.mubr.msk.bf16.gmra.mxu1 %vm1242_vm4, %v1195_v14 }
  0xf9   : > { %v1141_v17 = vmax.f32 %v8011_v16, 0.0 }
  0xfa   : > { %v922_v18 = vpop.f32.mrf.mxu0 }
  0xfb   : > { %v1139_v20 = vmax.f32 %v922_v18, 0.0  ;;  %v1197_v24 = vpack.c.bf16 %v1141_v17, %v1140_v21 }
  0xfc   : > { %v8014_v22 = vpop.f32.mrf.mxu0 }
  0xfd   : > { %v1196_v23 = vpack.c.bf16 %v1139_v20, %v1138_v19  ;;  %v1144_v31 = vmax.f32 %v8014_v22, 0.0  ;;  %v8460_v22 = vld [vmem:[%s12583_s9] sm:$0xff]  }
  0xfe   : > { %v935_v25 = vpop.f32.mrf.mxu0  ;;  %8134 = vmatprep.subr.bf16.mxu0 %v8460_v22 }
  0xff   : > { %8078 = vmatprep.mubr.msk.bf16.mxu1 %vm1242_vm4, %v1196_v23  ;;  %v1142_v29 = vmax.f32 %v935_v25, 0.0  ;;  %8135 = vmatpush3.bf16.msra.mxu0 %v8460_v22 }
 0x100   : > { %v8015_v26 = vpop.f32.mrf.mxu0  ;;  %8079 = vmatmul.mubr.msk.bf16.gmra.mxu1 %vm1242_vm4, %v1197_v24 }
 0x101   : > { %v1145_v27 = vmax.f32 %v8015_v26, 0.0 }
 0x102   : > { %v938_v28 = vpop.f32.mrf.mxu0 }
 0x103   : > { %v1143_v30 = vmax.f32 %v938_v28, 0.0  ;;  %v1199_v34 = vpack.c.bf16 %v1145_v27, %v1144_v31 }
 0x104   : > { %v8018_v32 = vpop.f32.mrf.mxu0 }
 0x105   : > { %v1198_v33 = vpack.c.bf16 %v1143_v30, %v1142_v29  ;;  %v1148_v41 = vmax.f32 %v8018_v32, 0.0 }
 0x106   : > { %v951_v35 = vpop.f32.mrf.mxu0 }
 0x107   : > { %8082 = vmatprep.mubr.msk.bf16.mxu1 %vm1242_vm4, %v1198_v33  ;;  %v1146_v39 = vmax.f32 %v951_v35, 0.0 }
 0x108   : > { %v8019_v36 = vpop.f32.mrf.mxu0  ;;  %8083 = vmatmul.mubr.msk.bf16.gmra.mxu1 %vm1242_vm4, %v1199_v34 }
 0x109   : > { %v1149_v37 = vmax.f32 %v8019_v36, 0.0 }
 0x10a   : > { %v954_v38 = vpop.f32.mrf.mxu0 }
 0x10b   : > { %v1147_v40 = vmax.f32 %v954_v38, 0.0  ;;  %v1201_v44 = vpack.c.bf16 %v1149_v37, %v1148_v41 }
 0x10c   : > { %v8022_v42 = vpop.f32.mrf.mxu0 }
 0x10d   : > { %v1200_v43 = vpack.c.bf16 %v1147_v40, %v1146_v39  ;;  %v1152_v51 = vmax.f32 %v8022_v42, 0.0 }
 0x10e   : > { %v967_v45 = vpop.f32.mrf.mxu0 }
 0x10f   : > { %8086 = vmatprep.mubr.msk.bf16.mxu1 %vm1242_vm4, %v1200_v43  ;;  %v1150_v49 = vmax.f32 %v967_v45, 0.0 }
 0x110   : > { %v8023_v46 = vpop.f32.mrf.mxu0  ;;  %8087 = vmatmul.mubr.msk.bf16.gmra.mxu1 %vm1242_vm4, %v1201_v44 }
 0x111   : > { %v1153_v47 = vmax.f32 %v8023_v46, 0.0 }
 0x112   : > { %v970_v48 = vpop.f32.mrf.mxu0 }
 0x113   : > { %v1151_v50 = vmax.f32 %v970_v48, 0.0  ;;  %v1203_v54 = vpack.c.bf16 %v1153_v47, %v1152_v51 }
 0x114   : > { %v8026_v52 = vpop.f32.mrf.mxu0 }
 0x115   : > { %v1202_v53 = vpack.c.bf16 %v1151_v50, %v1150_v49  ;;  %v1156_v61 = vmax.f32 %v8026_v52, 0.0 }
 0x116   : > { %v983_v55 = vpop.f32.mrf.mxu0 }
 0x117   : > { %8090 = vmatprep.mubr.msk.bf16.mxu1 %vm1242_vm4, %v1202_v53  ;;  %v1154_v59 = vmax.f32 %v983_v55, 0.0  ;;  %v3538_v55 = vld [vmem:[%s9354_s23 + $0x70] sm:$0xff] }
 0x118   : > { %v8027_v56 = vpop.f32.mrf.mxu0  ;;  %8091 = vmatmul.mubr.msk.bf16.gmra.mxu1 %vm1242_vm4, %v1203_v54  ;;  %v3554_v54 = vld [vmem:[%s9354_s23 + $0xf0] sm:$0xff]  ;;  %3744 = vrot.lane.b32.xlu1 %v3538_v55, %s9139_s24  ;;  %v3584_v55 = vld [vmem:[%s9354_s23 + $0x1e0] sm:$0xff] }
 0x119   : > { %v1157_v57 = vmax.f32 %v8027_v56, 0.0  ;;  %3776 = vrot.lane.b32.xlu0 %v3554_v54, %s9139_s24  ;;  %v3569_v54 = vld [vmem:[%s9354_s23 + $0x168] sm:$0xff] }
 0x11a   : > { %v986_v58 = vpop.f32.mrf.mxu0 }
 0x11b   : > { %v1155_v60 = vmax.f32 %v986_v58, 0.0  ;;  %v1205_v0 = vpack.c.bf16 %v1157_v57, %v1156_v61 }
 0x11c   : > { %v8030_v62 = vpop.f32.mrf.mxu0 }
 0x11d   : > { %v1204_v63 = vpack.c.bf16 %v1155_v60, %v1154_v59  ;;  %v1160_v7 = vmax.f32 %v8030_v62, 0.0 }
 0x11e   : > { %v999_v1 = vpop.f32.mrf.mxu0 }
 0x11f   : > { %8094 = vmatprep.mubr.msk.bf16.mxu1 %vm1242_vm4, %v1204_v63  ;;  %v1158_v5 = vmax.f32 %v999_v1, 0.0  ;;  %v3555_v63 = vld [vmem:[%s9354_s23 + $0xf8] sm:$0xff] }
 0x120   : > { %v8031_v2 = vpop.f32.mrf.mxu0  ;;  %8095 = vmatmul.mubr.msk.bf16.gmra.mxu1 %vm1242_vm4, %v1205_v0  ;;  %v3539_v0 = vld [vmem:[%s9354_s23 + $0x78] sm:$0xff]  ;;  %3778 = vrot.lane.b32.xlu0 %v3555_v63, %s9139_s24  ;;  %v3580_v63 = vld [vmem:[%s9354_s23 + $0x1c0] sm:$0xff] }
 0x121   : > { %v1161_v3 = vmax.f32 %v8031_v2, 0.0  ;;  %3746 = vrot.lane.b32.xlu1 %v3539_v0, %s9139_s24 }
 0x122   : > { %v1002_v4 = vpop.f32.mrf.mxu0 }
 0x123   : > { %v1159_v6 = vmax.f32 %v1002_v4, 0.0  ;;  %v1207_v10 = vpack.c.bf16 %v1161_v3, %v1160_v7  ;;  %v3552_v4 = vld [vmem:[%s9354_s23 + $0xe0] sm:$0xff] }
 0x124   : > { %v8034_v8 = vpop.f32.mrf.mxu0  ;;  %3772 = vrot.lane.b32.xlu0 %v3552_v4, %s9139_s24 }
 0x125   : > { %v1206_v9 = vpack.c.bf16 %v1159_v6, %v1158_v5  ;;  %v1164_v17 = vmax.f32 %v8034_v8, 0.0  ;;  %v3553_v5 = vld [vmem:[%s9354_s23 + $0xe8] sm:$0xff] }
 0x126   : > { %v1015_v11 = vpop.f32.mrf.mxu0  ;;  %3774 = vrot.lane.b32.xlu1 %v3553_v5, %s9139_s24  ;;  %v3563_v5 = vld [vmem:[%s9354_s23 + $0x138] sm:$0xff] }
 0x127   : > { %8098 = vmatprep.mubr.msk.bf16.mxu1 %vm1242_vm4, %v1206_v9  ;;  %v1162_v15 = vmax.f32 %v1015_v11, 0.0 }
 0x128   : > { %v8035_v12 = vpop.f32.mrf.mxu0  ;;  %8099 = vmatmul.mubr.msk.bf16.gmra.mxu1 %vm1242_vm4, %v1207_v10 }
 0x129   : > { %v1165_v13 = vmax.f32 %v8035_v12, 0.0 }
 0x12a   : > { %v1018_v14 = vpop.f32.mrf.mxu0 }
 0x12b   : > { %v1163_v16 = vmax.f32 %v1018_v14, 0.0  ;;  %v1209_v20 = vpack.c.bf16 %v1165_v13, %v1164_v17  ;;  %v3537_v13 = vld [vmem:[%s9354_s23 + $0x68] sm:$0xff]  ;;  %v3536_v14 = vld [vmem:[%s9354_s23 + $0x60] sm:$0xff] }
 0x12c   : > { %v8038_v18 = vpop.f32.mrf.mxu0  ;;  %3742 = vrot.lane.b32.xlu1 %v3537_v13, %s9139_s24  ;;  %3740 = vrot.lane.b32.xlu0 %v3536_v14, %s9139_s24 }
 0x12d   : > { %v1208_v19 = vpack.c.bf16 %v1163_v16, %v1162_v15  ;;  %v1168_v28 = vmax.f32 %v8038_v18, 0.0  ;;  %v3551_v18 = vld [vmem:[%s9354_s23 + $0xd8] sm:$0xff] }
 0x12e   : > { %v1031_v21 = vpop.f32.mrf.mxu0 }
 0x12f   : > { %8102 = vmatprep.mubr.msk.bf16.mxu1 %vm1242_vm4, %v1208_v19  ;;  %v1166_v26 = vmax.f32 %v1031_v21, 0.0  ;;  %v3550_v19 = vld [vmem:[%s9354_s23 + $0xd0] sm:$0xff] }
 0x130   : > { %v8039_v23 = vpop.f32.mrf.mxu0  ;;  %8103 = vmatmul.mubr.msk.bf16.gmra.mxu1 %vm1242_vm4, %v1209_v20  ;;  %3770 = vrot.lane.b32.xlu1 %v3551_v18, %s9139_s24  ;;  %v3561_v18 = vld [vmem:[%s9354_s23 + $0x128] sm:$0xff] }
 0x131   : > { %v1169_v24 = vmax.f32 %v8039_v23, 0.0  ;;  %3768 = vrot.lane.b32.xlu0 %v3550_v19, %s9139_s24  ;;  %v3576_v19 = vld [vmem:[%s9354_s23 + $0x1a0] sm:$0xff] }
 0x132   : > { %v1034_v25 = vpop.f32.mrf.mxu0 }
 0x133   : > { %v1167_v27 = vmax.f32 %v1034_v25, 0.0  ;;  %v1211_v31 = vpack.c.bf16 %v1169_v24, %v1168_v28 }
 0x134   : > { %v8042_v29 = vpop.f32.mrf.mxu0 }
 0x135   : > { %v1210_v30 = vpack.c.bf16 %v1167_v27, %v1166_v26  ;;  %v1172_v38 = vmax.f32 %v8042_v29, 0.0  ;;  %v3535_v26 = vld [vmem:[%s9354_s23 + $0x58] sm:$0xff]  ;;  %v3534_v27 = vld [vmem:[%s9354_s23 + $0x50] sm:$0xff]  ;;  %v3549_v29 = vld [vmem:[%s9354_s23 + $0xc8] sm:$0xff] }
 0x136   : > { %v1047_v32 = vpop.f32.mrf.mxu0  ;;  %3738 = vrot.lane.b32.xlu1 %v3535_v26, %s9139_s24  ;;  %3736 = vrot.lane.b32.xlu0 %v3534_v27, %s9139_s24  ;;  %v3560_v26 = vld [vmem:[%s9354_s23 + $0x120] sm:$0xff] }
 0x137   : > { %8106 = vmatprep.mubr.msk.bf16.mxu1 %vm1242_vm4, %v1210_v30  ;;  %v1170_v36 = vmax.f32 %v1047_v32, 0.0  ;;  %v3548_v30 = vld [vmem:[%s9354_s23 + $0xc0] sm:$0xff] }
 0x138   : > { %v8043_v33 = vpop.f32.mrf.mxu0  ;;  %8107 = vmatmul.mubr.msk.bf16.gmra.mxu1 %vm1242_vm4, %v1211_v31  ;;  %v3533_v31 = vld [vmem:[%s9354_s23 + $0x48] sm:$0xff]  ;;  %v3532_v32 = vld [vmem:[%s9354_s23 + $0x40] sm:$0xff] }
 0x139   : > { %v1173_v34 = vmax.f32 %v8043_v33, 0.0  ;;  %v3547_v33 = vld [vmem:[%s9354_s23 + $0xb8] sm:$0xff] }
 0x13a   : > { %v1050_v35 = vpop.f32.mrf.mxu0  ;;  %3766 = vrot.lane.b32.xlu1 %v3549_v29, %s9139_s24  ;;  %3764 = vrot.lane.b32.xlu0 %v3548_v30, %s9139_s24 }
 0x13b   : > { %v1171_v37 = vmax.f32 %v1050_v35, 0.0  ;;  %v1213_v41 = vpack.c.bf16 %v1173_v34, %v1172_v38  ;;  %v3546_v34 = vld [vmem:[%s9354_s23 + $0xb0] sm:$0xff]  ;;  %v3531_v35 = vld [vmem:[%s9354_s23 + $0x38] sm:$0xff]  ;;  %v3544_v38 = vld [vmem:[%s9354_s23 + $0xa0] sm:$0xff] }
 0x13c   : > { %v8046_v39 = vpop.f32.mrf.mxu0 }
 0x13d   : > { %v1212_v40 = vpack.c.bf16 %v1171_v37, %v1170_v36  ;;  %v1176_v48 = vmax.f32 %v8046_v39, 0.0  ;;  %v3530_v36 = vld [vmem:[%s9354_s23 + $0x30] sm:$0xff]  ;;  %v3545_v37 = vld [vmem:[%s9354_s23 + $0xa8] sm:$0xff] }
 0x13e   : > { %v1063_v42 = vpop.f32.mrf.mxu0  ;;  %3734 = vrot.lane.b32.xlu1 %v3533_v31, %s9139_s24  ;;  %3732 = vrot.lane.b32.xlu0 %v3532_v32, %s9139_s24  ;;  %v3529_v39 = vld [vmem:[%s9354_s23 + $0x28] sm:$0xff]  ;;  %v3559_v32 = vld [vmem:[%s9354_s23 + $0x118] sm:$0xff] }
 0x13f   : > { %8110 = vmatprep.mubr.msk.bf16.mxu1 %vm1242_vm4, %v1212_v40  ;;  %v1174_v46 = vmax.f32 %v1063_v42, 0.0  ;;  %v3528_v40 = vld [vmem:[%s9354_s23 + $0x20] sm:$0xff]  ;;  %v3542_v42 = vld [vmem:[%s9354_s23 + $0x90] sm:$0xff] }
 0x140   : > { %v8047_v43 = vpop.f32.mrf.mxu0  ;;  %8111 = vmatmul.mubr.msk.bf16.gmra.mxu1 %vm1242_vm4, %v1213_v41  ;;  %v3543_v41 = vld [vmem:[%s9354_s23 + $0x98] sm:$0xff] }
 0x141   : > { %v1177_v44 = vmax.f32 %v8047_v43, 0.0  ;;  %v3527_v43 = vld [vmem:[%s9354_s23 + $0x18] sm:$0xff] }
 0x142   : > { %v1066_v45 = vpop.f32.mrf.mxu0  ;;  %3762 = vrot.lane.b32.xlu1 %v3547_v33, %s9139_s24  ;;  %3760 = vrot.lane.b32.xlu0 %v3546_v34, %s9139_s24  ;;  %v3574_v33 = vld [vmem:[%s9354_s23 + $0x190] sm:$0xff] }
 0x143   : > { %v1175_v47 = vmax.f32 %v1066_v45, 0.0  ;;  %v1215_v51 = vpack.c.bf16 %v1177_v44, %v1176_v48  ;;  %v3526_v44 = vld [vmem:[%s9354_s23 + $0x10] sm:$0xff]  ;;  %v3541_v45 = vld [vmem:[%s9354_s23 + $0x88] sm:$0xff]  ;;  %v3524_v48 = vld [vmem:[%s9354_s23] sm:$0xff] }
 0x144   : > { %v8050_v49 = vpop.f32.mrf.mxu0 }
 0x145   : > { %v1214_v50 = vpack.c.bf16 %v1175_v47, %v1174_v46  ;;  %v1180_v60 = vmax.f32 %v8050_v49, 0.0  ;;  %v3540_v46 = vld [vmem:[%s9354_s23 + $0x80] sm:$0xff]  ;;  %v3525_v47 = vld [vmem:[%s9354_s23 + $0x8] sm:$0xff]  ;;  %v3587_v49 = vld [vmem:[%s9354_s23 + $0x1f8] sm:$0xff] }
 0x146   : > { %v1079_v52 = vpop.f32.mrf.mxu0  ;;  %3730 = vrot.lane.b32.xlu1 %v3531_v35, %s9139_s24  ;;  %3728 = vrot.lane.b32.xlu0 %v3530_v36, %s9139_s24 }
 0x147   : > { %8114 = vmatprep.mubr.msk.bf16.mxu1 %vm1242_vm4, %v1214_v50  ;;  %v1178_v58 = vmax.f32 %v1079_v52, 0.0  ;;  %v3571_v50 = vld [vmem:[%s9354_s23 + $0x178] sm:$0xff]  ;;  %v3585_v52 = vld [vmem:[%s9354_s23 + $0x1e8] sm:$0xff] }
 0x148   : > { %v8051_v53 = vpop.f32.mrf.mxu0  ;;  %8115 = vmatmul.mubr.msk.bf16.gmra.mxu1 %vm1242_vm4, %v1215_v51  ;;  %v3586_v51 = vld [vmem:[%s9354_s23 + $0x1f0] sm:$0xff] }
 0x149   : > { %v1181_v56 = vmax.f32 %v8051_v53, 0.0  ;;  %v3570_v53 = vld [vmem:[%s9354_s23 + $0x170] sm:$0xff] }
 0x14a   : > { %v1082_v57 = vpop.f32.mrf.mxu0  ;;  %3758 = vrot.lane.b32.xlu1 %v3545_v37, %s9139_s24  ;;  %3756 = vrot.lane.b32.xlu0 %v3544_v38, %s9139_s24 }
 0x14b   : > { %v1179_v59 = vmax.f32 %v1082_v57, 0.0  ;;  %v1217_v1 = vpack.c.bf16 %v1181_v56, %v1180_v60  ;;  %v3583_v56 = vld [vmem:[%s9354_s23 + $0x1d8] sm:$0xff]  ;;  %v3568_v57 = vld [vmem:[%s9354_s23 + $0x160] sm:$0xff]  ;;  %v3581_v60 = vld [vmem:[%s9354_s23 + $0x1c8] sm:$0xff] }
 0x14c   : > { %v8054_v61 = vpop.f32.mrf.mxu0 }
 0x14d   : > { %v1216_v62 = vpack.c.bf16 %v1179_v59, %v1178_v58  ;;  %v1184_v10 = vmax.f32 %v8054_v61, 0.0  ;;  %v3567_v58 = vld [vmem:[%s9354_s23 + $0x158] sm:$0xff]  ;;  %v3582_v59 = vld [vmem:[%s9354_s23 + $0x1d0] sm:$0xff] }
 0x14e   : > { %v1095_v2 = vpop.f32.mrf.mxu0  ;;  %3726 = vrot.lane.b32.xlu1 %v3529_v39, %s9139_s24  ;;  %3724 = vrot.lane.b32.xlu0 %v3528_v40, %s9139_s24  ;;  %v3566_v61 = vld [vmem:[%s9354_s23 + $0x150] sm:$0xff]  ;;  %v3573_v39 = vld [vmem:[%s9354_s23 + $0x188] sm:$0xff] }
 0x14f   : > { %8118 = vmatprep.mubr.msk.bf16.mxu1 %vm1242_vm4, %v1216_v62  ;;  %v1182_v8 = vmax.f32 %v1095_v2, 0.0  ;;  %v3565_v62 = vld [vmem:[%s9354_s23 + $0x148] sm:$0xff]  ;;  %v3564_v2 = vld [vmem:[%s9354_s23 + $0x140] sm:$0xff]  ;;  %v3558_v40 = vld [vmem:[%s9354_s23 + $0x110] sm:$0xff] }
 0x150   : > { %v8055_v3 = vpop.f32.mrf.mxu0  ;;  %8119 = vmatmul.mubr.msk.bf16.gmra.mxu1 %vm1242_vm4, %v1217_v1  ;;  %v3579_v1 = vld [vmem:[%s9354_s23 + $0x1b8] sm:$0xff] }
 0x151   : > { %v1185_v6 = vmax.f32 %v8055_v3, 0.0 }
 0x152   : > { %v1098_v7 = vpop.f32.mrf.mxu0  ;;  %3754 = vrot.lane.b32.xlu1 %v3543_v41, %s9139_s24  ;;  %3752 = vrot.lane.b32.xlu0 %v3542_v42, %s9139_s24 }
 0x153   : > { %v1183_v9 = vmax.f32 %v1098_v7, 0.0  ;;  %v1219_v15 = vpack.c.bf16 %v1185_v6, %v1184_v10  ;;  %v3578_v6 = vld [vmem:[%s9354_s23 + $0x1b0] sm:$0xff] }
 0x154   : > { %v8058_v11 = vpop.f32.mrf.mxu0 }
 0x155   : > { %v1218_v12 = vpack.c.bf16 %v1183_v9, %v1182_v8  ;;  %v1188_v24 = vmax.f32 %v8058_v11, 0.0  ;;  %v3577_v11 = vld [vmem:[%s9354_s23 + $0x1a8] sm:$0xff] }
 0x156   : > { %v1111_v16 = vpop.f32.mrf.mxu0  ;;  %3722 = vrot.lane.b32.xlu1 %v3527_v43, %s9139_s24  ;;  %3720 = vrot.lane.b32.xlu0 %v3526_v44, %s9139_s24 }
 0x157   : > { %8122 = vmatprep.mubr.msk.bf16.mxu1 %vm1242_vm4, %v1218_v12  ;;  %v1186_v22 = vmax.f32 %v1111_v16, 0.0  ;;  %v3562_v12 = vld [vmem:[%s9354_s23 + $0x130] sm:$0xff] }
 0x158   : > { %v8059_v17 = vpop.f32.mrf.mxu0  ;;  %8123 = vmatmul.mubr.msk.bf16.gmra.mxu1 %vm1242_vm4, %v1219_v15 }
 0x159   : > { %v1189_v20 = vmax.f32 %v8059_v17, 0.0 }
 0x15a   : > { %v1114_v21 = vpop.f32.mrf.mxu0  ;;  %3750 = vrot.lane.b32.xlu1 %v3541_v45, %s9139_s24  ;;  %3748 = vrot.lane.b32.xlu0 %v3540_v46, %s9139_s24  ;;  %v3556_v46 = vld [vmem:[%s9354_s23 + $0x100] sm:$0xff] }
 0x15b   : > { %v1187_v23 = vmax.f32 %v1114_v21, 0.0  ;;  %v1221_v28 = vpack.c.bf16 %v1189_v20, %v1188_v24 }
 0x15d   : > { %v1220_v25 = vpack.c.bf16 %v1187_v23, %v1186_v22 }
 0x15e   : > { %3718 = vrot.lane.b32.xlu1 %v3525_v47, %s9139_s24  ;;  %3716 = vrot.lane.b32.xlu0 %v3524_v48, %s9139_s24  ;;  %v3572_v47 = vld [vmem:[%s9354_s23 + $0x180] sm:$0xff] }
 0x15f   : > { %8126 = vmatprep.mubr.msk.bf16.mxu1 %vm1242_vm4, %v1220_v25  ;;  %v3575_v25 = vld [vmem:[%s9354_s23 + $0x198] sm:$0xff] }
 0x160   : > { %8127 = vmatmul.mubr.msk.bf16.gmra.mxu1 %vm1242_vm4, %v1221_v28 }
 0x162   : > { %3842 = vrot.lane.b32.xlu1 %v3587_v49, %s9139_s24  ;;  %3840 = vrot.lane.b32.xlu0 %v3586_v51, %s9139_s24 }
 0x166   : > { %3810 = vrot.lane.b32.xlu1 %v3571_v50, %s9139_s24  ;;  %3808 = vrot.lane.b32.xlu0 %v3570_v53, %s9139_s24  ;;  %v3557_v53 = vld [vmem:[%s9354_s23 + $0x108] sm:$0xff] }
 0x16a   : > { %3838 = vrot.lane.b32.xlu1 %v3585_v52, %s9139_s24  ;;  %3836 = vrot.lane.b32.xlu0 %v3584_v55, %s9139_s24 }
 0x16e   : > { %3806 = vrot.lane.b32.xlu1 %v3569_v54, %s9139_s24  ;;  %3804 = vrot.lane.b32.xlu0 %v3568_v57, %s9139_s24 }
 0x172   : > { %3834 = vrot.lane.b32.xlu1 %v3583_v56, %s9139_s24  ;;  %3832 = vrot.lane.b32.xlu0 %v3582_v59, %s9139_s24 }
 0x176   : > { %3802 = vrot.lane.b32.xlu1 %v3567_v58, %s9139_s24  ;;  %3800 = vrot.lane.b32.xlu0 %v3566_v61, %s9139_s24 }
 0x17a   : > { %3830 = vrot.lane.b32.xlu1 %v3581_v60, %s9139_s24  ;;  %3828 = vrot.lane.b32.xlu0 %v3580_v63, %s9139_s24 }
 0x17e   : > { %3798 = vrot.lane.b32.xlu1 %v3565_v62, %s9139_s24  ;;  %3796 = vrot.lane.b32.xlu0 %v3564_v2, %s9139_s24 }
 0x182   : > { %3826 = vrot.lane.b32.xlu1 %v3579_v1, %s9139_s24  ;;  %3824 = vrot.lane.b32.xlu0 %v3578_v6, %s9139_s24 }
 0x186   : > { %3794 = vrot.lane.b32.xlu1 %v3563_v5, %s9139_s24  ;;  %3792 = vrot.lane.b32.xlu0 %v3562_v12, %s9139_s24 }
 0x18a   : > { %3822 = vrot.lane.b32.xlu1 %v3577_v11, %s9139_s24  ;;  %3820 = vrot.lane.b32.xlu0 %v3576_v19, %s9139_s24 }
 0x18e   : > { %3790 = vrot.lane.b32.xlu1 %v3561_v18, %s9139_s24  ;;  %3788 = vrot.lane.b32.xlu0 %v3560_v26, %s9139_s24 }
 0x192   : > { %3818 = vrot.lane.b32.xlu1 %v3575_v25, %s9139_s24  ;;  %3816 = vrot.lane.b32.xlu0 %v3574_v33, %s9139_s24 }
 0x196   : > { %3786 = vrot.lane.b32.xlu1 %v3559_v32, %s9139_s24  ;;  %3784 = vrot.lane.b32.xlu0 %v3558_v40, %s9139_s24 }
 0x19a   : > { %3814 = vrot.lane.b32.xlu1 %v3573_v39, %s9139_s24  ;;  %3812 = vrot.lane.b32.xlu0 %v3572_v47, %s9139_s24 }
 0x19e   : > { %3780 = vrot.lane.b32.xlu1 %v3556_v46, %s9139_s24  ;;  %3782 = vrot.lane.b32.xlu0 %v3557_v53, %s9139_s24  ;;  %v8461_v46 = vld [vmem:[%s12584_s10 + $0x8] sm:$0xff]   ;;  %v9140_v53 = vmov 32  }
 0x19f   : > { %8200 = vmatprep.subr.bf16.mxu1 %v8461_v46  ;;  %8418 = vset.pattern.permute.xlu1 %v9140_v53 }
 0x1a0   : > { %8201 = vmatpush3.bf16.msra.mxu1 %v8461_v46  ;;  %8419 = vset.pattern.permute.xlu0 %v9140_v53 }
 0x1a8   : > { %v8068_v0 = vpop.f32.mrf.mxu1 }
 0x1a9   : > { %v1636_v13 = vmax.f32 %v8068_v0, 0.0 }
 0x1aa   : > { %v1379_v3 = vpop.f32.mrf.mxu1 }
 0x1ab   : > { %v1634_v9 = vmax.f32 %v1379_v3, 0.0 }
 0x1ac   : > { %v8069_v4 = vpop.f32.mrf.mxu1 }
 0x1ad   : > { %v1637_v7 = vmax.f32 %v8069_v4, 0.0 }
 0x1ae   : > { %v1382_v8 = vpop.f32.mrf.mxu1 }
 0x1af   : > { %v1635_v10 = vmax.f32 %v1382_v8, 0.0  ;;  %v1699_v16 = vpack.c.bf16 %v1637_v7, %v1636_v13 }
 0x1b0   : > { %v8072_v14 = vpop.f32.mrf.mxu1 }
 0x1b1   : > { %v1698_v15 = vpack.c.bf16 %v1635_v10, %v1634_v9  ;;  %v1640_v27 = vmax.f32 %v8072_v14, 0.0 }
 0x1b2   : > { %v1395_v17 = vpop.f32.mrf.mxu1 }
 0x1b3   : > { %8136 = vmatprep.mubr.msk.bf16.mxu0 %vm1242_vm4, %v1698_v15  ;;  %v1638_v23 = vmax.f32 %v1395_v17, 0.0 }
 0x1b4   : > { %v8073_v20 = vpop.f32.mrf.mxu1  ;;  %8137 = vmatmul.mubr.msk.bf16.vlgmr.msra.gmra.mxu0 %vm1242_vm4, %v1699_v16 }
 0x1b5   : > { %v1641_v21 = vmax.f32 %v8073_v20, 0.0 }
 0x1b6   : > { %v1398_v22 = vpop.f32.mrf.mxu1 }
 0x1b7   : > { %v1639_v24 = vmax.f32 %v1398_v22, 0.0  ;;  %v1701_v30 = vpack.c.bf16 %v1641_v21, %v1640_v27 }
 0x1b8   : > { %v8076_v28 = vpop.f32.mrf.mxu1 }
 0x1b9   : > { %v1700_v29 = vpack.c.bf16 %v1639_v24, %v1638_v23  ;;  %v1644_v41 = vmax.f32 %v8076_v28, 0.0 }
 0x1ba   : > { %v1411_v31 = vpop.f32.mrf.mxu1 }
 0x1bb   : > { %8140 = vmatprep.mubr.msk.bf16.mxu0 %vm1242_vm4, %v1700_v29  ;;  %v1642_v37 = vmax.f32 %v1411_v31, 0.0 }
 0x1bc   : > { %v8077_v34 = vpop.f32.mrf.mxu1  ;;  %8141 = vmatmul.mubr.msk.bf16.gmra.mxu0 %vm1242_vm4, %v1701_v30 }
 0x1bd   : > { %v1645_v35 = vmax.f32 %v8077_v34, 0.0 }
 0x1be   : > { %v1414_v36 = vpop.f32.mrf.mxu1 }
 0x1bf   : > { %v1643_v38 = vmax.f32 %v1414_v36, 0.0  ;;  %v1703_v44 = vpack.c.bf16 %v1645_v35, %v1644_v41 }
 0x1c0   : > { %v8080_v42 = vpop.f32.mrf.mxu1 }
 0x1c1   : > { %v1702_v43 = vpack.c.bf16 %v1643_v38, %v1642_v37  ;;  %v1648_v54 = vmax.f32 %v8080_v42, 0.0 }
 0x1c2   : > { %v1427_v45 = vpop.f32.mrf.mxu1 }
 0x1c3   : > { %8144 = vmatprep.mubr.msk.bf16.mxu0 %vm1242_vm4, %v1702_v43  ;;  %v1646_v51 = vmax.f32 %v1427_v45, 0.0 }
 0x1c4   : > { %v8081_v48 = vpop.f32.mrf.mxu1  ;;  %8145 = vmatmul.mubr.msk.bf16.gmra.mxu0 %vm1242_vm4, %v1703_v44 }
 0x1c5   : > { %v1649_v49 = vmax.f32 %v8081_v48, 0.0 }
 0x1c6   : > { %v1430_v50 = vpop.f32.mrf.mxu1 }
 0x1c7   : > { %v1647_v52 = vmax.f32 %v1430_v50, 0.0  ;;  %v1705_v57 = vpack.c.bf16 %v1649_v49, %v1648_v54 }
 0x1c8   : > { %v8084_v55 = vpop.f32.mrf.mxu1 }
 0x1c9   : > { %v1704_v56 = vpack.c.bf16 %v1647_v52, %v1646_v51  ;;  %v1652_v0 = vmax.f32 %v8084_v55, 0.0  ;;  %v8462_v55 = vld [vmem:[%s12584_s10] sm:$0xff]  }
 0x1ca   : > { %v1443_v58 = vpop.f32.mrf.mxu1  ;;  %8202 = vmatprep.subr.bf16.mxu1 %v8462_v55 }
 0x1cb   : > { %8148 = vmatprep.mubr.msk.bf16.mxu0 %vm1242_vm4, %v1704_v56  ;;  %v1650_v62 = vmax.f32 %v1443_v58, 0.0  ;;  %8203 = vmatpush3.bf16.msra.mxu1 %v8462_v55 }
 0x1cc   : > { %v8085_v59 = vpop.f32.mrf.mxu1  ;;  %8149 = vmatmul.mubr.msk.bf16.gmra.mxu0 %vm1242_vm4, %v1705_v57 }
 0x1cd   : > { %v1653_v60 = vmax.f32 %v8085_v59, 0.0 }
 0x1ce   : > { %v1446_v61 = vpop.f32.mrf.mxu1 }
 0x1cf   : > { %v1651_v63 = vmax.f32 %v1446_v61, 0.0  ;;  %v1707_v3 = vpack.c.bf16 %v1653_v60, %v1652_v0 }
 0x1d0   : > { %v8088_v1 = vpop.f32.mrf.mxu1 }
 0x1d1   : > { %v1706_v2 = vpack.c.bf16 %v1651_v63, %v1650_v62  ;;  %v1656_v10 = vmax.f32 %v8088_v1, 0.0 }
 0x1d2   : > { %v1459_v4 = vpop.f32.mrf.mxu1 }
 0x1d3   : > { %8152 = vmatprep.mubr.msk.bf16.mxu0 %vm1242_vm4, %v1706_v2  ;;  %v1654_v8 = vmax.f32 %v1459_v4, 0.0 }
 0x1d4   : > { %v8089_v5 = vpop.f32.mrf.mxu1  ;;  %8153 = vmatmul.mubr.msk.bf16.gmra.mxu0 %vm1242_vm4, %v1707_v3 }
 0x1d5   : > { %v1657_v6 = vmax.f32 %v8089_v5, 0.0 }
 0x1d6   : > { %v1462_v7 = vpop.f32.mrf.mxu1 }
 0x1d7   : > { %v1655_v9 = vmax.f32 %v1462_v7, 0.0  ;;  %v1709_v13 = vpack.c.bf16 %v1657_v6, %v1656_v10 }
 0x1d8   : > { %v8092_v11 = vpop.f32.mrf.mxu1 }
 0x1d9   : > { %v1708_v12 = vpack.c.bf16 %v1655_v9, %v1654_v8  ;;  %v1660_v20 = vmax.f32 %v8092_v11, 0.0 }
 0x1da   : > { %v1475_v14 = vpop.f32.mrf.mxu1 }
 0x1db   : > { %8156 = vmatprep.mubr.msk.bf16.mxu0 %vm1242_vm4, %v1708_v12  ;;  %v1658_v18 = vmax.f32 %v1475_v14, 0.0 }
 0x1dc   : > { %v8093_v15 = vpop.f32.mrf.mxu1  ;;  %8157 = vmatmul.mubr.msk.bf16.gmra.mxu0 %vm1242_vm4, %v1709_v13 }
 0x1dd   : > { %v1661_v16 = vmax.f32 %v8093_v15, 0.0 }
 0x1de   : > { %v1478_v17 = vpop.f32.mrf.mxu1 }
 0x1df   : > { %v1659_v19 = vmax.f32 %v1478_v17, 0.0  ;;  %v1711_v23 = vpack.c.bf16 %v1661_v16, %v1660_v20 }
 0x1e0   : > { %v8096_v21 = vpop.f32.mrf.mxu1 }
 0x1e1   : > { %v1710_v22 = vpack.c.bf16 %v1659_v19, %v1658_v18  ;;  %v1664_v30 = vmax.f32 %v8096_v21, 0.0 }
 0x1e2   : > { %v1491_v24 = vpop.f32.mrf.mxu1 }
 0x1e3   : > { %8160 = vmatprep.mubr.msk.bf16.mxu0 %vm1242_vm4, %v1710_v22  ;;  %v1662_v28 = vmax.f32 %v1491_v24, 0.0 }
 0x1e4   : > { %v8097_v25 = vpop.f32.mrf.mxu1  ;;  %8161 = vmatmul.mubr.msk.bf16.gmra.mxu0 %vm1242_vm4, %v1711_v23 }
 0x1e5   : > { %v1665_v26 = vmax.f32 %v8097_v25, 0.0 }
 0x1e6   : > { %v1494_v27 = vpop.f32.mrf.mxu1 }
 0x1e7   : > { %v1663_v29 = vmax.f32 %v1494_v27, 0.0  ;;  %v1713_v33 = vpack.c.bf16 %v1665_v26, %v1664_v30 }
 0x1e8   : > { %v8100_v31 = vpop.f32.mrf.mxu1 }
 0x1e9   : > { %v1712_v32 = vpack.c.bf16 %v1663_v29, %v1662_v28  ;;  %v1668_v40 = vmax.f32 %v8100_v31, 0.0 }
 0x1ea   : > { %v1507_v34 = vpop.f32.mrf.mxu1 }
 0x1eb   : > { %8164 = vmatprep.mubr.msk.bf16.mxu0 %vm1242_vm4, %v1712_v32  ;;  %v1666_v38 = vmax.f32 %v1507_v34, 0.0 }
 0x1ec   : > { %v8101_v35 = vpop.f32.mrf.mxu1  ;;  %8165 = vmatmul.mubr.msk.bf16.gmra.mxu0 %vm1242_vm4, %v1713_v33 }
 0x1ed   : > { %v1669_v36 = vmax.f32 %v8101_v35, 0.0 }
 0x1ee   : > { %v1510_v37 = vpop.f32.mrf.mxu1 }
 0x1ef   : > { %v1667_v39 = vmax.f32 %v1510_v37, 0.0  ;;  %v1715_v43 = vpack.c.bf16 %v1669_v36, %v1668_v40  ;;  %v9524_v37 = vpop.permute.xlu0 %3776 }
 0x1f0   : > { %v8104_v41 = vpop.f32.mrf.mxu1 }
 0x1f1   : > { %v1714_v42 = vpack.c.bf16 %v1667_v39, %v1666_v38  ;;  %v1672_v51 = vmax.f32 %v8104_v41, 0.0 }
 0x1f2   : > { %v1523_v44 = vpop.f32.mrf.mxu1 }
 0x1f3   : > { %8168 = vmatprep.mubr.msk.bf16.mxu0 %vm1242_vm4, %v1714_v42  ;;  %v1670_v49 = vmax.f32 %v1523_v44, 0.0 }
 0x1f4   : > { %v8105_v45 = vpop.f32.mrf.mxu1  ;;  %8169 = vmatmul.mubr.msk.bf16.gmra.mxu0 %vm1242_vm4, %v1715_v43 }
 0x1f5   : > { %v1673_v47 = vmax.f32 %v8105_v45, 0.0  ;;  %v9527_v45 = vpop.permute.xlu1 %3744 }
 0x1f6   : > { %v1526_v48 = vpop.f32.mrf.mxu1 }
 0x1f7   : > { %v1671_v50 = vmax.f32 %v1526_v48, 0.0  ;;  %v1717_v56 = vpack.c.bf16 %v1673_v47, %v1672_v51  ;;  %v9530_v47 = vpop.permute.xlu0 %3778 }
 0x1f8   : > { %v8108_v52 = vpop.f32.mrf.mxu1 }
 0x1f9   : > { %v1716_v54 = vpack.c.bf16 %v1671_v50, %v1670_v49  ;;  %v1676_v63 = vmax.f32 %v8108_v52, 0.0 }
 0x1fa   : > { %v1539_v57 = vpop.f32.mrf.mxu1 }
 0x1fb   : > { %8172 = vmatprep.mubr.msk.bf16.mxu0 %vm1242_vm4, %v1716_v54  ;;  %v1674_v61 = vmax.f32 %v1539_v57, 0.0  ;;  %v9532_v54 = vpop.permute.xlu1 %3746 }
 0x1fc   : > { %v8109_v58 = vpop.f32.mrf.mxu1  ;;  %8173 = vmatmul.mubr.msk.bf16.gmra.mxu0 %vm1242_vm4, %v1717_v56  ;;  %v9534_v56 = vpop.permute.xlu0 %3772 }
 0x1fd   : > { %v1677_v59 = vmax.f32 %v8109_v58, 0.0 }
 0x1fe   : > { %v1542_v60 = vpop.f32.mrf.mxu1 }
 0x1ff   : > { %v1675_v62 = vmax.f32 %v1542_v60, 0.0  ;;  %v1719_v2 = vpack.c.bf16 %v1677_v59, %v1676_v63  ;;  %v9538_v57 = vpop.permute.xlu1 %3774 }
 0x200   : > { %v8112_v0 = vpop.f32.mrf.mxu1  ;;  %v9540_v58 = vpop.permute.xlu0 %3740 }
 0x201   : > { %v1718_v1 = vpack.c.bf16 %v1675_v62, %v1674_v61  ;;  %v1680_v9 = vmax.f32 %v8112_v0, 0.0 }
 0x202   : > { %v1555_v3 = vpop.f32.mrf.mxu1 }
 0x203   : > { %8176 = vmatprep.mubr.msk.bf16.mxu0 %vm1242_vm4, %v1718_v1  ;;  %v1678_v7 = vmax.f32 %v1555_v3, 0.0  ;;  %v9542_v59 = vpop.permute.xlu1 %3742 }
 0x204   : > { %v8113_v4 = vpop.f32.mrf.mxu1  ;;  %8177 = vmatmul.mubr.msk.bf16.gmra.mxu0 %vm1242_vm4, %v1719_v2  ;;  %v9544_v60 = vpop.permute.xlu0 %3768 }
 0x205   : > { %v1681_v5 = vmax.f32 %v8113_v4, 0.0 }
 0x206   : > { %v1558_v6 = vpop.f32.mrf.mxu1 }
 0x207   : > { %v1679_v8 = vmax.f32 %v1558_v6, 0.0  ;;  %v1721_v12 = vpack.c.bf16 %v1681_v5, %v1680_v9  ;;  %v9546_v61 = vpop.permute.xlu1 %3770 }
 0x208   : > { %v8116_v10 = vpop.f32.mrf.mxu1  ;;  %v9548_v62 = vpop.permute.xlu0 %3736 }
 0x209   : > { %v1720_v11 = vpack.c.bf16 %v1679_v8, %v1678_v7  ;;  %v1684_v19 = vmax.f32 %v8116_v10, 0.0 }
 0x20a   : > { %v1571_v13 = vpop.f32.mrf.mxu1 }
 0x20b   : > { %8180 = vmatprep.mubr.msk.bf16.mxu0 %vm1242_vm4, %v1720_v11  ;;  %v1682_v17 = vmax.f32 %v1571_v13, 0.0  ;;  %v9550_v63 = vpop.permute.xlu1 %3738 }
 0x20c   : > { %v8117_v14 = vpop.f32.mrf.mxu1  ;;  %8181 = vmatmul.mubr.msk.bf16.gmra.mxu0 %vm1242_vm4, %v1721_v12  ;;  %v9552_v0 = vpop.permute.xlu0 %3764 }
 0x20d   : > { %v1685_v15 = vmax.f32 %v8117_v14, 0.0 }
 0x20e   : > { %v1574_v16 = vpop.f32.mrf.mxu1 }
 0x20f   : > { %v1683_v18 = vmax.f32 %v1574_v16, 0.0  ;;  %v1723_v22 = vpack.c.bf16 %v1685_v15, %v1684_v19  ;;  %v9554_v1 = vpop.permute.xlu1 %3766 }
 0x210   : > { %v8120_v20 = vpop.f32.mrf.mxu1  ;;  %v9556_v2 = vpop.permute.xlu0 %3732 }
 0x211   : > { %v1722_v21 = vpack.c.bf16 %v1683_v18, %v1682_v17  ;;  %v1688_v29 = vmax.f32 %v8120_v20, 0.0 }
 0x212   : > { %v1587_v23 = vpop.f32.mrf.mxu1 }
 0x213   : > { %8184 = vmatprep.mubr.msk.bf16.mxu0 %vm1242_vm4, %v1722_v21  ;;  %v1686_v27 = vmax.f32 %v1587_v23, 0.0  ;;  %v9558_v3 = vpop.permute.xlu1 %3734 }
 0x214   : > { %v8121_v24 = vpop.f32.mrf.mxu1  ;;  %8185 = vmatmul.mubr.msk.bf16.gmra.mxu0 %vm1242_vm4, %v1723_v22  ;;  %v9560_v4 = vpop.permute.xlu0 %3760 }
 0x215   : > { %v1689_v25 = vmax.f32 %v8121_v24, 0.0 }
 0x216   : > { %v1590_v26 = vpop.f32.mrf.mxu1 }
 0x217   : > { %v1687_v28 = vmax.f32 %v1590_v26, 0.0  ;;  %v1725_v32 = vpack.c.bf16 %v1689_v25, %v1688_v29  ;;  %v9562_v5 = vpop.permute.xlu1 %3762 }
 0x218   : > { %v8124_v30 = vpop.f32.mrf.mxu1  ;;  %v3729_v6 = vpop.permute.xlu0 %3728 }
 0x219   : > { %v1724_v31 = vpack.c.bf16 %v1687_v28, %v1686_v27  ;;  %v1692_v40 = vmax.f32 %v8124_v30, 0.0 }
 0x21a   : > { %v1603_v33 = vpop.f32.mrf.mxu1 }
 0x21b   : > { %8188 = vmatprep.mubr.msk.bf16.mxu0 %vm1242_vm4, %v1724_v31  ;;  %v1690_v38 = vmax.f32 %v1603_v33, 0.0  ;;  %v3731_v7 = vpop.permute.xlu1 %3730 }
 0x21c   : > { %v8125_v34 = vpop.f32.mrf.mxu1  ;;  %8189 = vmatmul.mubr.msk.bf16.gmra.mxu0 %vm1242_vm4, %v1725_v32  ;;  %v9564_v8 = vpop.permute.xlu0 %3756 }
 0x21d   : > { %v1693_v35 = vmax.f32 %v8125_v34, 0.0 }
 0x21e   : > { %v1606_v36 = vpop.f32.mrf.mxu1 }
 0x21f   : > { %v1691_v39 = vmax.f32 %v1606_v36, 0.0  ;;  %v1727_v43 = vpack.c.bf16 %v1693_v35, %v1692_v40  ;;  %v9566_v9 = vpop.permute.xlu1 %3758 }
 0x220   : > { %v8128_v41 = vpop.f32.mrf.mxu1  ;;  %v3725_v10 = vpop.permute.xlu0 %3724 }
 0x221   : > { %v1726_v42 = vpack.c.bf16 %v1691_v39, %v1690_v38  ;;  %v1696_v52 = vmax.f32 %v8128_v41, 0.0 }
 0x222   : > { %v1619_v44 = vpop.f32.mrf.mxu1 }
 0x223   : > { %8192 = vmatprep.mubr.msk.bf16.mxu0 %vm1242_vm4, %v1726_v42  ;;  %v1694_v50 = vmax.f32 %v1619_v44, 0.0  ;;  %v3727_v11 = vpop.permute.xlu1 %3726 }
 0x224   : > { %v8129_v46 = vpop.f32.mrf.mxu1  ;;  %8193 = vmatmul.mubr.msk.bf16.gmra.mxu0 %vm1242_vm4, %v1727_v43  ;;  %v9568_v12 = vpop.permute.xlu0 %3752 }
 0x225   : > { %v1697_v48 = vmax.f32 %v8129_v46, 0.0 }
 0x226   : > { %v1622_v49 = vpop.f32.mrf.mxu1 }
 0x227   : > { %v1695_v51 = vmax.f32 %v1622_v49, 0.0  ;;  %v1729_v55 = vpack.c.bf16 %v1697_v48, %v1696_v52  ;;  %v9570_v13 = vpop.permute.xlu1 %3754 }
 0x228   : > { %v3721_v14 = vpop.permute.xlu0 %3720 }
 0x229   : > { %v1728_v53 = vpack.c.bf16 %v1695_v51, %v1694_v50 }
 0x22b   : > { %8196 = vmatprep.mubr.msk.bf16.mxu0 %vm1242_vm4, %v1728_v53  ;;  %v3723_v15 = vpop.permute.xlu1 %3722 }
 0x22c   : > { %8197 = vmatmul.mubr.msk.bf16.gmra.mxu0 %vm1242_vm4, %v1729_v55  ;;  %v9572_v16 = vpop.permute.xlu0 %3748 }
 0x22f   : > { %v9574_v20 = vpop.permute.xlu1 %3750 }
 0x230   : > { %v3717_v23 = vpop.permute.xlu0 %3716 }
 0x233   : > { %v3719_v34 = vpop.permute.xlu1 %3718 }
 0x274   : > { %v8138_v17 = vpop.f32.mrf.mxu0 }
 0x275   : > { %v3590_v18 = vmax.f32 %v8138_v17, 0.0 }
 0x276   : > { %v1883_v19 = vpop.f32.mrf.mxu0 }
 0x277   : > { %v9576_v21 = vmul.f32 %v3721_v14, %v3590_v18  ;;  %v3588_v22 = vmax.f32 %v1883_v19, 0.0 }
 0x278   : > { %v8139_v24 = vpop.f32.mrf.mxu0 }
 0x279   : > { %v3591_v25 = vmax.f32 %v8139_v24, 0.0  ;;  %4048 = vperm.xlu1 %8418, %v9576_v21   ;;  %v9579_v27 = vmul.f32 %v3717_v23, %v3588_v22  ;;  %v2139_v32 = vpack.c.bf16 %v8139_v24, %v8138_v17 }
 0x27a   : > { %v1886_v26 = vpop.f32.mrf.mxu0 }
 0x27b   : > { %v9581_v28 = vmul.f32 %v3723_v15, %v3591_v25  ;;  %v2138_v29 = vpack.c.bf16 %v1886_v26, %v1883_v19  ;;  %v3589_v30 = vmax.f32 %v1886_v26, 0.0 }
 0x27c   : > { %v8142_v31 = vpop.f32.mrf.mxu0 }
 0x27d   : > { %v3594_v33 = vmax.f32 %v8142_v31, 0.0  ;;  %4038 = vperm.xlu1 %8418, %v9579_v27   ;;  %4053 = vperm.xlu0 %8419, %v9581_v28   ;;  %v9589_v39 = vmul.f32 %v3719_v34, %v3589_v30 }
 0x27e   : > { %8204 = vmatprep.mubr.msk.bf16.mxu1 %vm2314_vm5, %v2138_v29  ;;  %v1899_v35 = vpop.f32.mrf.mxu0 }
 0x27f   : > { %v9586_v36 = vmul.f32 %v3729_v6, %v3594_v33  ;;  %v3592_v38 = vmax.f32 %v1899_v35, 0.0  ;;  %8205 = vmatmul.mubr.msk.bf16.vlgmr.msra.gmra.mxu1 %vm2314_vm5, %v2139_v32  ;;  %12658 = vst [vmem:[#allocation3_spill] sm:$0xff] %v9589_v39 }
 0x280   : > { %v8143_v40 = vpop.f32.mrf.mxu0 }
 0x281   : > { %12657 = vst [vmem:[#allocation2_spill] sm:$0xff] %v9586_v36  ;;  %4043 = vperm.xlu0 %8419, %v9589_v39   ;;  %4068 = vperm.xlu1 %8418, %v9586_v36   ;;  %v3595_v41 = vmax.f32 %v8143_v40, 0.0  ;;  %v9593_v43 = vmul.f32 %v3725_v10, %v3592_v38  ;;  %v2141_v50 = vpack.c.bf16 %v8143_v40, %v8142_v31 }
 0x282   : > { %v1902_v42 = vpop.f32.mrf.mxu0 }
 0x283   : > { %12659 = vst [vmem:[#allocation4_spill] sm:$0xff] %v9593_v43  ;;  %v2140_v44 = vpack.c.bf16 %v1902_v42, %v1899_v35  ;;  %v9595_v46 = vmul.f32 %v3731_v7, %v3595_v41  ;;  %v3593_v48 = vmax.f32 %v1902_v42, 0.0  ;;  %v9644_v42 = vpop.permute.xlu0 %3840 }
 0x284   : > { %v8146_v49 = vpop.f32.mrf.mxu0 }
 0x285   : > { %12660 = vst [vmem:[#allocation5_spill] sm:$0xff] %v9595_v46  ;;  %v3598_v51 = vmax.f32 %v8146_v49, 0.0  ;;  %4058 = vperm.xlu1 %8418, %v9593_v43   ;;  %8208 = vmatprep.mubr.msk.bf16.mxu1 %vm2314_vm5, %v2140_v44  ;;  %v9604_v7 = vmul.f32 %v3727_v11, %v3593_v48 }
 0x286   : > { %4073 = vperm.xlu0 %8419, %v9595_v46   ;;  %v1915_v52 = vpop.f32.mrf.mxu0 }
 0x287   : > { %v9601_v53 = vmul.f32 %v9548_v62, %v3598_v51  ;;  %v3596_v55 = vmax.f32 %v1915_v52, 0.0  ;;  %8209 = vmatmul.mubr.msk.bf16.gmra.mxu1 %vm2314_vm5, %v2141_v50  ;;  %12662 = vst [vmem:[#allocation7_spill] sm:$0xff] %v9604_v7 }
 0x288   : > { %v8147_v6 = vpop.f32.mrf.mxu0 }
 0x289   : > { %12661 = vst [vmem:[#allocation6_spill] sm:$0xff] %v9601_v53  ;;  %v3599_v10 = vmax.f32 %v8147_v6, 0.0  ;;  %4088 = vperm.xlu1 %8418, %v9601_v53   ;;  %v9609_v15 = vmul.f32 %v9556_v2, %v3596_v55  ;;  %v2143_v22 = vpack.c.bf16 %v8147_v6, %v8146_v49 }
 0x28a   : > { %4063 = vperm.xlu0 %8419, %v9604_v7   ;;  %v1918_v14 = vpop.f32.mrf.mxu0 }
 0x28b   : > { %12663 = vst [vmem:[#allocation8_spill] sm:$0xff] %v9609_v15  ;;  %v9612_v17 = vmul.f32 %v9550_v63, %v3599_v10  ;;  %v2142_v62 = vpack.c.bf16 %v1918_v14, %v1915_v52  ;;  %v3597_v18 = vmax.f32 %v1918_v14, 0.0 }
 0x28c   : > { %v8150_v19 = vpop.f32.mrf.mxu0 }
 0x28d   : > { %12664 = vst [vmem:[#allocation9_spill] sm:$0xff] %v9612_v17  ;;  %4078 = vperm.xlu1 %8418, %v9609_v15   ;;  %8212 = vmatprep.mubr.msk.bf16.mxu1 %vm2314_vm5, %v2142_v62  ;;  %v3602_v11 = vmax.f32 %v8150_v19, 0.0  ;;  %v9622_v25 = vmul.f32 %v9558_v3, %v3597_v18  ;;  %v9633_v3 = vpop.permute.xlu1 %3842 }
 0x28e   : > { %4093 = vperm.xlu0 %8419, %v9612_v17   ;;  %v1931_v23 = vpop.f32.mrf.mxu0 }
 0x28f   : > { %8213 = vmatmul.mubr.msk.bf16.gmra.mxu1 %vm2314_vm5, %v2143_v22  ;;  %v9619_v2 = vmul.f32 %v9527_v45, %v3602_v11  ;;  %v3600_v24 = vmax.f32 %v1931_v23, 0.0  ;;  %12666 = vst [vmem:[#allocation11_spill] sm:$0xff] %v9622_v25 }
 0x290   : > { %v8151_v63 = vpop.f32.mrf.mxu0 }
 0x291   : > { %12665 = vst [vmem:[#allocation10_spill] sm:$0xff] %v9619_v2  ;;  %v3603_v26 = vmax.f32 %v8151_v63, 0.0  ;;  %4108 = vperm.xlu1 %8418, %v9619_v2   ;;  %v9630_v32 = vmul.f32 %v9540_v58, %v3600_v24  ;;  %v2145_v34 = vpack.c.bf16 %v8151_v63, %v8150_v19  ;;  %v9648_v50 = vpop.permute.xlu1 %3810 }
 0x292   : > { %4083 = vperm.xlu0 %8419, %v9622_v25   ;;  %v1934_v29 = vpop.f32.mrf.mxu0 }
 0x293   : > { %v9627_v30 = vmul.f32 %v9532_v54, %v3603_v26  ;;  %v2144_v31 = vpack.c.bf16 %v1934_v29, %v1931_v23  ;;  %12668 = vst [vmem:[#allocation13_spill] sm:$0xff] %v9630_v32  ;;  %v3601_v45 = vmax.f32 %v1934_v29, 0.0 }
 0x294   : > { %v8154_v33 = vpop.f32.mrf.mxu0 }
 0x295   : > { %12667 = vst [vmem:[#allocation12_spill] sm:$0xff] %v9627_v30  ;;  %v3606_v35 = vmax.f32 %v8154_v33, 0.0  ;;  %8216 = vmatprep.mubr.msk.bf16.mxu1 %vm2314_vm5, %v2144_v31  ;;  %4098 = vperm.xlu1 %8418, %v9630_v32   ;;  %v9642_v41 = vmul.f32 %v9542_v59, %v3601_v45  ;;  %v9668_v22 = vpop.permute.xlu1 %3838 }
 0x296   : > { %4113 = vperm.xlu0 %8419, %v9627_v30   ;;  %v1947_v38 = vpop.f32.mrf.mxu0 }
 0x297   : > { %v9638_v54 = vmul.f32 %v9568_v12, %v3606_v35  ;;  %8217 = vmatmul.mubr.msk.bf16.gmra.mxu1 %vm2314_vm5, %v2145_v34  ;;  %v3604_v58 = vmax.f32 %v1947_v38, 0.0  ;;  %12670 = vst [vmem:[#allocation15_spill] sm:$0xff] %v9642_v41 }
 0x298   : > { %v8155_v40 = vpop.f32.mrf.mxu0 }
 0x299   : > { %12669 = vst [vmem:[#allocation14_spill] sm:$0xff] %v9638_v54  ;;  %v3607_v44 = vmax.f32 %v8155_v40, 0.0  ;;  %4128 = vperm.xlu1 %8418, %v9638_v54   ;;  %v9651_v12 = vmul.f32 %v9572_v16, %v3604_v58  ;;  %v2147_v55 = vpack.c.bf16 %v8155_v40, %v8154_v33  ;;  %v9663_v16 = vpop.permute.xlu0 %3808 }
 0x29a   : > { %4103 = vperm.xlu0 %8419, %v9642_v41   ;;  %v1950_v48 = vpop.f32.mrf.mxu0 }
 0x29b   : > { %v2146_v49 = vpack.c.bf16 %v1950_v48, %v1947_v38  ;;  %12671 = vst [vmem:[#allocation16_spill] sm:$0xff] %v9651_v12  ;;  %v9654_v51 = vmul.f32 %v9570_v13, %v3607_v44  ;;  %v3605_v52 = vmax.f32 %v1950_v48, 0.0 }
 0x29c   : > { %v8158_v59 = vpop.f32.mrf.mxu0 }
 0x29d   : > { %12672 = vst [vmem:[#allocation17_spill] sm:$0xff] %v9654_v51  ;;  %v3610_v6 = vmax.f32 %v8158_v59, 0.0  ;;  %8220 = vmatprep.mubr.msk.bf16.mxu1 %vm2314_vm5, %v2146_v49  ;;  %4118 = vperm.xlu1 %8418, %v9651_v12   ;;  %v9666_v18 = vmul.f32 %v9574_v20, %v3605_v52  ;;  %v9679_v31 = vpop.permute.xlu0 %3836 }
 0x29e   : > { %4133 = vperm.xlu0 %8419, %v9654_v51   ;;  %v1963_v10 = vpop.f32.mrf.mxu0 }
 0x29f   : > { %v9660_v14 = vmul.f32 %v9560_v4, %v3610_v6  ;;  %8221 = vmatmul.mubr.msk.bf16.gmra.mxu1 %vm2314_vm5, %v2147_v55  ;;  %v3608_v13 = vmax.f32 %v1963_v10, 0.0  ;;  %12674 = vst [vmem:[#allocation19_spill] sm:$0xff] %v9666_v18 }
 0x2a0   : > { %v8159_v62 = vpop.f32.mrf.mxu0 }
 0x2a1   : > { %12673 = vst [vmem:[#allocation18_spill] sm:$0xff] %v9660_v14  ;;  %v3611_v19 = vmax.f32 %v8159_v62, 0.0  ;;  %4148 = vperm.xlu1 %8418, %v9660_v14   ;;  %v9676_v24 = vmul.f32 %v9564_v8, %v3608_v13  ;;  %v2149_v29 = vpack.c.bf16 %v8159_v62, %v8158_v59  ;;  %v9687_v8 = vpop.permute.xlu1 %3806  ;;  %v9694_v44 = vpop.permute.xlu0 %3804 }
 0x2a2   : > { %4123 = vperm.xlu0 %8419, %v9666_v18   ;;  %v1966_v11 = vpop.f32.mrf.mxu0 }
 0x2a3   : > { %v9673_v4 = vmul.f32 %v9562_v5, %v3611_v19  ;;  %v2148_v23 = vpack.c.bf16 %v1966_v11, %v1963_v10  ;;  %12676 = vst [vmem:[#allocation21_spill] sm:$0xff] %v9676_v24  ;;  %v3609_v63 = vmax.f32 %v1966_v11, 0.0 }
 0x2a4   : > { %v8162_v26 = vpop.f32.mrf.mxu0 }
 0x2a5   : > { %12675 = vst [vmem:[#allocation20_spill] sm:$0xff] %v9673_v4  ;;  %v3614_v20 = vmax.f32 %v8162_v26, 0.0  ;;  %8224 = vmatprep.mubr.msk.bf16.mxu1 %vm2314_vm5, %v2148_v23  ;;  %4138 = vperm.xlu1 %8418, %v9676_v24   ;;  %v9690_v35 = vmul.f32 %v9566_v9, %v3609_v63  ;;  %v9703_v9 = vpop.permute.xlu1 %3834  ;;  %v9714_v19 = vpop.permute.xlu0 %3832 }
 0x2a6   : > { %4153 = vperm.xlu0 %8419, %v9673_v4   ;;  %v1979_v45 = vpop.f32.mrf.mxu0 }
 0x2a7   : > { %v9684_v5 = vmul.f32 %v9544_v60, %v3614_v20  ;;  %8225 = vmatmul.mubr.msk.bf16.gmra.mxu1 %vm2314_vm5, %v2149_v29  ;;  %v3612_v33 = vmax.f32 %v1979_v45, 0.0  ;;  %12678 = vst [vmem:[#allocation23_spill] sm:$0xff] %v9690_v35 }
 0x2a8   : > { %v8163_v34 = vpop.f32.mrf.mxu0 }
 0x2a9   : > { %12677 = vst [vmem:[#allocation22_spill] sm:$0xff] %v9684_v5  ;;  %v3615_v38 = vmax.f32 %v8163_v34, 0.0  ;;  %4168 = vperm.xlu1 %8418, %v9684_v5   ;;  %v9697_v60 = vmul.f32 %v9552_v0, %v3612_v33  ;;  %v2151_v59 = vpack.c.bf16 %v8163_v34, %v8162_v26  ;;  %v3803_v63 = vpop.permute.xlu1 %3802  ;;  %v3801_v33 = vpop.permute.xlu0 %3800 }
 0x2aa   : > { %4143 = vperm.xlu0 %8419, %v9690_v35   ;;  %v1982_v58 = vpop.f32.mrf.mxu0 }
 0x2ab   : > { %v2150_v40 = vpack.c.bf16 %v1982_v58, %v1979_v45  ;;  %12679 = vst [vmem:[#allocation24_spill] sm:$0xff] %v9697_v60  ;;  %v9700_v48 = vmul.f32 %v9546_v61, %v3615_v38  ;;  %v3613_v49 = vmax.f32 %v1982_v58, 0.0 }
 0x2ac   : > { %v8166_v52 = vpop.f32.mrf.mxu0 }
 0x2ad   : > { %12680 = vst [vmem:[#allocation25_spill] sm:$0xff] %v9700_v48  ;;  %8228 = vmatprep.mubr.msk.bf16.mxu1 %vm2314_vm5, %v2150_v40  ;;  %4158 = vperm.xlu1 %8418, %v9697_v60   ;;  %v3618_v0 = vmax.f32 %v8166_v52, 0.0  ;;  %v9709_v61 = vmul.f32 %v9554_v1, %v3613_v49  ;;  %v9737_v38 = vpop.permute.xlu1 %3830 }
 0x2ae   : > { %4173 = vperm.xlu0 %8419, %v9700_v48   ;;  %v1995_v55 = vpop.f32.mrf.mxu0 }
 0x2af   : > { %v3616_v6 = vmax.f32 %v1995_v55, 0.0  ;;  %8229 = vmatmul.mubr.msk.bf16.gmra.mxu1 %vm2314_vm5, %v2151_v59  ;;  %12681 = vst [vmem:[#allocation26_spill] sm:$0xff] %v9709_v61  ;;  %v9719_v26 = vmul.f32 %v9524_v37, %v3618_v0 }
 0x2b0   : > { %v8167_v10 = vpop.f32.mrf.mxu0 }
 0x2b1   : > { %v9712_v13 = vmul.f32 %v9534_v56, %v3616_v6  ;;  %v3619_v62 = vmax.f32 %v8167_v10, 0.0  ;;  %12683 = vst [vmem:[#allocation28_spill] sm:$0xff] %v9719_v26  ;;  %v2153_v1 = vpack.c.bf16 %v8167_v10, %v8166_v52  ;;  %v9749_v52 = vpop.permute.xlu0 %3828  ;;  %v3799_v59 = vpop.permute.xlu1 %3798  ;;  %v8463_v10 = vld [vmem:[%s12585_s11 + $0x8] sm:$0xff]  }
 0x2b2   : > { %4163 = vperm.xlu0 %8419, %v9709_v61   ;;  %v1998_v11 = vpop.f32.mrf.mxu0  ;;  %8268 = vmatprep.subr.bf16.mxu0 %v8463_v10 }
 0x2b3   : > { %12682 = vst [vmem:[#allocation27_spill] sm:$0xff] %v9712_v13  ;;  %v2152_v23 = vpack.c.bf16 %v1998_v11, %v1995_v55  ;;  %4178 = vperm.xlu1 %8418, %v9712_v13   ;;  %v3617_v29 = vmax.f32 %v1998_v11, 0.0  ;;  %v9724_v56 = vmul.f32 %v9530_v47, %v3619_v62  ;;  %8269 = vmatpush3.bf16.msra.mxu0 %v8463_v10 }
 0x2b4   : > { %v9721_v20 = vpop.f32.mrf.mxu0 }
 0x2b5   : > { %12684 = vst [vmem:[#allocation29_spill] sm:$0xff] %v9724_v56  ;;  %8232 = vmatprep.mubr.msk.bf16.mxu1 %vm2314_vm5, %v2152_v23  ;;  %v9735_v34 = vmul.f32 %v9538_v57, %v3617_v29  ;;  %v3797_v62 = vpop.permute.xlu0 %3796 }
 0x2b6   : > { %4188 = vperm.xlu0 %8419, %v9719_v26   ;;  %v9728_v45 = vpop.f32.mrf.mxu0 }
 0x2b7   : > { %8233 = vmatmul.mubr.msk.bf16.gmra.mxu1 %vm2314_vm5, %v2153_v1  ;;  %4193 = vperm.xlu1 %8418, %v9724_v56   ;;  %12685 = vst [vmem:[#allocation30_spill] sm:$0xff] %v9735_v34  ;;  %v9766_v1 = vpop.permute.xlu1 %3826  ;;  %v8464_v56 = vld [vmem:[%s12585_s11] sm:$0xff]  }
 0x2b8   : > { %v9732_v37 = vpop.f32.mrf.mxu0  ;;  %8270 = vmatprep.subr.bf16.mxu0 %v8464_v56 }
 0x2b9   : > { %v2155_v49 = vpack.c.bf16 %v9732_v37, %v9721_v20  ;;  %8271 = vmatpush3.bf16.msra.mxu0 %v8464_v56 }
 0x2ba   : > { %4183 = vperm.xlu0 %8419, %v9735_v34   ;;  %v9740_v47 = vpop.f32.mrf.mxu0 }
 0x2bb   : > { %v2154_v58 = vpack.c.bf16 %v9740_v47, %v9728_v45 }
 0x2bc   : > { %v9744_v40 = vpop.f32.mrf.mxu0 }
 0x2bd   : > { %8236 = vmatprep.mubr.msk.bf16.mxu1 %vm2314_vm5, %v2154_v58 }
 0x2be   : > { %v9751_v57 = vpop.f32.mrf.mxu0 }
 0x2bf   : > { %8237 = vmatmul.mubr.msk.bf16.gmra.mxu1 %vm2314_vm5, %v2155_v49 }
 0x2c0   : > { %v9754_v55 = vpop.f32.mrf.mxu0 }
 0x2c1   : > { %v2157_v23 = vpack.c.bf16 %v9754_v55, %v9744_v40 }
 0x2c2   : > { %v9756_v6 = vpop.f32.mrf.mxu0 }
 0x2c3   : > { %v2156_v0 = vpack.c.bf16 %v9756_v6, %v9751_v57 }
 0x2c4   : > { %v8178_v11 = vpop.f32.mrf.mxu0 }
 0x2c5   : > { %v3630_v29 = vmax.f32 %v8178_v11, 0.0  ;;  %8240 = vmatprep.mubr.msk.bf16.mxu1 %vm2314_vm5, %v2156_v0  ;;  %v3825_v0 = vpop.permute.xlu0 %3824 }
 0x2c6   : > { %v2043_v58 = vpop.f32.mrf.mxu0 }
 0x2c7   : > { %v9768_v49 = vmul.f32 %v3801_v33, %v3630_v29  ;;  %v3628_v34 = vmax.f32 %v2043_v58, 0.0  ;;  %8241 = vmatmul.mubr.msk.bf16.gmra.mxu1 %vm2314_vm5, %v2157_v23  ;;  %v9779_v29 = vpop.permute.xlu1 %3794 }
 0x2c8   : > { %v8179_v13 = vpop.f32.mrf.mxu0 }
 0x2c9   : > { %12686 = vst [vmem:[#allocation31_spill] sm:$0xff] %v9768_v49  ;;  %v3631_v26 = vmax.f32 %v8179_v13, 0.0  ;;  %4248 = vperm.xlu1 %8418, %v9768_v49   ;;  %v9775_v48 = vmul.f32 %v3797_v62, %v3628_v34  ;;  %v2159_v5 = vpack.c.bf16 %v8179_v13, %v8178_v11 }
 0x2ca   : > { %v2046_v61 = vpop.f32.mrf.mxu0 }
 0x2cb   : > { %12687 = vst [vmem:[#allocation32_spill] sm:$0xff] %v9775_v48  ;;  %v9777_v10 = vmul.f32 %v3803_v63, %v3631_v26  ;;  %v2158_v33 = vpack.c.bf16 %v2046_v61, %v2043_v58  ;;  %v3629_v23 = vmax.f32 %v2046_v61, 0.0  ;;  %v9787_v63 = vpop.permute.xlu0 %3792  ;;  %v9793_v13 = vpop.permute.xlu1 %3822 }
 0x2cc   : > { %v8182_v60 = vpop.f32.mrf.mxu0 }
 0x2cd   : > { %12688 = vst [vmem:[#allocation33_spill] sm:$0xff] %v9777_v10  ;;  %4238 = vperm.xlu1 %8418, %v9775_v48   ;;  %4253 = vperm.xlu0 %8419, %v9777_v10   ;;  %v3634_v35 = vmax.f32 %v8182_v60, 0.0  ;;  %v9784_v4 = vmul.f32 %v3799_v59, %v3629_v23 }
 0x2ce   : > { %8244 = vmatprep.mubr.msk.bf16.mxu1 %vm2314_vm5, %v2158_v33  ;;  %v2059_v49 = vpop.f32.mrf.mxu0 }
 0x2cf   : > { %12689 = vst [vmem:[#allocation34_spill] sm:$0xff] %v9784_v4  ;;  %8245 = vmatmul.mubr.msk.bf16.gmra.mxu1 %vm2314_vm5, %v2159_v5  ;;  %v9790_v26 = vmul.f32 %v9663_v16, %v3634_v35  ;;  %v3632_v61 = vmax.f32 %v2059_v49, 0.0  ;;  %v9805_v33 = vpop.permute.xlu0 %3820 }
 0x2d0   : > { %v8183_v56 = vpop.f32.mrf.mxu0 }
 0x2d1   : > { %12690 = vst [vmem:[#allocation35_spill] sm:$0xff] %v9790_v26  ;;  %4243 = vperm.xlu0 %8419, %v9784_v4   ;;  %v3635_v34 = vmax.f32 %v8183_v56, 0.0  ;;  %4268 = vperm.xlu1 %8418, %v9790_v26   ;;  %v9797_v59 = vmul.f32 %v9694_v44, %v3632_v61  ;;  %v2161_v35 = vpack.c.bf16 %v8183_v56, %v8182_v60  ;;  %v9812_v44 = vpop.permute.xlu1 %3790 }
 0x2d2   : > { %v2062_v62 = vpop.f32.mrf.mxu0 }
 0x2d3   : > { %v2160_v11 = vpack.c.bf16 %v2062_v62, %v2059_v49  ;;  %12691 = vst [vmem:[#allocation36_spill] sm:$0xff] %v9797_v59  ;;  %v9800_v5 = vmul.f32 %v9648_v50, %v3635_v34  ;;  %v3633_v58 = vmax.f32 %v2062_v62, 0.0  ;;  %v9824_v56 = vpop.permute.xlu0 %3788 }
 0x2d4   : > { %v9802_v16 = vpop.f32.mrf.mxu0 }
 0x2d5   : > { %12692 = vst [vmem:[#allocation37_spill] sm:$0xff] %v9800_v5  ;;  %8248 = vmatprep.mubr.msk.bf16.mxu1 %vm2314_vm5, %v2160_v11  ;;  %4258 = vperm.xlu1 %8418, %v9797_v59   ;;  %v9815_v50 = vmul.f32 %v9687_v8, %v3633_v58  ;;  %v9829_v8 = vpop.permute.xlu1 %3818 }
 0x2d6   : > { %4273 = vperm.xlu0 %8419, %v9800_v5   ;;  %v9809_v23 = vpop.f32.mrf.mxu0 }
 0x2d7   : > { %8249 = vmatmul.mubr.msk.bf16.gmra.mxu1 %vm2314_vm5, %v2161_v35  ;;  %12693 = vst [vmem:[#allocation38_spill] sm:$0xff] %v9815_v50  ;;  %v9837_v59 = vpop.permute.xlu0 %3816 }
 0x2d8   : > { %v9817_v49 = vpop.f32.mrf.mxu0 }
 0x2d9   : > { %v2163_v62 = vpack.c.bf16 %v9817_v49, %v9802_v16  ;;  %v9846_v10 = vpop.permute.xlu1 %3786 }
 0x2da   : > { %4263 = vperm.xlu0 %8419, %v9815_v50   ;;  %v9820_v60 = vpop.f32.mrf.mxu0 }
 0x2db   : > { %v2162_v61 = vpack.c.bf16 %v9820_v60, %v9809_v23 }
 0x2dc   : > { %v8190_v34 = vpop.f32.mrf.mxu0 }
 0x2dd   : > { %v3642_v11 = vmax.f32 %v8190_v34, 0.0  ;;  %8252 = vmatprep.mubr.msk.bf16.mxu1 %vm2314_vm5, %v2162_v61  ;;  %v9857_v14 = vpop.permute.xlu1 %3814 }
 0x2de   : > { %v9831_v58 = vpop.f32.mrf.mxu0 }
 0x2df   : > { %v9833_v35 = vmul.f32 %v3825_v0, %v3642_v11  ;;  %8253 = vmatmul.mubr.msk.bf16.gmra.mxu1 %vm2314_vm5, %v2163_v62 }
 0x2e0   : > { %v8191_v50 = vpop.f32.mrf.mxu0 }
 0x2e1   : > { %12694 = vst [vmem:[#allocation39_spill] sm:$0xff] %v9833_v35  ;;  %v3643_v5 = vmax.f32 %v8191_v50, 0.0  ;;  %4308 = vperm.xlu1 %8418, %v9833_v35   ;;  %v2165_v11 = vpack.c.bf16 %v8191_v50, %v8190_v34 }
 0x2e2   : > { %v9839_v26 = vpop.f32.mrf.mxu0 }
 0x2e3   : > { %v9842_v4 = vmul.f32 %v9766_v1, %v3643_v5  ;;  %v2164_v61 = vpack.c.bf16 %v9839_v26, %v9831_v58  ;;  %v9854_v1 = vpop.permute.xlu0 %3784 }
 0x2e4   : > { %v8194_v0 = vpop.f32.mrf.mxu0 }
 0x2e5   : > { %12695 = vst [vmem:[#allocation40_spill] sm:$0xff] %v9842_v4  ;;  %v3646_v48 = vmax.f32 %v8194_v0, 0.0  ;;  %4313 = vperm.xlu0 %8419, %v9842_v4   ;;  %8256 = vmatprep.mubr.msk.bf16.mxu1 %vm2314_vm5, %v2164_v61 }
 0x2e6   : > { %v2107_v62 = vpop.f32.mrf.mxu0 }
 0x2e7   : > { %v9851_v35 = vmul.f32 %v9714_v19, %v3646_v48  ;;  %v3644_v24 = vmax.f32 %v2107_v62, 0.0  ;;  %8257 = vmatmul.mubr.msk.bf16.gmra.mxu1 %vm2314_vm5, %v2165_v11 }
 0x2e8   : > { %v8195_v5 = vpop.f32.mrf.mxu0 }
 0x2e9   : > { %12696 = vst [vmem:[#allocation41_spill] sm:$0xff] %v9851_v35  ;;  %4328 = vperm.xlu1 %8418, %v9851_v35   ;;  %v3647_v50 = vmax.f32 %v8195_v5, 0.0  ;;  %v9860_v4 = vmul.f32 %v9749_v52, %v3644_v24  ;;  %v2167_v51 = vpack.c.bf16 %v8195_v5, %v8194_v0  ;;  %v9867_v35 = vpop.permute.xlu0 %3812 }
 0x2ea   : > { %v2110_v34 = vpop.f32.mrf.mxu0 }
 0x2eb   : > { %12697 = vst [vmem:[#allocation42_spill] sm:$0xff] %v9860_v4  ;;  %v2166_v61 = vpack.c.bf16 %v2110_v34, %v2107_v62  ;;  %v9863_v18 = vmul.f32 %v9703_v9, %v3647_v50  ;;  %v3645_v48 = vmax.f32 %v2110_v34, 0.0  ;;  %v9874_v9 = vpop.permute.xlu1 %3780  ;;  %v3626_v34 = vmax.f32 %v9744_v40, 0.0 }
 0x2ec   : > { %v8198_v19 = vpop.f32.mrf.mxu0 }
 0x2ed   : > { %12698 = vst [vmem:[#allocation43_spill] sm:$0xff] %v9863_v18  ;;  %v3650_v11 = vmax.f32 %v8198_v19, 0.0  ;;  %4318 = vperm.xlu1 %8418, %v9860_v4   ;;  %8260 = vmatprep.mubr.msk.bf16.mxu1 %vm2314_vm5, %v2166_v61  ;;  %v9877_v0 = vmul.f32 %v9737_v38, %v3645_v48  ;;  %v9032_v4 = vld [vmem:[%s9354_s23 + $0x60] sm:$0xff] }
 0x2ee   : > { %4333 = vperm.xlu0 %8419, %v9863_v18   ;;  %v2123_v12 = vpop.f32.mrf.mxu0  ;;  %v9031_v18 = vld [vmem:[%s9354_s23 + $0x48] sm:$0xff] }
 0x2ef   : > { %v9871_v24 = vmul.f32 %v9644_v42, %v3650_v11  ;;  %v3648_v52 = vmax.f32 %v2123_v12, 0.0  ;;  %8261 = vmatmul.mubr.msk.bf16.gmra.mxu1 %vm2314_vm5, %v2167_v51  ;;  %12700 = vst [vmem:[#allocation45_spill] sm:$0xff] %v9877_v0  ;;  %v9885_v11 = vpop.permute.xlu0 %3782 }
 0x2f0   : > { %v8199_v62 = vpop.f32.mrf.mxu0 }
 0x2f1   : > { %12699 = vst [vmem:[#allocation44_spill] sm:$0xff] %v9871_v24  ;;  %4348 = vperm.xlu1 %8418, %v9871_v24   ;;  %v3651_v5 = vmax.f32 %v8199_v62, 0.0  ;;  %v9883_v42 = vmul.f32 %v9679_v31, %v3648_v52  ;;  %v8467_v24 = vld [vmem:[%s12577_s3 + $0x4] ss:$16 sps:$4 sm:$0xff]   ;;  %v3627_v31 = vmax.f32 %v9754_v55, 0.0 }
 0x2f2   : > { %4323 = vperm.xlu0 %8419, %v9877_v0   ;;  %v2126_v50 = vpop.f32.mrf.mxu0  ;;  %v2169_v0 = vpack.c.bf16 %v8199_v62, %v8198_v19 }
 0x2f3   : > { %12701 = vst [vmem:[#allocation46_spill] sm:$0xff] %v9883_v42  ;;  %v2168_v61 = vpack.c.bf16 %v2126_v50, %v2123_v12  ;;  %v9888_v51 = vmul.f32 %v9633_v3, %v3651_v5  ;;  %v3649_v38 = vmax.f32 %v2126_v50, 0.0  ;;  %v9899_v12 = vmul.f32 %v9787_v63, %v3626_v34 }
 0x2f4   : > { %v9890_v48 = vpop.permute.xlu1 %4048  ;;  %v3640_v3 = vmax.f32 %v9831_v58, 0.0  ;;  %v3624_v63 = vmax.f32 %v9751_v57, 0.0  ;;  %v3638_v57 = vmax.f32 %v9802_v16, 0.0  ;;  %v3622_v50 = vmax.f32 %v9721_v20, 0.0 }
 0x2f5   : > { %12702 = vst [vmem:[#allocation47_spill] sm:$0xff] %v9888_v51  ;;  %4338 = vperm.xlu1 %8418, %v9883_v42   ;;  %8264 = vmatprep.mubr.msk.bf16.mxu1 %vm2314_vm5, %v2168_v61  ;;  %12703 = vst [vmem:[#allocation48_spill] sm:$0xff] %v9899_v12  ;;  %v9905_v40 = vmul.f32 %v9668_v22, %v3649_v38  ;;  %v3641_v22 = vmax.f32 %v9839_v26, 0.0  ;;  %v3636_v20 = vmax.f32 %v9809_v23, 0.0  ;;  %v9030_v42 = vld [vmem:[%s9354_s23 + $0x50] sm:$0xff] }
 0x2f6   : > { %4353 = vperm.xlu0 %8419, %v9888_v51   ;;  %v9915_v58 = vmul.f32 %v9805_v33, %v3640_v3  ;;  %v3625_v33 = vmax.f32 %v9756_v6, 0.0  ;;  %v3639_v6 = vmax.f32 %v9817_v49, 0.0  ;;  %v9956_v61 = vmul.f32 %v9854_v1, %v3622_v50  ;;  %v9022_v50 = vld [vmem:[%s9354_s23 + $0x10] sm:$0xff] }
 0x2f7   : > { %8265 = vmatmul.mubr.msk.bf16.gmra.mxu1 %vm2314_vm5, %v2169_v0  ;;  %12704 = vst [vmem:[#allocation49_spill] sm:$0xff] %v9905_v40  ;;  %v9918_v0 = vmul.f32 %v9779_v29, %v3627_v31  ;;  %v9933_v29 = vmul.f32 %v9793_v13, %v3641_v22  ;;  %v3620_v3 = vmax.f32 %v9728_v45, 0.0  ;;  %v9971_v1 = vmul.f32 %v9867_v35, %v3636_v20 }
 0x2f8   : > { %v9907_v52 = vpop.permute.xlu1 %4038  ;;  %v9909_v19 = vpop.permute.xlu0 %4053  ;;  %4532 = vmatprep.mubr.bf16.mxu1 %v8467_v24  ;;  %12705 = vst [vmem:[#allocation50_spill] sm:$0xff] %v9915_v58  ;;  %v9928_v24 = vmul.f32 %v9824_v56, %v3624_v63  ;;  %v9943_v56 = vmul.f32 %v9837_v59, %v3638_v57  ;;  %v9946_v16 = vmul.f32 %v9812_v44, %v3625_v33  ;;  %12711 = vst [vmem:[#allocation56_spill] sm:$0xff] %v9956_v61 }
 0x2f9   : > { %4228 = vperm.xlu1 %8418, %v9899_v12   ;;  %12706 = vst [vmem:[#allocation51_spill] sm:$0xff] %v9918_v0  ;;  %12708 = vst [vmem:[#allocation53_spill] sm:$0xff] %v9933_v29  ;;  %v3623_v59 = vmax.f32 %v9732_v37, 0.0  ;;  %v9961_v44 = vmul.f32 %v9829_v8, %v3639_v6  ;;  %v3637_v37 = vmax.f32 %v9820_v60, 0.0  ;;  %v9984_v63 = vmul.f32 %v9874_v9, %v3620_v3  ;;  %v9025_v3 = vld [vmem:[%s9354_s23 + $0x18] sm:$0xff] }
 0x2fa   : > { %4343 = vperm.xlu0 %8419, %v9905_v40   ;;  %12707 = vst [vmem:[#allocation52_spill] sm:$0xff] %v9928_v24  ;;  %12709 = vst [vmem:[#allocation54_spill] sm:$0xff] %v9943_v56  ;;  %v3621_v45 = vmax.f32 %v9740_v47, 0.0  ;;  %v9021_v47 = vld [vmem:[%s9354_s23 + $0x8] sm:$0xff]  ;;  %v9028_v40 = vld [vmem:[%s9354_s23 + $0x40] sm:$0xff] }
 0x2fb   : > { %12710 = vst [vmem:[#allocation55_spill] sm:$0xff] %v9946_v16  ;;  %12712 = vst [vmem:[#allocation57_spill] sm:$0xff] %v9961_v44  ;;  %v9974_v23 = vmul.f32 %v9846_v10, %v3623_v59  ;;  %v9988_v10 = vmul.f32 %v9857_v14, %v3637_v37  ;;  %v9024_v59 = vld [vmem:[%s9354_s23 + $0x20] sm:$0xff] }
 0x2fc   : > { %v9921_v55 = vpop.permute.xlu0 %4043  ;;  %v9923_v62 = vpop.permute.xlu1 %4068  ;;  %12713 = vst [vmem:[#allocation58_spill] sm:$0xff] %v9971_v1  ;;  %12715 = vst [vmem:[#allocation60_spill] sm:$0xff] %v9984_v63  ;;  %v9995_v22 = vmul.f32 %v9885_v11, %v3621_v45  ;;  %v9023_v11 = vld [vmem:[%s9354_s23] sm:$0xff] }
 0x2fd   : > { %4298 = vperm.xlu1 %8418, %v9915_v58   ;;  %12714 = vst [vmem:[#allocation59_spill] sm:$0xff] %v9974_v23  ;;  %12716 = vst [vmem:[#allocation61_spill] sm:$0xff] %v9988_v10 }
 0x2fe   : > { %4233 = vperm.xlu0 %8419, %v9918_v0   ;;  %12717 = vst [vmem:[#allocation62_spill] sm:$0xff] %v9995_v22 }
 0x300   : > { %v9935_v5 = vpop.permute.xlu1 %4058 }
 0x301   : > { %v9937_v26 = vpop.permute.xlu0 %4073  ;;  %4218 = vperm.xlu1 %8418, %v9928_v24  }
 0x302   : > { %4303 = vperm.xlu0 %8419, %v9933_v29  }
 0x304   : > { %v9949_v13 = vpop.permute.xlu1 %4088 }
 0x305   : > { %v9951_v34 = vpop.permute.xlu0 %4063  ;;  %4288 = vperm.xlu1 %8418, %v9943_v56   ;;  %v3985_v56 = vld [vmem:[%s12579_s5 + $0x68] sm:$0xff] }
 0x306   : > { %4223 = vperm.xlu0 %8419, %v9946_v16   ;;  %v4000_v16 = vld [vmem:[%s12579_s5 + $0xe0] sm:$0xff] }
 0x308   : > { %v9963_v38 = vpop.permute.xlu1 %4078 }
 0x309   : > { %v9965_v49 = vpop.permute.xlu0 %4093  ;;  %4208 = vperm.xlu1 %8418, %v9956_v61   ;;  %v10366_v61 = vld [vmem:[%s12579_s5 + $0x1e8] sm:$0xff] }
 0x30a   : > { %4293 = vperm.xlu0 %8419, %v9961_v44  }
 0x30c   : > { %v9979_v31 = vpop.permute.xlu1 %4108 }
 0x30d   : > { %v9977_v8 = vpop.permute.xlu0 %4083  ;;  %4278 = vperm.xlu1 %8418, %v9971_v1   ;;  %v9035_v1 = vld [vmem:[%s9354_s23 + $0x68] sm:$0xff] }
 0x30e   : > { %4213 = vperm.xlu0 %8419, %v9974_v23   ;;  %v9036_v23 = vld [vmem:[%s9354_s23 + $0x80] sm:$0xff] }
 0x310   : > { %v9990_v35 = vpop.permute.xlu1 %4098 }
 0x311   : > { %v4114_v60 = vpop.permute.xlu0 %4113  ;;  %4198 = vperm.xlu1 %8418, %v9984_v63   ;;  %v10361_v63 = vld [vmem:[%s12579_s5 + $0x1e0] sm:$0xff] }
 0x312   : > { %4283 = vperm.xlu0 %8419, %v9988_v10   ;;  %v9034_v10 = vld [vmem:[%s9354_s23 + $0x70] sm:$0xff] }
 0x314   : > { %v9999_v57 = vpop.permute.xlu1 %4128 }
 0x315   : > { %v9997_v9 = vpop.permute.xlu0 %4103  ;;  %6044 = vrot.lane.b32.xlu1 %v9021_v47, %s9141_s22  ;;  %v9026_v47 = vld [vmem:[%s9354_s23 + $0x30] sm:$0xff] }
 0x316   : > { %4203 = vperm.xlu0 %8419, %v9995_v22  }
 0x318   : > { %v10004_v14 = vpop.permute.xlu1 %4118 }
 0x319   : > { %v10006_v33 = vpop.permute.xlu0 %4133  ;;  %6046 = vrot.lane.b32.xlu1 %v9022_v50, %s9141_s22  ;;  %v9027_v50 = vld [vmem:[%s9354_s23 + $0x28] sm:$0xff] }
 0x31a   : > { %6042 = vrot.lane.b32.xlu0 %v9023_v11, %s9141_s22 }
 0x31c   : > { %v10014_v20 = vpop.permute.xlu1 %4148 }
 0x31d   : > { %v10012_v6 = vpop.permute.xlu0 %4123  ;;  %6050 = vrot.lane.b32.xlu1 %v9024_v59, %s9141_s22 }
 0x31e   : > { %6048 = vrot.lane.b32.xlu0 %v9025_v3, %s9141_s22  ;;  %v9029_v3 = vld [vmem:[%s9354_s23 + $0x38] sm:$0xff] }
 0x320   : > { %v10020_v37 = vpop.permute.xlu1 %4138 }
 0x321   : > { %v10022_v45 = vpop.permute.xlu0 %4153  ;;  %6054 = vrot.lane.b32.xlu1 %v9026_v47, %s9141_s22 }
 0x322   : > { %6052 = vrot.lane.b32.xlu0 %v9027_v50, %s9141_s22 }
 0x324   : > { %v4169_v59 = vpop.permute.xlu1 %4168 }
 0x325   : > { %v10028_v11 = vpop.permute.xlu0 %4143  ;;  %6058 = vrot.lane.b32.xlu1 %v9028_v40, %s9141_s22  ;;  %v9033_v40 = vld [vmem:[%s9354_s23 + $0x58] sm:$0xff] }
 0x326   : > { %6056 = vrot.lane.b32.xlu0 %v9029_v3, %s9141_s22  ;;  %v3987_v3 = vld [vmem:[%s12579_s5 + $0x78] sm:$0xff] }
 0x328   : > { %v10036_v47 = vpop.permute.xlu1 %4158 }
 0x329   : > { %v4174_v51 = vpop.permute.xlu0 %4173  ;;  %6062 = vrot.lane.b32.xlu1 %v9030_v42, %s9141_s22  ;;  %v4002_v42 = vld [vmem:[%s12579_s5 + $0xf0] sm:$0xff] }
 0x32a   : > { %6060 = vrot.lane.b32.xlu0 %v9031_v18, %s9141_s22  ;;  %v4003_v18 = vld [vmem:[%s12579_s5 + $0xf8] sm:$0xff] }
 0x32d   : > { %v4164_v50 = vpop.permute.xlu0 %4163  ;;  %6066 = vrot.lane.b32.xlu1 %v9032_v4, %s9141_s22  ;;  %v3986_v4 = vld [vmem:[%s12579_s5 + $0x70] sm:$0xff] }
 0x32e   : > { %v4179_v29 = vpop.permute.xlu1 %4178  ;;  %6064 = vrot.lane.b32.xlu0 %v9033_v40, %s9141_s22  ;;  %v4371_v40 = vmul.f32 %v4114_v60, %v3987_v3  ;;  %v4370_v60 = vmul.f32 %v9979_v31, %v3986_v4  ;;  %v3984_v3 = vld [vmem:[%s12579_s5 + $0x60] sm:$0xff]  ;;  %v3998_v31 = vld [vmem:[%s12579_s5 + $0xd0] sm:$0xff]  ;;  %v9037_v4 = vld [vmem:[%s9354_s23 + $0x78] sm:$0xff] }
 0x331   : > { %v4189_v58 = vpop.permute.xlu0 %4188  ;;  %6070 = vrot.lane.b32.xlu1 %v9034_v10, %s9141_s22  ;;  %v4001_v10 = vld [vmem:[%s12579_s5 + $0xe8] sm:$0xff] }
 0x332   : > { %v4194_v44 = vpop.permute.xlu1 %4193  ;;  %6068 = vrot.lane.b32.xlu0 %v9035_v1, %s9141_s22  ;;  %v4386_v0 = vmul.f32 %v4189_v58, %v4002_v42  ;;  %v3999_v1 = vld [vmem:[%s12579_s5 + $0xd8] sm:$0xff]  ;;  %v4427_v58 = vpack.c.bf16 %v4371_v40, %v4370_v60  ;;  %v4384_v42 = vmul.f32 %v4179_v29, %v4000_v16  ;;  %v3982_v29 = vld [vmem:[%s12579_s5 + $0x50] sm:$0xff]  ;;  %v4382_v16 = vmul.f32 %v4169_v59, %v3998_v31  ;;  %v9039_v40 = vld [vmem:[%s9354_s23 + $0x88] sm:$0xff] }
 0x333   : > { %v4387_v24 = vmul.f32 %v4194_v44, %v4003_v18  ;;  %v4369_v44 = vmul.f32 %v9997_v9, %v3985_v56  ;;  %v3997_v56 = vld [vmem:[%s12579_s5 + $0xc8] sm:$0xff] }
 0x334   : > { %v4381_v60 = vmul.f32 %v4164_v50, %v3997_v56 }
 0x335   : > { %v4435_v12 = vpack.c.bf16 %v4387_v24, %v4386_v0  ;;  %v4184_v22 = vpop.permute.xlu0 %4183  ;;  %6074 = vrot.lane.b32.xlu1 %v9036_v23, %s9141_s22  ;;  %v3983_v0 = vld [vmem:[%s12579_s5 + $0x58] sm:$0xff]  ;;  %v4383_v24 = vmul.f32 %v4174_v51, %v3999_v1  ;;  %v4368_v23 = vmul.f32 %v9990_v35, %v3984_v3  ;;  %v3996_v35 = vld [vmem:[%s12579_s5 + $0xc0] sm:$0xff] }
 0x336   : > { %v4385_v18 = vmul.f32 %v4184_v22, %v4001_v10  ;;  %6072 = vrot.lane.b32.xlu0 %v9037_v4, %s9141_s22  ;;  %v9038_v22 = vld [vmem:[%s9354_s23 + $0x90] sm:$0xff]  ;;  %v4367_v51 = vmul.f32 %v9965_v49, %v3983_v0  ;;  %v3981_v10 = vld [vmem:[%s12579_s5 + $0x48] sm:$0xff]  ;;  %v4366_v49 = vmul.f32 %v9949_v13, %v3982_v29  ;;  %v3995_v1 = vld [vmem:[%s12579_s5 + $0xb8] sm:$0xff]  ;;  %v4380_v50 = vmul.f32 %v10036_v47, %v3996_v35 }
 0x337   : > { %7844 = vmatprep.subr.bf16.mxu1 %v4435_v12  ;;  %v4426_v12 = vpack.c.bf16 %v4369_v44, %v4368_v23  ;;  %v4433_v59 = vpack.c.bf16 %v4383_v24, %v4382_v16  ;;  %v3980_v3 = vld [vmem:[%s12579_s5 + $0x40] sm:$0xff]  ;;  %v3994_v13 = vld [vmem:[%s12579_s5 + $0xb0] sm:$0xff]  ;;  %v9041_v4 = vld [vmem:[%s9354_s23 + $0x98] sm:$0xff]  ;;  %v4379_v0 = vmul.f32 %v10022_v45, %v3995_v1 }
 0x338   : > { %v4434_v9 = vpack.c.bf16 %v4385_v18, %v4384_v42  ;;  %7845 = vmatpush3.bf16.msra.mxu1 %v4427_v58  ;;  %v7513_v58 = vld [vmem:[%s10110_s21] sm:$0xff]   ;;  %v4425_v31 = vpack.c.bf16 %v4367_v51, %v4366_v49  ;;  %v4365_v42 = vmul.f32 %v9977_v8, %v3981_v10  ;;  %v7640_v18 = vld [vmem:[%s10110_s21 + $0x8] sm:$0xff]   ;;  %v3979_v47 = vld [vmem:[%s12579_s5 + $0x38] sm:$0xff]  ;;  %v4432_v24 = vpack.c.bf16 %v4381_v60, %v4380_v50 }
 0x339   : > { %6078 = vrot.lane.b32.xlu1 %v9038_v22, %s9141_s22  ;;  %v9040_v44 = vld [vmem:[%s9354_s23 + $0xa0] sm:$0xff]  ;;  %v4364_v56 = vmul.f32 %v9963_v38, %v3980_v3  ;;  %v3993_v8 = vld [vmem:[%s12579_s5 + $0xa8] sm:$0xff]  ;;  %v7519_v29 = vunpack.c.h.bf16 %v7640_v18  ;;  %v10141_v16 = vld [vmem:[%s12579_s5 + $0x30] sm:$0xff]  ;;  %v4378_v22 = vmul.f32 %v10014_v20, %v3994_v13  ;;  %v7518_v45 = vunpack.c.l.bf16 %v7640_v18 }
 0x33a   : > { %7846 = vmatprep.subr.bf16.mxu1 %v4434_v9  ;;  %6076 = vrot.lane.b32.xlu0 %v9039_v40, %s9141_s22  ;;  %v7514_v9 = vunpack.c.l.bf16 %v7513_v58  ;;  %v4363_v38 = vmul.f32 %v9937_v26, %v3979_v47  ;;  %v3992_v40 = vld [vmem:[%s12579_s5 + $0xa0] sm:$0xff]  ;;  %v7515_v10 = vunpack.c.h.bf16 %v7513_v58  ;;  %v10155_v20 = vld [vmem:[%s12579_s5 + $0x28] sm:$0xff]  ;;  %v4377_v49 = vmul.f32 %v10028_v11, %v3993_v8  ;;  %v3991_v3 = vld [vmem:[%s12579_s5 + $0x98] sm:$0xff] }
 0x33b   : > { %v4424_v35 = vpack.c.bf16 %v4365_v42, %v4364_v56  ;;  %v4431_v60 = vpack.c.bf16 %v4379_v0, %v4378_v22  ;;  %v4362_v26 = vmul.f32 %v9923_v62, %v10141_v16  ;;  %v4376_v11 = vmul.f32 %v10020_v37, %v3992_v40  ;;  %v9044_v62 = vld [vmem:[%s9354_s23 + $0xc0] sm:$0xff]  ;;  %v3990_v47 = vld [vmem:[%s12579_s5 + $0x90] sm:$0xff]  ;;  %v9045_v56 = vld [vmem:[%s9354_s23 + $0xb8] sm:$0xff] }
 0x33c   : > { %7847 = vmatpush3.bf16.msra.mxu1 %v4426_v12  ;;  %v9042_v12 = vld [vmem:[%s9354_s23 + $0xb0] sm:$0xff]  ;;  %v10183_v37 = vld [vmem:[%s12579_s5 + $0x18] sm:$0xff] }
 0x33d   : > { %7848 = vmatprep.subr.bf16.mxu1 %v4433_v59  ;;  %6082 = vrot.lane.b32.xlu1 %v9040_v44, %s9141_s22  ;;  %v9043_v59 = vld [vmem:[%s9354_s23 + $0xa8] sm:$0xff]  ;;  %v7641_v44 = vld [vmem:[%s10110_s21 + $0x10] sm:$0xff]   ;;  %v4423_v18 = vpack.c.bf16 %v4363_v38, %v4362_v26  ;;  %v4430_v8 = vpack.c.bf16 %v4377_v49, %v4376_v11 }
 0x33e   : > { %6080 = vrot.lane.b32.xlu0 %v9041_v4, %s9141_s22  ;;  %v4361_v4 = vmul.f32 %v9951_v34, %v10155_v20 }
 0x33f   : > { %v8206_v23 = vpop.f32.mrf.mxu1 }
 0x340   : > { %7849 = vmatpush3.bf16.msra.mxu1 %v4425_v31  ;;  %v10167_v31 = vld [vmem:[%s12579_s5 + $0x20] sm:$0xff]  ;;  %v2454_v42 = vadd.f32 %v8206_v23, %v7518_v45  ;;  %v4375_v23 = vmul.f32 %v10006_v33, %v3991_v3  ;;  %v3989_v45 = vld [vmem:[%s12579_s5 + $0x88] sm:$0xff]  ;;  %v10194_v33 = vld [vmem:[%s12579_s5 + $0x10] sm:$0xff] }
 0x341   : > { %v2445_v51 = vpop.f32.mrf.mxu1  ;;  %7850 = vmatprep.subr.bf16.mxu1 %v4432_v24  ;;  %6086 = vrot.lane.b32.xlu1 %v9042_v12, %s9141_s22  ;;  %v7642_v24 = vld [vmem:[%s10110_s21 + $0x18] sm:$0xff]   ;;  %v4360_v22 = vmul.f32 %v9935_v5, %v10167_v31  ;;  %v9046_v5 = vld [vmem:[%s9354_s23 + $0xd0] sm:$0xff] }
 0x342   : > { %6084 = vrot.lane.b32.xlu0 %v9043_v59, %s9141_s22  ;;  %v2446_v50 = vadd.f32 %v7514_v9, %v2445_v51  ;;  %v7527_v38 = vunpack.c.h.bf16 %v7642_v24  ;;  %v2702_v40 = vmax.f32 %v2454_v42, 0.0 }
 0x343   : > { %v8207_v1 = vpop.f32.mrf.mxu1  ;;  %v4422_v49 = vpack.c.bf16 %v4361_v4, %v4360_v22  ;;  %v10220_v4 = vld [vmem:[%s12579_s5] sm:$0xff]  ;;  %v7644_v22 = vld [vmem:[%s10110_s21 + $0x28] sm:$0xff]  }
 0x344   : > { %v2457_v58 = vadd.f32 %v8207_v1, %v7519_v29  ;;  %7851 = vmatpush3.bf16.msra.mxu1 %v4424_v35  ;;  %v7522_v29 = vunpack.c.l.bf16 %v7641_v44  ;;  %v2700_v51 = vmax.f32 %v2446_v50, 0.0  ;;  %v4374_v35 = vmul.f32 %v9999_v57, %v3990_v47  ;;  %v3988_v1 = vld [vmem:[%s12579_s5 + $0x80] sm:$0xff]  ;;  %v10204_v26 = vpop.permute.xlu1 %4248  ;;  %v9047_v57 = vld [vmem:[%s9354_s23 + $0xc8] sm:$0xff] }
 0x345   : > { %v2448_v13 = vpop.f32.mrf.mxu1  ;;  %7852 = vmatprep.subr.bf16.mxu1 %v4431_v60  ;;  %6090 = vrot.lane.b32.xlu1 %v9044_v62, %s9141_s22  ;;  %v4359_v60 = vmul.f32 %v9909_v19, %v10183_v37  ;;  %v7523_v50 = vunpack.c.h.bf16 %v7641_v44  ;;  %v4373_v19 = vmul.f32 %v10012_v6, %v3989_v45  ;;  %v4358_v62 = vmul.f32 %v9890_v48, %v10194_v33 }
 0x346   : > { %v2449_v0 = vadd.f32 %v7515_v10, %v2448_v13  ;;  %6088 = vrot.lane.b32.xlu0 %v9045_v56, %s9141_s22  ;;  %v2703_v9 = vmax.f32 %v2457_v58, 0.0  ;;  %v7526_v10 = vunpack.c.l.bf16 %v7642_v24  ;;  %v10211_v58 = vld [vmem:[%s12579_s5 + $0x8] sm:$0xff]  ;;  %v4429_v11 = vpack.c.bf16 %v4375_v23, %v4374_v35  ;;  %v7643_v23 = vld [vmem:[%s10110_s21 + $0x20] sm:$0xff]  }
 0x347   : > { %v8210_v34 = vpop.f32.mrf.mxu1  ;;  %v4372_v6 = vmul.f32 %v10004_v14, %v3988_v1  ;;  %v4421_v48 = vpack.c.bf16 %v4359_v60, %v4358_v62  ;;  %v4357_v24 = vmul.f32 %v9921_v55, %v10211_v58  ;;  %v7534_v60 = vunpack.c.l.bf16 %v7644_v22  ;;  %v9050_v1 = vld [vmem:[%s9354_s23 + $0xf0] sm:$0xff] }
 0x348   : > { %v2701_v12 = vmax.f32 %v2449_v0, 0.0  ;;  %7853 = vmatpush3.bf16.msra.mxu1 %v4423_v18  ;;  %v2765_v42 = vpack.c.bf16 %v2703_v9, %v2702_v40  ;;  %v2470_v47 = vadd.f32 %v8210_v34, %v7526_v10  ;;  %v9049_v9 = vld [vmem:[%s9354_s23 + $0xd8] sm:$0xff]  ;;  %v10231_v14 = vpop.permute.xlu0 %4253  ;;  %v10236_v55 = vpop.permute.xlu1 %4238  ;;  %v7530_v40 = vunpack.c.l.bf16 %v7643_v23 }
 0x349   : > { %v2461_v59 = vpop.f32.mrf.mxu1  ;;  %7854 = vmatprep.subr.bf16.mxu1 %v4430_v8  ;;  %6094 = vrot.lane.b32.xlu1 %v9046_v5, %s9141_s22  ;;  %v9048_v8 = vld [vmem:[%s9354_s23 + $0xe0] sm:$0xff]  ;;  %v7535_v10 = vunpack.c.h.bf16 %v7644_v22 }
 0x34a   : > { %v2764_v3 = vpack.c.bf16 %v2701_v12, %v2700_v51  ;;  %6092 = vrot.lane.b32.xlu0 %v9047_v57, %s9141_s22  ;;  %v2462_v18 = vadd.f32 %v7522_v29, %v2461_v59  ;;  %v4428_v29 = vpack.c.bf16 %v4373_v19, %v4372_v6  ;;  %v4356_v51 = vmul.f32 %v9907_v52, %v10220_v4  ;;  %v8465_v57 = vld [vmem:[%s12577_s3] ss:$16 sps:$4 sm:$0xff]   ;;  %v8470_v19 = vld [vmem:[%s12577_s3 + $0x24] ss:$16 sps:$4 sm:$0xff]  }
 0x34b   : > { %v8211_v13 = vpop.f32.mrf.mxu1  ;;  %v2706_v35 = vmax.f32 %v2470_v47, 0.0  ;;  %v7645_v47 = vld [vmem:[%s10110_s21 + $0x30] sm:$0xff]  }
 0x34c   : > { %v2473_v44 = vadd.f32 %v8211_v13, %v7527_v38  ;;  %8272 = vmatprep.mubr.msk.bf16.mxu0 %vm2314_vm5, %v2764_v3  ;;  %7855 = vmatpush3.bf16.msra.mxu1 %v4422_v49  ;;  %v2704_v12 = vmax.f32 %v2462_v18, 0.0  ;;  %v4420_v59 = vpack.c.bf16 %v4357_v24, %v4356_v51  ;;  %v9051_v3 = vld [vmem:[%s9354_s23 + $0xe8] sm:$0xff]  ;;  %v10252_v18 = vpop.permute.xlu1 %4268 }
 0x34d   : > { %v2464_v0 = vpop.f32.mrf.mxu1  ;;  %8273 = vmatmul.mubr.msk.bf16.vlgmr.msra.gmra.mxu0 %vm2314_vm5, %v2765_v42  ;;  %7856 = vmatprep.subr.bf16.mxu1 %v4429_v11  ;;  %v10249_v42 = vpop.permute.xlu0 %4243 }
 0x34e   : > { %v2465_v56 = vadd.f32 %v7523_v50, %v2464_v0  ;;  %6098 = vrot.lane.b32.xlu1 %v9048_v8, %s9141_s22  ;;  %6096 = vrot.lane.b32.xlu0 %v9049_v9, %s9141_s22  ;;  %v2707_v34 = vmax.f32 %v2473_v44, 0.0  ;;  %v7531_v50 = vunpack.c.h.bf16 %v7643_v23  ;;  %v9052_v0 = vld [vmem:[%s9354_s23 + $0x100] sm:$0xff] }
 0x34f   : > { %v8214_v45 = vpop.f32.mrf.mxu1 }
 0x350   : > { %v2705_v38 = vmax.f32 %v2465_v56, 0.0  ;;  %7857 = vmatpush3.bf16.msra.mxu1 %v4421_v48  ;;  %v2767_v52 = vpack.c.bf16 %v2707_v34, %v2706_v35  ;;  %v2486_v44 = vadd.f32 %v8214_v45, %v7534_v60  ;;  %v9053_v48 = vld [vmem:[%s9354_s23 + $0xf8] sm:$0xff]  ;;  %v7538_v34 = vunpack.c.l.bf16 %v7645_v47  ;;  %v9055_v35 = vld [vmem:[%s9354_s23 + $0x108] sm:$0xff]  ;;  %v10269_v60 = vpop.permute.xlu1 %4258 }
 0x351   : > { %7858 = vmatprep.subr.bf16.mxu1 %v4428_v29  ;;  %v2477_v49 = vpop.f32.mrf.mxu1  ;;  %v7646_v56 = vld [vmem:[%s10110_s21 + $0x38] sm:$0xff]  }
 0x352   : > { %v2766_v5 = vpack.c.bf16 %v2705_v38, %v2704_v12  ;;  %6102 = vrot.lane.b32.xlu1 %v9050_v1, %s9141_s22  ;;  %6100 = vrot.lane.b32.xlu0 %v9051_v3, %s9141_s22  ;;  %v2478_v13 = vadd.f32 %v7530_v40, %v2477_v49  ;;  %v7543_v22 = vunpack.c.h.bf16 %v7646_v56  ;;  %v2710_v45 = vmax.f32 %v2486_v44, 0.0  ;;  %v9054_v38 = vld [vmem:[%s9354_s23 + $0x110] sm:$0xff]  ;;  %v10264_v40 = vpop.permute.xlu0 %4273  ;;  %v8473_v3 = vld [vmem:[%s12577_s3 + $0xc] ss:$16 sps:$4 sm:$0xff]  }
 0x353   : > { %v8215_v11 = vpop.f32.mrf.mxu1  ;;  %v7542_v51 = vunpack.c.l.bf16 %v7646_v56  ;;  %v7648_v44 = vld [vmem:[%s10110_s21 + $0x48] sm:$0xff]  }
 0x354   : > { %8276 = vmatprep.mubr.msk.bf16.mxu0 %vm2314_vm5, %v2766_v5  ;;  %7859 = vmatpush3.bf16.msra.mxu1 %v4420_v59  ;;  %v2489_v62 = vadd.f32 %v8215_v11, %v7535_v10  ;;  %v2708_v9 = vmax.f32 %v2478_v13, 0.0  ;;  %v7539_v59 = vunpack.c.h.bf16 %v7645_v47  ;;  %v8468_v5 = vld [vmem:[%s12577_s3 + $0x20] ss:$16 sps:$4 sm:$0xff]  }
 0x355   : > { %8277 = vmatmul.mubr.msk.bf16.gmra.mxu0 %vm2314_vm5, %v2767_v52  ;;  %v2480_v6 = vpop.f32.mrf.mxu1  ;;  %v9056_v13 = vld [vmem:[%s9354_s23 + $0x120] sm:$0xff] }
 0x356   : > { %6106 = vrot.lane.b32.xlu1 %v9052_v0, %s9141_s22  ;;  %6104 = vrot.lane.b32.xlu0 %v9053_v48, %s9141_s22  ;;  %v2481_v24 = vadd.f32 %v7531_v50, %v2480_v6  ;;  %v2711_v23 = vmax.f32 %v2489_v62, 0.0  ;;  %v9057_v6 = vld [vmem:[%s9354_s23 + $0x118] sm:$0xff] }
 0x357   : > { %4533 = vmatmul.mubr.bf16.vlgmr.msra.gmra.mxu1 %v8465_v57  ;;  %v8218_v8 = vpop.f32.mrf.mxu1 }
 0x358   : > { %4540 = vmatprep.mubr.bf16.mxu1 %v8470_v19  ;;  %v2709_v29 = vmax.f32 %v2481_v24, 0.0  ;;  %v2769_v49 = vpack.c.bf16 %v2711_v23, %v2710_v45  ;;  %v2502_v57 = vadd.f32 %v8218_v8, %v7542_v51  ;;  %v7647_v19 = vld [vmem:[%s10110_s21 + $0x40] sm:$0xff]   ;;  %v10284_v24 = vpop.permute.xlu0 %4263  ;;  %v9058_v45 = vld [vmem:[%s9354_s23 + $0x130] sm:$0xff] }
 0x359   : > { %v2493_v12 = vpop.f32.mrf.mxu1  ;;  %v7546_v8 = vunpack.c.l.bf16 %v7647_v19 }
 0x35a   : > { %6110 = vrot.lane.b32.xlu1 %v9054_v38, %s9141_s22  ;;  %6108 = vrot.lane.b32.xlu0 %v9055_v35, %s9141_s22  ;;  %v2768_v10 = vpack.c.bf16 %v2709_v29, %v2708_v9  ;;  %v2494_v52 = vadd.f32 %v7538_v34, %v2493_v12  ;;  %v7551_v9 = vunpack.c.h.bf16 %v7648_v44  ;;  %v2714_v29 = vmax.f32 %v2502_v57, 0.0  ;;  %v9059_v38 = vld [vmem:[%s9354_s23 + $0x128] sm:$0xff]  ;;  %v9060_v57 = vld [vmem:[%s9354_s23 + $0x140] sm:$0xff] }
 0x35b   : > { %v8219_v1 = vpop.f32.mrf.mxu1  ;;  %v7550_v34 = vunpack.c.l.bf16 %v7648_v44  ;;  %v7547_v12 = vunpack.c.h.bf16 %v7647_v19  ;;  %v7650_v19 = vld [vmem:[%s10110_s21 + $0x58] sm:$0xff]  }
 0x35c   : > { %v2505_v50 = vadd.f32 %v8219_v1, %v7543_v22  ;;  %8280 = vmatprep.mubr.msk.bf16.mxu0 %vm2314_vm5, %v2768_v10  ;;  %v10282_v0 = vpop.permute.xlu1 %4308  ;;  %v2712_v56 = vmax.f32 %v2494_v52, 0.0 }
 0x35d   : > { %v2496_v11 = vpop.f32.mrf.mxu1  ;;  %8281 = vmatmul.mubr.msk.bf16.gmra.mxu0 %vm2314_vm5, %v2769_v49 }
 0x35e   : > { %6114 = vrot.lane.b32.xlu1 %v9056_v13, %s9141_s22  ;;  %v2497_v62 = vadd.f32 %v7539_v59, %v2496_v11  ;;  %6112 = vrot.lane.b32.xlu0 %v9057_v6, %s9141_s22  ;;  %v2715_v47 = vmax.f32 %v2505_v50, 0.0  ;;  %v7649_v50 = vld [vmem:[%s10110_s21 + $0x50] sm:$0xff]   ;;  %v9061_v13 = vld [vmem:[%s9354_s23 + $0x138] sm:$0xff] }
 0x35f   : > { %4541 = vmatmul.mubr.bf16.gmra.mxu1 %v8468_v5  ;;  %v8222_v48 = vpop.f32.mrf.mxu1 }
 0x360   : > { %4581 = vmatprep.mubr.bf16.mxu1 %v8473_v3  ;;  %v2713_v23 = vmax.f32 %v2497_v62, 0.0  ;;  %v2771_v35 = vpack.c.bf16 %v2715_v47, %v2714_v29  ;;  %v10292_v5 = vpop.permute.xlu0 %4313  ;;  %v2518_v3 = vadd.f32 %v8222_v48, %v7550_v34  ;;  %v7558_v29 = vunpack.c.l.bf16 %v7650_v19 }
 0x361   : > { %v2509_v22 = vpop.f32.mrf.mxu1 }
 0x362   : > { %6118 = vrot.lane.b32.xlu1 %v9058_v45, %s9141_s22  ;;  %v2770_v51 = vpack.c.bf16 %v2713_v23, %v2712_v56  ;;  %6116 = vrot.lane.b32.xlu0 %v9059_v38, %s9141_s22  ;;  %v2510_v49 = vadd.f32 %v7546_v8, %v2509_v22  ;;  %v7554_v23 = vunpack.c.l.bf16 %v7649_v50  ;;  %v7559_v8 = vunpack.c.h.bf16 %v7650_v19  ;;  %v9062_v22 = vld [vmem:[%s9354_s23 + $0x150] sm:$0xff]  ;;  %v7651_v19 = vld [vmem:[%s10110_s21 + $0x60] sm:$0xff]  }
 0x363   : > { %v8223_v10 = vpop.f32.mrf.mxu1 }
 0x364   : > { %v10290_v59 = vpop.permute.xlu1 %4328  ;;  %v2521_v1 = vadd.f32 %v8223_v10, %v7551_v9  ;;  %8284 = vmatprep.mubr.msk.bf16.mxu0 %vm2314_vm5, %v2770_v51  ;;  %v2716_v47 = vmax.f32 %v2510_v49, 0.0  ;;  %v2718_v9 = vmax.f32 %v2518_v3, 0.0  ;;  %v7555_v51 = vunpack.c.h.bf16 %v7649_v50  ;;  %v10313_v49 = vld [vmem:[%s12579_s5 + $0x178] sm:$0xff]  ;;  %v7652_v50 = vld [vmem:[%s10110_s21 + $0x68] sm:$0xff]  }
 0x365   : > { %v2512_v52 = vpop.f32.mrf.mxu1  ;;  %8285 = vmatmul.mubr.msk.bf16.gmra.mxu0 %vm2314_vm5, %v2771_v35 }
 0x366   : > { %6122 = vrot.lane.b32.xlu1 %v9060_v57, %s9141_s22  ;;  %v2513_v11 = vadd.f32 %v7547_v12, %v2512_v52  ;;  %6120 = vrot.lane.b32.xlu0 %v9061_v13, %s9141_s22  ;;  %v2719_v62 = vmax.f32 %v2521_v1, 0.0  ;;  %v9063_v12 = vld [vmem:[%s9354_s23 + $0x148] sm:$0xff]  ;;  %v9064_v13 = vld [vmem:[%s9354_s23 + $0x160] sm:$0xff] }
 0x367   : > { %v8226_v44 = vpop.f32.mrf.mxu1 }
 0x368   : > { %v10302_v6 = vpop.permute.xlu1 %4318  ;;  %v2717_v48 = vmax.f32 %v2513_v11, 0.0  ;;  %v2773_v38 = vpack.c.bf16 %v2719_v62, %v2718_v9  ;;  %v2534_v57 = vadd.f32 %v8226_v44, %v7558_v29  ;;  %v10326_v62 = vld [vmem:[%s12579_s5 + $0x170] sm:$0xff]  ;;  %v10336_v44 = vld [vmem:[%s12579_s5 + $0x1f8] sm:$0xff]  ;;  %v7566_v29 = vunpack.c.l.bf16 %v7652_v50 }
 0x369   : > { %v10304_v56 = vpop.permute.xlu0 %4333  ;;  %v2525_v34 = vpop.f32.mrf.mxu1 }
 0x36a   : > { %6126 = vrot.lane.b32.xlu1 %v9062_v22, %s9141_s22  ;;  %v2772_v45 = vpack.c.bf16 %v2717_v48, %v2716_v47  ;;  %6124 = vrot.lane.b32.xlu0 %v9063_v12, %s9141_s22  ;;  %v2526_v1 = vadd.f32 %v7554_v23, %v2525_v34  ;;  %v10331_v48 = vld [vmem:[%s12579_s5 + $0x1f0] sm:$0xff]  ;;  %v9065_v23 = vld [vmem:[%s9354_s23 + $0x158] sm:$0xff]  ;;  %v7562_v12 = vunpack.c.l.bf16 %v7651_v19 }
 0x36b   : > { %v8227_v35 = vpop.f32.mrf.mxu1 }
 0x36c   : > { %v4349_v10 = vpop.permute.xlu1 %4348  ;;  %v2537_v3 = vadd.f32 %v8227_v35, %v7559_v8  ;;  %8288 = vmatprep.mubr.msk.bf16.mxu0 %vm2314_vm5, %v2772_v45  ;;  %v4403_v8 = vmul.f32 %v10264_v40, %v10313_v49  ;;  %v2720_v45 = vmax.f32 %v2526_v1, 0.0  ;;  %v7567_v35 = vunpack.c.h.bf16 %v7652_v50 }
 0x36d   : > { %v10316_v52 = vpop.permute.xlu0 %4323  ;;  %v2528_v11 = vpop.f32.mrf.mxu1  ;;  %8289 = vmatmul.mubr.msk.bf16.gmra.mxu0 %vm2314_vm5, %v2773_v38  ;;  %v2722_v40 = vmax.f32 %v2534_v57, 0.0  ;;  %v4418_v1 = vmul.f32 %v4349_v10, %v10331_v48  ;;  %v7563_v57 = vunpack.c.h.bf16 %v7651_v19  ;;  %v9067_v10 = vld [vmem:[%s9354_s23 + $0x168] sm:$0xff]  ;;  %v10378_v19 = vld [vmem:[%s10110_s21 + $0x70] sm:$0xff]  }
 0x36e   : > { %6130 = vrot.lane.b32.xlu1 %v9064_v13, %s9141_s22  ;;  %v2529_v47 = vadd.f32 %v7555_v51, %v2528_v11  ;;  %6128 = vrot.lane.b32.xlu0 %v9065_v23, %s9141_s22  ;;  %v2723_v9 = vmax.f32 %v2537_v3, 0.0  ;;  %v4402_v11 = vmul.f32 %v10252_v18, %v10326_v62  ;;  %v10347_v13 = vld [vmem:[%s12579_s5 + $0x168] sm:$0xff]  ;;  %v10352_v3 = vld [vmem:[%s12579_s5 + $0x1d8] sm:$0xff] }
 0x36f   : > { %v8230_v34 = vpop.f32.mrf.mxu1  ;;  %v9066_v23 = vld [vmem:[%s9354_s23 + $0x170] sm:$0xff]  ;;  %v4401_v30 = vmul.f32 %v10284_v24, %v10347_v13  ;;  %v4415_v32 = vmul.f32 %v10304_v56, %v10352_v3  ;;  %v10403_v56 = vld [vmem:[%s12579_s5 + $0x1c8] sm:$0xff] }
 0x370   : > { %v4339_v22 = vpop.permute.xlu1 %4338  ;;  %v2721_v51 = vmax.f32 %v2529_v47, 0.0  ;;  %v2550_v24 = vadd.f32 %v8230_v34, %v7566_v29  ;;  %v7570_v29 = vunpack.c.l.bf16 %v10378_v19  ;;  %v9068_v34 = vld [vmem:[%s9354_s23 + $0x180] sm:$0xff] }
 0x371   : > { %v4354_v38 = vpop.permute.xlu0 %4353  ;;  %v2541_v47 = vpop.f32.mrf.mxu1 }
 0x372   : > { %v4419_v50 = vmul.f32 %v4354_v38, %v10336_v44  ;;  %6134 = vrot.lane.b32.xlu1 %v9066_v23, %s9141_s22  ;;  %v2774_v18 = vpack.c.bf16 %v2721_v51, %v2720_v45  ;;  %6132 = vrot.lane.b32.xlu0 %v9067_v10, %s9141_s22  ;;  %v10373_v38 = vld [vmem:[%s12579_s5 + $0x160] sm:$0xff]  ;;  %v4443_v45 = vpack.c.bf16 %v4403_v8, %v4402_v11  ;;  %v10385_v10 = vld [vmem:[%s12579_s5 + $0x1d0] sm:$0xff] }
 0x373   : > { %v2775_v51 = vpack.c.bf16 %v2723_v9, %v2722_v40  ;;  %v8231_v54 = vpop.f32.mrf.mxu1  ;;  %v2542_v8 = vadd.f32 %v7562_v12, %v2541_v47  ;;  %v10393_v40 = vld [vmem:[%s12579_s5 + $0x158] sm:$0xff] }
 0x374   : > { %v4451_v23 = vpack.c.bf16 %v4419_v50, %v4418_v1  ;;  %v10375_v41 = vpop.permute.xlu1 %4228  ;;  %v2553_v9 = vadd.f32 %v8231_v54, %v7567_v35  ;;  %8292 = vmatprep.mubr.msk.bf16.mxu0 %vm2314_vm5, %v2774_v18  ;;  %v4416_v1 = vmul.f32 %v4339_v22, %v10361_v63  ;;  %v4400_v54 = vmul.f32 %v10269_v60, %v10373_v38  ;;  %v7654_v35 = vld [vmem:[%s10110_s21 + $0x78] sm:$0xff]   ;;  %v10412_v22 = vld [vmem:[%s12579_s5 + $0x150] sm:$0xff] }
 0x375   : > { %v4344_v11 = vpop.permute.xlu0 %4343  ;;  %v2544_v50 = vpop.f32.mrf.mxu1  ;;  %8293 = vmatmul.mubr.msk.bf16.gmra.mxu0 %vm2314_vm5, %v2775_v51  ;;  %v4414_v60 = vmul.f32 %v10290_v59, %v10385_v10  ;;  %v2724_v59 = vmax.f32 %v2542_v8, 0.0  ;;  %v4398_v17 = vmul.f32 %v10204_v26, %v10412_v22  ;;  %v10439_v8 = vld [vmem:[%s12579_s5 + $0x1b8] sm:$0xff] }
 0x376   : > { %v4417_v2 = vmul.f32 %v4344_v11, %v10366_v61  ;;  %7872 = vmatprep.subr.bf16.mxu1 %v4451_v23  ;;  %v2545_v12 = vadd.f32 %v7563_v57, %v2544_v50  ;;  %6138 = vrot.lane.b32.xlu1 %v9068_v34, %s9141_s22  ;;  %v2727_v47 = vmax.f32 %v2553_v9, 0.0  ;;  %v7575_v57 = vunpack.c.h.bf16 %v7654_v35  ;;  %v10425_v34 = vld [vmem:[%s12579_s5 + $0x1c0] sm:$0xff] }
 0x377   : > { %7873 = vmatpush3.bf16.msra.mxu1 %v4443_v45  ;;  %v8234_v51 = vpop.f32.mrf.mxu1  ;;  %v9069_v45 = vld [vmem:[%s9354_s23 + $0x178] sm:$0xff]  ;;  %v4399_v11 = vmul.f32 %v10231_v14, %v10393_v40  ;;  %v4442_v50 = vpack.c.bf16 %v4401_v30, %v4400_v54  ;;  %v4449_v25 = vpack.c.bf16 %v4415_v32, %v4414_v60  ;;  %v2726_v14 = vmax.f32 %v2550_v24, 0.0  ;;  %v9070_v60 = vld [vmem:[%s9354_s23 + $0x190] sm:$0xff] }
 0x378   : > { %v4450_v18 = vpack.c.bf16 %v4417_v2, %v4416_v1  ;;  %v10416_v23 = vpop.permute.xlu1 %4298  ;;  %6136 = vrot.lane.b32.xlu0 %v9069_v45, %s9141_s22  ;;  %v2725_v9 = vmax.f32 %v2545_v12, 0.0  ;;  %v10430_v1 = vld [vmem:[%s12579_s5 + $0x148] sm:$0xff]  ;;  %v4413_v45 = vmul.f32 %v10316_v52, %v10403_v56  ;;  %v7574_v30 = vunpack.c.l.bf16 %v7654_v35  ;;  %v10447_v52 = vld [vmem:[%s12579_s5 + $0x140] sm:$0xff] }
 0x379   : > { %v4234_v2 = vpop.permute.xlu0 %4233  ;;  %v2557_v54 = vpop.f32.mrf.mxu1  ;;  %v7571_v32 = vunpack.c.h.bf16 %v10378_v19  ;;  %v4412_v26 = vmul.f32 %v10302_v6, %v10425_v34  ;;  %v2777_v24 = vpack.c.bf16 %v2727_v47, %v2726_v14  ;;  %v4441_v19 = vpack.c.bf16 %v4399_v11, %v4398_v17  ;;  %v10464_v47 = vld [vmem:[%s10110_s21 + $0x80] sm:$0xff]  }
 0x37a   : > { %7874 = vmatprep.subr.bf16.mxu1 %v4450_v18  ;;  %v2776_v12 = vpack.c.bf16 %v2725_v9, %v2724_v59  ;;  %6142 = vrot.lane.b32.xlu1 %v9070_v60, %s9141_s22  ;;  %v4397_v59 = vmul.f32 %v10249_v42, %v10430_v1  ;;  %v10460_v9 = vld [vmem:[%s12579_s5 + $0x1b0] sm:$0xff]  ;;  %v2558_v60 = vadd.f32 %v7570_v29, %v2557_v54  ;;  %v10471_v42 = vld [vmem:[%s12579_s5 + $0x138] sm:$0xff]  ;;  %v10479_v54 = vld [vmem:[%s12579_s5 + $0x1a8] sm:$0xff] }
 0x37b   : > { %7875 = vmatpush3.bf16.msra.mxu1 %v4442_v50  ;;  %v8235_v35 = vpop.f32.mrf.mxu1  ;;  %v9071_v50 = vld [vmem:[%s9354_s23 + $0x188] sm:$0xff]  ;;  %v4411_v17 = vmul.f32 %v10292_v5, %v10439_v8  ;;  %v4448_v11 = vpack.c.bf16 %v4413_v45, %v4412_v26  ;;  %v2566_v14 = vadd.f32 %v8234_v51, %v7574_v30  ;;  %v4396_v29 = vmul.f32 %v10236_v55, %v10447_v52  ;;  %v9072_v51 = vld [vmem:[%s9354_s23 + $0x1a0] sm:$0xff]  ;;  %v10489_v30 = vld [vmem:[%s12579_s5 + $0x130] sm:$0xff] }
 0x37c   : > { %7876 = vmatprep.subr.bf16.mxu1 %v4449_v25  ;;  %v10451_v18 = vpop.permute.xlu1 %4218  ;;  %6140 = vrot.lane.b32.xlu0 %v9071_v50, %s9141_s22  ;;  %v2569_v6 = vadd.f32 %v8235_v35, %v7575_v57  ;;  %v7656_v5 = vld [vmem:[%s10110_s21 + $0x88] sm:$0xff]   ;;  %v4410_v45 = vmul.f32 %v10282_v0, %v10460_v9  ;;  %v9073_v35 = vld [vmem:[%s9354_s23 + $0x198] sm:$0xff]  ;;  %v10497_v0 = vld [vmem:[%s12579_s5 + $0x1a0] sm:$0xff] }
 0x37d   : > { %8296 = vmatprep.mubr.msk.bf16.mxu0 %vm2314_vm5, %v2776_v12  ;;  %v4304_v25 = vpop.permute.xlu0 %4303  ;;  %v2560_v50 = vpop.f32.mrf.mxu1  ;;  %v2730_v53 = vmax.f32 %v2566_v14, 0.0  ;;  %v7582_v46 = vunpack.c.l.bf16 %v7656_v5  ;;  %v9074_v14 = vld [vmem:[%s9354_s23 + $0x1b0] sm:$0xff] }
 0x37e   : > { %8297 = vmatmul.mubr.msk.bf16.gmra.mxu0 %vm2314_vm5, %v2777_v24  ;;  %v2561_v57 = vadd.f32 %v7571_v32, %v2560_v50  ;;  %6146 = vrot.lane.b32.xlu1 %v9072_v51, %s9141_s22  ;;  %v2731_v55 = vmax.f32 %v2569_v6, 0.0  ;;  %v7578_v32 = vunpack.c.l.bf16 %v10464_v47  ;;  %v7583_v24 = vunpack.c.h.bf16 %v7656_v5 }
 0x37f   : > { %7877 = vmatpush3.bf16.msra.mxu1 %v4441_v19  ;;  %v8238_v12 = vpop.f32.mrf.mxu1  ;;  %v4440_v19 = vpack.c.bf16 %v4397_v59, %v4396_v29  ;;  %v2728_v50 = vmax.f32 %v2558_v60, 0.0  ;;  %v4395_v51 = vmul.f32 %v4234_v2, %v10471_v42  ;;  %v4409_v7 = vmul.f32 %v4304_v25, %v10479_v54  ;;  %v4009_v59 = vld [vmem:[%s12579_s5 + $0x128] sm:$0xff] }
 0x380   : > { %7878 = vmatprep.subr.bf16.mxu1 %v4448_v11  ;;  %v4289_v26 = vpop.permute.xlu1 %4288  ;;  %6144 = vrot.lane.b32.xlu0 %v9073_v35, %s9141_s22  ;;  %v2729_v6 = vmax.f32 %v2561_v57, 0.0  ;;  %v4447_v11 = vpack.c.bf16 %v4411_v17, %v4410_v45  ;;  %v4394_v60 = vmul.f32 %v10375_v41, %v10489_v30  ;;  %v7579_v2 = vunpack.c.h.bf16 %v10464_v47  ;;  %v4023_v17 = vld [vmem:[%s12579_s5 + $0x198] sm:$0xff]  ;;  %v4008_v41 = vld [vmem:[%s12579_s5 + $0x120] sm:$0xff]  ;;  %v9075_v45 = vld [vmem:[%s9354_s23 + $0x1a8] sm:$0xff] }
 0x381   : > { %v4224_v15 = vpop.permute.xlu0 %4223  ;;  %v2573_v43 = vpop.f32.mrf.mxu1  ;;  %v4408_v25 = vmul.f32 %v10416_v23, %v10497_v0  ;;  %v2779_v57 = vpack.c.bf16 %v2731_v55, %v2730_v53  ;;  %v7658_v55 = vld [vmem:[%s10110_s21 + $0x98] sm:$0xff]  }
 0x382   : > { %v2778_v29 = vpack.c.bf16 %v2729_v6, %v2728_v50  ;;  %6150 = vrot.lane.b32.xlu1 %v9074_v14, %s9141_s22  ;;  %v4439_v35 = vpack.c.bf16 %v4395_v51, %v4394_v60  ;;  %v4022_v50 = vld [vmem:[%s12579_s5 + $0x190] sm:$0xff]  ;;  %v4393_v6 = vmul.f32 %v4224_v15, %v4009_v59  ;;  %v9076_v59 = vld [vmem:[%s9354_s23 + $0x1c0] sm:$0xff] }
 0x383   : > { %7879 = vmatpush3.bf16.msra.mxu1 %v4440_v19  ;;  %v8239_v5 = vpop.f32.mrf.mxu1  ;;  %v2574_v19 = vadd.f32 %v7578_v32, %v2573_v43  ;;  %v7657_v14 = vld [vmem:[%s10110_s21 + $0x90] sm:$0xff]   ;;  %v4446_v36 = vpack.c.bf16 %v4409_v7, %v4408_v25  ;;  %v4392_v43 = vmul.f32 %v10451_v18, %v4008_v41  ;;  %v9077_v18 = vld [vmem:[%s9354_s23 + $0x1b8] sm:$0xff]  ;;  %v7591_v41 = vunpack.c.h.bf16 %v7658_v55 }
 0x384   : > { %7880 = vmatprep.subr.bf16.mxu1 %v4447_v11  ;;  %v4209_v47 = vpop.permute.xlu1 %4208  ;;  %6148 = vrot.lane.b32.xlu0 %v9075_v45, %s9141_s22  ;;  %v2585_v23 = vadd.f32 %v8239_v5, %v7583_v24  ;;  %v2582_v11 = vadd.f32 %v8238_v12, %v7582_v46  ;;  %v4006_v15 = vld [vmem:[%s12579_s5 + $0x110] sm:$0xff]  ;;  %v4007_v24 = vld [vmem:[%s12579_s5 + $0x118] sm:$0xff]  ;;  %v4406_v46 = vmul.f32 %v4289_v26, %v4022_v50  ;;  %v7590_v12 = vunpack.c.l.bf16 %v7658_v55 }
 0x385   : > { %8300 = vmatprep.mubr.msk.bf16.mxu0 %vm2314_vm5, %v2778_v29  ;;  %v4294_v53 = vpop.permute.xlu0 %4293  ;;  %v2576_v39 = vpop.f32.mrf.mxu1  ;;  %v7586_v29 = vunpack.c.l.bf16 %v7657_v14  ;;  %v4390_v45 = vmul.f32 %v4209_v47, %v4006_v15 }
 0x386   : > { %8301 = vmatmul.mubr.msk.bf16.gmra.mxu0 %vm2314_vm5, %v2779_v57  ;;  %v4407_v51 = vmul.f32 %v4294_v53, %v4023_v17  ;;  %v2577_v32 = vadd.f32 %v7579_v2, %v2576_v39  ;;  %6154 = vrot.lane.b32.xlu1 %v9076_v59, %s9141_s22  ;;  %v2735_v7 = vmax.f32 %v2585_v23, 0.0  ;;  %v2732_v39 = vmax.f32 %v2574_v19, 0.0  ;;  %v4021_v19 = vld [vmem:[%s12579_s5 + $0x188] sm:$0xff] }
 0x387   : > { %7881 = vmatpush3.bf16.msra.mxu1 %v4439_v35  ;;  %v8242_v60 = vpop.f32.mrf.mxu1  ;;  %v4438_v2 = vpack.c.bf16 %v4393_v6, %v4392_v43  ;;  %v2734_v5 = vmax.f32 %v2582_v11, 0.0  ;;  %v7587_v53 = vunpack.c.h.bf16 %v7657_v14  ;;  %v9078_v6 = vld [vmem:[%s9354_s23 + $0x1d0] sm:$0xff] }
 0x388   : > { %7882 = vmatprep.subr.bf16.mxu1 %v4446_v36  ;;  %6152 = vrot.lane.b32.xlu0 %v9077_v18, %s9141_s22  ;;  %v2733_v17 = vmax.f32 %v2577_v32, 0.0  ;;  %v4279_v25 = vpop.permute.xlu1 %4278  ;;  %v4445_v35 = vpack.c.bf16 %v4407_v51, %v4406_v46  ;;  %v4020_v36 = vld [vmem:[%s12579_s5 + $0x180] sm:$0xff]  ;;  %v9079_v51 = vld [vmem:[%s9354_s23 + $0x1c8] sm:$0xff]  ;;  %v2598_v15 = vadd.f32 %v8242_v60, %v7590_v12 }
 0x389   : > { %v4214_v57 = vpop.permute.xlu0 %4213  ;;  %v2589_v26 = vpop.f32.mrf.mxu1  ;;  %v2781_v55 = vpack.c.bf16 %v2735_v7, %v2734_v5  ;;  %v7659_v7 = vld [vmem:[%s10110_s21 + $0xa0] sm:$0xff]  }
 0x38a   : > { %v4391_v50 = vmul.f32 %v4214_v57, %v4007_v24  ;;  %v2780_v23 = vpack.c.bf16 %v2733_v17, %v2732_v39  ;;  %6158 = vrot.lane.b32.xlu1 %v9078_v6, %s9141_s22  ;;  %v2590_v43 = vadd.f32 %v7586_v29, %v2589_v26  ;;  %v4404_v24 = vmul.f32 %v4279_v25, %v4020_v36  ;;  %v4004_v39 = vld [vmem:[%s12579_s5 + $0x100] sm:$0xff]  ;;  %v7660_v29 = vld [vmem:[%s10110_s21 + $0xa8] sm:$0xff]  }
 0x38b   : > { %7883 = vmatpush3.bf16.msra.mxu1 %v4438_v2  ;;  %v8243_v11 = vpop.f32.mrf.mxu1  ;;  %v4005_v17 = vld [vmem:[%s12579_s5 + $0x108] sm:$0xff]  ;;  %v9080_v12 = vld [vmem:[%s9354_s23 + $0x1e0] sm:$0xff] }
 0x38c   : > { %v4437_v47 = vpack.c.bf16 %v4391_v50, %v4390_v45  ;;  %7884 = vmatprep.subr.bf16.mxu1 %v4445_v35  ;;  %6156 = vrot.lane.b32.xlu0 %v9079_v51, %s9141_s22  ;;  %v2601_v32 = vadd.f32 %v8243_v11, %v7591_v41  ;;  %v4199_v2 = vpop.permute.xlu1 %4198  ;;  %v9081_v41 = vld [vmem:[%s9354_s23 + $0x1d8] sm:$0xff]  ;;  %v2736_v5 = vmax.f32 %v2590_v43, 0.0  ;;  %v7594_v35 = vunpack.c.l.bf16 %v7659_v7  ;;  %v9082_v11 = vld [vmem:[%s9354_s23 + $0x1f0] sm:$0xff] }
 0x38d   : > { %8304 = vmatprep.mubr.msk.bf16.mxu0 %vm2314_vm5, %v2780_v23  ;;  %v4284_v14 = vpop.permute.xlu0 %4283  ;;  %v2592_v59 = vpop.f32.mrf.mxu1  ;;  %v7599_v50 = vunpack.c.h.bf16 %v7660_v29  ;;  %v2738_v23 = vmax.f32 %v2598_v15, 0.0  ;;  %v4388_v36 = vmul.f32 %v4199_v2, %v4004_v39  ;;  %v8476_v39 = vld [vmem:[%s12577_s3 + $0x2c] ss:$16 sps:$4 sm:$0xff]  }
 0x38e   : > { %8305 = vmatmul.mubr.msk.bf16.gmra.mxu0 %vm2314_vm5, %v2781_v55  ;;  %v4405_v46 = vmul.f32 %v4284_v14, %v4021_v19  ;;  %v2593_v18 = vadd.f32 %v7587_v53, %v2592_v59  ;;  %6162 = vrot.lane.b32.xlu1 %v9080_v12, %s9141_s22  ;;  %v2739_v60 = vmax.f32 %v2601_v32, 0.0  ;;  %v7598_v53 = vunpack.c.l.bf16 %v7660_v29  ;;  %v9083_v14 = vld [vmem:[%s9354_s23 + $0x1e8] sm:$0xff]  ;;  %v7662_v29 = vld [vmem:[%s10110_s21 + $0xb8] sm:$0xff]  }
 0x38f   : > { %7885 = vmatpush3.bf16.msra.mxu1 %v4437_v47  ;;  %v8246_v57 = vpop.f32.mrf.mxu1  ;;  %v7595_v47 = vunpack.c.h.bf16 %v7659_v7  ;;  %v8471_v59 = vld [vmem:[%s12577_s3 + $0x8] ss:$16 sps:$4 sm:$0xff]  }
 0x390   : > { %v4444_v25 = vpack.c.bf16 %v4405_v46, %v4404_v24  ;;  %6160 = vrot.lane.b32.xlu0 %v9081_v41, %s9141_s22  ;;  %v2737_v45 = vmax.f32 %v2593_v18, 0.0  ;;  %v2783_v51 = vpack.c.bf16 %v2739_v60, %v2738_v23  ;;  %v2614_v46 = vadd.f32 %v8246_v57, %v7598_v53  ;;  %v7661_v18 = vld [vmem:[%s10110_s21 + $0xb0] sm:$0xff]   ;;  %v9084_v60 = vld [vmem:[%s9354_s23 + $0x1f8] sm:$0xff] }
 0x391   : > { %v4204_v26 = vpop.permute.xlu0 %4203  ;;  %v2605_v19 = vpop.f32.mrf.mxu1  ;;  %v7602_v41 = vunpack.c.l.bf16 %v7661_v18  ;;  %v7603_v23 = vunpack.c.h.bf16 %v7661_v18 }
 0x392   : > { %v4389_v6 = vmul.f32 %v4204_v26, %v4005_v17  ;;  %7886 = vmatprep.subr.bf16.mxu1 %v4444_v25  ;;  %v2782_v55 = vpack.c.bf16 %v2737_v45, %v2736_v5  ;;  %6166 = vrot.lane.b32.xlu1 %v9082_v11, %s9141_s22  ;;  %v2606_v24 = vadd.f32 %v7594_v35, %v2605_v19  ;;  %v7607_v5 = vunpack.c.h.bf16 %v7662_v29  ;;  %v7663_v11 = vld [vmem:[%s10110_s21 + $0xc0] sm:$0xff]  }
 0x393   : > { %v8247_v32 = vpop.f32.mrf.mxu1  ;;  %v2742_v45 = vmax.f32 %v2614_v46, 0.0  ;;  %v7606_v35 = vunpack.c.l.bf16 %v7662_v29 }
 0x394   : > { %v4436_v43 = vpack.c.bf16 %v4389_v6, %v4388_v36  ;;  %6164 = vrot.lane.b32.xlu0 %v9083_v14, %s9141_s22  ;;  %v2617_v15 = vadd.f32 %v8247_v32, %v7599_v50  ;;  %8308 = vmatprep.mubr.msk.bf16.mxu0 %vm2314_vm5, %v2782_v55  ;;  %v2740_v25 = vmax.f32 %v2606_v24, 0.0  ;;  %v8474_v6 = vld [vmem:[%s12577_s3 + $0x28] ss:$16 sps:$4 sm:$0xff]   ;;  %v7610_v24 = vunpack.c.l.bf16 %v7663_v11 }
 0x395   : > { %v2608_v7 = vpop.f32.mrf.mxu1 }
 0x396   : > { %8309 = vmatmul.mubr.msk.bf16.gmra.mxu0 %vm2314_vm5, %v2783_v51  ;;  %7887 = vmatpush3.bf16.msra.mxu1 %v4436_v43  ;;  %v2609_v2 = vadd.f32 %v7595_v47, %v2608_v7  ;;  %v2743_v17 = vmax.f32 %v2617_v15, 0.0 }
 0x397   : > { %6298 = vrot.lane.b32.xlu1 %v10220_v4, %s9142_s28  ;;  %v8250_v12 = vpop.f32.mrf.mxu1 }
 0x398   : > { %6168 = vrot.lane.b32.xlu0 %v9084_v60, %s9141_s22  ;;  %v2741_v57 = vmax.f32 %v2609_v2, 0.0  ;;  %v2785_v4 = vpack.c.bf16 %v2743_v17, %v2742_v45  ;;  %v2630_v55 = vadd.f32 %v8250_v12, %v7606_v35  ;;  %v7665_v60 = vld [vmem:[%s10110_s21 + $0xd0] sm:$0xff]  }
 0x399   : > { %4582 = vmatmul.mubr.bf16.vlgmr.msra.gmra.mxu1 %v8471_v59  ;;  %v2621_v26 = vpop.f32.mrf.mxu1 }
 0x39a   : > { %4589 = vmatprep.mubr.bf16.mxu1 %v8476_v39  ;;  %v2784_v50 = vpack.c.bf16 %v2741_v57, %v2740_v25  ;;  %v2622_v53 = vadd.f32 %v7602_v41, %v2621_v26  ;;  %v2746_v59 = vmax.f32 %v2630_v55, 0.0  ;;  %v7611_v39 = vunpack.c.h.bf16 %v7663_v11  ;;  %v7666_v57 = vld [vmem:[%s10110_s21 + $0xd8] sm:$0xff]   ;;  %v9088_v11 = vld [vmem:[%s12579_s5 + $0x48] sm:$0xff] }
 0x39b   : > { %6302 = vrot.lane.b32.xlu1 %v10194_v33, %s9142_s28  ;;  %v8251_v36 = vpop.f32.mrf.mxu1  ;;  %v7664_v33 = vld [vmem:[%s10110_s21 + $0xc8] sm:$0xff]   ;;  %v7618_v26 = vunpack.c.l.bf16 %v7665_v60 }
 0x39c   : > { %6300 = vrot.lane.b32.xlu0 %v10211_v58, %s9142_s28  ;;  %v2633_v19 = vadd.f32 %v8251_v36, %v7607_v5  ;;  %8312 = vmatprep.mubr.msk.bf16.mxu0 %vm2314_vm5, %v2784_v50  ;;  %v2744_v32 = vmax.f32 %v2622_v53, 0.0  ;;  %v7615_v15 = vunpack.c.h.bf16 %v7664_v33  ;;  %v7614_v46 = vunpack.c.l.bf16 %v7664_v33 }
 0x39d   : > { %v2624_v47 = vpop.f32.mrf.mxu1  ;;  %v7623_v50 = vunpack.c.h.bf16 %v7666_v57 }
 0x39e   : > { %8313 = vmatmul.mubr.msk.bf16.gmra.mxu0 %vm2314_vm5, %v2785_v4  ;;  %v2625_v51 = vadd.f32 %v7603_v23, %v2624_v47  ;;  %v2747_v43 = vmax.f32 %v2633_v19, 0.0  ;;  %v7622_v4 = vunpack.c.l.bf16 %v7666_v57  ;;  %v7619_v19 = vunpack.c.h.bf16 %v7665_v60 }
 0x39f   : > { %6306 = vrot.lane.b32.xlu1 %v10167_v31, %s9142_s28  ;;  %v8254_v58 = vpop.f32.mrf.mxu1 }
 0x3a0   : > { %6304 = vrot.lane.b32.xlu0 %v10183_v37, %s9142_s28  ;;  %v2745_v14 = vmax.f32 %v2625_v51, 0.0  ;;  %v2787_v31 = vpack.c.bf16 %v2747_v43, %v2746_v59  ;;  %v2646_v17 = vadd.f32 %v8254_v58, %v7614_v46 }
 0x3a1   : > { %4590 = vmatmul.mubr.bf16.gmra.mxu1 %v8474_v6  ;;  %v2637_v7 = vpop.f32.mrf.mxu1  ;;  %v9087_v6 = vld [vmem:[%s12579_s5 + $0x50] sm:$0xff] }
 0x3a2   : > { %v2786_v18 = vpack.c.bf16 %v2745_v14, %v2744_v32  ;;  %v2638_v37 = vadd.f32 %v7610_v24, %v2637_v7  ;;  %v2750_v23 = vmax.f32 %v2646_v17, 0.0  ;;  %v7667_v32 = vld [vmem:[%s10110_s21 + $0xe0] sm:$0xff]   ;;  %v7668_v24 = vld [vmem:[%s10110_s21 + $0xe8] sm:$0xff]   ;;  %v9090_v7 = vld [vmem:[%s12579_s5 + $0x58] sm:$0xff] }
 0x3a3   : > { %6310 = vrot.lane.b32.xlu1 %v10141_v16, %s9142_s28  ;;  %v8255_v2 = vpop.f32.mrf.mxu1  ;;  %v9085_v16 = vld [vmem:[%s12579_s5 + $0x40] sm:$0xff]  ;;  %v7627_v60 = vunpack.c.h.bf16 %v7667_v32 }
 0x3a4   : > { %6308 = vrot.lane.b32.xlu0 %v10155_v20, %s9142_s28  ;;  %v2649_v29 = vadd.f32 %v8255_v2, %v7615_v15  ;;  %8316 = vmatprep.mubr.msk.bf16.mxu0 %vm2314_vm5, %v2786_v18  ;;  %v9086_v20 = vld [vmem:[%s12579_s5 + $0x38] sm:$0xff]  ;;  %v2748_v45 = vmax.f32 %v2638_v37, 0.0  ;;  %v9089_v15 = vld [vmem:[%s12579_s5 + $0x60] sm:$0xff]  ;;  %v7631_v2 = vunpack.c.h.bf16 %v7668_v24 }
 0x3a5   : > { %v2640_v12 = vpop.f32.mrf.mxu1 }
 0x3a6   : > { %8317 = vmatmul.mubr.msk.bf16.gmra.mxu0 %vm2314_vm5, %v2787_v31  ;;  %v2641_v25 = vadd.f32 %v7611_v39, %v2640_v12  ;;  %v2751_v41 = vmax.f32 %v2649_v29, 0.0  ;;  %v7626_v31 = vunpack.c.l.bf16 %v7667_v32  ;;  %v7630_v29 = vunpack.c.l.bf16 %v7668_v24 }
 0x3a7   : > { %6314 = vrot.lane.b32.xlu1 %v9085_v16, %s9142_s28  ;;  %v8258_v5 = vpop.f32.mrf.mxu1 }
 0x3a8   : > { %6312 = vrot.lane.b32.xlu0 %v9086_v20, %s9142_s28  ;;  %v2749_v35 = vmax.f32 %v2641_v25, 0.0  ;;  %v2789_v55 = vpack.c.bf16 %v2751_v41, %v2750_v23  ;;  %v2662_v43 = vadd.f32 %v8258_v5, %v7622_v4  ;;  %v9091_v25 = vld [vmem:[%s12579_s5 + $0x70] sm:$0xff]  ;;  %v9092_v41 = vld [vmem:[%s12579_s5 + $0x68] sm:$0xff]  ;;  %v7670_v23 = vld [vmem:[%s10110_s21 + $0xf8] sm:$0xff]  }
 0x3a9   : > { %v2653_v36 = vpop.f32.mrf.mxu1  ;;  %v9093_v4 = vld [vmem:[%s12579_s5 + $0x80] sm:$0xff] }
 0x3aa   : > { %v2788_v53 = vpack.c.bf16 %v2749_v35, %v2748_v45  ;;  %v2654_v51 = vadd.f32 %v7618_v26, %v2653_v36  ;;  %v2754_v37 = vmax.f32 %v2662_v43, 0.0  ;;  %v7669_v26 = vld [vmem:[%s10110_s21 + $0xf0] sm:$0xff]  }
 0x3ab   : > { %6318 = vrot.lane.b32.xlu1 %v9087_v6, %s9142_s28  ;;  %v8259_v47 = vpop.f32.mrf.mxu1  ;;  %v7635_v32 = vunpack.c.h.bf16 %v7669_v26 }
 0x3ac   : > { %6316 = vrot.lane.b32.xlu0 %v9088_v11, %s9142_s28  ;;  %v2665_v33 = vadd.f32 %v8259_v47, %v7623_v50  ;;  %8320 = vmatprep.mubr.msk.bf16.mxu0 %vm2314_vm5, %v2788_v53  ;;  %v2752_v18 = vmax.f32 %v2654_v51, 0.0  ;;  %v7634_v47 = vunpack.c.l.bf16 %v7669_v26  ;;  %v7639_v11 = vunpack.c.h.bf16 %v7670_v23  ;;  %v9104_v26 = vld [vmem:[%s12579_s5 + $0xd8] sm:$0xff] }
 0x3ad   : > { %v2656_v58 = vpop.f32.mrf.mxu1 }
 0x3ae   : > { %8321 = vmatmul.mubr.msk.bf16.gmra.mxu0 %vm2314_vm5, %v2789_v55  ;;  %v2657_v14 = vadd.f32 %v7619_v19, %v2656_v58  ;;  %v2755_v59 = vmax.f32 %v2665_v33, 0.0  ;;  %v9094_v19 = vld [vmem:[%s12579_s5 + $0x78] sm:$0xff]  ;;  %v7638_v33 = vunpack.c.l.bf16 %v7670_v23  ;;  %v10699_v23 = vpop.permute.xlu0 %6042 }
 0x3af   : > { %6322 = vrot.lane.b32.xlu1 %v9089_v15, %s9142_s28  ;;  %v8262_v46 = vpop.f32.mrf.mxu1  ;;  %12719 = vst [vmem:[#allocation64_spill] sm:$0xff] %v10699_v23 }
 0x3b0   : > { %6320 = vrot.lane.b32.xlu0 %v9090_v7, %s9142_s28  ;;  %v2753_v39 = vmax.f32 %v2657_v14, 0.0  ;;  %v2791_v57 = vpack.c.bf16 %v2755_v59, %v2754_v37  ;;  %v2678_v45 = vadd.f32 %v8262_v46, %v7630_v29  ;;  %v9095_v14 = vld [vmem:[%s12579_s5 + $0x90] sm:$0xff]  ;;  %v9096_v59 = vld [vmem:[%s12579_s5 + $0x88] sm:$0xff]  ;;  %v9098_v29 = vld [vmem:[%s12579_s5 + $0x98] sm:$0xff] }
 0x3b1   : > { %v2669_v17 = vpop.f32.mrf.mxu1 }
 0x3b2   : > { %v2790_v12 = vpack.c.bf16 %v2753_v39, %v2752_v18  ;;  %v2670_v5 = vadd.f32 %v7626_v31, %v2669_v17  ;;  %v2758_v51 = vmax.f32 %v2678_v45, 0.0  ;;  %v9103_v45 = vld [vmem:[%s12579_s5 + $0xe0] sm:$0xff] }
 0x3b3   : > { %6326 = vrot.lane.b32.xlu1 %v9091_v25, %s9142_s28  ;;  %v8263_v16 = vpop.f32.mrf.mxu1 }
 0x3b4   : > { %6324 = vrot.lane.b32.xlu0 %v9092_v41, %s9142_s28  ;;  %v2681_v20 = vadd.f32 %v8263_v16, %v7631_v2  ;;  %8324 = vmatprep.mubr.msk.bf16.mxu0 %vm2314_vm5, %v2790_v12  ;;  %v2756_v6 = vmax.f32 %v2670_v5, 0.0  ;;  %v9097_v2 = vld [vmem:[%s12579_s5 + $0xa0] sm:$0xff]  ;;  %v9100_v41 = vld [vmem:[%s12579_s5 + $0xf0] sm:$0xff]  ;;  %v9101_v5 = vld [vmem:[%s12579_s5 + $0xe8] sm:$0xff] }
 0x3b5   : > { %v2672_v35 = vpop.f32.mrf.mxu1 }
 0x3b6   : > { %8325 = vmatmul.mubr.msk.bf16.gmra.mxu0 %vm2314_vm5, %v2791_v57  ;;  %v2673_v50 = vadd.f32 %v7627_v60, %v2672_v35  ;;  %v2759_v36 = vmax.f32 %v2681_v20, 0.0  ;;  %v9099_v57 = vld [vmem:[%s12579_s5 + $0xf8] sm:$0xff]  ;;  %v9102_v20 = vld [vmem:[%s12577_s3 + $0x4] ss:$16 sps:$4 sm:$0xff]   ;;  %v10689_v35 = vpop.permute.xlu1 %6044 }
 0x3b7   : > { %6330 = vrot.lane.b32.xlu1 %v9093_v4, %s9142_s28  ;;  %v8266_v53 = vpop.f32.mrf.mxu1  ;;  %12718 = vst [vmem:[#allocation63_spill] sm:$0xff] %v10689_v35 }
 0x3b8   : > { %6328 = vrot.lane.b32.xlu0 %v9094_v19, %s9142_s28  ;;  %v2757_v55 = vmax.f32 %v2673_v50, 0.0  ;;  %v2793_v24 = vpack.c.bf16 %v2759_v36, %v2758_v51  ;;  %v2694_v18 = vadd.f32 %v8266_v53, %v7638_v33  ;;  %v9105_v50 = vld [vmem:[%s12579_s5 + $0xd0] sm:$0xff]  ;;  %v9106_v36 = vld [vmem:[%s12579_s5 + $0xc8] sm:$0xff]  ;;  %v9107_v53 = vld [vmem:[%s12579_s5 + $0xc0] sm:$0xff] }
 0x3b9   : > { %v2685_v43 = vpop.f32.mrf.mxu1  ;;  %v9108_v19 = vld [vmem:[%s12579_s5 + $0xb8] sm:$0xff] }
 0x3ba   : > { %v2792_v58 = vpack.c.bf16 %v2757_v55, %v2756_v6  ;;  %v2686_v46 = vadd.f32 %v7634_v47, %v2685_v43  ;;  %v2762_v60 = vmax.f32 %v2694_v18, 0.0  ;;  %v10701_v4 = vpop.permute.xlu1 %6046  ;;  %v10715_v6 = vpop.permute.xlu0 %6048  ;;  %v9109_v55 = vld [vmem:[%s12579_s5 + $0xb0] sm:$0xff] }
 0x3bb   : > { %6334 = vrot.lane.b32.xlu1 %v9095_v14, %s9142_s28  ;;  %v8267_v15 = vpop.f32.mrf.mxu1  ;;  %12720 = vst [vmem:[#allocation65_spill] sm:$0xff] %v10701_v4  ;;  %12721 = vst [vmem:[#allocation66_spill] sm:$0xff] %v10715_v6  ;;  %v12868_v6 = vld [vmem:[#allocation62_spill] sm:$0xff] }
 0x3bc   : > { %6332 = vrot.lane.b32.xlu0 %v9096_v59, %s9142_s28  ;;  %v2697_v7 = vadd.f32 %v8267_v15, %v7639_v11  ;;  %8328 = vmatprep.mubr.msk.bf16.mxu0 %vm2314_vm5, %v2792_v58  ;;  %v2760_v17 = vmax.f32 %v2686_v46, 0.0  ;;  %v9110_v11 = vld [vmem:[%s12579_s5 + $0xa8] sm:$0xff] }
 0x3bd   : > { %v2688_v39 = vpop.f32.mrf.mxu1 }
 0x3be   : > { %8329 = vmatmul.mubr.msk.bf16.gmra.mxu0 %vm2314_vm5, %v2793_v24  ;;  %v2689_v31 = vadd.f32 %v7635_v32, %v2688_v39  ;;  %v2763_v37 = vmax.f32 %v2697_v7, 0.0  ;;  %v10721_v47 = vpop.permute.xlu1 %6050  ;;  %v10729_v51 = vpop.permute.xlu0 %6052 }
 0x3bf   : > { %6338 = vrot.lane.b32.xlu1 %v9097_v2, %s9142_s28  ;;  %12722 = vst [vmem:[#allocation67_spill] sm:$0xff] %v10721_v47  ;;  %12723 = vst [vmem:[#allocation68_spill] sm:$0xff] %v10729_v51 }
 0x3c0   : > { %6336 = vrot.lane.b32.xlu0 %v9098_v29, %s9142_s28  ;;  %v2761_v12 = vmax.f32 %v2689_v31, 0.0  ;;  %v2795_v16 = vpack.c.bf16 %v2763_v37, %v2762_v60 }
 0x3c2   : > { %v2794_v25 = vpack.c.bf16 %v2761_v12, %v2760_v17  ;;  %v10731_v33 = vpop.permute.xlu1 %6054 }
 0x3c3   : > { %6360 = vrot.lane.b32.xlu1 %v9099_v57, %s9142_s28  ;;  %12724 = vst [vmem:[#allocation69_spill] sm:$0xff] %v10731_v33 }
 0x3c4   : > { %6358 = vrot.lane.b32.xlu0 %v9100_v41, %s9142_s28  ;;  %8332 = vmatprep.mubr.msk.bf16.mxu0 %vm2314_vm5, %v2794_v25 }
 0x3c6   : > { %8333 = vmatmul.mubr.msk.bf16.gmra.mxu0 %vm2314_vm5, %v2795_v16  ;;  %v10743_v43 = vpop.permute.xlu1 %6058 }
 0x3c7   : > { %6356 = vrot.lane.b32.xlu1 %v9101_v5, %s9142_s28  ;;  %7068 = vmatprep.mubr.bf16.mxu0 %v9102_v20  ;;  %12726 = vst [vmem:[#allocation71_spill] sm:$0xff] %v10743_v43  ;;  %v8478_v5 = vld [vmem:[%s12578_s4 + $0x8] sm:$0xff]   ;;  %v8479_v20 = vld [vmem:[%s12578_s4 + $0x10] sm:$0xff]  }
 0x3c8   : > { %6354 = vrot.lane.b32.xlu0 %v9103_v45, %s9142_s28  ;;  %v8480_v45 = vld [vmem:[%s12578_s4 + $0x18] sm:$0xff]  }
 0x3ca   : > { %v10751_v58 = vpop.permute.xlu1 %6062 }
 0x3cb   : > { %6352 = vrot.lane.b32.xlu1 %v9104_v26, %s9142_s28  ;;  %12728 = vst [vmem:[#allocation73_spill] sm:$0xff] %v10751_v58  ;;  %v8481_v26 = vld [vmem:[%s12578_s4 + $0x20] sm:$0xff]   ;;  %v12863_v58 = vld [vmem:[#allocation29_spill] sm:$0xff] }
 0x3cc   : > { %6350 = vrot.lane.b32.xlu0 %v9105_v50, %s9142_s28  ;;  %v8482_v50 = vld [vmem:[%s12578_s4 + $0x28] sm:$0xff]  }
 0x3cf   : > { %6348 = vrot.lane.b32.xlu1 %v9106_v36, %s9142_s28  ;;  %v8483_v36 = vld [vmem:[%s12578_s4 + $0x30] sm:$0xff]  }
 0x3d0   : > { %6346 = vrot.lane.b32.xlu0 %v9107_v53, %s9142_s28  ;;  %v8484_v53 = vld [vmem:[%s12578_s4 + $0x38] sm:$0xff]  }
 0x3d3   : > { %6344 = vrot.lane.b32.xlu1 %v9108_v19, %s9142_s28  ;;  %v8485_v19 = vld [vmem:[%s12578_s4 + $0x40] sm:$0xff]  }
 0x3d4   : > { %6342 = vrot.lane.b32.xlu0 %v9109_v55, %s9142_s28  ;;  %v8486_v55 = vld [vmem:[%s12578_s4 + $0x48] sm:$0xff]  }
 0x3d7   : > { %6422 = vrot.lane.b32.xlu1 %v10331_v48, %s9142_s28  ;;  %v10739_v48 = vpop.permute.xlu0 %6056 }
 0x3d8   : > { %6340 = vrot.lane.b32.xlu0 %v9110_v11, %s9142_s28  ;;  %12725 = vst [vmem:[#allocation70_spill] sm:$0xff] %v10739_v48  ;;  %v8487_v11 = vld [vmem:[%s12578_s4 + $0x50] sm:$0xff]  }
 0x3db   : > { %6390 = vrot.lane.b32.xlu1 %v10326_v62, %s9142_s28  ;;  %v10749_v62 = vpop.permute.xlu0 %6060 }
 0x3dc   : > { %6424 = vrot.lane.b32.xlu0 %v10336_v44, %s9142_s28  ;;  %12727 = vst [vmem:[#allocation72_spill] sm:$0xff] %v10749_v62 }
 0x3df   : > { %6418 = vrot.lane.b32.xlu1 %v10361_v63, %s9142_s28  ;;  %v10759_v63 = vpop.permute.xlu0 %6064 }
 0x3e0   : > { %6392 = vrot.lane.b32.xlu0 %v10313_v49, %s9142_s28  ;;  %12729 = vst [vmem:[#allocation74_spill] sm:$0xff] %v10759_v63  ;;  %v10763_v49 = vpop.permute.xlu1 %6066 }
 0x3e1   : > { %12730 = vst [vmem:[#allocation75_spill] sm:$0xff] %v10763_v49 }
 0x3e3   : > { %6386 = vrot.lane.b32.xlu1 %v10373_v38, %s9142_s28 }
 0x3e4   : > { %6420 = vrot.lane.b32.xlu0 %v10366_v61, %s9142_s28  ;;  %v10769_v61 = vpop.permute.xlu0 %6068  ;;  %v10771_v44 = vpop.permute.xlu1 %6070 }
 0x3e5   : > { %12731 = vst [vmem:[#allocation76_spill] sm:$0xff] %v10769_v61  ;;  %12732 = vst [vmem:[#allocation77_spill] sm:$0xff] %v10771_v44 }
 0x3e7   : > { %6414 = vrot.lane.b32.xlu1 %v10385_v10, %s9142_s28 }
 0x3e8   : > { %6388 = vrot.lane.b32.xlu0 %v10347_v13, %s9142_s28  ;;  %v8477_v13 = vld [vmem:[%s12578_s4] sm:$0xff]   ;;  %v10787_v38 = vpop.permute.xlu1 %6074 }
 0x3e9   : > { %8340 = vmatprep.mubr.msk.bf16.mxu1 %vm2314_vm5, %v8477_v13  ;;  %12734 = vst [vmem:[#allocation79_spill] sm:$0xff] %v10787_v38  ;;  %v8488_v13 = vld [vmem:[%s12578_s4 + $0x58] sm:$0xff]  }
 0x3eb   : > { %6382 = vrot.lane.b32.xlu1 %v10412_v22, %s9142_s28 }
 0x3ec   : > { %6416 = vrot.lane.b32.xlu0 %v10352_v3, %s9142_s28  ;;  %v10782_v3 = vpop.permute.xlu0 %6072 }
 0x3ed   : > { %12733 = vst [vmem:[#allocation78_spill] sm:$0xff] %v10782_v3 }
 0x3ef   : > { %6410 = vrot.lane.b32.xlu1 %v10425_v34, %s9142_s28 }
 0x3f0   : > { %6384 = vrot.lane.b32.xlu0 %v10393_v40, %s9142_s28  ;;  %v10793_v10 = vpop.permute.xlu0 %6076  ;;  %v10795_v40 = vpop.permute.xlu1 %6078 }
 0x3f1   : > { %12735 = vst [vmem:[#allocation80_spill] sm:$0xff] %v10793_v10  ;;  %12736 = vst [vmem:[#allocation81_spill] sm:$0xff] %v10795_v40 }
 0x3f3   : > { %6378 = vrot.lane.b32.xlu1 %v10447_v52, %s9142_s28 }
 0x3f4   : > { %6412 = vrot.lane.b32.xlu0 %v10403_v56, %s9142_s28  ;;  %v10801_v56 = vpop.permute.xlu0 %6080 }
 0x3f5   : > { %12737 = vst [vmem:[#allocation82_spill] sm:$0xff] %v10801_v56 }
 0x3f7   : > { %6406 = vrot.lane.b32.xlu1 %v10460_v9, %s9142_s28 }
 0x3f8   : > { %6380 = vrot.lane.b32.xlu0 %v10430_v1, %s9142_s28 }
 0x3fb   : > { %6374 = vrot.lane.b32.xlu1 %v10489_v30, %s9142_s28 }
 0x3fc   : > { %6408 = vrot.lane.b32.xlu0 %v10439_v8, %s9142_s28 }
 0x3ff   : > { %6402 = vrot.lane.b32.xlu1 %v10497_v0, %s9142_s28 }
 0x400   : > { %6376 = vrot.lane.b32.xlu0 %v10471_v42, %s9142_s28 }
 0x404   : > { %6404 = vrot.lane.b32.xlu0 %v10479_v54, %s9142_s28 }
 0x417   : > { %v7860_v22 = vpop.f32.mrf.mxu1 }
 0x419   : > { %v7861_v34 = vpop.f32.mrf.mxu1 }
 0x41a   : > { %v7862_v17 = vadd.f32 %v7861_v34, %v7860_v22  ;;  %v8489_v22 = vld [vmem:[%s12578_s4 + $0x60] sm:$0xff]   ;;  %v10853_v34 = vpop.permute.xlu0 %6084 }
 0x41b   : > { %v7863_v1 = vpop.f32.mrf.mxu1  ;;  %12738 = vst [vmem:[#allocation83_spill] sm:$0xff] %v10853_v34 }
 0x41d   : > { %v7864_v52 = vpop.f32.mrf.mxu1 }
 0x41e   : > { %v7865_v39 = vadd.f32 %v7864_v52, %v7863_v1  ;;  %v8490_v1 = vld [vmem:[%s12578_s4 + $0x68] sm:$0xff]   ;;  %v10858_v52 = vpop.permute.xlu1 %6082 }
 0x41f   : > { %v7866_v8 = vpop.f32.mrf.mxu1  ;;  %12739 = vst [vmem:[#allocation84_spill] sm:$0xff] %v10858_v52 }
 0x421   : > { %v7867_v9 = vpop.f32.mrf.mxu1 }
 0x422   : > { %v7868_v54 = vadd.f32 %v7867_v9, %v7866_v8  ;;  %v8491_v8 = vld [vmem:[%s12578_s4 + $0x70] sm:$0xff]   ;;  %v10864_v9 = vpop.permute.xlu0 %6088 }
 0x423   : > { %v7869_v30 = vpop.f32.mrf.mxu1  ;;  %12740 = vst [vmem:[#allocation85_spill] sm:$0xff] %v10864_v9 }
 0x425   : > { %v7870_v32 = vpop.f32.mrf.mxu1 }
 0x426   : > { %v7871_v2 = vadd.f32 %v7870_v32, %v7869_v30  ;;  %v10867_v30 = vpop.permute.xlu1 %6086  ;;  %v8492_v32 = vld [vmem:[%s12578_s4 + $0x78] sm:$0xff]  }
 0x427   : > { %12741 = vst [vmem:[#allocation86_spill] sm:$0xff] %v10867_v30 }
 0x459   : > { %v7888_v14 = vpop.f32.mrf.mxu1 }
 0x45b   : > { %v7889_v24 = vpop.f32.mrf.mxu1 }
 0x45c   : > { %v7890_v37 = vadd.f32 %v7889_v24, %v7888_v14  ;;  %v8493_v14 = vld [vmem:[%s12578_s4 + $0x80] sm:$0xff]   ;;  %v10875_v24 = vpop.permute.xlu0 %6092 }
 0x45d   : > { %v7891_v15 = vpop.f32.mrf.mxu1  ;;  %12742 = vst [vmem:[#allocation87_spill] sm:$0xff] %v10875_v24 }
 0x45e   : > { %v4584_v57 = vadd.f32 %v7890_v37, %v7862_v17  ;;  %v8498_v37 = vld [vmem:[%s12578_s4 + $0xa8] sm:$0xff]  }
 0x45f   : > { %v7892_v0 = vpop.f32.mrf.mxu1 }
 0x460   : > { %v7893_v7 = vadd.f32 %v7892_v0, %v7891_v15  ;;  %v10878_v15 = vpop.permute.xlu1 %6090  ;;  %v8494_v0 = vld [vmem:[%s12578_s4 + $0x88] sm:$0xff]  }
 0x461   : > { %v7894_v59 = vpop.f32.mrf.mxu1  ;;  %12743 = vst [vmem:[#allocation88_spill] sm:$0xff] %v10878_v15 }
 0x462   : > { %v4587_v12 = vadd.f32 %v7893_v7, %v7865_v39 }
 0x463   : > { %v7895_v46 = vpop.f32.mrf.mxu1 }
 0x464   : > { %v7896_v18 = vadd.f32 %v7895_v46, %v7894_v59  ;;  %v4662_v41 = vpack.c.bf16 %v4587_v12, %v4584_v57  ;;  %v10884_v59 = vpop.permute.xlu0 %6096  ;;  %v8495_v46 = vld [vmem:[%s12578_s4 + $0x90] sm:$0xff]   ;;  %v8501_v57 = vld [vmem:[%s12578_s4 + $0xc0] sm:$0xff]  }
 0x465   : > { %v7897_v42 = vpop.f32.mrf.mxu1  ;;  %12744 = vst [vmem:[#allocation89_spill] sm:$0xff] %v10884_v59 }
 0x466   : > { %v4592_v60 = vadd.f32 %v7896_v18, %v7868_v54  ;;  %v8496_v18 = vld [vmem:[%s12578_s4 + $0x98] sm:$0xff]  }
 0x467   : > { %v7898_v31 = vpop.f32.mrf.mxu1 }
 0x468   : > { %v7899_v29 = vadd.f32 %v7898_v31, %v7897_v42  ;;  %v10889_v42 = vpop.permute.xlu1 %6094  ;;  %v10893_v7 = vpop.permute.xlu0 %6100  ;;  %v8497_v31 = vld [vmem:[%s12578_s4 + $0xa0] sm:$0xff]  }
 0x469   : > { %12745 = vst [vmem:[#allocation90_spill] sm:$0xff] %v10889_v42  ;;  %12746 = vst [vmem:[#allocation91_spill] sm:$0xff] %v10893_v7 }
 0x46a   : > { %v4595_v25 = vadd.f32 %v7899_v29, %v7871_v2  ;;  %v8499_v29 = vld [vmem:[%s12578_s4 + $0xb0] sm:$0xff]  }
 0x46c   : > { %v4663_v16 = vpack.c.bf16 %v4595_v25, %v4592_v60  ;;  %v10898_v39 = vpop.permute.xlu1 %6098  ;;  %v10904_v54 = vpop.permute.xlu0 %6104  ;;  %v8500_v60 = vld [vmem:[%s12578_s4 + $0xb8] sm:$0xff]  }
 0x46d   : > { %12747 = vst [vmem:[#allocation92_spill] sm:$0xff] %v10898_v39  ;;  %12748 = vst [vmem:[#allocation93_spill] sm:$0xff] %v10904_v54 }
 0x46e   : > { %8336 = vmatprep.subr.bf16.mxu1 %v4663_v16 }
 0x46f   : > { %8337 = vmatpush3.bf16.msra.mxu1 %v4663_v16 }
 0x470   : > { %8338 = vmatprep.subr.bf16.mxu1 %v4662_v41  ;;  %v10907_v2 = vpop.permute.xlu1 %6102  ;;  %v10915_v17 = vpop.permute.xlu0 %6108 }
 0x471   : > { %12749 = vst [vmem:[#allocation94_spill] sm:$0xff] %v10907_v2  ;;  %12750 = vst [vmem:[#allocation95_spill] sm:$0xff] %v10915_v17 }
 0x473   : > { %8339 = vmatpush3.bf16.msra.mxu1 %v4662_v41 }
 0x474   : > { %v10918_v12 = vpop.permute.xlu1 %6106  ;;  %v10924_v25 = vpop.permute.xlu0 %6112 }
 0x475   : > { %12751 = vst [vmem:[#allocation96_spill] sm:$0xff] %v10918_v12  ;;  %12752 = vst [vmem:[#allocation97_spill] sm:$0xff] %v10924_v25 }
 0x476   : > { %8341 = vmatmul.mubr.msk.bf16.vlgmr.msra.gmra.mxu1 %vm2314_vm5, %v8478_v5  ;;  %v8502_v5 = vld [vmem:[%s12578_s4 + $0xc8] sm:$0xff]  }
 0x477   : > { %8344 = vmatprep.mubr.msk.bf16.mxu1 %vm2314_vm5, %v8479_v20 }
 0x478   : > { %v10929_v16 = vpop.permute.xlu1 %6110  ;;  %v10933_v41 = vpop.permute.xlu0 %6116 }
 0x479   : > { %12753 = vst [vmem:[#allocation98_spill] sm:$0xff] %v10929_v16  ;;  %12754 = vst [vmem:[#allocation99_spill] sm:$0xff] %v10933_v41 }
 0x47c   : > { %v10938_v20 = vpop.permute.xlu1 %6114 }
 0x47d   : > { %12755 = vst [vmem:[#allocation100_spill] sm:$0xff] %v10938_v20 }
 0x47e   : > { %8345 = vmatmul.mubr.msk.bf16.gmra.mxu1 %vm2314_vm5, %v8480_v45  ;;  %v8503_v45 = vld [vmem:[%s12578_s4 + $0xd0] sm:$0xff]  }
 0x47f   : > { %8348 = vmatprep.mubr.msk.bf16.mxu1 %vm2314_vm5, %v8481_v26  ;;  %v10944_v26 = vpop.permute.xlu0 %6120 }
 0x480   : > { %12756 = vst [vmem:[#allocation101_spill] sm:$0xff] %v10944_v26 }
 0x486   : > { %8349 = vmatmul.mubr.msk.bf16.gmra.mxu1 %vm2314_vm5, %v8482_v50  ;;  %v10947_v50 = vpop.permute.xlu1 %6118 }
 0x487   : > { %8352 = vmatprep.mubr.msk.bf16.mxu1 %vm2314_vm5, %v8483_v36  ;;  %12757 = vst [vmem:[#allocation102_spill] sm:$0xff] %v10947_v50  ;;  %v8504_v36 = vld [vmem:[%s12578_s4 + $0xd8] sm:$0xff]  }
 0x48e   : > { %8353 = vmatmul.mubr.msk.bf16.gmra.mxu1 %vm2314_vm5, %v8484_v53  ;;  %v8505_v53 = vld [vmem:[%s12578_s4 + $0xe0] sm:$0xff]  }
 0x48f   : > { %8356 = vmatprep.mubr.msk.bf16.mxu1 %vm2314_vm5, %v8485_v19  ;;  %v10955_v19 = vpop.permute.xlu0 %6124 }
 0x490   : > { %12758 = vst [vmem:[#allocation103_spill] sm:$0xff] %v10955_v19 }
 0x496   : > { %8357 = vmatmul.mubr.msk.bf16.gmra.mxu1 %vm2314_vm5, %v8486_v55  ;;  %v10958_v55 = vpop.permute.xlu1 %6122 }
 0x497   : > { %8360 = vmatprep.mubr.msk.bf16.mxu1 %vm2314_vm5, %v8487_v11  ;;  %12759 = vst [vmem:[#allocation104_spill] sm:$0xff] %v10958_v55  ;;  %v8506_v11 = vld [vmem:[%s12578_s4 + $0xe8] sm:$0xff]   ;;  %v5209_v55 = vld [vmem:[%s12580_s6] sm:$0xff] }
 0x49e   : > { %8361 = vmatmul.mubr.msk.bf16.gmra.mxu1 %vm2314_vm5, %v8488_v13  ;;  %v10964_v13 = vpop.permute.xlu0 %6128 }
 0x49f   : > { %8364 = vmatprep.mubr.msk.bf16.mxu1 %vm2314_vm5, %v8489_v22  ;;  %12760 = vst [vmem:[#allocation105_spill] sm:$0xff] %v10964_v13  ;;  %v8507_v22 = vld [vmem:[%s12578_s4 + $0xf0] sm:$0xff]  }
 0x4a6   : > { %8365 = vmatmul.mubr.msk.bf16.gmra.mxu1 %vm2314_vm5, %v8490_v1  ;;  %v10969_v1 = vpop.permute.xlu1 %6126 }
 0x4a7   : > { %8368 = vmatprep.mubr.msk.bf16.mxu1 %vm2314_vm5, %v8491_v8  ;;  %12761 = vst [vmem:[#allocation106_spill] sm:$0xff] %v10969_v1  ;;  %v10973_v8 = vpop.permute.xlu0 %6132 }
 0x4a8   : > { %12762 = vst [vmem:[#allocation107_spill] sm:$0xff] %v10973_v8  ;;  %v5210_v8 = vld [vmem:[%s12580_s6 + $0x8] sm:$0xff] }
 0x4ae   : > { %8369 = vmatmul.mubr.msk.bf16.gmra.mxu1 %vm2314_vm5, %v8492_v32  ;;  %v8508_v32 = vld [vmem:[%s12578_s4 + $0xf8] sm:$0xff]  }
 0x4af   : > { %8372 = vmatprep.mubr.msk.bf16.mxu1 %vm2314_vm5, %v8493_v14  ;;  %v10978_v14 = vpop.permute.xlu1 %6130 }
 0x4b0   : > { %12763 = vst [vmem:[#allocation108_spill] sm:$0xff] %v10978_v14 }
 0x4b6   : > { %8373 = vmatmul.mubr.msk.bf16.gmra.mxu1 %vm2314_vm5, %v8494_v0  ;;  %v10981_v0 = vpop.permute.xlu0 %6136 }
 0x4b7   : > { %8376 = vmatprep.mubr.msk.bf16.mxu1 %vm2314_vm5, %v8495_v46  ;;  %12764 = vst [vmem:[#allocation109_spill] sm:$0xff] %v10981_v0  ;;  %v10983_v46 = vpop.permute.xlu1 %6134 }
 0x4b8   : > { %12765 = vst [vmem:[#allocation110_spill] sm:$0xff] %v10983_v46 }
 0x4be   : > { %8377 = vmatmul.mubr.msk.bf16.gmra.mxu1 %vm2314_vm5, %v8496_v18  ;;  %v10985_v18 = vpop.permute.xlu0 %6140 }
 0x4bf   : > { %8380 = vmatprep.mubr.msk.bf16.mxu1 %vm2314_vm5, %v8497_v31  ;;  %12766 = vst [vmem:[#allocation111_spill] sm:$0xff] %v10985_v18  ;;  %v10987_v31 = vpop.permute.xlu1 %6138 }
 0x4c0   : > { %12767 = vst [vmem:[#allocation112_spill] sm:$0xff] %v10987_v31 }
 0x4c6   : > { %8381 = vmatmul.mubr.msk.bf16.gmra.mxu1 %vm2314_vm5, %v8498_v37  ;;  %v10989_v37 = vpop.permute.xlu0 %6144 }
 0x4c7   : > { %8384 = vmatprep.mubr.msk.bf16.mxu1 %vm2314_vm5, %v8499_v29  ;;  %12768 = vst [vmem:[#allocation113_spill] sm:$0xff] %v10989_v37  ;;  %v10991_v29 = vpop.permute.xlu1 %6142 }
 0x4c8   : > { %12769 = vst [vmem:[#allocation114_spill] sm:$0xff] %v10991_v29 }
 0x4ce   : > { %8385 = vmatmul.mubr.msk.bf16.gmra.mxu1 %vm2314_vm5, %v8500_v60  ;;  %v10993_v60 = vpop.permute.xlu0 %6148 }
 0x4cf   : > { %8388 = vmatprep.mubr.msk.bf16.mxu1 %vm2314_vm5, %v8501_v57  ;;  %12770 = vst [vmem:[#allocation115_spill] sm:$0xff] %v10993_v60  ;;  %v10995_v57 = vpop.permute.xlu1 %6146  ;;  %v5211_v60 = vld [vmem:[%s12580_s6 + $0x10] sm:$0xff] }
 0x4d0   : > { %12771 = vst [vmem:[#allocation116_spill] sm:$0xff] %v10995_v57 }
 0x4d6   : > { %8389 = vmatmul.mubr.msk.bf16.gmra.mxu1 %vm2314_vm5, %v8502_v5  ;;  %v10997_v5 = vpop.permute.xlu0 %6152 }
 0x4d7   : > { %8392 = vmatprep.mubr.msk.bf16.mxu1 %vm2314_vm5, %v8503_v45  ;;  %12772 = vst [vmem:[#allocation117_spill] sm:$0xff] %v10997_v5  ;;  %v10999_v45 = vpop.permute.xlu1 %6150 }
 0x4d8   : > { %12773 = vst [vmem:[#allocation118_spill] sm:$0xff] %v10999_v45 }
 0x4de   : > { %8393 = vmatmul.mubr.msk.bf16.gmra.mxu1 %vm2314_vm5, %v8504_v36  ;;  %v11001_v36 = vpop.permute.xlu0 %6156 }
 0x4df   : > { %8396 = vmatprep.mubr.msk.bf16.mxu1 %vm2314_vm5, %v8505_v53  ;;  %12774 = vst [vmem:[#allocation119_spill] sm:$0xff] %v11001_v36  ;;  %v11003_v53 = vpop.permute.xlu1 %6154  ;;  %v5212_v36 = vld [vmem:[%s12580_s6 + $0x18] sm:$0xff] }
 0x4e0   : > { %12775 = vst [vmem:[#allocation120_spill] sm:$0xff] %v11003_v53 }
 0x4e6   : > { %8397 = vmatmul.mubr.msk.bf16.gmra.mxu1 %vm2314_vm5, %v8506_v11  ;;  %v11005_v11 = vpop.permute.xlu0 %6160 }
 0x4e7   : > { %8400 = vmatprep.mubr.msk.bf16.mxu1 %vm2314_vm5, %v8507_v22  ;;  %12776 = vst [vmem:[#allocation121_spill] sm:$0xff] %v11005_v11  ;;  %v11007_v22 = vpop.permute.xlu1 %6158 }
 0x4e8   : > { %12777 = vst [vmem:[#allocation122_spill] sm:$0xff] %v11007_v22 }
 0x4eb   : > { %v11011_v17 = vpop.permute.xlu1 %6162 }
 0x4ec   : > { %12779 = vst [vmem:[#allocation124_spill] sm:$0xff] %v11011_v17 }
 0x4ee   : > { %8401 = vmatmul.mubr.msk.bf16.gmra.mxu1 %vm2314_vm5, %v8508_v32  ;;  %v11009_v32 = vpop.permute.xlu0 %6164 }
 0x4ef   : > { %12778 = vst [vmem:[#allocation123_spill] sm:$0xff] %v11009_v32  ;;  %v11015_v18 = vpop.permute.xlu1 %6166 }
 0x4f0   : > { %12781 = vst [vmem:[#allocation126_spill] sm:$0xff] %v11015_v18 }
 0x4f2   : > { %v11013_v12 = vpop.permute.xlu0 %6168 }
 0x4f3   : > { %12780 = vst [vmem:[#allocation125_spill] sm:$0xff] %v11013_v12  ;;  %v11019_v25 = vpop.permute.xlu1 %6298 }
 0x4f4   : > { %12783 = vst [vmem:[#allocation128_spill] sm:$0xff] %v11019_v25 }
 0x4f6   : > { %v11017_v31 = vpop.permute.xlu0 %6300 }
 0x4f7   : > { %12782 = vst [vmem:[#allocation127_spill] sm:$0xff] %v11017_v31  ;;  %v11023_v16 = vpop.permute.xlu1 %6302 }
 0x4f8   : > { %12785 = vst [vmem:[#allocation130_spill] sm:$0xff] %v11023_v16 }
 0x4fa   : > { %v11021_v29 = vpop.permute.xlu0 %6304 }
 0x4fb   : > { %12784 = vst [vmem:[#allocation129_spill] sm:$0xff] %v11021_v29  ;;  %v11027_v57 = vpop.permute.xlu1 %6306 }
 0x4fc   : > { %12787 = vst [vmem:[#allocation132_spill] sm:$0xff] %v11027_v57 }
 0x4fe   : > { %v11025_v37 = vpop.permute.xlu0 %6308 }
 0x4ff   : > { %12786 = vst [vmem:[#allocation131_spill] sm:$0xff] %v11025_v37  ;;  %v11040_v22 = vpop.permute.xlu1 %6310  ;;  %v5753_v37 = vsub.f32 0.0, %v12863_v58 }
 0x500   : > { %12789 = vst [vmem:[#allocation134_spill] sm:$0xff] %v11040_v22  ;;  %v12865_v22 = vld [vmem:[#allocation56_spill] sm:$0xff] }
 0x501   : > { %v5848_v48 = vmul.f32 1.442695, %v5753_v37 }
 0x502   : > { %v11035_v5 = vpop.permute.xlu0 %6312 }
 0x503   : > { %12788 = vst [vmem:[#allocation133_spill] sm:$0xff] %v11035_v5 }
 0x506   : > { %v11050_v13 = vpop.permute.xlu0 %6316 }
 0x507   : > { %12790 = vst [vmem:[#allocation135_spill] sm:$0xff] %v11050_v13 }
 0x536   : > { %v8342_v45 = vpop.f32.mrf.mxu1 }
 0x537   : > { %v5275_v19 = vmul.f32 %v8342_v45, %v5211_v60  ;;  %v5215_v45 = vld [vmem:[%s12580_s6 + $0x30] sm:$0xff] }
 0x538   : > { %v4954_v53 = vpop.f32.mrf.mxu1 }
 0x539   : > { %v5273_v32 = vmul.f32 %v5209_v55, %v4954_v53  ;;  %v5344_v17 = vsel %vm5337_vm6, %v5275_v19, 0.0  ;;  %v11052_v19 = vpop.permute.xlu1 %6314 }
 0x53a   : > { %5345 = vadd.xlane.f32.xlu0 %v5344_v17  ;;  %v8343_v11 = vpop.f32.mrf.mxu1  ;;  %12791 = vst [vmem:[#allocation136_spill] sm:$0xff] %v11052_v19  ;;  %v12861_v19 = vld [vmem:[#allocation28_spill] sm:$0xff] }
 0x53b   : > { %v5276_v14 = vmul.f32 %v8343_v11, %v5212_v36  ;;  %v5338_v46 = vsel %vm5337_vm6, %v5273_v32, 0.0  ;;  %v5216_v11 = vld [vmem:[%s12580_s6 + $0x38] sm:$0xff]  ;;  %v5214_v32 = vld [vmem:[%s12580_s6 + $0x28] sm:$0xff] }
 0x53c   : > { %5339 = vadd.xlane.f32.xlu1 %v5338_v46  ;;  %v4957_v60 = vpop.f32.mrf.mxu1  ;;  %v5213_v46 = vld [vmem:[%s12580_s6 + $0x20] sm:$0xff] }
 0x53d   : > { %v5274_v55 = vmul.f32 %v5210_v8, %v4957_v60  ;;  %v5347_v12 = vsel %vm5337_vm6, %v5276_v14, 0.0  ;;  %v11065_v60 = vpop.permute.xlu0 %6320 }
 0x53e   : > { %v8346_v53 = vpop.f32.mrf.mxu1  ;;  %12792 = vst [vmem:[#allocation137_spill] sm:$0xff] %v11065_v60  ;;  %v5752_v60 = vsub.f32 0.0, %v12861_v19 }
 0x53f   : > { %v5279_v17 = vmul.f32 %v8346_v53, %v5215_v45  ;;  %v5341_v18 = vsel %vm5337_vm6, %v5274_v55, 0.0  ;;  %v5219_v55 = vld [vmem:[%s12580_s6 + $0x50] sm:$0xff]  ;;  %v11071_v53 = vpop.permute.xlu1 %6318 }
 0x540   : > { %5348 = vadd.xlane.f32.xlu1 %v5347_v12  ;;  %5342 = vadd.xlane.f32.xlu0 %v5341_v18  ;;  %v4970_v36 = vpop.f32.mrf.mxu1  ;;  %12793 = vst [vmem:[#allocation138_spill] sm:$0xff] %v11071_v53  ;;  %v5846_v19 = vmul.f32 1.442695, %v5752_v60 }
 0x541   : > { %v5277_v14 = vmul.f32 %v5213_v46, %v4970_v36  ;;  %v5356_v12 = vsel %vm5337_vm6, %v5279_v17, 0.0  ;;  %v5217_v17 = vld [vmem:[%s12580_s6 + $0x40] sm:$0xff]  ;;  %v5220_v46 = vld [vmem:[%s12580_s6 + $0x58] sm:$0xff] }
 0x542   : > { %v8347_v8 = vpop.f32.mrf.mxu1 }
 0x543   : > { %v5280_v45 = vmul.f32 %v8347_v8, %v5216_v11  ;;  %v5350_v52 = vsel %vm5337_vm6, %v5277_v14, 0.0  ;;  %v11081_v11 = vpop.permute.xlu0 %6324 }
 0x544   : > { %5357 = vadd.xlane.f32.xlu0 %v5356_v12  ;;  %v4973_v18 = vpop.f32.mrf.mxu1  ;;  %12794 = vst [vmem:[#allocation139_spill] sm:$0xff] %v11081_v11 }
 0x545   : > { %v5278_v0 = vmul.f32 %v5214_v32, %v4973_v18  ;;  %v5359_v1 = vsel %vm5337_vm6, %v5280_v45, 0.0  ;;  %v5223_v18 = vld [vmem:[%s12580_s6 + $0x70] sm:$0xff] }
 0x546   : > { %5360 = vadd.xlane.f32.xlu1 %v5359_v1  ;;  %v8350_v20 = vpop.f32.mrf.mxu1 }
 0x547   : > { %v5283_v41 = vmul.f32 %v8350_v20, %v5219_v55  ;;  %v5353_v8 = vsel %vm5337_vm6, %v5278_v0, 0.0  ;;  %v5218_v20 = vld [vmem:[%s12580_s6 + $0x48] sm:$0xff]  ;;  %v11094_v26 = vpop.permute.xlu0 %6328 }
 0x548   : > { %5351 = vadd.xlane.f32.xlu0 %v5350_v52  ;;  %v4986_v36 = vpop.f32.mrf.mxu1  ;;  %v11087_v52 = vpop.permute.xlu1 %6322  ;;  %12796 = vst [vmem:[#allocation141_spill] sm:$0xff] %v11094_v26 }
 0x549   : > { %12795 = vst [vmem:[#allocation140_spill] sm:$0xff] %v11087_v52  ;;  %v5281_v32 = vmul.f32 %v5217_v17, %v4986_v36  ;;  %v5368_v45 = vsel %vm5337_vm6, %v5283_v41, 0.0  ;;  %v5221_v41 = vld [vmem:[%s12580_s6 + $0x60] sm:$0xff]  ;;  %v5224_v17 = vld [vmem:[%s12580_s6 + $0x78] sm:$0xff] }
 0x54a   : > { %5354 = vadd.xlane.f32.xlu1 %v5353_v8  ;;  %v8351_v1 = vpop.f32.mrf.mxu1 }
 0x54b   : > { %v5284_v14 = vmul.f32 %v8351_v1, %v5220_v46  ;;  %v5362_v24 = vsel %vm5337_vm6, %v5281_v32, 0.0  ;;  %v5222_v32 = vld [vmem:[%s12580_s6 + $0x68] sm:$0xff] }
 0x54c   : > { %5369 = vadd.xlane.f32.xlu0 %v5368_v45  ;;  %v4989_v12 = vpop.f32.mrf.mxu1  ;;  %v11103_v46 = vpop.permute.xlu1 %6326 }
 0x54d   : > { %v5282_v55 = vmul.f32 %v5218_v20, %v4989_v12  ;;  %v5371_v0 = vsel %vm5337_vm6, %v5284_v14, 0.0  ;;  %12797 = vst [vmem:[#allocation142_spill] sm:$0xff] %v11103_v46 }
 0x54e   : > { %5372 = vadd.xlane.f32.xlu1 %v5371_v0  ;;  %v8354_v8 = vpop.f32.mrf.mxu1  ;;  %v11113_v0 = vpop.permute.xlu0 %6332 }
 0x54f   : > { %v5287_v50 = vmul.f32 %v8354_v8, %v5223_v18  ;;  %v5365_v1 = vsel %vm5337_vm6, %v5282_v55, 0.0  ;;  %v5227_v18 = vld [vmem:[%s12580_s6 + $0x90] sm:$0xff]  ;;  %12798 = vst [vmem:[#allocation143_spill] sm:$0xff] %v11113_v0 }
 0x550   : > { %5363 = vadd.xlane.f32.xlu0 %v5362_v24  ;;  %v5002_v36 = vpop.f32.mrf.mxu1  ;;  %v11116_v34 = vpop.permute.xlu1 %6330 }
 0x551   : > { %v5285_v24 = vmul.f32 %v5221_v41, %v5002_v36  ;;  %v5380_v45 = vsel %vm5337_vm6, %v5287_v50, 0.0  ;;  %12799 = vst [vmem:[#allocation144_spill] sm:$0xff] %v11116_v34  ;;  %v5225_v41 = vld [vmem:[%s12580_s6 + $0x80] sm:$0xff]  ;;  %v12831_v34 = vld [vmem:[#allocation4_spill] sm:$0xff] }
 0x552   : > { %5366 = vadd.xlane.f32.xlu1 %v5365_v1  ;;  %v8355_v20 = vpop.f32.mrf.mxu1 }
 0x553   : > { %v5288_v14 = vmul.f32 %v8355_v20, %v5224_v17  ;;  %v5374_v36 = vsel %vm5337_vm6, %v5285_v24, 0.0  ;;  %v5228_v17 = vld [vmem:[%s12580_s6 + $0x98] sm:$0xff] }
 0x554   : > { %5381 = vadd.xlane.f32.xlu0 %v5380_v45  ;;  %v5005_v12 = vpop.f32.mrf.mxu1  ;;  %v11129_v45 = vpop.permute.xlu0 %6336 }
 0x555   : > { %v5286_v8 = vmul.f32 %v5222_v32, %v5005_v12  ;;  %v5383_v55 = vsel %vm5337_vm6, %v5288_v14, 0.0  ;;  %v5226_v14 = vld [vmem:[%s12580_s6 + $0x88] sm:$0xff]  ;;  %12800 = vst [vmem:[#allocation145_spill] sm:$0xff] %v11129_v45  ;;  %v5726_v45 = vsub.f32 0.0, %v12831_v34 }
 0x556   : > { %5384 = vadd.xlane.f32.xlu1 %v5383_v55  ;;  %v8358_v1 = vpop.f32.mrf.mxu1 }
 0x557   : > { %v5291_v15 = vmul.f32 %v8358_v1, %v5227_v18  ;;  %v5377_v20 = vsel %vm5337_vm6, %v5286_v8, 0.0  ;;  %v5231_v1 = vld [vmem:[%s12580_s6 + $0xb0] sm:$0xff] }
 0x558   : > { %5375 = vadd.xlane.f32.xlu0 %v5374_v36  ;;  %v5018_v50 = vpop.f32.mrf.mxu1  ;;  %v11135_v36 = vpop.permute.xlu1 %6334 }
 0x559   : > { %v5289_v24 = vmul.f32 %v5225_v41, %v5018_v50  ;;  %v5392_v18 = vsel %vm5337_vm6, %v5291_v15, 0.0  ;;  %12801 = vst [vmem:[#allocation146_spill] sm:$0xff] %v11135_v36  ;;  %v5229_v15 = vld [vmem:[%s12580_s6 + $0xa0] sm:$0xff]  ;;  %v5232_v41 = vld [vmem:[%s12580_s6 + $0xb8] sm:$0xff] }
 0x55a   : > { %5378 = vadd.xlane.f32.xlu1 %v5377_v20  ;;  %v8359_v32 = vpop.f32.mrf.mxu1 }
 0x55b   : > { %v5292_v12 = vmul.f32 %v8359_v32, %v5228_v17  ;;  %v5386_v7 = vsel %vm5337_vm6, %v5289_v24, 0.0  ;;  %v11145_v17 = vpop.permute.xlu0 %6358 }
 0x55c   : > { %5393 = vadd.xlane.f32.xlu0 %v5392_v18  ;;  %v5021_v55 = vpop.f32.mrf.mxu1  ;;  %12802 = vst [vmem:[#allocation147_spill] sm:$0xff] %v11145_v17 }
 0x55d   : > { %v5290_v8 = vmul.f32 %v5226_v14, %v5021_v55  ;;  %v5395_v20 = vsel %vm5337_vm6, %v5292_v12, 0.0 }
 0x55e   : > { %5396 = vadd.xlane.f32.xlu1 %v5395_v20  ;;  %v8362_v59 = vpop.f32.mrf.mxu1 }
 0x55f   : > { %v5295_v39 = vmul.f32 %v8362_v59, %v5231_v1  ;;  %v5389_v32 = vsel %vm5337_vm6, %v5290_v8, 0.0  ;;  %v5230_v59 = vld [vmem:[%s12580_s6 + $0xa8] sm:$0xff]  ;;  %v5235_v1 = vld [vmem:[%s12580_s6 + $0xd0] sm:$0xff]  ;;  %v11158_v17 = vpop.permute.xlu0 %6354 }
 0x560   : > { %5387 = vadd.xlane.f32.xlu0 %v5386_v7  ;;  %v5034_v50 = vpop.f32.mrf.mxu1  ;;  %v11151_v7 = vpop.permute.xlu1 %6338  ;;  %12804 = vst [vmem:[#allocation149_spill] sm:$0xff] %v11158_v17 }
 0x561   : > { %12803 = vst [vmem:[#allocation148_spill] sm:$0xff] %v11151_v7  ;;  %v5293_v24 = vmul.f32 %v5229_v15, %v5034_v50  ;;  %v5404_v18 = vsel %vm5337_vm6, %v5295_v39, 0.0  ;;  %v5233_v39 = vld [vmem:[%s12580_s6 + $0xc0] sm:$0xff]  ;;  %v5236_v15 = vld [vmem:[%s12580_s6 + $0xd8] sm:$0xff] }
 0x562   : > { %5390 = vadd.xlane.f32.xlu1 %v5389_v32  ;;  %v8363_v14 = vpop.f32.mrf.mxu1 }
 0x563   : > { %v5296_v12 = vmul.f32 %v8363_v14, %v5232_v41  ;;  %v5398_v7 = vsel %vm5337_vm6, %v5293_v24, 0.0  ;;  %v5234_v24 = vld [vmem:[%s12580_s6 + $0xc8] sm:$0xff] }
 0x564   : > { %5405 = vadd.xlane.f32.xlu0 %v5404_v18  ;;  %v5037_v55 = vpop.f32.mrf.mxu1  ;;  %v11167_v41 = vpop.permute.xlu1 %6360 }
 0x565   : > { %v5294_v20 = vmul.f32 %v5230_v59, %v5037_v55  ;;  %v5407_v8 = vsel %vm5337_vm6, %v5296_v12, 0.0  ;;  %12805 = vst [vmem:[#allocation150_spill] sm:$0xff] %v11167_v41 }
 0x566   : > { %5408 = vadd.xlane.f32.xlu1 %v5407_v8  ;;  %v8366_v32 = vpop.f32.mrf.mxu1  ;;  %v11177_v8 = vpop.permute.xlu0 %6350 }
 0x567   : > { %v5299_v42 = vmul.f32 %v8366_v32, %v5235_v1  ;;  %v5401_v14 = vsel %vm5337_vm6, %v5294_v20, 0.0  ;;  %v5239_v1 = vld [vmem:[%s12580_s6 + $0xf0] sm:$0xff]  ;;  %12806 = vst [vmem:[#allocation151_spill] sm:$0xff] %v11177_v8 }
 0x568   : > { %5399 = vadd.xlane.f32.xlu0 %v5398_v7  ;;  %v5050_v50 = vpop.f32.mrf.mxu1  ;;  %v11180_v17 = vpop.permute.xlu1 %6356 }
 0x569   : > { %v5297_v7 = vmul.f32 %v5233_v39, %v5050_v50  ;;  %v5416_v18 = vsel %vm5337_vm6, %v5299_v42, 0.0  ;;  %12807 = vst [vmem:[#allocation152_spill] sm:$0xff] %v11180_v17  ;;  %v5237_v39 = vld [vmem:[%s12580_s6 + $0xe0] sm:$0xff] }
 0x56a   : > { %5402 = vadd.xlane.f32.xlu1 %v5401_v14  ;;  %v8367_v59 = vpop.f32.mrf.mxu1 }
 0x56b   : > { %v5300_v12 = vmul.f32 %v8367_v59, %v5236_v15  ;;  %v5410_v50 = vsel %vm5337_vm6, %v5297_v7, 0.0  ;;  %v5240_v15 = vld [vmem:[%s12580_s6 + $0xf8] sm:$0xff] }
 0x56c   : > { %5417 = vadd.xlane.f32.xlu0 %v5416_v18  ;;  %v5053_v55 = vpop.f32.mrf.mxu1  ;;  %v11193_v18 = vpop.permute.xlu0 %6346 }
 0x56d   : > { %v5298_v32 = vmul.f32 %v5234_v24, %v5053_v55  ;;  %v5419_v20 = vsel %vm5337_vm6, %v5300_v12, 0.0  ;;  %v5238_v12 = vld [vmem:[%s12580_s6 + $0xe8] sm:$0xff]  ;;  %12808 = vst [vmem:[#allocation153_spill] sm:$0xff] %v11193_v18 }
 0x56e   : > { %5420 = vadd.xlane.f32.xlu1 %v5419_v20  ;;  %v8370_v14 = vpop.f32.mrf.mxu1 }
 0x56f   : > { %v5303_v41 = vmul.f32 %v8370_v14, %v5239_v1  ;;  %v5413_v59 = vsel %vm5337_vm6, %v5298_v32, 0.0  ;;  %v5243_v14 = vld [vmem:[%s12580_s6 + $0x110] sm:$0xff] }
 0x570   : > { %5411 = vadd.xlane.f32.xlu0 %v5410_v50  ;;  %v5066_v42 = vpop.f32.mrf.mxu1  ;;  %v11199_v50 = vpop.permute.xlu1 %6352 }
 0x571   : > { %v5301_v7 = vmul.f32 %v5237_v39, %v5066_v42  ;;  %v5428_v1 = vsel %vm5337_vm6, %v5303_v41, 0.0  ;;  %12809 = vst [vmem:[#allocation154_spill] sm:$0xff] %v11199_v50  ;;  %v5241_v41 = vld [vmem:[%s12580_s6 + $0x100] sm:$0xff]  ;;  %v5244_v39 = vld [vmem:[%s12580_s6 + $0x118] sm:$0xff] }
 0x572   : > { %5414 = vadd.xlane.f32.xlu1 %v5413_v59  ;;  %v8371_v24 = vpop.f32.mrf.mxu1 }
 0x573   : > { %v5304_v55 = vmul.f32 %v8371_v24, %v5240_v15  ;;  %v5422_v18 = vsel %vm5337_vm6, %v5301_v7, 0.0  ;;  %v11209_v15 = vpop.permute.xlu0 %6342 }
 0x574   : > { %5429 = vadd.xlane.f32.xlu0 %v5428_v1  ;;  %v5069_v20 = vpop.f32.mrf.mxu1  ;;  %12810 = vst [vmem:[#allocation155_spill] sm:$0xff] %v11209_v15 }
 0x575   : > { %v5302_v32 = vmul.f32 %v5238_v12, %v5069_v20  ;;  %v5431_v59 = vsel %vm5337_vm6, %v5304_v55, 0.0 }
 0x576   : > { %5432 = vadd.xlane.f32.xlu1 %v5431_v59  ;;  %v8374_v17 = vpop.f32.mrf.mxu1 }
 0x577   : > { %v5307_v8 = vmul.f32 %v8374_v17, %v5243_v14  ;;  %v5425_v24 = vsel %vm5337_vm6, %v5302_v32, 0.0  ;;  %v5242_v17 = vld [vmem:[%s12580_s6 + $0x108] sm:$0xff]  ;;  %v5247_v14 = vld [vmem:[%s12580_s6 + $0x130] sm:$0xff]  ;;  %v11222_v50 = vpop.permute.xlu0 %6340 }
 0x578   : > { %5423 = vadd.xlane.f32.xlu0 %v5422_v18  ;;  %v5082_v42 = vpop.f32.mrf.mxu1  ;;  %v11215_v18 = vpop.permute.xlu1 %6348  ;;  %12812 = vst [vmem:[#allocation157_spill] sm:$0xff] %v11222_v50 }
 0x579   : > { %12811 = vst [vmem:[#allocation156_spill] sm:$0xff] %v11215_v18  ;;  %v5305_v7 = vmul.f32 %v5241_v41, %v5082_v42  ;;  %v5440_v1 = vsel %vm5337_vm6, %v5307_v8, 0.0  ;;  %v5245_v8 = vld [vmem:[%s12580_s6 + $0x120] sm:$0xff]  ;;  %v5248_v41 = vld [vmem:[%s12580_s6 + $0x138] sm:$0xff] }
 0x57a   : > { %5426 = vadd.xlane.f32.xlu1 %v5425_v24  ;;  %v8375_v12 = vpop.f32.mrf.mxu1 }
 0x57b   : > { %v5308_v55 = vmul.f32 %v8375_v12, %v5244_v39  ;;  %v5434_v18 = vsel %vm5337_vm6, %v5305_v7, 0.0  ;;  %v5246_v7 = vld [vmem:[%s12580_s6 + $0x128] sm:$0xff] }
 0x57c   : > { %5441 = vadd.xlane.f32.xlu0 %v5440_v1  ;;  %v5085_v20 = vpop.f32.mrf.mxu1  ;;  %v11231_v39 = vpop.permute.xlu1 %6344 }
 0x57d   : > { %v5306_v59 = vmul.f32 %v5242_v17, %v5085_v20  ;;  %v5443_v32 = vsel %vm5337_vm6, %v5308_v55, 0.0  ;;  %12813 = vst [vmem:[#allocation158_spill] sm:$0xff] %v11231_v39 }
 0x57e   : > { %5444 = vadd.xlane.f32.xlu1 %v5443_v32  ;;  %v8378_v24 = vpop.f32.mrf.mxu1  ;;  %v11241_v32 = vpop.permute.xlu0 %6424 }
 0x57f   : > { %v5311_v15 = vmul.f32 %v8378_v24, %v5247_v14  ;;  %v5437_v12 = vsel %vm5337_vm6, %v5306_v59, 0.0  ;;  %v5251_v14 = vld [vmem:[%s12580_s6 + $0x150] sm:$0xff]  ;;  %12814 = vst [vmem:[#allocation159_spill] sm:$0xff] %v11241_v32 }
 0x580   : > { %5435 = vadd.xlane.f32.xlu0 %v5434_v18  ;;  %v5098_v42 = vpop.f32.mrf.mxu1  ;;  %v11244_v50 = vpop.permute.xlu1 %6422 }
 0x581   : > { %v5309_v18 = vmul.f32 %v5245_v8, %v5098_v42  ;;  %v5452_v1 = vsel %vm5337_vm6, %v5311_v15, 0.0  ;;  %12815 = vst [vmem:[#allocation160_spill] sm:$0xff] %v11244_v50  ;;  %v5249_v8 = vld [vmem:[%s12580_s6 + $0x140] sm:$0xff] }
 0x582   : > { %5438 = vadd.xlane.f32.xlu1 %v5437_v12  ;;  %v8379_v17 = vpop.f32.mrf.mxu1 }
 0x583   : > { %v5312_v55 = vmul.f32 %v8379_v17, %v5248_v41  ;;  %v5446_v42 = vsel %vm5337_vm6, %v5309_v18, 0.0  ;;  %v5252_v41 = vld [vmem:[%s12580_s6 + $0x158] sm:$0xff] }
 0x584   : > { %5453 = vadd.xlane.f32.xlu0 %v5452_v1  ;;  %v5101_v20 = vpop.f32.mrf.mxu1  ;;  %v11257_v1 = vpop.permute.xlu0 %6392 }
 0x585   : > { %v5310_v24 = vmul.f32 %v5246_v7, %v5101_v20  ;;  %v5455_v59 = vsel %vm5337_vm6, %v5312_v55, 0.0  ;;  %v5250_v55 = vld [vmem:[%s12580_s6 + $0x148] sm:$0xff]  ;;  %12816 = vst [vmem:[#allocation161_spill] sm:$0xff] %v11257_v1 }
 0x586   : > { %5456 = vadd.xlane.f32.xlu1 %v5455_v59  ;;  %v8382_v12 = vpop.f32.mrf.mxu1 }
 0x587   : > { %v5315_v39 = vmul.f32 %v8382_v12, %v5251_v14  ;;  %v5449_v17 = vsel %vm5337_vm6, %v5310_v24, 0.0  ;;  %v5255_v12 = vld [vmem:[%s12580_s6 + $0x170] sm:$0xff] }
 0x588   : > { %5447 = vadd.xlane.f32.xlu0 %v5446_v42  ;;  %v5114_v15 = vpop.f32.mrf.mxu1  ;;  %v11263_v42 = vpop.permute.xlu1 %6390 }
 0x589   : > { %v5313_v18 = vmul.f32 %v5249_v8, %v5114_v15  ;;  %v5464_v14 = vsel %vm5337_vm6, %v5315_v39, 0.0  ;;  %12817 = vst [vmem:[#allocation162_spill] sm:$0xff] %v11263_v42  ;;  %v5253_v39 = vld [vmem:[%s12580_s6 + $0x160] sm:$0xff]  ;;  %v5256_v8 = vld [vmem:[%s12580_s6 + $0x178] sm:$0xff] }
 0x58a   : > { %5450 = vadd.xlane.f32.xlu1 %v5449_v17  ;;  %v8383_v7 = vpop.f32.mrf.mxu1 }
 0x58b   : > { %v5316_v20 = vmul.f32 %v8383_v7, %v5252_v41  ;;  %v5458_v1 = vsel %vm5337_vm6, %v5313_v18, 0.0  ;;  %v11273_v41 = vpop.permute.xlu0 %6420 }
 0x58c   : > { %5465 = vadd.xlane.f32.xlu0 %v5464_v14  ;;  %v5117_v59 = vpop.f32.mrf.mxu1  ;;  %12818 = vst [vmem:[#allocation163_spill] sm:$0xff] %v11273_v41 }
 0x58d   : > { %v5314_v24 = vmul.f32 %v5250_v55, %v5117_v59  ;;  %v5467_v17 = vsel %vm5337_vm6, %v5316_v20, 0.0 }
 0x58e   : > { %5468 = vadd.xlane.f32.xlu1 %v5467_v17  ;;  %v8386_v32 = vpop.f32.mrf.mxu1 }
 0x58f   : > { %v5319_v50 = vmul.f32 %v8386_v32, %v5255_v12  ;;  %v5461_v7 = vsel %vm5337_vm6, %v5314_v24, 0.0  ;;  %v5254_v32 = vld [vmem:[%s12580_s6 + $0x168] sm:$0xff]  ;;  %v5259_v12 = vld [vmem:[%s12580_s6 + $0x190] sm:$0xff]  ;;  %v11286_v41 = vpop.permute.xlu0 %6388 }
 0x590   : > { %5459 = vadd.xlane.f32.xlu0 %v5458_v1  ;;  %v5130_v15 = vpop.f32.mrf.mxu1  ;;  %v11279_v1 = vpop.permute.xlu1 %6418  ;;  %12820 = vst [vmem:[#allocation165_spill] sm:$0xff] %v11286_v41 }
 0x591   : > { %12819 = vst [vmem:[#allocation164_spill] sm:$0xff] %v11279_v1  ;;  %v5317_v18 = vmul.f32 %v5253_v39, %v5130_v15  ;;  %v5476_v14 = vsel %vm5337_vm6, %v5319_v50, 0.0  ;;  %v5257_v50 = vld [vmem:[%s12580_s6 + $0x180] sm:$0xff]  ;;  %v5260_v39 = vld [vmem:[%s12580_s6 + $0x198] sm:$0xff] }
 0x592   : > { %5462 = vadd.xlane.f32.xlu1 %v5461_v7  ;;  %v8387_v55 = vpop.f32.mrf.mxu1 }
 0x593   : > { %v5320_v20 = vmul.f32 %v8387_v55, %v5256_v8  ;;  %v5470_v1 = vsel %vm5337_vm6, %v5317_v18, 0.0  ;;  %v5258_v18 = vld [vmem:[%s12580_s6 + $0x188] sm:$0xff] }
 0x594   : > { %5477 = vadd.xlane.f32.xlu0 %v5476_v14  ;;  %v5133_v59 = vpop.f32.mrf.mxu1  ;;  %v11295_v8 = vpop.permute.xlu1 %6386 }
 0x595   : > { %v5318_v17 = vmul.f32 %v5254_v32, %v5133_v59  ;;  %v5479_v24 = vsel %vm5337_vm6, %v5320_v20, 0.0  ;;  %12821 = vst [vmem:[#allocation166_spill] sm:$0xff] %v11295_v8 }
 0x596   : > { %5480 = vadd.xlane.f32.xlu1 %v5479_v24  ;;  %v8390_v7 = vpop.f32.mrf.mxu1  ;;  %v11305_v24 = vpop.permute.xlu0 %6416 }
 0x597   : > { %v5323_v42 = vmul.f32 %v8390_v7, %v5259_v12  ;;  %v5473_v55 = vsel %vm5337_vm6, %v5318_v17, 0.0  ;;  %v5263_v12 = vld [vmem:[%s12580_s6 + $0x1b0] sm:$0xff]  ;;  %12822 = vst [vmem:[#allocation167_spill] sm:$0xff] %v11305_v24 }
 0x598   : > { %5471 = vadd.xlane.f32.xlu0 %v5470_v1  ;;  %v5146_v15 = vpop.f32.mrf.mxu1  ;;  %v11308_v41 = vpop.permute.xlu1 %6414 }
 0x599   : > { %v5321_v1 = vmul.f32 %v5257_v50, %v5146_v15  ;;  %v5488_v14 = vsel %vm5337_vm6, %v5323_v42, 0.0  ;;  %12823 = vst [vmem:[#allocation168_spill] sm:$0xff] %v11308_v41  ;;  %v5261_v50 = vld [vmem:[%s12580_s6 + $0x1a0] sm:$0xff] }
 0x59a   : > { %5474 = vadd.xlane.f32.xlu1 %v5473_v55  ;;  %v8391_v32 = vpop.f32.mrf.mxu1 }
 0x59b   : > { %v5324_v20 = vmul.f32 %v8391_v32, %v5260_v39  ;;  %v5482_v15 = vsel %vm5337_vm6, %v5321_v1, 0.0  ;;  %v5264_v39 = vld [vmem:[%s12580_s6 + $0x1b8] sm:$0xff] }
 0x59c   : > { %5489 = vadd.xlane.f32.xlu0 %v5488_v14  ;;  %v5149_v59 = vpop.f32.mrf.mxu1  ;;  %v11321_v14 = vpop.permute.xlu0 %6384 }
 0x59d   : > { %v5322_v7 = vmul.f32 %v5258_v18, %v5149_v59  ;;  %v5491_v17 = vsel %vm5337_vm6, %v5324_v20, 0.0  ;;  %v5262_v20 = vld [vmem:[%s12580_s6 + $0x1a8] sm:$0xff]  ;;  %12824 = vst [vmem:[#allocation169_spill] sm:$0xff] %v11321_v14 }
 0x59e   : > { %5492 = vadd.xlane.f32.xlu1 %v5491_v17  ;;  %v8394_v55 = vpop.f32.mrf.mxu1  ;;  %v11324_v17 = vpop.f32.mrf.mxu0 }
 0x59f   : > { %v5327_v8 = vmul.f32 %v8394_v55, %v5263_v12  ;;  %v5485_v32 = vsel %vm5337_vm6, %v5322_v7, 0.0  ;;  %v5267_v7 = vld [vmem:[%s12580_s6 + $0x1d0] sm:$0xff] }
 0x5a0   : > { %5483 = vadd.xlane.f32.xlu0 %v5482_v15  ;;  %v5162_v42 = vpop.f32.mrf.mxu1  ;;  %v11329_v15 = vpop.permute.xlu1 %6382 }
 0x5a1   : > { %v5325_v1 = vmul.f32 %v5261_v50, %v5162_v42  ;;  %v5500_v12 = vsel %vm5337_vm6, %v5327_v8, 0.0  ;;  %12825 = vst [vmem:[#allocation170_spill] sm:$0xff] %v11329_v15  ;;  %v11333_v50 = vpop.f32.mrf.mxu0 }
 0x5a2   : > { %5486 = vadd.xlane.f32.xlu1 %v5485_v32  ;;  %v8395_v18 = vpop.f32.mrf.mxu1 }
 0x5a3   : > { %v5328_v59 = vmul.f32 %v8395_v18, %v5264_v39  ;;  %v5494_v42 = vsel %vm5337_vm6, %v5325_v1, 0.0  ;;  %v5265_v39 = vld [vmem:[%s12580_s6 + $0x1c0] sm:$0xff]  ;;  %v5268_v18 = vld [vmem:[%s12580_s6 + $0x1d8] sm:$0xff]  ;;  %v11353_v2 = vpop.f32.mrf.mxu0 }
 0x5a4   : > { %5501 = vadd.xlane.f32.xlu0 %v5500_v12  ;;  %v5165_v55 = vpop.f32.mrf.mxu1  ;;  %v5266_v12 = vld [vmem:[%s12580_s6 + $0x1c8] sm:$0xff] }
 0x5a5   : > { %v5326_v32 = vmul.f32 %v5262_v20, %v5165_v55  ;;  %v5503_v41 = vsel %vm5337_vm6, %v5328_v59, 0.0  ;;  %v5724_v20 = vsub.f32 0.0, %v9576_v21  ;;  %v11342_v59 = vpop.permute.xlu0 %6412  ;;  %v11349_v55 = vpop.permute.xlu1 %6410  ;;  %v5725_v21 = vsub.f32 0.0, %v9581_v28 }
 0x5a6   : > { %5504 = vadd.xlane.f32.xlu1 %v5503_v41  ;;  %v8398_v24 = vpop.f32.mrf.mxu1  ;;  %12826 = vst [vmem:[#allocation171_spill] sm:$0xff] %v11342_v59  ;;  %12827 = vst [vmem:[#allocation172_spill] sm:$0xff] %v11349_v55  ;;  %v12828_v55 = vld [vmem:[#allocation3_spill] sm:$0xff]  ;;  %v11365_v9 = vpop.f32.mrf.mxu0 }
 0x5a7   : > { %v5331_v14 = vmul.f32 %v8398_v24, %v5267_v7  ;;  %v5497_v41 = vsel %vm5337_vm6, %v5326_v32, 0.0  ;;  %v5722_v24 = vsub.f32 0.0, %v9579_v27  ;;  %v5271_v27 = vld [vmem:[%s12580_s6 + $0x1f0] sm:$0xff]  ;;  %v5792_v30 = vmul.f32 1.442695, %v5725_v21 }
 0x5a8   : > { %5495 = vadd.xlane.f32.xlu0 %v5494_v42  ;;  %v5178_v8 = vpop.f32.mrf.mxu1 }
 0x5a9   : > { %v5329_v7 = vmul.f32 %v5265_v39, %v5178_v8  ;;  %v5512_v15 = vsel %vm5337_vm6, %v5331_v14, 0.0  ;;  %v5786_v0 = vmul.f32 1.442695, %v5722_v24  ;;  %v5723_v8 = vsub.f32 0.0, %v12828_v55  ;;  %v12829_v14 = vld [vmem:[#allocation2_spill] sm:$0xff]  ;;  %v11361_v28 = vpop.permute.xlu0 %6380 }
 0x5aa   : > { %5498 = vadd.xlane.f32.xlu1 %v5497_v41  ;;  %v8399_v1 = vpop.f32.mrf.mxu1  ;;  %v5790_v41 = vmul.f32 1.442695, %v5724_v20  ;;  %12830 = vst [vmem:[#allocation3_spill] sm:$0xff] %v11361_v28  ;;  %v5269_v24 = vld [vmem:[%s12580_s6 + $0x1e0] sm:$0xff] }
 0x5ab   : > { %v5332_v42 = vmul.f32 %v8399_v1, %v5268_v18  ;;  %v5728_v18 = vsub.f32 0.0, %v12829_v14  ;;  %v5788_v21 = vmul.f32 1.442695, %v5723_v8  ;;  %v5270_v14 = vld [vmem:[%s12580_s6 + $0x1e8] sm:$0xff] }
 0x5ac   : > { %5513 = vadd.xlane.f32.xlu0 %v5512_v15  ;;  %v5181_v32 = vpop.f32.mrf.mxu1  ;;  %v5506_v15 = vsel %vm5337_vm6, %v5329_v7, 0.0  ;;  %8509 = vpow2.f32 %v5790_v41  ;;  %v12835_v41 = vld [vmem:[#allocation6_spill] sm:$0xff] }
 0x5ad   : > { %v5330_v59 = vmul.f32 %v5266_v12, %v5181_v32  ;;  %v5515_v54 = vsel %vm5337_vm6, %v5332_v42, 0.0  ;;  %v12832_v12 = vld [vmem:[#allocation5_spill] sm:$0xff]  ;;  %v11374_v42 = vpop.permute.xlu1 %6378  ;;  %8511 = vpow2.f32 %v5786_v0  ;;  %v12834_v32 = vld [vmem:[#allocation7_spill] sm:$0xff]  ;;  %v5732_v28 = vsub.f32 0.0, %v12835_v41  ;;  %v11387_v38 = vpop.permute.xlu0 %6408 }
 0x5ae   : > { %5516 = vadd.xlane.f32.xlu1 %v5515_v54  ;;  %v8402_v39 = vpop.f32.mrf.mxu1  ;;  %v5272_v54 = vld [vmem:[%s12580_s6 + $0x1f8] sm:$0xff]  ;;  %v5729_v55 = vsub.f32 0.0, %v12832_v12  ;;  %12833 = vst [vmem:[#allocation2_spill] sm:$0xff] %v11374_v42  ;;  %8513 = vpow2.f32 %v5792_v30  ;;  %v5794_v42 = vmul.f32 1.442695, %v5726_v45  ;;  %12838 = vst [vmem:[#allocation4_spill] sm:$0xff] %v11387_v38 }
 0x5af   : > { %v5335_v1 = vmul.f32 %v8402_v39, %v5271_v27  ;;  %v5509_v7 = vsel %vm5337_vm6, %v5330_v59, 0.0  ;;  %v5727_v27 = vsub.f32 0.0, %v12834_v32  ;;  %v12836_v59 = vld [vmem:[#allocation8_spill] sm:$0xff]  ;;  %8515 = vpow2.f32 %v5788_v21  ;;  %v12840_v45 = vld [vmem:[#allocation10_spill] sm:$0xff] }
 0x5b0   : > { %5507 = vadd.xlane.f32.xlu0 %v5506_v15  ;;  %v5194_v20 = vpop.f32.mrf.mxu1  ;;  %v5798_v15 = vmul.f32 1.442695, %v5728_v18  ;;  %v5730_v56 = vsub.f32 0.0, %v12836_v59  ;;  %v5800_v8 = vmul.f32 1.442695, %v5729_v55  ;;  %v12842_v59 = vld [vmem:[#allocation13_spill] sm:$0xff] }
 0x5b1   : > { %v5524_v34 = vsel %vm5337_vm6, %v5335_v1, 0.0  ;;  %v5333_v12 = vmul.f32 %v5269_v24, %v5194_v20  ;;  %v11384_v1 = vpop.f32.mrf.mxu0  ;;  %v5796_v41 = vmul.f32 1.442695, %v5727_v27  ;;  %v12839_v20 = vld [vmem:[#allocation11_spill] sm:$0xff]  ;;  %v5806_v30 = vmul.f32 1.442695, %v5732_v28 }
 0x5b2   : > { %5510 = vadd.xlane.f32.xlu1 %v5509_v7  ;;  %v8403_v39 = vpop.f32.mrf.mxu1  ;;  %v12837_v7 = vld [vmem:[#allocation9_spill] sm:$0xff]  ;;  %v5731_v24 = vsub.f32 0.0, %v12839_v20  ;;  %8517 = vpow2.f32 %v5798_v15  ;;  %v12843_v21 = vld [vmem:[#allocation12_spill] sm:$0xff] }
 0x5b3   : > { %v5336_v10 = vmul.f32 %v8403_v39, %v5272_v54  ;;  %v5733_v32 = vsub.f32 0.0, %v12837_v7  ;;  %v5736_v54 = vsub.f32 0.0, %v12840_v45  ;;  %v11392_v39 = vpop.permute.xlu1 %6406  ;;  %v5518_v55 = vsel %vm5337_vm6, %v5333_v12, 0.0  ;;  %v11396_v38 = vpop.f32.mrf.mxu0  ;;  %v12847_v45 = vld [vmem:[#allocation16_spill] sm:$0xff] }
 0x5b4   : > { %5525 = vadd.xlane.f32.xlu0 %v5524_v34  ;;  %v5197_v0 = vpop.f32.mrf.mxu1  ;;  %12841 = vst [vmem:[#allocation5_spill] sm:$0xff] %v11392_v39  ;;  %8519 = vpow2.f32 %v5794_v42  ;;  %v5802_v34 = vmul.f32 1.442695, %v5730_v56  ;;  %v5734_v7 = vsub.f32 0.0, %v12842_v59  ;;  %v5737_v27 = vsub.f32 0.0, %v12843_v21  ;;  %v12845_v42 = vld [vmem:[#allocation14_spill] sm:$0xff] }
 0x5b5   : > { %v5527_v36 = vsel %vm5337_vm6, %v5336_v10, 0.0  ;;  %v5334_v18 = vmul.f32 %v5270_v14, %v5197_v0  ;;  %8521 = vpow2.f32 %v5800_v8  ;;  %v5808_v10 = vmul.f32 1.442695, %v5733_v32  ;;  %v12844_v14 = vld [vmem:[#allocation15_spill] sm:$0xff]  ;;  %v11402_v0 = vpop.permute.xlu0 %6376  ;;  %v11405_v32 = vpop.f32.mrf.mxu0 }
 0x5b6   : > { %5528 = vadd.xlane.f32.xlu1 %v5527_v36  ;;  %8523 = vpow2.f32 %v5796_v41  ;;  %v5804_v28 = vmul.f32 1.442695, %v5731_v24  ;;  %v5735_v15 = vsub.f32 0.0, %v12844_v14  ;;  %v5814_v12 = vmul.f32 1.442695, %v5736_v54  ;;  %12846 = vst [vmem:[#allocation7_spill] sm:$0xff] %v11402_v0 }
 0x5b7   : > { %v5521_v36 = vsel %vm5337_vm6, %v5334_v18, 0.0  ;;  %8525 = vpow2.f32 %v5806_v30  ;;  %v5740_v56 = vsub.f32 0.0, %v12845_v42  ;;  %v5810_v20 = vmul.f32 1.442695, %v5734_v7  ;;  %v12848_v18 = vld [vmem:[#allocation17_spill] sm:$0xff]  ;;  %v11408_v24 = vpop.permute.xlu1 %6374  ;;  %v12850_v54 = vld [vmem:[#allocation19_spill] sm:$0xff] }
 0x5b8   : > { %5519 = vadd.xlane.f32.xlu0 %v5518_v55  ;;  %8527 = vpow2.f32 %v5802_v34  ;;  %v5738_v8 = vsub.f32 0.0, %v12847_v45  ;;  %v5816_v55 = vmul.f32 1.442695, %v5737_v27  ;;  %v5741_v41 = vsub.f32 0.0, %v12848_v18  ;;  %12849 = vst [vmem:[#allocation6_spill] sm:$0xff] %v11408_v24  ;;  %v12851_v7 = vld [vmem:[#allocation18_spill] sm:$0xff]  ;;  %v11418_v27 = vpop.f32.mrf.mxu0 }
 0x5b9   : > { %8529 = vpow2.f32 %v5808_v10  ;;  %v11410_v59 = vpop.eup %8509  ;;  %v5812_v30 = vmul.f32 1.442695, %v5735_v15  ;;  %v5739_v21 = vsub.f32 0.0, %v12850_v54  ;;  %v5822_v34 = vmul.f32 1.442695, %v5740_v56  ;;  %v11416_v42 = vpop.permute.xlu0 %6404  ;;  %v12856_v0 = vld [vmem:[#allocation23_spill] sm:$0xff] }
 0x5ba   : > { %5522 = vadd.xlane.f32.xlu1 %v5521_v36  ;;  %8531 = vpow2.f32 %v5804_v28  ;;  %v11413_v36 = vpop.eup %8511  ;;  %v5744_v14 = vsub.f32 0.0, %v12851_v7  ;;  %12852 = vst [vmem:[#allocation8_spill] sm:$0xff] %v11416_v42  ;;  %v5818_v10 = vmul.f32 1.442695, %v5738_v8  ;;  %v5824_v18 = vmul.f32 1.442695, %v5741_v41 }
 0x5bb   : > { %8533 = vpow2.f32 %v5814_v12  ;;  %v11420_v45 = vpop.eup %8513  ;;  %v12853_v28 = vld [vmem:[#allocation21_spill] sm:$0xff]  ;;  %v11423_v39 = vpop.permute.xlu1 %6402  ;;  %v5820_v54 = vmul.f32 1.442695, %v5739_v21  ;;  %v12855_v7 = vld [vmem:[#allocation20_spill] sm:$0xff]  ;;  %v5743_v24 = vsub.f32 0.0, %v12856_v0  ;;  %v12857_v21 = vld [vmem:[#allocation22_spill] sm:$0xff] }
 0x5bc   : > { %8535 = vpow2.f32 %v5810_v20  ;;  %v5742_v15 = vsub.f32 0.0, %v12853_v28  ;;  %12854 = vst [vmem:[#allocation9_spill] sm:$0xff] %v11423_v39  ;;  %v11425_v12 = vpop.eup %8515  ;;  %v5830_v56 = vmul.f32 1.442695, %v5744_v14  ;;  %v5745_v42 = vsub.f32 0.0, %v12855_v7  ;;  %v12858_v0 = vld [vmem:[#allocation24_spill] sm:$0xff] }
 0x5bd   : > { %8537 = vpow2.f32 %v5816_v55  ;;  %v11431_v55 = vpop.f32.mrf.mxu0  ;;  %v5748_v39 = vsub.f32 0.0, %v12857_v21  ;;  %v5746_v26 = vsub.f32 0.0, %v12858_v0  ;;  %v5916_v60 = vsub.f32 1.0, %v11410_v59 }
 0x5be   : > { %8539 = vpow2.f32 %v5812_v30  ;;  %v5826_v30 = vmul.f32 1.442695, %v5742_v15  ;;  %v5914_v59 = vsub.f32 1.0, %v11413_v36 }
 0x5bf   : > { %8541 = vpow2.f32 %v5822_v34  ;;  %v11428_v8 = vpop.eup %8517  ;;  %v11443_v52 = vpop.f32.mrf.mxu0  ;;  %v5838_v21 = vmul.f32 1.442695, %v5748_v39 }
 0x5c0   : > { %8543 = vpow2.f32 %v5818_v10  ;;  %v5832_v10 = vmul.f32 1.442695, %v5745_v42  ;;  %v12860_v42 = vld [vmem:[#allocation26_spill] sm:$0xff] }
 0x5c1   : > { %v11433_v28 = vpop.eup %8519  ;;  %8545 = vpow2.f32 %v5824_v18  ;;  %v11458_v44 = vpop.f32.mrf.mxu0 }
 0x5c2   : > { %v11436_v34 = vpop.eup %8521  ;;  %8547 = vpow2.f32 %v5820_v54  ;;  %v12859_v54 = vld [vmem:[#allocation25_spill] sm:$0xff] }
 0x5c3   : > { %v5346_v20 = vpop.xlane.xlu0 %5345  ;;  %v11438_v40 = vpop.eup %8523  ;;  %8549 = vpow2.f32 %v5830_v56  ;;  %v5747_v56 = vsub.f32 0.0, %v12860_v42 }
 0x5c4   : > { %v5532_v41 = vsub.f32 0.0, %v5346_v20  ;;  %v11441_v61 = vpop.eup %8525  ;;  %v5828_v20 = vmul.f32 1.442695, %v5743_v24  ;;  %v11469_v53 = vpop.f32.mrf.mxu0 }
 0x5c5   : > { %v5340_v11 = vpop.xlane.xlu1 %5339  ;;  %v11445_v15 = vpop.eup %8527 }
 0x5c6   : > { %v5598_v14 = vmul.f32 1.442695, %v5532_v41  ;;  %v5530_v7 = vsub.f32 0.0, %v5340_v11  ;;  %v5749_v41 = vsub.f32 0.0, %v12859_v54  ;;  %v11448_v49 = vpop.eup %8529  ;;  %v11479_v57 = vpop.f32.mrf.mxu0 }
 0x5c7   : > { %v11451_v24 = vpop.eup %8531 }
 0x5c8   : > { %8551 = vpow2.f32 %v5598_v14  ;;  %v5594_v18 = vmul.f32 1.442695, %v5530_v7  ;;  %v5834_v14 = vmul.f32 1.442695, %v5746_v26  ;;  %v11453_v7 = vpop.eup %8533  ;;  %v5840_v54 = vmul.f32 1.442695, %v5749_v41 }
 0x5c9   : > { %8553 = vpow2.f32 %v5826_v30  ;;  %v5349_v11 = vpop.xlane.xlu1 %5348  ;;  %v5343_v3 = vpop.xlane.xlu0 %5342 }
 0x5ca   : > { %8555 = vpow2.f32 %v5594_v18  ;;  %v5533_v0 = vsub.f32 0.0, %v5349_v11  ;;  %v5531_v46 = vsub.f32 0.0, %v5343_v3  ;;  %v11455_v13 = vpop.eup %8535  ;;  %v5836_v3 = vmul.f32 1.442695, %v5747_v56 }
 0x5cb   : > { %8557 = vpow2.f32 %v5832_v10  ;;  %v11460_v11 = vpop.eup %8537 }
 0x5cc   : > { %8559 = vpow2.f32 %v5828_v20  ;;  %v5600_v30 = vmul.f32 1.442695, %v5533_v0  ;;  %v5596_v39 = vmul.f32 1.442695, %v5531_v46  ;;  %v11462_v26 = vpop.eup %8539  ;;  %v12862_v0 = vld [vmem:[#allocation27_spill] sm:$0xff] }
 0x5cd   : > { %8561 = vpow2.f32 %v5838_v21  ;;  %v5358_v18 = vpop.xlane.xlu0 %5357  ;;  %v11464_v42 = vpop.eup %8541  ;;  %v5750_v62 = vsub.f32 0.0, %v12862_v0 }
 0x5ce   : > { %8563 = vpow2.f32 %v5600_v30  ;;  %v5536_v10 = vsub.f32 0.0, %v5358_v18  ;;  %v11466_v41 = vpop.eup %8543 }
 0x5cf   : > { %8565 = vpow2.f32 %v5834_v14  ;;  %v5361_v20 = vpop.xlane.xlu1 %5360  ;;  %v11471_v30 = vpop.eup %8545  ;;  %v5842_v63 = vmul.f32 1.442695, %v5750_v62 }
 0x5d0   : > { %8567 = vpow2.f32 %v5596_v39  ;;  %v5606_v46 = vmul.f32 1.442695, %v5536_v10  ;;  %v5537_v21 = vsub.f32 0.0, %v5361_v20  ;;  %v11473_v43 = vpop.eup %8547 }
 0x5d1   : > { %8569 = vpow2.f32 %v5840_v54  ;;  %v5352_v56 = vpop.xlane.xlu0 %5351  ;;  %v11475_v10 = vpop.eup %8549 }
 0x5d2   : > { %8571 = vpow2.f32 %v5836_v3  ;;  %v5608_v18 = vmul.f32 1.442695, %v5537_v21  ;;  %v5534_v14 = vsub.f32 0.0, %v5352_v56  ;;  %v12864_v56 = vld [vmem:[#allocation30_spill] sm:$0xff] }
 0x5d3   : > { %8573 = vpow2.f32 %v5606_v46  ;;  %v5355_v39 = vpop.xlane.xlu1 %5354  ;;  %v5751_v46 = vsub.f32 0.0, %v12864_v56  ;;  %v5756_v56 = vsub.f32 0.0, %v12865_v22 }
 0x5d4   : > { %8575 = vpow2.f32 %v5608_v18  ;;  %v5602_v20 = vmul.f32 1.442695, %v5534_v14  ;;  %v5535_v54 = vsub.f32 0.0, %v5355_v39 }
 0x5d5   : > { %v8552_v0 = vpop.eup %8551  ;;  %8577 = vpow2.f32 %v5846_v19  ;;  %v5370_v3 = vpop.xlane.xlu0 %5369  ;;  %v5854_v33 = vmul.f32 1.442695, %v5756_v56  ;;  %v5921_v56 = vsub.f32 1.0, %v11436_v34 }
 0x5d6   : > { %v11481_v21 = vpop.eup %8553  ;;  %v5604_v51 = vmul.f32 1.442695, %v5535_v54  ;;  %v5540_v5 = vsub.f32 0.0, %v5370_v3  ;;  %v5980_v47 = vmul.f32 %v8552_v0, %v5916_v60  ;;  %8579 = vpow2.f32 %v5602_v20  ;;  %v11490_v54 = vpop.f32.mrf.mxu0 }
 0x5d7   : > { %v8556_v18 = vpop.eup %8555  ;;  %v5373_v14 = vpop.xlane.xlu1 %5372  ;;  %v5917_v20 = vsub.f32 1.0, %v11420_v45  ;;  %v5844_v3 = vmul.f32 1.442695, %v5751_v46  ;;  %v12866_v45 = vld [vmem:[#allocation60_spill] sm:$0xff] }
 0x5d8   : > { %v11484_v39 = vpop.eup %8557  ;;  %8581 = vpow2.f32 %v5604_v51  ;;  %v5614_v62 = vmul.f32 1.442695, %v5540_v5  ;;  %v5541_v58 = vsub.f32 0.0, %v5373_v14  ;;  %6632 = vperm.xlu1 %8418, %v5980_v47   ;;  %v5978_v51 = vmul.f32 %v8556_v18, %v5914_v59  ;;  %v11498_v35 = vpop.f32.mrf.mxu0 }
 0x5d9   : > { %v11487_v19 = vpop.eup %8559  ;;  %8583 = vpow2.f32 %v5842_v63  ;;  %v5364_v60 = vpop.xlane.xlu0 %5363  ;;  %v5754_v25 = vsub.f32 0.0, %v12866_v45  ;;  %v5915_v18 = vsub.f32 1.0, %v11425_v12 }
 0x5da   : > { %v11493_v0 = vpop.eup %8561  ;;  %v5616_v31 = vmul.f32 1.442695, %v5541_v58  ;;  %v5538_v36 = vsub.f32 0.0, %v5364_v60  ;;  %8585 = vpow2.f32 %v5614_v62  ;;  %v12867_v62 = vld [vmem:[#allocation59_spill] sm:$0xff] }
 0x5db   : > { %v8564_v5 = vpop.eup %8563  ;;  %v5367_v47 = vpop.xlane.xlu1 %5366  ;;  %v5757_v58 = vsub.f32 0.0, %v12867_v62  ;;  %v5850_v45 = vmul.f32 1.442695, %v5754_v25  ;;  %v5755_v62 = vsub.f32 0.0, %v12868_v6  ;;  %v5918_v6 = vsub.f32 1.0, %v11433_v28 }
 0x5dc   : > { %v11495_v14 = vpop.eup %8565  ;;  %8587 = vpow2.f32 %v5616_v31  ;;  %v5610_v63 = vmul.f32 1.442695, %v5538_v36  ;;  %v5539_v37 = vsub.f32 0.0, %v5367_v47  ;;  %6622 = vperm.xlu1 %8418, %v5978_v51   ;;  %v5981_v22 = vmul.f32 %v8564_v5, %v5917_v20 }
 0x5dd   : > { %v8568_v29 = vpop.eup %8567  ;;  %8589 = vpow2.f32 %v5848_v48  ;;  %v5382_v46 = vpop.xlane.xlu0 %5381 }
 0x5de   : > { %v11501_v59 = vpop.eup %8569  ;;  %8591 = vpow2.f32 %v5844_v3  ;;  %v5612_v31 = vmul.f32 1.442695, %v5539_v37  ;;  %v5544_v60 = vsub.f32 0.0, %v5382_v46  ;;  %6637 = vperm.xlu0 %8419, %v5981_v22   ;;  %v5979_v47 = vmul.f32 %v8568_v29, %v5915_v18  ;;  %v11508_v3 = vpop.f32.mrf.mxu0 }
 0x5df   : > { %v11504_v36 = vpop.eup %8571  ;;  %8593 = vpow2.f32 %v5610_v63  ;;  %v5385_v48 = vpop.xlane.xlu1 %5384  ;;  %v5920_v22 = vsub.f32 1.0, %v11428_v8  ;;  %v5856_v63 = vmul.f32 1.442695, %v5757_v58  ;;  %v5852_v58 = vmul.f32 1.442695, %v5755_v62 }
 0x5e0   : > { %v8574_v20 = vpop.eup %8573  ;;  %8595 = vpow2.f32 %v5612_v31  ;;  %v5622_v51 = vmul.f32 1.442695, %v5544_v60  ;;  %v5545_v5 = vsub.f32 0.0, %v5385_v48  ;;  %v12869_v60 = vld [vmem:[#allocation48_spill] sm:$0xff]  ;;  %v5925_v62 = vsub.f32 1.0, %v11448_v49 }
 0x5e1   : > { %v8576_v12 = vpop.eup %8575  ;;  %8597 = vpow2.f32 %v5854_v33  ;;  %v5376_v37 = vpop.xlane.xlu0 %5375  ;;  %v5760_v48 = vsub.f32 0.0, %v12869_v60  ;;  %v5919_v33 = vsub.f32 1.0, %v11438_v40  ;;  %v5984_v8 = vmul.f32 %v8574_v20, %v5920_v22 }
 0x5e2   : > { %v11511_v46 = vpop.eup %8577  ;;  %v5624_v23 = vmul.f32 1.442695, %v5545_v5  ;;  %v5542_v34 = vsub.f32 0.0, %v5376_v37  ;;  %6627 = vperm.xlu0 %8419, %v5979_v47   ;;  %v5985_v31 = vmul.f32 %v8576_v12, %v5921_v56  ;;  %8599 = vpow2.f32 %v5622_v51  ;;  %v12870_v5 = vld [vmem:[#allocation52_spill] sm:$0xff]  ;;  %v11517_v56 = vpop.f32.mrf.mxu0 }
 0x5e3   : > { %v5379_v29 = vpop.xlane.xlu1 %5378  ;;  %v8580_v25 = vpop.eup %8579  ;;  %v5758_v47 = vsub.f32 0.0, %v12870_v5  ;;  %v5924_v51 = vsub.f32 1.0, %v11441_v61 }
 0x5e4   : > { %8601 = vpow2.f32 %v5624_v23  ;;  %v5618_v18 = vmul.f32 1.442695, %v5542_v34  ;;  %v5543_v16 = vsub.f32 0.0, %v5379_v29  ;;  %6657 = vperm.xlu1 %8418, %v5985_v31   ;;  %v5862_v34 = vmul.f32 1.442695, %v5760_v48  ;;  %v12871_v31 = vld [vmem:[#allocation51_spill] sm:$0xff]  ;;  %v11526_v48 = vpop.f32.mrf.mxu0 }
 0x5e5   : > { %v8582_v4 = vpop.eup %8581  ;;  %8603 = vpow2.f32 %v5850_v45  ;;  %v5394_v12 = vpop.xlane.xlu0 %5393  ;;  %v5761_v20 = vsub.f32 0.0, %v12871_v31  ;;  %v5982_v61 = vmul.f32 %v8580_v25, %v5918_v6 }
 0x5e6   : > { %v11520_v37 = vpop.eup %8583  ;;  %8605 = vpow2.f32 %v5856_v63  ;;  %v5620_v40 = vmul.f32 1.442695, %v5543_v16  ;;  %v5548_v28 = vsub.f32 0.0, %v5394_v12  ;;  %6652 = vperm.xlu0 %8419, %v5984_v8   ;;  %v5983_v23 = vmul.f32 %v8582_v4, %v5919_v33  ;;  %v12872_v16 = vld [vmem:[#allocation55_spill] sm:$0xff] }
 0x5e7   : > { %8607 = vpow2.f32 %v5618_v18  ;;  %v5397_v45 = vpop.xlane.xlu1 %5396  ;;  %v8586_v22 = vpop.eup %8585  ;;  %v5858_v63 = vmul.f32 1.442695, %v5758_v47  ;;  %v5759_v12 = vsub.f32 0.0, %v12872_v16  ;;  %v12873_v8 = vld [vmem:[#allocation31_spill] sm:$0xff]  ;;  %v5864_v6 = vmul.f32 1.442695, %v5761_v20 }
 0x5e8   : > { %8609 = vpow2.f32 %v5620_v40  ;;  %v5630_v60 = vmul.f32 1.442695, %v5548_v28  ;;  %v5549_v29 = vsub.f32 0.0, %v5397_v45  ;;  %6647 = vperm.xlu1 %8418, %v5983_v23   ;;  %v5764_v4 = vsub.f32 0.0, %v12873_v8 }
 0x5e9   : > { %v8588_v5 = vpop.eup %8587  ;;  %8611 = vpow2.f32 %v5852_v58  ;;  %v5388_v33 = vpop.xlane.xlu0 %5387  ;;  %v5923_v58 = vsub.f32 1.0, %v11451_v24  ;;  %v5922_v47 = vsub.f32 1.0, %v11445_v15  ;;  %v5988_v8 = vmul.f32 %v8586_v22, %v5924_v51 }
 0x5ea   : > { %v11528_v18 = vpop.eup %8589  ;;  %8613 = vpow2.f32 %v5630_v60  ;;  %v5632_v49 = vmul.f32 1.442695, %v5549_v29  ;;  %v5546_v31 = vsub.f32 0.0, %v5388_v33  ;;  %6642 = vperm.xlu0 %8419, %v5982_v61   ;;  %v5989_v40 = vmul.f32 %v8588_v5, %v5925_v62  ;;  %v12874_v62 = vld [vmem:[#allocation32_spill] sm:$0xff]  ;;  %v11535_v33 = vpop.f32.mrf.mxu0 }
 0x5eb   : > { %v11530_v28 = vpop.eup %8591  ;;  %8615 = vpow2.f32 %v5862_v34  ;;  %v5391_v25 = vpop.xlane.xlu1 %5390  ;;  %v5860_v29 = vmul.f32 1.442695, %v5759_v12  ;;  %v5870_v61 = vmul.f32 1.442695, %v5764_v4  ;;  %v5762_v5 = vsub.f32 0.0, %v12874_v62  ;;  %12875 = vst [vmem:[#allocation11_spill] sm:$0xff] %v11535_v33 }
 0x5ec   : > { %v8594_v23 = vpop.eup %8593  ;;  %8617 = vpow2.f32 %v5632_v49  ;;  %v5626_v45 = vmul.f32 1.442695, %v5546_v31  ;;  %v5547_v16 = vsub.f32 0.0, %v5391_v25  ;;  %6677 = vperm.xlu1 %8418, %v5989_v40   ;;  %v5929_v51 = vsub.f32 1.0, %v11460_v11  ;;  %v12876_v62 = vld [vmem:[#allocation33_spill] sm:$0xff] }
 0x5ed   : > { %v8596_v60 = vpop.eup %8595  ;;  %8619 = vpow2.f32 %v5858_v63  ;;  %v5406_v34 = vpop.xlane.xlu0 %5405  ;;  %v5986_v4 = vmul.f32 %v8594_v23, %v5922_v47  ;;  %v5866_v25 = vmul.f32 1.442695, %v5762_v5  ;;  %v5765_v33 = vsub.f32 0.0, %v12876_v62 }
 0x5ee   : > { %v11537_v20 = vpop.eup %8597  ;;  %8621 = vpow2.f32 %v5626_v45  ;;  %v5628_v24 = vmul.f32 1.442695, %v5547_v16  ;;  %v5552_v15 = vsub.f32 0.0, %v5406_v34  ;;  %6672 = vperm.xlu0 %8419, %v5988_v8   ;;  %v5987_v49 = vmul.f32 %v8596_v60, %v5923_v58  ;;  %v11541_v45 = vpop.f32.mrf.mxu0 }
 0x5ef   : > { %8623 = vpow2.f32 %v5864_v6  ;;  %v5409_v31 = vpop.xlane.xlu1 %5408  ;;  %v8600_v22 = vpop.eup %8599  ;;  %v5928_v58 = vsub.f32 1.0, %v11453_v7  ;;  %v5927_v23 = vsub.f32 1.0, %v11462_v26 }
 0x5f0   : > { %8625 = vpow2.f32 %v5628_v24  ;;  %v5638_v63 = vmul.f32 1.442695, %v5552_v15  ;;  %v5553_v12 = vsub.f32 0.0, %v5409_v31  ;;  %6667 = vperm.xlu1 %8418, %v5987_v49   ;;  %v5872_v49 = vmul.f32 1.442695, %v5765_v33 }
 0x5f1   : > { %v8602_v40 = vpop.eup %8601  ;;  %8627 = vpow2.f32 %v5860_v29  ;;  %v5400_v16 = vpop.xlane.xlu0 %5399  ;;  %v5992_v15 = vmul.f32 %v8600_v22, %v5928_v58  ;;  %v5932_v33 = vsub.f32 1.0, %v11464_v42 }
 0x5f2   : > { %v11544_v6 = vpop.eup %8603  ;;  %8629 = vpow2.f32 %v5870_v61  ;;  %v5640_v11 = vmul.f32 1.442695, %v5553_v12  ;;  %v5550_v8 = vsub.f32 0.0, %v5400_v16  ;;  %6662 = vperm.xlu0 %8419, %v5986_v4   ;;  %v5993_v60 = vmul.f32 %v8602_v40, %v5929_v51  ;;  %v12879_v61 = vld [vmem:[#allocation34_spill] sm:$0xff]  ;;  %v11550_v12 = vpop.f32.mrf.mxu0  ;;  %v12882_v40 = vld [vmem:[#allocation35_spill] sm:$0xff] }
 0x5f3   : > { %12877 = vst [vmem:[#allocation10_spill] sm:$0xff] %v11544_v6  ;;  %v11546_v34 = vpop.eup %8605  ;;  %8631 = vpow2.f32 %v5638_v63  ;;  %v5403_v47 = vpop.xlane.xlu1 %5402  ;;  %v5763_v31 = vsub.f32 0.0, %v12879_v61  ;;  %12880 = vst [vmem:[#allocation12_spill] sm:$0xff] %v11550_v12  ;;  %v5926_v4 = vsub.f32 1.0, %v11455_v13  ;;  %v5768_v26 = vsub.f32 0.0, %v12882_v40  ;;  %v12883_v40 = vld [vmem:[#allocation36_spill] sm:$0xff] }
 0x5f4   : > { %12878 = vst [vmem:[#allocation13_spill] sm:$0xff] %v11546_v34  ;;  %v8608_v29 = vpop.eup %8607  ;;  %8633 = vpow2.f32 %v5640_v11  ;;  %v5634_v5 = vmul.f32 1.442695, %v5550_v8  ;;  %v5551_v24 = vsub.f32 0.0, %v5403_v47  ;;  %6697 = vperm.xlu1 %8418, %v5993_v60  }
 0x5f5   : > { %v8610_v7 = vpop.eup %8609  ;;  %8635 = vpow2.f32 %v5866_v25  ;;  %v5418_v51 = vpop.xlane.xlu0 %5417  ;;  %v5990_v13 = vmul.f32 %v8608_v29, %v5926_v4  ;;  %v5868_v61 = vmul.f32 1.442695, %v5763_v31  ;;  %v5878_v42 = vmul.f32 1.442695, %v5768_v26  ;;  %v12885_v26 = vld [vmem:[#allocation37_spill] sm:$0xff] }
 0x5f6   : > { %v11553_v63 = vpop.eup %8611  ;;  %v5636_v62 = vmul.f32 1.442695, %v5551_v24  ;;  %v5556_v16 = vsub.f32 0.0, %v5418_v51  ;;  %6692 = vperm.xlu0 %8419, %v5992_v15   ;;  %v5991_v11 = vmul.f32 %v8610_v7, %v5927_v23  ;;  %8637 = vpow2.f32 %v5634_v5  ;;  %v11560_v51 = vpop.f32.mrf.mxu0 }
 0x5f7   : > { %12881 = vst [vmem:[#allocation15_spill] sm:$0xff] %v11553_v63  ;;  %v8614_v8 = vpop.eup %8613  ;;  %v5421_v22 = vpop.xlane.xlu1 %5420  ;;  %v5766_v24 = vsub.f32 0.0, %v12883_v40  ;;  %12884 = vst [vmem:[#allocation14_spill] sm:$0xff] %v11560_v51  ;;  %v5933_v5 = vsub.f32 1.0, %v11471_v30 }
 0x5f8   : > { %v11557_v25 = vpop.eup %8615  ;;  %8639 = vpow2.f32 %v5636_v62  ;;  %v5646_v58 = vmul.f32 1.442695, %v5556_v16  ;;  %v5557_v60 = vsub.f32 0.0, %v5421_v22  ;;  %6687 = vperm.xlu1 %8418, %v5991_v11   ;;  %v5996_v62 = vmul.f32 %v8614_v8, %v5932_v33 }
 0x5f9   : > { %v8618_v47 = vpop.eup %8617  ;;  %8641 = vpow2.f32 %v5872_v49  ;;  %v5412_v23 = vpop.xlane.xlu0 %5411  ;;  %v5930_v49 = vsub.f32 1.0, %v11466_v41  ;;  %v5874_v40 = vmul.f32 1.442695, %v5766_v24  ;;  %v5931_v33 = vsub.f32 1.0, %v11473_v43 }
 0x5fa   : > { %v11563_v15 = vpop.eup %8619  ;;  %v5648_v7 = vmul.f32 1.442695, %v5557_v60  ;;  %v5554_v63 = vsub.f32 0.0, %v5412_v23  ;;  %6682 = vperm.xlu0 %8419, %v5990_v13   ;;  %8643 = vpow2.f32 %v5646_v58  ;;  %v5997_v22 = vmul.f32 %v8618_v47, %v5933_v5  ;;  %v11569_v23 = vpop.f32.mrf.mxu0 }
 0x5fb   : > { %v8622_v16 = vpop.eup %8621  ;;  %v5415_v29 = vpop.xlane.xlu1 %5414  ;;  %v5769_v60 = vsub.f32 0.0, %v12885_v26  ;;  %12886 = vst [vmem:[#allocation16_spill] sm:$0xff] %v11569_v23 }
 0x5fc   : > { %v11566_v31 = vpop.eup %8623  ;;  %8645 = vpow2.f32 %v5648_v7  ;;  %v5642_v4 = vmul.f32 1.442695, %v5554_v63  ;;  %v5555_v11 = vsub.f32 0.0, %v5415_v29  ;;  %6712 = vperm.xlu1 %8418, %v5996_v62   ;;  %v5994_v63 = vmul.f32 %v8622_v16, %v5930_v49 }
 0x5fd   : > { %v8626_v30 = vpop.eup %8625  ;;  %8647 = vpow2.f32 %v5868_v61  ;;  %v5430_v8 = vpop.xlane.xlu0 %5429  ;;  %v5937_v61 = vsub.f32 1.0, %v11484_v39  ;;  %v5880_v26 = vmul.f32 1.442695, %v5769_v60  ;;  %v5936_v49 = vsub.f32 1.0, %v11475_v10 }
 0x5fe   : > { %v11572_v58 = vpop.eup %8627  ;;  %8649 = vpow2.f32 %v5878_v42  ;;  %v5644_v41 = vmul.f32 1.442695, %v5555_v11  ;;  %v5560_v13 = vsub.f32 0.0, %v5430_v8  ;;  %6717 = vperm.xlu0 %8419, %v5997_v22   ;;  %v5995_v29 = vmul.f32 %v8626_v30, %v5931_v33  ;;  %v12887_v42 = vld [vmem:[#allocation38_spill] sm:$0xff]  ;;  %v11578_v8 = vpop.f32.mrf.mxu0  ;;  %v12891_v33 = vld [vmem:[#allocation57_spill] sm:$0xff] }
 0x5ff   : > { %v11574_v7 = vpop.eup %8629  ;;  %8651 = vpow2.f32 %v5642_v4  ;;  %v5433_v47 = vpop.xlane.xlu1 %5432  ;;  %v5767_v11 = vsub.f32 0.0, %v12887_v42  ;;  %12888 = vst [vmem:[#allocation17_spill] sm:$0xff] %v11578_v8  ;;  %v12889_v22 = vld [vmem:[#allocation54_spill] sm:$0xff] }
 0x600   : > { %v8632_v24 = vpop.eup %8631  ;;  %8653 = vpow2.f32 %v5644_v41  ;;  %v5654_v5 = vmul.f32 1.442695, %v5560_v13  ;;  %v5561_v62 = vsub.f32 0.0, %v5433_v47  ;;  %6702 = vperm.xlu1 %8418, %v5994_v63   ;;  %v5772_v39 = vsub.f32 0.0, %v12889_v22  ;;  %v12890_v63 = vld [vmem:[#allocation58_spill] sm:$0xff] }
 0x601   : > { %v8634_v43 = vpop.eup %8633  ;;  %8655 = vpow2.f32 %v5874_v40  ;;  %v5424_v16 = vpop.xlane.xlu0 %5423  ;;  %v5770_v30 = vsub.f32 0.0, %v12890_v63  ;;  %v5773_v40 = vsub.f32 0.0, %v12891_v33  ;;  %v5935_v47 = vsub.f32 1.0, %v11487_v19  ;;  %v12894_v63 = vld [vmem:[#allocation39_spill] sm:$0xff] }
 0x602   : > { %v11581_v4 = vpop.eup %8635  ;;  %v5656_v6 = vmul.f32 1.442695, %v5561_v62  ;;  %v5558_v41 = vsub.f32 0.0, %v5424_v16  ;;  %6707 = vperm.xlu0 %8419, %v5995_v29   ;;  %v6001_v13 = vmul.f32 %v8634_v43, %v5937_v61  ;;  %8657 = vpow2.f32 %v5654_v5  ;;  %v12892_v16 = vld [vmem:[#allocation61_spill] sm:$0xff]  ;;  %v11588_v61 = vpop.f32.mrf.mxu0 }
 0x603   : > { %v5427_v60 = vpop.xlane.xlu1 %5426  ;;  %v8638_v42 = vpop.eup %8637  ;;  %v6000_v23 = vmul.f32 %v8632_v24, %v5936_v49  ;;  %v5876_v62 = vmul.f32 1.442695, %v5767_v11  ;;  %v5771_v29 = vsub.f32 0.0, %v12892_v16  ;;  %12893 = vst [vmem:[#allocation19_spill] sm:$0xff] %v11588_v61  ;;  %v5934_v5 = vsub.f32 1.0, %v11481_v21  ;;  %v12895_v49 = vld [vmem:[#allocation50_spill] sm:$0xff] }
 0x604   : > { %8659 = vpow2.f32 %v5656_v6  ;;  %v5650_v8 = vmul.f32 1.442695, %v5558_v41  ;;  %v5559_v10 = vsub.f32 0.0, %v5427_v60  ;;  %6737 = vperm.xlu1 %8418, %v6001_v13   ;;  %v5886_v19 = vmul.f32 1.442695, %v5772_v39  ;;  %v12896_v61 = vld [vmem:[#allocation40_spill] sm:$0xff] }
 0x605   : > { %v8640_v51 = vpop.eup %8639  ;;  %8661 = vpow2.f32 %v5880_v26  ;;  %v11590_v43 = vpop.xlane.xlu0 %5441  ;;  %v5776_v6 = vsub.f32 0.0, %v12894_v63  ;;  %v5882_v24 = vmul.f32 1.442695, %v5770_v30  ;;  %v5774_v26 = vsub.f32 0.0, %v12895_v49 }
 0x606   : > { %v11593_v22 = vpop.eup %8641  ;;  %v5652_v41 = vmul.f32 1.442695, %v5559_v10  ;;  %6732 = vperm.xlu0 %8419, %v6000_v23   ;;  %v5999_v13 = vmul.f32 %v8640_v51, %v5935_v47  ;;  %8663 = vpow2.f32 %v5650_v8  ;;  %v5941_v33 = vsub.f32 1.0, %v11501_v59  ;;  %v12897_v23 = vld [vmem:[#allocation53_spill] sm:$0xff]  ;;  %v11602_v30 = vpop.f32.mrf.mxu0 }
 0x607   : > { %v11597_v11 = vpop.xlane.xlu1 %5444  ;;  %v8644_v60 = vpop.eup %8643  ;;  %v5888_v16 = vmul.f32 1.442695, %v5773_v40  ;;  %v5777_v21 = vsub.f32 0.0, %v12896_v61  ;;  %v5998_v39 = vmul.f32 %v8638_v42, %v5934_v5  ;;  %v5884_v10 = vmul.f32 1.442695, %v5771_v29  ;;  %12898 = vst [vmem:[#allocation18_spill] sm:$0xff] %v11602_v30 }
 0x608   : > { %8665 = vpow2.f32 %v5652_v41  ;;  %6727 = vperm.xlu1 %8418, %v5999_v13   ;;  %v5775_v51 = vsub.f32 0.0, %v12897_v23  ;;  %v5894_v59 = vmul.f32 1.442695, %v5776_v6  ;;  %v5940_v61 = vsub.f32 1.0, %v11493_v0 }
 0x609   : > { %v8646_v12 = vpop.eup %8645  ;;  %8667 = vpow2.f32 %v5876_v62  ;;  %v11604_v47 = vpop.xlane.xlu0 %5435  ;;  %v5890_v42 = vmul.f32 1.442695, %v5774_v26  ;;  %v12899_v62 = vld [vmem:[#allocation41_spill] sm:$0xff]  ;;  %v5938_v41 = vsub.f32 1.0, %v11495_v14  ;;  %v5896_v49 = vmul.f32 1.442695, %v5777_v21 }
 0x60a   : > { %v11606_v8 = vpop.eup %8647  ;;  %8669 = vpow2.f32 %v5886_v19  ;;  %6722 = vperm.xlu0 %8419, %v5998_v39   ;;  %v6005_v40 = vmul.f32 %v8646_v12, %v5941_v33  ;;  %v5780_v29 = vsub.f32 0.0, %v12899_v62  ;;  %v6004_v19 = vmul.f32 %v8644_v60, %v5940_v61  ;;  %v12900_v33 = vld [vmem:[#allocation42_spill] sm:$0xff]  ;;  %v12902_v21 = vld [vmem:[#allocation43_spill] sm:$0xff] }
 0x60b   : > { %v11609_v63 = vpop.eup %8649  ;;  %8671 = vpow2.f32 %v5882_v24  ;;  %v11612_v5 = vpop.xlane.xlu1 %5438  ;;  %v5939_v6 = vsub.f32 1.0, %v11504_v36  ;;  %v5892_v0 = vmul.f32 1.442695, %v5775_v51  ;;  %v5778_v39 = vsub.f32 0.0, %v12900_v33 }
 0x60c   : > { %v8652_v13 = vpop.eup %8651  ;;  %8673 = vpow2.f32 %v5888_v16  ;;  %6757 = vperm.xlu1 %8418, %v6005_v40   ;;  %v11617_v24 = vpop.f32.mrf.mxu0  ;;  %v5944_v23 = vsub.f32 1.0, %v11511_v46  ;;  %v5942_v60 = vsub.f32 1.0, %v11520_v37  ;;  %v5902_v36 = vmul.f32 1.442695, %v5780_v29  ;;  %v11628_v46 = vld [vmem:[%s12586_s12] ss:$0 sm:$0xff] }
 0x60d   : > { %v8654_v12 = vpop.eup %8653  ;;  %8675 = vpow2.f32 %v5884_v10  ;;  %12901 = vst [vmem:[#allocation21_spill] sm:$0xff] %v11617_v24  ;;  %v5454_v26 = vpop.xlane.xlu0 %5453  ;;  %v5781_v10 = vsub.f32 0.0, %v12902_v21  ;;  %v5945_v40 = vsub.f32 1.0, %v11528_v18  ;;  %v5898_v37 = vmul.f32 1.442695, %v5778_v39 }
 0x60e   : > { %v11620_v62 = vpop.eup %8655  ;;  %8677 = vpow2.f32 %v5894_v59  ;;  %v5568_v14 = vsub.f32 0.0, %v5454_v26  ;;  %6752 = vperm.xlu0 %8419, %v6004_v19   ;;  %v6003_v16 = vmul.f32 %v8654_v12, %v5939_v6  ;;  %v6002_v19 = vmul.f32 %v8652_v13, %v5938_v41  ;;  %v11631_v12 = vpop.f32.mrf.mxu0  ;;  %v12905_v41 = vld [vmem:[#allocation44_spill] sm:$0xff] }
 0x60f   : > { %8679 = vpow2.f32 %v5890_v42  ;;  %v5457_v51 = vpop.xlane.xlu1 %5456  ;;  %v8658_v61 = vpop.eup %8657  ;;  %v12903_v42 = vld [vmem:[#allocation45_spill] sm:$0xff]  ;;  %12904 = vst [vmem:[#allocation20_spill] sm:$0xff] %v11631_v12  ;;  %v5943_v18 = vsub.f32 1.0, %v11530_v28  ;;  %v5784_v13 = vsub.f32 0.0, %v12905_v41 }
 0x610   : > { %8681 = vpow2.f32 %v5896_v49  ;;  %v5670_v59 = vmul.f32 1.442695, %v5568_v14  ;;  %v5569_v33 = vsub.f32 0.0, %v5457_v51  ;;  %6747 = vperm.xlu1 %8418, %v6003_v16   ;;  %v5779_v29 = vsub.f32 0.0, %v12903_v42 }
 0x611   : > { %v8660_v6 = vpop.eup %8659  ;;  %8683 = vpow2.f32 %v5892_v0  ;;  %v5448_v26 = vpop.xlane.xlu0 %5447  ;;  %v5904_v16 = vmul.f32 1.442695, %v5781_v10  ;;  %v2958_v0 = vadd.f32 %v11324_v17, %v11628_v46  ;;  %v6008_v28 = vmul.f32 %v8658_v61, %v5944_v23 }
 0x612   : > { %v11634_v49 = vpop.eup %8661  ;;  %8685 = vpow2.f32 %v5670_v59  ;;  %v5672_v21 = vmul.f32 1.442695, %v5569_v33  ;;  %v5566_v30 = vsub.f32 0.0, %v5448_v26  ;;  %6742 = vperm.xlu0 %8419, %v6002_v19   ;;  %v6009_v14 = vmul.f32 %v8660_v6, %v5945_v40  ;;  %v12906_v33 = vld [vmem:[#allocation46_spill] sm:$0xff]  ;;  %v11642_v10 = vpop.f32.mrf.mxu0 }
 0x613   : > { %8687 = vpow2.f32 %v5902_v36  ;;  %v5451_v39 = vpop.xlane.xlu1 %5450  ;;  %v8664_v51 = vpop.eup %8663  ;;  %v5900_v59 = vmul.f32 1.442695, %v5779_v29  ;;  %v5782_v19 = vsub.f32 0.0, %v12906_v33  ;;  %v2950_v36 = vadd.f32 %v11628_v46, %v11333_v50  ;;  %12907 = vst [vmem:[#allocation23_spill] sm:$0xff] %v11642_v10 }
 0x614   : > { %8689 = vpow2.f32 %v5672_v21  ;;  %v5666_v42 = vmul.f32 1.442695, %v5566_v30  ;;  %v5567_v12 = vsub.f32 0.0, %v5451_v39  ;;  %6777 = vperm.xlu1 %8418, %v6009_v14   ;;  %v5910_v23 = vmul.f32 1.442695, %v5784_v13 }
 0x615   : > { %v8666_v24 = vpop.eup %8665  ;;  %8691 = vpow2.f32 %v5898_v37  ;;  %v5466_v40 = vpop.xlane.xlu0 %5465  ;;  %v3206_v61 = vsub.f32 0.0, %v2958_v0  ;;  %v6006_v41 = vmul.f32 %v8664_v51, %v5942_v60  ;;  %v2961_v51 = vadd.f32 %v11353_v2, %v11628_v46 }
 0x616   : > { %v11644_v6 = vpop.eup %8667  ;;  %8693 = vpow2.f32 %v5666_v42  ;;  %v5668_v17 = vmul.f32 1.442695, %v5567_v12  ;;  %v5572_v26 = vsub.f32 0.0, %v5466_v40  ;;  %6772 = vperm.xlu0 %8419, %v6008_v28   ;;  %v6007_v30 = vmul.f32 %v8666_v24, %v5943_v18  ;;  %v11652_v28 = vpop.f32.mrf.mxu0 }
 0x617   : > { %v11646_v21 = vpop.eup %8669  ;;  %8695 = vpow2.f32 %v5904_v16  ;;  %v5469_v37 = vpop.xlane.xlu1 %5468  ;;  %v5906_v12 = vmul.f32 1.442695, %v5782_v19  ;;  %v3204_v42 = vsub.f32 0.0, %v2950_v36  ;;  %12908 = vst [vmem:[#allocation22_spill] sm:$0xff] %v11652_v28  ;;  %v3272_v60 = vmul.f32 1.442695, %v3206_v61 }
 0x618   : > { %v11648_v29 = vpop.eup %8671  ;;  %8697 = vpow2.f32 %v5668_v17  ;;  %v5678_v50 = vmul.f32 1.442695, %v5572_v26  ;;  %v5573_v14 = vsub.f32 0.0, %v5469_v37  ;;  %6767 = vperm.xlu1 %8418, %v6007_v30   ;;  %v5952_v19 = vsub.f32 1.0, %v11557_v25 }
 0x619   : > { %v11650_v39 = vpop.eup %8673  ;;  %8699 = vpow2.f32 %v5900_v59  ;;  %v5460_v24 = vpop.xlane.xlu0 %5459  ;;  %v5950_v30 = vsub.f32 1.0, %v11563_v15  ;;  %v5953_v61 = vsub.f32 1.0, %v11566_v31  ;;  %v5951_v2 = vsub.f32 1.0, %v11572_v58 }
 0x61a   : > { %v11655_v16 = vpop.eup %8675  ;;  %8701 = vpow2.f32 %v5678_v50  ;;  %v5680_v13 = vmul.f32 1.442695, %v5573_v14  ;;  %v5570_v0 = vsub.f32 0.0, %v5460_v24  ;;  %6762 = vperm.xlu0 %8419, %v6006_v41   ;;  %v3268_v50 = vmul.f32 1.442695, %v3204_v42  ;;  %v11668_v14 = vpop.f32.mrf.mxu0 }
 0x61b   : > { %v11658_v40 = vpop.eup %8677  ;;  %8703 = vpow2.f32 %v5910_v23  ;;  %v5463_v59 = vpop.xlane.xlu1 %5462  ;;  %12909 = vst [vmem:[#allocation24_spill] sm:$0xff] %v11668_v14  ;;  %v3207_v15 = vsub.f32 0.0, %v2961_v51 }
 0x61c   : > { %v11663_v36 = vpop.eup %8679  ;;  %8705 = vpow2.f32 %v5680_v13  ;;  %v5674_v17 = vmul.f32 1.442695, %v5570_v0  ;;  %v5571_v26 = vsub.f32 0.0, %v5463_v59  ;;  %v5956_v13 = vsub.f32 1.0, %v11574_v7 }
 0x61d   : > { %v11666_v37 = vpop.eup %8681  ;;  %8707 = vpow2.f32 %v5906_v12  ;;  %v5478_v23 = vpop.xlane.xlu0 %5477  ;;  %v2953_v12 = vadd.f32 %v11628_v46, %v11365_v9  ;;  %v2974_v7 = vadd.f32 %v11384_v1, %v11628_v46  ;;  %v5957_v9 = vsub.f32 1.0, %v11593_v22 }
 0x61e   : > { %v11672_v41 = vpop.eup %8683  ;;  %8709 = vpow2.f32 %v5674_v17  ;;  %v5676_v25 = vmul.f32 1.442695, %v5571_v26  ;;  %v5576_v24 = vsub.f32 0.0, %v5478_v23  ;;  %v12910_v26 = vld [vmem:[#allocation47_spill] sm:$0xff]  ;;  %v2977_v1 = vadd.f32 %v11405_v32, %v11628_v46 }
 0x61f   : > { %v8686_v0 = vpop.eup %8685  ;;  %8711 = vpow2.f32 %v3272_v60  ;;  %v5481_v42 = vpop.xlane.xlu1 %5480  ;;  %v5785_v23 = vsub.f32 0.0, %v12910_v26 }
 0x620   : > { %v11678_v33 = vpop.eup %8687  ;;  %8713 = vpow2.f32 %v5676_v25  ;;  %v5686_v31 = vmul.f32 1.442695, %v5576_v24  ;;  %v5577_v58 = vsub.f32 0.0, %v5481_v42  ;;  %v6016_v18 = vmul.f32 %v8686_v0, %v5952_v19  ;;  %v11683_v60 = vpop.f32.mrf.mxu0 }
 0x621   : > { %v8690_v17 = vpop.eup %8689  ;;  %8715 = vpow2.f32 %v3268_v50  ;;  %12911 = vst [vmem:[#allocation25_spill] sm:$0xff] %v11683_v60  ;;  %v5472_v51 = vpop.xlane.xlu0 %5471  ;;  %v3274_v0 = vmul.f32 1.442695, %v3207_v15  ;;  %v3205_v42 = vsub.f32 0.0, %v2953_v12  ;;  %v2966_v50 = vadd.f32 %v11628_v46, %v11396_v38 }
 0x622   : > { %v11686_v28 = vpop.eup %8691  ;;  %8717 = vpow2.f32 %v5686_v31  ;;  %v5688_v59 = vmul.f32 1.442695, %v5577_v58  ;;  %v5574_v25 = vsub.f32 0.0, %v5472_v51  ;;  %6812 = vperm.xlu1 %8418, %v6016_v18   ;;  %v6017_v24 = vmul.f32 %v8690_v17, %v5953_v61  ;;  %v12912_v61 = vld [vmem:[#allocation49_spill] sm:$0xff]  ;;  %v11697_v38 = vpop.f32.mrf.mxu0 }
 0x623   : > { %v8694_v19 = vpop.eup %8693  ;;  %v5475_v26 = vpop.xlane.xlu1 %5474  ;;  %v5912_v18 = vmul.f32 1.442695, %v5785_v23  ;;  %v5783_v17 = vsub.f32 0.0, %v12912_v61  ;;  %v3210_v15 = vsub.f32 0.0, %v2974_v7  ;;  %v2969_v12 = vadd.f32 %v11628_v46, %v11418_v27  ;;  %12913 = vst [vmem:[#allocation26_spill] sm:$0xff] %v11697_v38 }
 0x624   : > { %v11692_v60 = vpop.eup %8695  ;;  %8719 = vpow2.f32 %v5688_v59  ;;  %v5682_v22 = vmul.f32 1.442695, %v5574_v25  ;;  %v5575_v34 = vsub.f32 0.0, %v5475_v26  ;;  %6817 = vperm.xlu0 %8419, %v6017_v24   ;;  %v6014_v31 = vmul.f32 %v8694_v19, %v5950_v30 }
 0x625   : > { %v8698_v58 = vpop.eup %8697  ;;  %v5490_v51 = vpop.xlane.xlu0 %5489  ;;  %v3270_v30 = vmul.f32 1.442695, %v3205_v42  ;;  %v3208_v23 = vsub.f32 0.0, %v2966_v50  ;;  %v3211_v19 = vsub.f32 0.0, %v2977_v1  ;;  %v3280_v50 = vmul.f32 1.442695, %v3210_v15 }
 0x626   : > { %v11699_v32 = vpop.eup %8699  ;;  %8721 = vpow2.f32 %v5682_v22  ;;  %v5684_v14 = vmul.f32 1.442695, %v5575_v34  ;;  %v5580_v59 = vsub.f32 0.0, %v5490_v51  ;;  %6802 = vperm.xlu1 %8418, %v6014_v31   ;;  %v6015_v25 = vmul.f32 %v8698_v58, %v5951_v2  ;;  %v11705_v31 = vpop.f32.mrf.mxu0 }
 0x627   : > { %v8702_v24 = vpop.eup %8701  ;;  %8723 = vpow2.f32 %v3274_v0  ;;  %v5493_v26 = vpop.xlane.xlu1 %5492  ;;  %v5908_v22 = vmul.f32 1.442695, %v5783_v17  ;;  %v3209_v34 = vsub.f32 0.0, %v2969_v12  ;;  %v2990_v2 = vadd.f32 %v11431_v55, %v11628_v46 }
 0x628   : > { %v11701_v7 = vpop.eup %8703  ;;  %8725 = vpow2.f32 %v5684_v14  ;;  %v5694_v27 = vmul.f32 1.442695, %v5580_v59  ;;  %v5581_v61 = vsub.f32 0.0, %v5493_v26  ;;  %6807 = vperm.xlu0 %8419, %v6015_v25   ;;  %v6020_v38 = vmul.f32 %v8702_v24, %v5956_v13 }
 0x629   : > { %v8706_v10 = vpop.eup %8705  ;;  %8727 = vpow2.f32 %v5912_v18  ;;  %v11707_v0 = vpop.xlane.xlu0 %5483  ;;  %v3276_v13 = vmul.f32 1.442695, %v3208_v23  ;;  %v5955_v17 = vsub.f32 1.0, %v11606_v8  ;;  %v5960_v55 = vsub.f32 1.0, %v11609_v63 }
 0x62a   : > { %v11709_v42 = vpop.eup %8707  ;;  %8729 = vpow2.f32 %v5694_v27  ;;  %v5696_v14 = vmul.f32 1.442695, %v5581_v61  ;;  %6832 = vperm.xlu1 %8418, %v6020_v38   ;;  %v6021_v1 = vmul.f32 %v8706_v10, %v5957_v9  ;;  %v3282_v51 = vmul.f32 1.442695, %v3211_v19 }
 0x62b   : > { %v8710_v58 = vpop.eup %8709  ;;  %8731 = vpow2.f32 %v3270_v30  ;;  %v11711_v18 = vpop.xlane.xlu1 %5486  ;;  %v12914_v59 = vsub.f32 1.0, %v11581_v4  ;;  %v5958_v25 = vsub.f32 1.0, %v11620_v62  ;;  %v3278_v10 = vmul.f32 1.442695, %v3209_v34 }
 0x62c   : > { %v8712_v12 = vpop.eup %8711  ;;  %8733 = vpow2.f32 %v5696_v14  ;;  %6837 = vperm.xlu0 %8419, %v6021_v1   ;;  %v3214_v9 = vsub.f32 0.0, %v2990_v2  ;;  %v2982_v24 = vadd.f32 %v11628_v46, %v11443_v52  ;;  %v11720_v30 = vpop.f32.mrf.mxu0  ;;  %v5961_v4 = vsub.f32 1.0, %v11634_v49 }
 0x62d   : > { %v6018_v15 = vmul.f32 %v8710_v58, %v12914_v59  ;;  %v8714_v38 = vpop.eup %8713  ;;  %8735 = vpow2.f32 %v5908_v22  ;;  %v5502_v8 = vpop.xlane.xlu0 %5501  ;;  %v3398_v27 = vadd.f32 1.0, %v8712_v12  ;;  %v5959_v61 = vsub.f32 1.0, %v11644_v6 }
 0x62e   : > { %v8716_v63 = vpop.eup %8715  ;;  %8737 = vpow2.f32 %v3280_v50  ;;  %v5584_v23 = vsub.f32 0.0, %v5502_v8  ;;  %v6019_v19 = vmul.f32 %v8714_v38, %v5955_v17  ;;  %v5964_v22 = vsub.f32 1.0, %v11646_v21  ;;  %v11727_v58 = vpop.f32.mrf.mxu0 }
 0x62f   : > { %6822 = vperm.xlu1 %8418, %v6018_v15   ;;  %v8718_v26 = vpop.eup %8717  ;;  %8739 = vpow2.f32 %v3276_v13  ;;  %v5505_v62 = vpop.xlane.xlu1 %5504  ;;  %v3288_v50 = vmul.f32 1.442695, %v3214_v9  ;;  %v3212_v1 = vsub.f32 0.0, %v2982_v24  ;;  %v2993_v49 = vadd.f32 %v11458_v44, %v11628_v46 }
 0x630   : > { %8741 = vpow2.f32 %v3282_v51  ;;  %v5702_v52 = vmul.f32 1.442695, %v5584_v23  ;;  %v5585_v34 = vsub.f32 0.0, %v5505_v62  ;;  %6827 = vperm.xlu0 %8419, %v6019_v19   ;;  %v6024_v2 = vmul.f32 %v8718_v26, %v5960_v55 }
 0x631   : > { %v8720_v14 = vpop.eup %8719  ;;  %8743 = vpow2.f32 %v3278_v10  ;;  %v5496_v13 = vpop.xlane.xlu0 %5495  ;;  %v3396_v51 = vadd.f32 1.0, %v8716_v63  ;;  %v5965_v55 = vsub.f32 1.0, %v11650_v39  ;;  %v5962_v15 = vsub.f32 1.0, %v11648_v29 }
 0x632   : > { %8745 = vpow2.f32 %v5702_v52  ;;  %v5704_v17 = vmul.f32 1.442695, %v5585_v34  ;;  %v5582_v6 = vsub.f32 0.0, %v5496_v13  ;;  %v6025_v21 = vmul.f32 %v8720_v14, %v5961_v4  ;;  %v11733_v4 = vpop.f32.mrf.mxu0 }
 0x633   : > { %6852 = vperm.xlu1 %8418, %v6024_v2   ;;  %v8722_v12 = vpop.eup %8721  ;;  %8747 = vrcp.f32 %v3398_v27  ;;  %v5499_v59 = vpop.xlane.xlu1 %5498  ;;  %v3284_v8 = vmul.f32 1.442695, %v3212_v1  ;;  %v3215_v23 = vsub.f32 0.0, %v2993_v49  ;;  %v2985_v19 = vadd.f32 %v11628_v46, %v11469_v53 }
 0x634   : > { %v8724_v38 = vpop.eup %8723  ;;  %8749 = vpow2.f32 %v5704_v17  ;;  %v5698_v10 = vmul.f32 1.442695, %v5582_v6  ;;  %v5583_v44 = vsub.f32 0.0, %v5499_v59  ;;  %6857 = vperm.xlu0 %8419, %v6025_v21   ;;  %v6022_v9 = vmul.f32 %v8722_v12, %v5958_v25  ;;  %v11739_v21 = vpop.f32.mrf.mxu0 }
 0x635   : > { %v8726_v24 = vpop.eup %8725  ;;  %8751 = vpow2.f32 %v3288_v50  ;;  %v5514_v63 = vpop.xlane.xlu0 %5513  ;;  %v3399_v25 = vadd.f32 1.0, %v8724_v38  ;;  %v5968_v2 = vsub.f32 1.0, %v11658_v40  ;;  %v3290_v17 = vmul.f32 1.442695, %v3215_v23 }
 0x636   : > { %v11735_v26 = vpop.eup %8727  ;;  %8753 = vpow2.f32 %v5698_v10  ;;  %v5700_v39 = vmul.f32 1.442695, %v5583_v44  ;;  %v5588_v27 = vsub.f32 0.0, %v5514_v63  ;;  %v6023_v62 = vmul.f32 %v8726_v24, %v5959_v61 }
 0x637   : > { %6842 = vperm.xlu1 %8418, %v6022_v9   ;;  %v8730_v52 = vpop.eup %8729  ;;  %8755 = vrcp.f32 %v3396_v51  ;;  %v5517_v34 = vpop.xlane.xlu1 %5516  ;;  %v3213_v6 = vsub.f32 0.0, %v2985_v19  ;;  %v5966_v12 = vsub.f32 1.0, %v11663_v36  ;;  %v5969_v24 = vsub.f32 1.0, %v11666_v37 }
 0x638   : > { %v8732_v50 = vpop.eup %8731  ;;  %8757 = vpow2.f32 %v5700_v39  ;;  %v5710_v53 = vmul.f32 1.442695, %v5588_v27  ;;  %v5589_v1 = vsub.f32 0.0, %v5517_v34  ;;  %6847 = vperm.xlu0 %8419, %v6023_v62   ;;  %v6028_v49 = vmul.f32 %v8730_v52, %v5964_v22  ;;  %v11750_v62 = vpop.f32.mrf.mxu0 }
 0x639   : > { %v8734_v13 = vpop.eup %8733  ;;  %8759 = vpow2.f32 %v3284_v8  ;;  %v5508_v61 = vpop.xlane.xlu0 %5507  ;;  %v3397_v44 = vadd.f32 1.0, %v8732_v50  ;;  %v3006_v22 = vadd.f32 %v11479_v57, %v11628_v46  ;;  %v5967_v63 = vsub.f32 1.0, %v11672_v41 }
 0x63a   : > { %v11742_v51 = vpop.eup %8735  ;;  %8761 = vpow2.f32 %v5710_v53  ;;  %v5712_v40 = vmul.f32 1.442695, %v5589_v1  ;;  %v5586_v59 = vsub.f32 0.0, %v5508_v61  ;;  %v6029_v38 = vmul.f32 %v8734_v13, %v5965_v55 }
 0x63b   : > { %6872 = vperm.xlu1 %8418, %v6028_v49   ;;  %v8738_v10 = vpop.eup %8737  ;;  %8763 = vrcp.f32 %v3399_v25  ;;  %v5511_v9 = vpop.xlane.xlu1 %5510  ;;  %v3286_v27 = vmul.f32 1.442695, %v3213_v6  ;;  %v2998_v55 = vadd.f32 %v11628_v46, %v11490_v54  ;;  %v5972_v57 = vsub.f32 1.0, %v11678_v33 }
 0x63c   : > { %v8740_v8 = vpop.eup %8739  ;;  %8765 = vpow2.f32 %v5712_v40  ;;  %v5706_v23 = vmul.f32 1.442695, %v5586_v59  ;;  %v5587_v19 = vsub.f32 0.0, %v5511_v9  ;;  %6877 = vperm.xlu0 %8419, %v6029_v38   ;;  %v5970_v50 = vsub.f32 1.0, %v11686_v28  ;;  %v11761_v9 = vpop.f32.mrf.mxu0 }
 0x63d   : > { %v8742_v39 = vpop.eup %8741  ;;  %8767 = vpow2.f32 %v3290_v17  ;;  %v5526_v52 = vpop.xlane.xlu0 %5525  ;;  %v3402_v41 = vadd.f32 1.0, %v8738_v10  ;;  %v3218_v1 = vsub.f32 0.0, %v3006_v22  ;;  %v5973_v13 = vsub.f32 1.0, %v11692_v60 }
 0x63e   : > { %v11753_v25 = vpop.eup %8743  ;;  %8769 = vpow2.f32 %v5706_v23  ;;  %v5708_v37 = vmul.f32 1.442695, %v5587_v19  ;;  %v5592_v34 = vsub.f32 0.0, %v5526_v52  ;;  %v3216_v59 = vsub.f32 0.0, %v2998_v55 }
 0x63f   : > { %v8746_v53 = vpop.eup %8745  ;;  %8771 = vrcp.f32 %v3397_v44  ;;  %v5529_v49 = vpop.xlane.xlu1 %5528  ;;  %v3009_v38 = vadd.f32 %v11498_v35, %v11628_v46  ;;  %v5971_v10 = vsub.f32 1.0, %v11699_v32  ;;  %v3001_v55 = vadd.f32 %v11628_v46, %v11508_v3  ;;  %v12917_v32 = vld [vmem:[#allocation130_spill] sm:$0xff] }
 0x640   : > { %v11757_v54 = vpop.eup %8747  ;;  %8773 = vpow2.f32 %v5708_v37  ;;  %v5718_v17 = vmul.f32 1.442695, %v5592_v34  ;;  %v5593_v6 = vsub.f32 0.0, %v5529_v49  ;;  %v6032_v61 = vmul.f32 %v8746_v53, %v5968_v2 }
 0x641   : > { %v8750_v40 = vpop.eup %8749  ;;  %8775 = vpow2.f32 %v3286_v27  ;;  %v5520_v44 = vpop.xlane.xlu0 %5519  ;;  %v3400_v2 = vadd.f32 1.0, %v8740_v8  ;;  %v3296_v27 = vmul.f32 1.442695, %v3218_v1  ;;  %v5564_v53 = vsub.f32 0.0, %v11590_v43 }
 0x642   : > { %v11764_v22 = vpop.eup %8751  ;;  %8777 = vpow2.f32 %v5718_v17  ;;  %v5720_v23 = vmul.f32 1.442695, %v5593_v6  ;;  %v5590_v19 = vsub.f32 0.0, %v5520_v44  ;;  %6892 = vperm.xlu1 %8418, %v6032_v61   ;;  %v6033_v52 = vmul.f32 %v8750_v40, %v5969_v24 }
 0x643   : > { %v8754_v37 = vpop.eup %8753  ;;  %8779 = vrcp.f32 %v3402_v41  ;;  %v5523_v35 = vpop.xlane.xlu1 %5522  ;;  %v3292_v24 = vmul.f32 1.442695, %v3216_v59  ;;  %v3219_v61 = vsub.f32 0.0, %v3009_v38  ;;  %v3022_v8 = vadd.f32 %v11517_v56, %v11628_v46 }
 0x644   : > { %v11768_v34 = vpop.eup %8755  ;;  %v5714_v49 = vmul.f32 1.442695, %v5590_v19  ;;  %v5591_v14 = vsub.f32 0.0, %v5523_v35  ;;  %6897 = vperm.xlu0 %8419, %v6033_v52   ;;  %v6030_v17 = vmul.f32 %v8754_v37, %v5966_v12  ;;  %v11775_v41 = vpop.f32.mrf.mxu0  ;;  %8781 = vpow2.f32 %v5720_v23 }
 0x645   : > { %v8758_v6 = vpop.eup %8757  ;;  %v5565_v1 = vsub.f32 0.0, %v11597_v11  ;;  %v3403_v19 = vadd.f32 1.0, %v8742_v39  ;;  %v5976_v36 = vsub.f32 1.0, %v11701_v7  ;;  %v5974_v12 = vsub.f32 1.0, %v11709_v42 }
 0x646   : > { %v8760_v3 = vpop.eup %8759  ;;  %8783 = vpow2.f32 %v5714_v49  ;;  %v5716_v43 = vmul.f32 1.442695, %v5591_v14  ;;  %6882 = vperm.xlu1 %8418, %v6030_v17   ;;  %v6031_v40 = vmul.f32 %v8758_v6, %v5967_v63  ;;  %v3217_v56 = vsub.f32 0.0, %v3001_v55  ;;  %v11786_v39 = vpop.f32.mrf.mxu0 }
 0x647   : > { %v8762_v44 = vpop.eup %8761  ;;  %8785 = vpow2.f32 %v3296_v27  ;;  %v5662_v38 = vmul.f32 1.442695, %v5564_v53  ;;  %v3298_v14 = vmul.f32 1.442695, %v3219_v61  ;;  %v3014_v63 = vadd.f32 %v11628_v46, %v11526_v48 }
 0x648   : > { %v11780_v59 = vpop.eup %8763  ;;  %8787 = vrcp.f32 %v3400_v2  ;;  %6887 = vperm.xlu0 %8419, %v6031_v40   ;;  %v6036_v11 = vmul.f32 %v8762_v44, %v5972_v57  ;;  %v3222_v52 = vsub.f32 0.0, %v3022_v8  ;;  %v5664_v37 = vmul.f32 1.442695, %v5565_v1  ;;  %v12915_v57 = vld [vmem:[#allocation11_spill] sm:$0xff]  ;;  %v11797_v6 = vpop.f32.mrf.mxu0 }
 0x649   : > { %v8766_v23 = vpop.eup %8765  ;;  %8789 = vpow2.f32 %v3292_v24  ;;  %v3401_v33 = vadd.f32 1.0, %v11753_v25  ;;  %v3025_v55 = vadd.f32 %v12915_v57, %v11628_v46  ;;  %v3294_v35 = vmul.f32 1.442695, %v3217_v56  ;;  %v12916_v25 = vld [vmem:[#allocation65_spill] sm:$0xff]  ;;  %v9111_v57 = vld [vmem:[%s12579_s5 + $0x128] sm:$0xff] }
 0x64a   : > { %v8768_v7 = vpop.eup %8767  ;;  %8791 = vpow2.f32 %v5716_v43  ;;  %6912 = vperm.xlu1 %8418, %v6036_v11   ;;  %v6037_v2 = vmul.f32 %v8766_v23, %v5973_v13  ;;  %v5578_v53 = vsub.f32 0.0, %v11707_v0  ;;  %v3406_v60 = vadd.f32 1.0, %v11764_v22  ;;  %v11808_v56 = vpop.f32.mrf.mxu0 }
 0x64b   : > { %v8770_v27 = vpop.eup %8769  ;;  %8793 = vrcp.f32 %v3403_v19  ;;  %v3220_v13 = vsub.f32 0.0, %v3014_v63  ;;  %v6493_v24 = vsel %vm6490_vm7, %v11757_v54, %v12916_v25  ;;  %v3304_v8 = vmul.f32 1.442695, %v3222_v52 }
 0x64c   : > { %v8772_v48 = vpop.eup %8771  ;;  %8795 = vpow2.f32 %v5662_v38  ;;  %6917 = vperm.xlu0 %8419, %v6037_v2   ;;  %v6034_v49 = vmul.f32 %v8770_v27, %v5970_v50  ;;  %v5579_v0 = vsub.f32 0.0, %v11711_v18  ;;  %v3404_v22 = vadd.f32 1.0, %v8760_v3 }
 0x64d   : > { %v8774_v17 = vpop.eup %8773  ;;  %8797 = vpow2.f32 %v3298_v14  ;;  %v3223_v1 = vsub.f32 0.0, %v3025_v55  ;;  %v3017_v43 = vadd.f32 %v11628_v46, %v11541_v45  ;;  %v5690_v44 = vmul.f32 1.442695, %v5578_v53  ;;  %v12918_v45 = vld [vmem:[#allocation12_spill] sm:$0xff]  ;;  %v12921_v53 = vld [vmem:[#allocation66_spill] sm:$0xff] }
 0x64e   : > { %v8776_v61 = vpop.eup %8775  ;;  %8799 = vpow2.f32 %v5664_v37  ;;  %6902 = vperm.xlu1 %8418, %v6034_v49   ;;  %v6035_v28 = vmul.f32 %v8774_v17, %v5971_v10  ;;  %v5977_v19 = vsub.f32 1.0, %v11735_v26  ;;  %v3300_v18 = vmul.f32 1.442695, %v3220_v13  ;;  %v12919_v14 = vld [vmem:[#allocation64_spill] sm:$0xff]  ;;  %v12922_v49 = vld [vmem:[#allocation63_spill] sm:$0xff] }
 0x64f   : > { %v8778_v50 = vpop.eup %8777  ;;  %8801 = vrcp.f32 %v3401_v33  ;;  %v6558_v10 = vsel %vm6555_vm8, %v6493_v24, %v12917_v32  ;;  %v5975_v3 = vsub.f32 1.0, %v11742_v51  ;;  %v3038_v11 = vadd.f32 %v12918_v45, %v11628_v46 }
 0x650   : > { %v8780_v40 = vpop.eup %8779  ;;  %8803 = vpow2.f32 %v3294_v35  ;;  %6907 = vperm.xlu0 %8419, %v6035_v28   ;;  %v6040_v54 = vmul.f32 %v8778_v50, %v5976_v36  ;;  %v5692_v23 = vmul.f32 1.442695, %v5579_v0  ;;  %v6491_v26 = vsel %vm6490_vm7, %v11768_v34, %v12919_v14  ;;  %v11827_v35 = vpop.f32.mrf.mxu0  ;;  %v12924_v0 = vld [vmem:[#allocation128_spill] sm:$0xff] }
 0x651   : > { %8805 = vrcp.f32 %v3406_v60  ;;  %v8782_v38 = vpop.eup %8781  ;;  %v3407_v63 = vadd.f32 1.0, %v8768_v7  ;;  %v3306_v52 = vmul.f32 1.442695, %v3223_v1  ;;  %v3221_v37 = vsub.f32 0.0, %v3017_v43 }
 0x652   : > { %8807 = vpow2.f32 %v3304_v8  ;;  %6932 = vperm.xlu1 %8418, %v6040_v54   ;;  %v5562_v51 = vsub.f32 0.0, %v11604_v47  ;;  %v3405_v7 = vadd.f32 1.0, %v8776_v61  ;;  %v6494_v47 = vsel %vm6490_vm7, %v11780_v59, %v12921_v53  ;;  %v12923_v61 = vld [vmem:[#allocation14_spill] sm:$0xff]  ;;  %v11843_v54 = vpop.f32.mrf.mxu0 }
 0x653   : > { %v8784_v36 = vpop.eup %8783  ;;  %8809 = vrcp.f32 %v3404_v22  ;;  %v6633_v2 = vpop.permute.xlu1 %6632  ;;  %v6492_v17 = vsel %vm6490_vm7, %v8772_v48, %v12922_v49  ;;  %v3226_v13 = vsub.f32 0.0, %v3038_v11  ;;  %v5563_v25 = vsub.f32 0.0, %v11612_v5  ;;  %v12926_v5 = vld [vmem:[#allocation69_spill] sm:$0xff]  ;;  %v12933_v53 = vld [vmem:[#allocation70_spill] sm:$0xff] }
 0x654   : > { %v8786_v27 = vpop.eup %8785  ;;  %8811 = vpow2.f32 %v5690_v44  ;;  %v11819_v33 = vmul.f32 %v6633_v2, %v6558_v10  ;;  %6372 = vrot.lane.b32.xlu0 %v9111_v57, %s9142_s28  ;;  %v6038_v34 = vmul.f32 %v8784_v36, %v5974_v12  ;;  %v6041_v42 = vmul.f32 %v8782_v38, %v5977_v19  ;;  %v12927_v19 = vld [vmem:[#allocation129_spill] sm:$0xff]  ;;  %v12928_v10 = vld [vmem:[#allocation127_spill] sm:$0xff]  ;;  %v12931_v2 = vld [vmem:[#allocation134_spill] sm:$0xff] }
 0x655   : > { %v8788_v55 = vpop.eup %8787  ;;  %8813 = vpow2.f32 %v3300_v18  ;;  %v3302_v24 = vmul.f32 1.442695, %v3221_v37  ;;  %v3030_v8 = vadd.f32 %v11628_v46, %v12923_v61  ;;  %v6556_v28 = vsel %vm6555_vm8, %v6491_v26, %v12924_v0  ;;  %v12964_v57 = vld [vmem:[#allocation74_spill] sm:$0xff] }
 0x656   : > { %12920 = vst [vmem:[#allocation28_spill] sm:$0xff] %v11819_v33  ;;  %v8790_v60 = vpop.eup %8789  ;;  %8815 = vpow2.f32 %v5692_v23  ;;  %6922 = vperm.xlu1 %8418, %v6038_v34   ;;  %v5658_v48 = vmul.f32 1.442695, %v5562_v51  ;;  %v6497_v1 = vsel %vm6490_vm7, %v8780_v40, %v12926_v5  ;;  %v3410_v44 = vadd.f32 1.0, %v8786_v27  ;;  %v9112_v40 = vld [vmem:[%s12579_s5 + $0x120] sm:$0xff]  ;;  %v12940_v5 = vld [vmem:[#allocation17_spill] sm:$0xff] }
 0x657   : > { %v8792_v12 = vpop.eup %8791  ;;  %8817 = vrcp.f32 %v3407_v63  ;;  %v6623_v59 = vpop.permute.xlu1 %6622  ;;  %v6559_v18 = vsel %vm6555_vm8, %v6494_v47, %v12927_v19  ;;  %v6557_v38 = vsel %vm6555_vm8, %v6492_v17, %v12928_v10  ;;  %v3312_v11 = vmul.f32 1.442695, %v3226_v13  ;;  %v12934_v17 = vld [vmem:[#allocation23_spill] sm:$0xff]  ;;  %v12958_v10 = vld [vmem:[#allocation26_spill] sm:$0xff] }
 0x658   : > { %v8794_v50 = vpop.eup %8793  ;;  %8819 = vpow2.f32 %v3306_v52  ;;  %v11839_v22 = vmul.f32 %v6623_v59, %v6556_v28  ;;  %6937 = vperm.xlu0 %8419, %v6041_v42   ;;  %v5660_v23 = vmul.f32 1.442695, %v5563_v25  ;;  %v6039_v26 = vmul.f32 %v8792_v12, %v5975_v3  ;;  %v12930_v52 = vld [vmem:[#allocation16_spill] sm:$0xff]  ;;  %v11869_v25 = vpop.f32.mrf.mxu0  ;;  %v12935_v12 = vld [vmem:[#allocation67_spill] sm:$0xff]  ;;  %v12938_v28 = vld [vmem:[#allocation13_spill] sm:$0xff] }
 0x659   : > { %v8796_v43 = vpop.eup %8795  ;;  %8821 = vrcp.f32 %v3405_v7  ;;  %v6638_v32 = vpop.permute.xlu0 %6637  ;;  %v3224_v63 = vsub.f32 0.0, %v3030_v8  ;;  %v3041_v37 = vadd.f32 %v12930_v52, %v11628_v46  ;;  %v6562_v27 = vsel %vm6555_vm8, %v6497_v1, %v12931_v2 }
 0x65a   : > { %12925 = vst [vmem:[#allocation27_spill] sm:$0xff] %v11839_v22  ;;  %v8798_v45 = vpop.eup %8797  ;;  %v11849_v14 = vmul.f32 %v6638_v32, %v6559_v18  ;;  %6370 = vrot.lane.b32.xlu1 %v9112_v40, %s9142_s28  ;;  %8823 = vpow2.f32 %v3302_v24  ;;  %v12932_v34 = vsub.f32 1.0, %v11537_v20  ;;  %v6498_v3 = vsel %vm6490_vm7, %v8794_v50, %v12933_v53  ;;  %v12936_v20 = vld [vmem:[#allocation24_spill] sm:$0xff] }
 0x65b   : > { %v8800_v36 = vpop.eup %8799  ;;  %8825 = vpow2.f32 %v5658_v48  ;;  %v3408_v49 = vadd.f32 1.0, %v8790_v60  ;;  %v3070_v13 = vadd.f32 %v12934_v17, %v11628_v46  ;;  %v6495_v24 = vsel %vm6490_vm7, %v8788_v55, %v12935_v12  ;;  %v12941_v55 = vld [vmem:[#allocation19_spill] sm:$0xff]  ;;  %v12945_v53 = vld [vmem:[#allocation132_spill] sm:$0xff] }
 0x65c   : > { %12929 = vst [vmem:[#allocation29_spill] sm:$0xff] %v11849_v14  ;;  %v8802_v51 = vpop.eup %8801  ;;  %6927 = vperm.xlu0 %8419, %v6039_v26   ;;  %v6012_v7 = vmul.f32 %v8796_v43, %v12932_v34  ;;  %8827 = vrcp.f32 %v3410_v44  ;;  %v3073_v8 = vadd.f32 %v12936_v20, %v11628_v46  ;;  %v12939_v60 = vsub.f32 1.0, %v12938_v28  ;;  %v12942_v44 = vld [vmem:[#allocation133_spill] sm:$0xff]  ;;  %v11901_v34 = vpop.f32.mrf.mxu0 }
 0x65d   : > { %v11865_v47 = vpop.eup %8803  ;;  %v6628_v42 = vpop.permute.xlu0 %6627  ;;  %8829 = vpow2.f32 %v5660_v23  ;;  %v3227_v48 = vsub.f32 0.0, %v3041_v37  ;;  %v11885_v1 = vadd.f32 %v11628_v46, %v12940_v5  ;;  %v3054_v43 = vadd.f32 %v12941_v55, %v11628_v46  ;;  %v12943_v23 = vld [vmem:[#allocation68_spill] sm:$0xff]  ;;  %v12944_v37 = vld [vmem:[#allocation22_spill] sm:$0xff]  ;;  %v12949_v5 = vld [vmem:[#allocation21_spill] sm:$0xff] }
 0x65e   : > { %v11873_v61 = vpop.eup %8805  ;;  %v11877_v0 = vmul.f32 %v6628_v42, %v6557_v38  ;;  %6792 = vperm.xlu1 %8418, %v6012_v7   ;;  %v6013_v59 = vmul.f32 %v8800_v36, %v12939_v60  ;;  %v6563_v19 = vsel %vm6555_vm8, %v6498_v3, %v12942_v44  ;;  %8831 = vpow2.f32 %v3312_v11  ;;  %v12946_v42 = vld [vmem:[#allocation25_spill] sm:$0xff] }
 0x65f   : > { %v11881_v50 = vpop.eup %8807  ;;  %v6658_v18 = vpop.permute.xlu1 %6657  ;;  %v6496_v40 = vsel %vm6490_vm7, %v8802_v51, %v12943_v23  ;;  %v3308_v36 = vmul.f32 1.442695, %v3224_v63  ;;  %v3234_v52 = vsub.f32 0.0, %v3070_v13  ;;  %v3062_v2 = vadd.f32 %v11628_v46, %v12944_v37  ;;  %v9113_v63 = vld [vmem:[%s12579_s5 + $0x190] sm:$0xff] }
 0x660   : > { %12937 = vst [vmem:[#allocation30_spill] sm:$0xff] %v11877_v0  ;;  %v11891_v32 = vpop.eup %8809  ;;  %v11895_v38 = vmul.f32 %v6658_v18, %v6563_v19  ;;  %6797 = vperm.xlu0 %8419, %v6013_v59   ;;  %v6560_v11 = vsel %vm6555_vm8, %v6495_v24, %v12945_v53  ;;  %8833 = vrcp.f32 %v3408_v49  ;;  %v3235_v17 = vsub.f32 0.0, %v3073_v8  ;;  %v12948_v24 = vld [vmem:[#allocation131_spill] sm:$0xff]  ;;  %v12951_v19 = vld [vmem:[#allocation18_spill] sm:$0xff]  ;;  %v11940_v37 = vpop.f32.mrf.mxu0 }
 0x661   : > { %v8812_v26 = vpop.eup %8811  ;;  %v6653_v7 = vpop.permute.xlu0 %6652  ;;  %v3065_v12 = vadd.f32 %v11628_v46, %v12946_v42  ;;  %v3411_v20 = vadd.f32 1.0, %v8798_v45  ;;  %v3314_v28 = vmul.f32 1.442695, %v3227_v48  ;;  %v3230_v60 = vsub.f32 0.0, %v3054_v43  ;;  %v9114_v45 = vld [vmem:[%s12579_s5 + $0x198] sm:$0xff] }
 0x662   : > { %v11905_v3 = vpop.eup %8813  ;;  %v11909_v51 = vmul.f32 %v6653_v7, %v6562_v27  ;;  %6398 = vrot.lane.b32.xlu1 %v9113_v63, %s9142_s28  ;;  %v6561_v59 = vsel %vm6555_vm8, %v6496_v40, %v12948_v24  ;;  %v3057_v27 = vadd.f32 %v12949_v5, %v11628_v46  ;;  %v6026_v48 = vmul.f32 %v8812_v26, %v5962_v15  ;;  %v11936_v46 = vld [vmem:[%s12586_s12] ss:$0 sm:$0xff] }
 0x663   : > { %v8816_v13 = vpop.eup %8815  ;;  %v6648_v49 = vpop.permute.xlu1 %6647  ;;  %8835 = vpow2.f32 %v3308_v36  ;;  %v3046_v18 = vadd.f32 %v11936_v46, %v12951_v19  ;;  %v3328_v23 = vmul.f32 1.442695, %v3234_v52  ;;  %v3232_v40 = vsub.f32 0.0, %v3062_v2  ;;  %v12954_v2 = vld [vmem:[#allocation20_spill] sm:$0xff] }
 0x664   : > { %12947 = vst [vmem:[#allocation56_spill] sm:$0xff] %v11909_v51  ;;  %v11917_v8 = vpop.eup %8817  ;;  %v11923_v44 = vmul.f32 %v6648_v49, %v6561_v59  ;;  %6400 = vrot.lane.b32.xlu0 %v9114_v45, %s9142_s28  ;;  %v3330_v29 = vmul.f32 1.442695, %v3235_v17  ;;  %v3233_v15 = vsub.f32 0.0, %v3065_v12  ;;  %v12953_v36 = vsub.f32 1.0, %v11655_v16  ;;  %v12955_v12 = vld [vmem:[#allocation10_spill] sm:$0xff] }
 0x665   : > { %v11931_v43 = vpop.eup %8819  ;;  %v6643_v7 = vpop.permute.xlu0 %6642  ;;  %8837 = vrcp.f32 %v3411_v20  ;;  %v3320_v63 = vmul.f32 1.442695, %v3230_v60  ;;  %v3231_v52 = vsub.f32 0.0, %v3057_v27  ;;  %v3049_v49 = vadd.f32 %v11936_v46, %v12954_v2  ;;  %v9116_v19 = vld [vmem:[%s12579_s5 + $0x110] sm:$0xff] }
 0x666   : > { %12950 = vst [vmem:[#allocation60_spill] sm:$0xff] %v11923_v44  ;;  %v11942_v53 = vpop.eup %8821  ;;  %v11944_v26 = vmul.f32 %v6643_v7, %v6560_v11  ;;  %6862 = vperm.xlu1 %8418, %v6026_v48   ;;  %v6027_v42 = vmul.f32 %v8816_v13, %v12953_v36  ;;  %8839 = vpow2.f32 %v3314_v28  ;;  %v5946_v5 = vsub.f32 1.0, %v12955_v12  ;;  %v11958_v20 = vpop.f32.mrf.mxu0 }
 0x667   : > { %v11948_v24 = vpop.permute.xlu1 %6677  ;;  %v11950_v59 = vpop.eup %8823  ;;  %v3225_v16 = vsub.f32 0.0, %v11885_v1  ;;  %8841 = vpow2.f32 %v3328_v23  ;;  %v3324_v13 = vmul.f32 1.442695, %v3232_v40  ;;  %v3228_v27 = vsub.f32 0.0, %v3046_v18  ;;  %v12956_v23 = vld [vmem:[#allocation15_spill] sm:$0xff] }
 0x668   : > { %12952 = vst [vmem:[#allocation59_spill] sm:$0xff] %v11944_v26  ;;  %6867 = vperm.xlu0 %8419, %v6027_v42   ;;  %v8826_v11 = vpop.eup %8825  ;;  %8843 = vpow2.f32 %v3330_v29  ;;  %v3326_v45 = vmul.f32 1.442695, %v3233_v15  ;;  %v3102_v48 = vadd.f32 %v11936_v46, %v11733_v4  ;;  %v5947_v40 = vsub.f32 1.0, %v12956_v23  ;;  %v9117_v4 = vld [vmem:[%s12579_s5 + $0x118] sm:$0xff] }
 0x669   : > { %v11960_v60 = vpop.permute.xlu0 %6672  ;;  %v11962_v28 = vpop.eup %8827  ;;  %v3409_v7 = vadd.f32 1.0, %v11865_v47  ;;  %8845 = vpow2.f32 %v3320_v63  ;;  %v3322_v18 = vmul.f32 1.442695, %v3231_v52  ;;  %v3229_v29 = vsub.f32 0.0, %v3049_v49 }
 0x66a   : > { %6366 = vrot.lane.b32.xlu1 %v9116_v19, %s9142_s28  ;;  %v8830_v1 = vpop.eup %8829  ;;  %v3105_v15 = vadd.f32 %v11936_v46, %v11750_v62  ;;  %v6010_v42 = vmul.f32 %v8826_v11, %v5946_v5  ;;  %v3310_v12 = vmul.f32 1.442695, %v3225_v16  ;;  %8847 = vpow2.f32 %v3324_v13  ;;  %v11980_v19 = vpop.f32.mrf.mxu0 }
 0x66b   : > { %v11972_v36 = vpop.permute.xlu1 %6667  ;;  %v8832_v2 = vpop.eup %8831  ;;  %12957 = vst [vmem:[#allocation62_spill] sm:$0xff] %v11980_v19  ;;  %v3316_v63 = vmul.f32 1.442695, %v3228_v27  ;;  %8849 = vpow2.f32 %v3326_v45  ;;  %v3242_v52 = vsub.f32 0.0, %v3102_v48  ;;  %v6011_v49 = vmul.f32 %v8830_v1, %v5947_v40 }
 0x66c   : > { %6368 = vrot.lane.b32.xlu0 %v9117_v4, %s9142_s28  ;;  %8851 = vrcp.f32 %v3409_v7  ;;  %v3414_v23 = vadd.f32 1.0, %v11881_v50  ;;  %v3086_v11 = vadd.f32 %v11936_v46, %v12958_v10  ;;  %v3318_v16 = vmul.f32 1.442695, %v3229_v29  ;;  %v11992_v45 = vpop.f32.mrf.mxu0  ;;  %v9118_v10 = vld [vmem:[%s12579_s5 + $0x180] sm:$0xff] }
 0x66d   : > { %v11982_v47 = vpop.permute.xlu0 %6662  ;;  %v11984_v62 = vpop.eup %8833  ;;  %8853 = vpow2.f32 %v3322_v18  ;;  %v3243_v13 = vsub.f32 0.0, %v3105_v15  ;;  %v3412_v27 = vadd.f32 1.0, %v11905_v3  ;;  %12959 = vst [vmem:[#allocation48_spill] sm:$0xff] %v11992_v45  ;;  %v3344_v50 = vmul.f32 1.442695, %v3242_v52  ;;  %v9119_v15 = vld [vmem:[%s12579_s5 + $0x188] sm:$0xff] }
 0x66e   : > { %6782 = vperm.xlu1 %8418, %v6010_v42   ;;  %8855 = vpow2.f32 %v3310_v12  ;;  %v3415_v40 = vadd.f32 1.0, %v11931_v43  ;;  %v3238_v7 = vsub.f32 0.0, %v3086_v11  ;;  %v3413_v42 = vadd.f32 1.0, %v11950_v59  ;;  %v12012_v12 = vpop.f32.mrf.mxu0  ;;  %v12972_v45 = vld [vmem:[#allocation137_spill] sm:$0xff] }
 0x66f   : > { %v11989_v5 = vpop.permute.xlu1 %6697  ;;  %8857 = vpow2.f32 %v3316_v63  ;;  %v3346_v29 = vmul.f32 1.442695, %v3243_v13  ;;  %12960 = vst [vmem:[#allocation52_spill] sm:$0xff] %v12012_v12  ;;  %v3418_v52 = vadd.f32 1.0, %v8832_v2 }
 0x670   : > { %6787 = vperm.xlu0 %8419, %v6011_v49   ;;  %v11996_v1 = vpop.eup %8835  ;;  %8859 = vrcp.f32 %v3414_v23  ;;  %v9120_v49 = vld [vmem:[%s12579_s5 + $0x100] sm:$0xff]  ;;  %v3336_v11 = vmul.f32 1.442695, %v3238_v7 }
 0x671   : > { %v11994_v48 = vpop.permute.xlu0 %6692  ;;  %8861 = vpow2.f32 %v3318_v16 }
 0x672   : > { %6394 = vrot.lane.b32.xlu1 %v9118_v10, %s9142_s28  ;;  %v12005_v18 = vpop.eup %8837  ;;  %8863 = vrcp.f32 %v3412_v27  ;;  %v9121_v27 = vld [vmem:[%s12579_s5 + $0x108] sm:$0xff]  ;;  %v12963_v10 = vld [vmem:[#allocation73_spill] sm:$0xff] }
 0x673   : > { %v12003_v3 = vpop.permute.xlu1 %6687  ;;  %v8840_v4 = vpop.eup %8839  ;;  %8865 = vpow2.f32 %v3344_v50 }
 0x674   : > { %6396 = vrot.lane.b32.xlu0 %v9119_v15, %s9142_s28  ;;  %v8842_v63 = vpop.eup %8841  ;;  %8867 = vrcp.f32 %v3415_v40  ;;  %v3419_v59 = vadd.f32 1.0, %v8840_v4  ;;  %v12026_v50 = vpop.f32.mrf.mxu0  ;;  %v6501_v40 = vsel %vm6490_vm7, %v11873_v61, %v12963_v10 }
 0x675   : > { %v12014_v43 = vpop.permute.xlu0 %6682  ;;  %v8844_v23 = vpop.eup %8843  ;;  %8869 = vpow2.f32 %v3346_v29  ;;  %v3426_v2 = vadd.f32 1.0, %v8842_v63  ;;  %12962 = vst [vmem:[#allocation55_spill] sm:$0xff] %v12026_v50  ;;  %v12965_v63 = vld [vmem:[#allocation71_spill] sm:$0xff] }
 0x676   : > { %6362 = vrot.lane.b32.xlu1 %v9120_v49, %s9142_s28  ;;  %v8846_v13 = vpop.eup %8845  ;;  %8871 = vrcp.f32 %v3413_v42  ;;  %v3427_v4 = vadd.f32 1.0, %v8844_v23  ;;  %v3078_v49 = vadd.f32 %v11936_v46, %v11705_v31  ;;  %v6502_v42 = vsel %vm6490_vm7, %v11917_v8, %v12964_v57 }
 0x677   : > { %v12020_v16 = vpop.permute.xlu1 %6712  ;;  %v8848_v15 = vpop.eup %8847  ;;  %8873 = vrcp.f32 %v3418_v52  ;;  %v3422_v10 = vadd.f32 1.0, %v8846_v13  ;;  %v12967_v52 = vld [vmem:[#allocation138_spill] sm:$0xff]  ;;  %v3089_v8 = vadd.f32 %v11936_v46, %v11720_v30 }
 0x678   : > { %12961 = vst [vmem:[#allocation51_spill] sm:$0xff] %v12020_v16  ;;  %6364 = vrot.lane.b32.xlu0 %v9121_v27, %s9142_s28  ;;  %v8850_v29 = vpop.eup %8849  ;;  %8875 = vpow2.f32 %v3336_v11  ;;  %v6499_v27 = vsel %vm6490_vm7, %v11891_v32, %v12965_v63  ;;  %v12045_v23 = vsel %vm6555_vm8, %v6501_v40, %v12967_v52  ;;  %v12968_v11 = vld [vmem:[#allocation72_spill] sm:$0xff]  ;;  %v3424_v57 = vadd.f32 1.0, %v8848_v15  ;;  %v12052_v32 = vpop.f32.mrf.mxu0  ;;  %v12970_v63 = vld [vmem:[#allocation77_spill] sm:$0xff]  ;;  %s7231_s28 = sshll.u32 %s13102_s17, 3 }
 0x679   : > { %v12031_v7 = vpop.permute.xlu0 %6717  ;;  %v8852_v61 = vpop.eup %8851  ;;  %8877 = vrcp.f32 %v3419_v59  ;;  %v6500_v31 = vsel %vm6490_vm7, %v11942_v53, %v12968_v11  ;;  %12969 = vst [vmem:[#allocation32_spill] sm:$0xff] %v12052_v32  ;;  %v6505_v13 = vsel %vm6490_vm7, %v11962_v28, %v12970_v63  ;;  %v3425_v52 = vadd.f32 1.0, %v8850_v29  ;;  %v12974_v63 = vld [vmem:[#allocation135_spill] sm:$0xff]  ;;  %v12989_v32 = vld [vmem:[#allocation80_spill] sm:$0xff]  ;;  %s486_s16 = scalar_lea.vmem %s12587_s13, %s7231_s28 }
 0x67a   : > { %v8854_v55 = vpop.eup %8853  ;;  %8879 = vrcp.f32 %v3426_v2  ;;  %v12061_v53 = vsel %vm6555_vm8, %v6502_v42, %v12972_v45  ;;  %v12973_v2 = vld [vmem:[#allocation136_spill] sm:$0xff]  ;;  %v3416_v11 = vadd.f32 1.0, %v11996_v1  ;;  %v3236_v22 = vsub.f32 0.0, %v3078_v49  ;;  %v12975_v42 = vld [vmem:[#allocation142_spill] sm:$0xff] }
 0x67b   : > { %v12041_v17 = vpop.permute.xlu1 %6702  ;;  %v8856_v40 = vpop.eup %8855  ;;  %8881 = vrcp.f32 %v3427_v4  ;;  %v12065_v15 = vsel %vm6555_vm8, %v6499_v27, %v12973_v2  ;;  %v3081_v28 = vadd.f32 %v11936_v46, %v11727_v58  ;;  %v12072_v0 = vsel %vm6555_vm8, %v6500_v31, %v12974_v63  ;;  %v12976_v2 = vld [vmem:[#allocation75_spill] sm:$0xff] }
 0x67c   : > { %12966 = vst [vmem:[#allocation31_spill] sm:$0xff] %v12041_v17  ;;  %v8858_v30 = vpop.eup %8857  ;;  %8883 = vrcp.f32 %v3422_v10  ;;  %v3423_v45 = vadd.f32 1.0, %v8854_v55  ;;  %v12078_v27 = vsel %vm6555_vm8, %v6505_v13, %v12975_v42  ;;  %v6503_v1 = vsel %vm6490_vm7, %v11984_v62, %v12976_v2  ;;  %v12085_v63 = vpop.f32.mrf.mxu0  ;;  %v12978_v42 = vld [vmem:[#allocation78_spill] sm:$0xff]  ;;  %v12979_v2 = vld [vmem:[#allocation140_spill] sm:$0xff] }
 0x67d   : > { %v12057_v59 = vpop.permute.xlu0 %6707  ;;  %v8860_v29 = vpop.eup %8859  ;;  %v3417_v33 = vadd.f32 1.0, %v8856_v40  ;;  %8885 = vrcp.f32 %v3424_v57  ;;  %v3239_v58 = vsub.f32 0.0, %v3089_v8  ;;  %v3094_v31 = vadd.f32 %v11936_v46, %v11739_v21  ;;  %12977 = vst [vmem:[#allocation34_spill] sm:$0xff] %v12085_v63 }
 0x67e   : > { %12971 = vst [vmem:[#allocation33_spill] sm:$0xff] %v12057_v59  ;;  %v8862_v49 = vpop.eup %8861  ;;  %v3420_v10 = vadd.f32 1.0, %v8858_v30  ;;  %8887 = vrcp.f32 %v3425_v52  ;;  %v3097_v13 = vadd.f32 %v11936_v46, %v11761_v9  ;;  %v6506_v62 = vsel %vm6490_vm7, %v12005_v18, %v12978_v42  ;;  %v12980_v30 = vld [vmem:[#allocation76_spill] sm:$0xff]  ;;  %v12981_v42 = vld [vmem:[#allocation141_spill] sm:$0xff] }
 0x67f   : > { %v12074_v4 = vpop.permute.xlu1 %6737  ;;  %v8864_v55 = vpop.eup %8863  ;;  %8889 = vrcp.f32 %v3416_v11  ;;  %v3332_v57 = vmul.f32 1.442695, %v3236_v22  ;;  %v3237_v8 = vsub.f32 0.0, %v3081_v28  ;;  %v12096_v21 = vsel %vm6555_vm8, %v6503_v1, %v12979_v2 }
 0x680   : > { %v8866_v40 = vpop.eup %8865  ;;  %8891 = vrcp.f32 %v3423_v45  ;;  %v3421_v52 = vadd.f32 1.0, %v8862_v49  ;;  %v3118_v9 = vadd.f32 %v11936_v46, %v11775_v41  ;;  %v6504_v12 = vsel %vm6490_vm7, %v8852_v61, %v12980_v30  ;;  %v12104_v28 = vpop.f32.mrf.mxu0  ;;  %v12982_v41 = vld [vmem:[#allocation81_spill] sm:$0xff] }
 0x681   : > { %v12087_v14 = vpop.permute.xlu0 %6732  ;;  %v8868_v50 = vpop.eup %8867  ;;  %8893 = vrcp.f32 %v3417_v33  ;;  %v3338_v11 = vmul.f32 1.442695, %v3239_v58  ;;  %v3240_v22 = vsub.f32 0.0, %v3094_v31  ;;  %v12108_v1 = vsel %vm6555_vm8, %v6506_v62, %v12981_v42  ;;  %v12983_v31 = vld [vmem:[#allocation139_spill] sm:$0xff] }
 0x682   : > { %v8870_v18 = vpop.eup %8869  ;;  %8895 = vrcp.f32 %v3420_v10  ;;  %v3434_v49 = vadd.f32 1.0, %v8866_v40  ;;  %v3241_v17 = vsub.f32 0.0, %v3097_v13  ;;  %v6509_v26 = vsel %vm6490_vm7, %v8860_v29, %v12982_v41  ;;  %v12985_v41 = vld [vmem:[#allocation146_spill] sm:$0xff] }
 0x683   : > { %v12098_v63 = vpop.permute.xlu1 %6727  ;;  %v8872_v45 = vpop.eup %8871  ;;  %8897 = vpow2.f32 %v3332_v57  ;;  %v3334_v33 = vmul.f32 1.442695, %v3237_v8  ;;  %v3110_v58 = vadd.f32 %v11936_v46, %v11786_v39  ;;  %v12118_v30 = vsel %vm6555_vm8, %v6504_v12, %v12983_v31  ;;  %v12987_v12 = vld [vmem:[#allocation79_spill] sm:$0xff] }
 0x684   : > { %v8874_v61 = vpop.eup %8873  ;;  %8899 = vrcp.f32 %v3421_v52  ;;  %v3435_v10 = vadd.f32 1.0, %v8870_v18  ;;  %v3246_v40 = vsub.f32 0.0, %v3118_v9  ;;  %v3121_v13 = vadd.f32 %v11936_v46, %v11797_v6  ;;  %v12124_v8 = vpop.f32.mrf.mxu0  ;;  %v12988_v18 = vld [vmem:[#allocation82_spill] sm:$0xff] }
 0x685   : > { %v12110_v2 = vpop.permute.xlu0 %6722  ;;  %v8876_v42 = vpop.eup %8875  ;;  %8901 = vpow2.f32 %v3338_v11  ;;  %v3340_v57 = vmul.f32 1.442695, %v3240_v22  ;;  %12984 = vst [vmem:[#allocation35_spill] sm:$0xff] %v12124_v8  ;;  %v12128_v39 = vsel %vm6555_vm8, %v6509_v26, %v12985_v41  ;;  %v6507_v31 = vsel %vm6490_vm7, %v8864_v55, %v12987_v12 }
 0x686   : > { %v8878_v29 = vpop.eup %8877  ;;  %12986 = vst [vmem:[#allocation36_spill] sm:$0xff] %v12128_v39  ;;  %8903 = vrcp.f32 %v3434_v49  ;;  %v3342_v9 = vmul.f32 1.442695, %v3241_v17  ;;  %v6510_v6 = vsel %vm6490_vm7, %v8868_v50, %v12988_v18  ;;  %v6508_v11 = vsel %vm6490_vm7, %v8872_v45, %v12989_v32  ;;  %v12990_v49 = vld [vmem:[#allocation85_spill] sm:$0xff]  ;;  %v12144_v50 = vpop.f32.mrf.mxu0 }
 0x687   : > { %v12120_v62 = vpop.permute.xlu1 %6757  ;;  %v8880_v52 = vpop.eup %8879  ;;  %v3430_v59 = vadd.f32 1.0, %v8876_v42  ;;  %8905 = vpow2.f32 %v3334_v33  ;;  %v3244_v8 = vsub.f32 0.0, %v3110_v58  ;;  %v3113_v26 = vadd.f32 %v11936_v46, %v11808_v56  ;;  %v12991_v32 = vld [vmem:[#allocation145_spill] sm:$0xff]  ;;  %v12992_v33 = vld [vmem:[#allocation144_spill] sm:$0xff]  ;;  %v12994_v56 = vld [vmem:[#allocation86_spill] sm:$0xff] }
 0x688   : > { %v8882_v22 = vpop.eup %8881  ;;  %8907 = vrcp.f32 %v3435_v10  ;;  %v3352_v55 = vmul.f32 1.442695, %v3246_v40  ;;  %v3247_v12 = vsub.f32 0.0, %v3121_v13  ;;  %v6514_v17 = vsel %vm6490_vm7, %v8878_v29, %v12990_v49  ;;  %v12995_v13 = vld [vmem:[#allocation143_spill] sm:$0xff] }
 0x689   : > { %v12132_v44 = vpop.permute.xlu0 %6752  ;;  %v8884_v19 = vpop.eup %8883  ;;  %8909 = vpow2.f32 %v3340_v57  ;;  %v12148_v45 = vsel %vm6555_vm8, %v6510_v6, %v12991_v32  ;;  %v12152_v58 = vsel %vm6555_vm8, %v6507_v31, %v12992_v33  ;;  %v6513_v42 = vsel %vm6490_vm7, %v8874_v61, %v12994_v56  ;;  %v12997_v57 = vld [vmem:[#allocation93_spill] sm:$0xff]  ;;  %v12998_v6 = vld [vmem:[#allocation94_spill] sm:$0xff] }
 0x68a   : > { %12993 = vst [vmem:[#allocation37_spill] sm:$0xff] %v12152_v58  ;;  %v8886_v40 = vpop.eup %8885  ;;  %8911 = vpow2.f32 %v3342_v9  ;;  %v12160_v29 = vsel %vm6555_vm8, %v6508_v11, %v12995_v13  ;;  %v6522_v18 = vsel %vm6490_vm7, %v8882_v22, %v12997_v57  ;;  %v6521_v49 = vsel %vm6490_vm7, %v8880_v52, %v12998_v6  ;;  %v12999_v58 = vld [vmem:[#allocation158_spill] sm:$0xff]  ;;  %v13000_v22 = vld [vmem:[#allocation155_spill] sm:$0xff] }
 0x68b   : > { %v12140_v41 = vpop.permute.xlu1 %6747  ;;  %12996 = vst [vmem:[#allocation38_spill] sm:$0xff] %v12160_v29  ;;  %v8888_v32 = vpop.eup %8887  ;;  %8913 = vrcp.f32 %v3430_v59  ;;  %v3348_v31 = vmul.f32 1.442695, %v3244_v8  ;;  %v3245_v33 = vsub.f32 0.0, %v3113_v26  ;;  %v12168_v61 = vsel %vm6555_vm8, %v6514_v17, %v12999_v58  ;;  %v13002_v26 = vld [vmem:[#allocation90_spill] sm:$0xff] }
 0x68c   : > { %v12170_v9 = vpop.eup %8889  ;;  %8915 = vpow2.f32 %v3352_v55  ;;  %v3354_v11 = vmul.f32 1.442695, %v3247_v12  ;;  %v3134_v13 = vadd.f32 %v11936_v46, %v11827_v35  ;;  %v12176_v57 = vsel %vm6555_vm8, %v6513_v42, %v13000_v22  ;;  %v12178_v59 = vpop.f32.mrf.mxu0  ;;  %v13003_v58 = vld [vmem:[#allocation150_spill] sm:$0xff]  ;;  %v13004_v12 = vld [vmem:[#allocation147_spill] sm:$0xff] }
 0x68d   : > { %v12156_v10 = vpop.permute.xlu0 %6742  ;;  %v8892_v52 = vpop.eup %8891  ;;  %13001 = vst [vmem:[#allocation54_spill] sm:$0xff] %v12178_v59  ;;  %v6954_v8 = vmul.f32 %v11994_v48, %v12078_v27  ;;  %v6517_v17 = vsel %vm6490_vm7, %v8884_v19, %v13002_v26  ;;  %v6587_v55 = vsel %vm6555_vm8, %v6522_v18, %v13003_v58  ;;  %v6586_v6 = vsel %vm6555_vm8, %v6521_v49, %v13004_v12  ;;  %v13005_v22 = vld [vmem:[#allocation91_spill] sm:$0xff]  ;;  %v13006_v59 = vld [vmem:[#allocation92_spill] sm:$0xff]  ;;  %v13007_v58 = vld [vmem:[#allocation89_spill] sm:$0xff] }
 0x68e   : > { %v8894_v29 = vpop.eup %8893  ;;  %v6520_v39 = vsel %vm6490_vm7, %v8888_v32, %v13005_v22  ;;  %v6519_v51 = vsel %vm6490_vm7, %v8886_v40, %v13006_v59  ;;  %8917 = vpow2.f32 %v3348_v31  ;;  %v3350_v27 = vmul.f32 1.442695, %v3245_v33  ;;  %v13008_v32 = vld [vmem:[#allocation151_spill] sm:$0xff]  ;;  %v8334_v31 = vpop.f32.mrf.mxu0 }
 0x68f   : > { %v6778_v56 = vpop.permute.xlu1 %6777  ;;  %v8896_v48 = vpop.eup %8895  ;;  %v3126_v19 = vadd.f32 %v11936_v46, %v11843_v54  ;;  %v6955_v18 = vmul.f32 %v11989_v5, %v12108_v1  ;;  %v6582_v12 = vsel %vm6555_vm8, %v6517_v17, %v13008_v32  ;;  %v6952_v54 = vmul.f32 %v12014_v43, %v12096_v21  ;;  %v13010_v1 = vld [vmem:[#allocation149_spill] sm:$0xff]  ;;  %v13012_v21 = vld [vmem:[#allocation83_spill] sm:$0xff] }
 0x690   : > { %v6971_v16 = vmul.f32 %v6778_v56, %v6587_v55  ;;  %v12196_v26 = vpop.eup %8897  ;;  %v3250_v56 = vsub.f32 0.0, %v3134_v13  ;;  %v6518_v55 = vsel %vm6490_vm7, %v8892_v52, %v13007_v58  ;;  %v6966_v52 = vmul.f32 %v12132_v44, %v6582_v12  ;;  %v13011_v58 = vld [vmem:[#allocation88_spill] sm:$0xff] }
 0x691   : > { %v6773_v35 = vpop.permute.xlu0 %6772  ;;  %v8900_v59 = vpop.eup %8899  ;;  %v7011_v33 = vpack.c.bf16 %v6955_v18, %v6954_v8  ;;  %v3248_v18 = vsub.f32 0.0, %v3126_v19  ;;  %v6953_v43 = vmul.f32 %v12003_v3, %v12118_v30  ;;  %v3137_v44 = vadd.f32 %v11936_v46, %v11869_v25 }
 0x692   : > { %v6970_v42 = vmul.f32 %v6773_v35, %v6586_v6  ;;  %v13009_v6 = vld [vmem:[#allocation152_spill] sm:$0xff]  ;;  %v6584_v35 = vsel %vm6555_vm8, %v6519_v51, %v13010_v1  ;;  %v12208_v22 = vpop.eup %8901  ;;  %v13013_v51 = vld [vmem:[#allocation154_spill] sm:$0xff]  ;;  %8919 = vpow2.f32 %v3354_v11  ;;  %v3189_v3 = vpop.f32.mrf.mxu0  ;;  %v6950_v30 = vmul.f32 %v11960_v60, %v12045_v23 }
 0x693   : > { %v6768_v49 = vpop.permute.xlu1 %6767  ;;  %v6585_v5 = vsel %vm6555_vm8, %v6520_v39, %v13009_v6  ;;  %v8904_v8 = vpop.eup %8903  ;;  %v6512_v39 = vsel %vm6490_vm7, %v8894_v29, %v13012_v21  ;;  %v6583_v32 = vsel %vm6555_vm8, %v6518_v55, %v13013_v51  ;;  %v7010_v29 = vpack.c.bf16 %v6953_v43, %v6952_v54  ;;  %v13015_v55 = vld [vmem:[#allocation153_spill] sm:$0xff]  ;;  %v13018_v23 = vld [vmem:[#allocation156_spill] sm:$0xff]  ;;  %v13020_v21 = vld [vmem:[#allocation6_spill] sm:$0xff] }
 0x694   : > { %v7019_v40 = vpack.c.bf16 %v6971_v16, %v6970_v42  ;;  %v6515_v16 = vsel %vm6490_vm7, %v8896_v48, %v13011_v58  ;;  %v6969_v17 = vmul.f32 %v6768_v49, %v6585_v5  ;;  %v12219_v6 = vpop.eup %8905  ;;  %v6967_v48 = vmul.f32 %v12120_v62, %v6583_v32  ;;  %v13014_v49 = vld [vmem:[#allocation87_spill] sm:$0xff]  ;;  %v13016_v62 = vld [vmem:[#allocation102_spill] sm:$0xff]  ;;  %v13017_v58 = vld [vmem:[#allocation157_spill] sm:$0xff] }
 0x695   : > { %v6763_v13 = vpop.permute.xlu0 %6762  ;;  %v6516_v19 = vsel %vm6490_vm7, %v8900_v59, %v13014_v49  ;;  %v3360_v1 = vmul.f32 1.442695, %v3250_v56  ;;  %v6529_v59 = vsel %vm6490_vm7, %v8904_v8, %v13016_v62  ;;  %8921 = vpow2.f32 %v3350_v27  ;;  %v13021_v51 = vld [vmem:[#allocation84_spill] sm:$0xff] }
 0x696   : > { %v6968_v42 = vmul.f32 %v6763_v13, %v6584_v35  ;;  %7934 = vmatprep.subr.bf16.mxu0 %v7019_v40  ;;  %v8908_v40 = vpop.eup %8907  ;;  %v7017_v35 = vpack.c.bf16 %v6967_v48, %v6966_v52  ;;  %v6951_v11 = vmul.f32 %v11948_v24, %v12061_v53  ;;  %v6577_v60 = vsel %vm6555_vm8, %v6512_v39, %v13017_v58  ;;  %v8335_v53 = vpop.f32.mrf.mxu0 }
 0x697   : > { %7935 = vmatpush3.bf16.msra.mxu0 %v7011_v33  ;;  %v6580_v33 = vsel %vm6555_vm8, %v6515_v16, %v13015_v55  ;;  %v8910_v5 = vpop.eup %8909  ;;  %v6581_v54 = vsel %vm6555_vm8, %v6516_v19, %v13018_v23  ;;  %v3356_v52 = vmul.f32 1.442695, %v3248_v18  ;;  %v3129_v24 = vadd.f32 %v11936_v46, %v11901_v34  ;;  %v13023_v55 = vld [vmem:[#allocation148_spill] sm:$0xff] }
 0x698   : > { %v7018_v12 = vpack.c.bf16 %v6969_v17, %v6968_v42  ;;  %v6964_v25 = vmul.f32 %v12156_v10, %v6580_v33  ;;  %v8912_v13 = vpop.eup %8911  ;;  %v3251_v10 = vsub.f32 0.0, %v3137_v44  ;;  %v6965_v16 = vmul.f32 %v12140_v41, %v6581_v54  ;;  %v13019_v17 = vld [vmem:[#allocation101_spill] sm:$0xff] }
 0x699   : > { %v12239_v56 = vpop.eup %8913  ;;  %v6530_v27 = vsel %vm6490_vm7, %v8908_v40, %v13019_v17  ;;  %v7009_v8 = vpack.c.bf16 %v6951_v11, %v6950_v30  ;;  %v6948_v43 = vmul.f32 %v11982_v47, %v12065_v15  ;;  %v6594_v18 = vsel %vm6555_vm8, %v6529_v59, %v13020_v21  ;;  %v13022_v15 = vld [vmem:[#allocation7_spill] sm:$0xff] }
 0x69a   : > { %7936 = vmatprep.subr.bf16.mxu0 %v7018_v12  ;;  %v12244_v42 = vpop.eup %8915  ;;  %v6962_v41 = vmul.f32 %v12087_v14, %v12176_v57  ;;  %v6511_v32 = vsel %vm6490_vm7, %v12170_v9, %v13021_v51  ;;  %v7016_v44 = vpack.c.bf16 %v6965_v16, %v6964_v25  ;;  %v3432_v34 = vadd.f32 1.0, %v8910_v5 }
 0x69b   : > { %7937 = vmatpush3.bf16.msra.mxu0 %v7010_v29  ;;  %v3198_v49 = vadd.f32 %v11936_v46, %v8334_v31  ;;  %v6949_v47 = vmul.f32 %v11972_v36, %v12072_v0  ;;  %v6595_v19 = vsel %vm6555_vm8, %v6530_v27, %v13022_v15  ;;  %v12264_v40 = vpop.eup %8917  ;;  %v3362_v14 = vmul.f32 1.442695, %v3251_v10  ;;  %v3192_v36 = vpop.f32.mrf.mxu0  ;;  %v13031_v15 = vld [vmem:[#allocation38_spill] sm:$0xff] }
 0x69c   : > { %7938 = vmatprep.subr.bf16.mxu0 %v7017_v35  ;;  %v3201_v57 = vadd.f32 %v11936_v46, %v8335_v53  ;;  %v6963_v9 = vmul.f32 %v12074_v4, %v12168_v61  ;;  %v3249_v31 = vsub.f32 0.0, %v3129_v24  ;;  %v3150_v0 = vadd.f32 %v11936_v46, %v11940_v37 }
 0x69d   : > { %v6813_v39 = vpop.permute.xlu1 %6812  ;;  %v7008_v29 = vpack.c.bf16 %v6949_v47, %v6948_v43  ;;  %v6576_v33 = vsel %vm6555_vm8, %v6511_v32, %v13023_v55  ;;  %v3185_v35 = vadd.f32 %v11936_v46, %v12144_v50  ;;  %v3433_v62 = vadd.f32 1.0, %v8912_v13 }
 0x69e   : > { %v12257_v48 = vmul.f32 %v6813_v39, %v6594_v18  ;;  %v7015_v25 = vpack.c.bf16 %v6963_v9, %v6962_v41  ;;  %v6960_v4 = vmul.f32 %v12110_v2, %v6576_v33  ;;  %8923 = vpow2.f32 %v3360_v1  ;;  %v13028_v18 = vld [vmem:[#allocation51_spill] sm:$0xff]  ;;  %v13029_v41 = vld [vmem:[#allocation62_spill] sm:$0xff] }
 0x69f   : > { %v6818_v12 = vpop.permute.xlu0 %6817  ;;  %7939 = vmatpush3.bf16.msra.mxu0 %v7009_v8  ;;  %v3266_v59 = vsub.f32 0.0, %v3198_v49  ;;  %v3190_v37 = vadd.f32 %v11936_v46, %v3189_v3  ;;  %8925 = vrcp.f32 %v3432_v34  ;;  %v3267_v58 = vsub.f32 0.0, %v3201_v57  ;;  %v12291_v10 = vpop.eup %8919  ;;  %v13026_v8 = vld [vmem:[#allocation54_spill] sm:$0xff]  ;;  %v13033_v57 = vld [vmem:[#allocation32_spill] sm:$0xff] }
 0x6a0   : > { %v12269_v30 = vmul.f32 %v6818_v12, %v6595_v19  ;;  %7940 = vmatprep.subr.bf16.mxu0 %v7016_v44  ;;  %v3193_v23 = vadd.f32 %v11936_v46, %v3192_v36  ;;  %v6961_v50 = vmul.f32 %v12098_v63, %v6577_v60  ;;  %8927 = vpow2.f32 %v3356_v52  ;;  %v13032_v19 = vld [vmem:[#allocation33_spill] sm:$0xff]  ;;  %v13034_v36 = vld [vmem:[#allocation60_spill] sm:$0xff] }
 0x6a1   : > { %v12275_v5 = vpop.permute.xlu1 %6802  ;;  %v3358_v2 = vmul.f32 1.442695, %v3249_v31  ;;  %v3254_v54 = vsub.f32 0.0, %v3150_v0  ;;  %v3182_v13 = vadd.f32 %v11936_v46, %v12104_v28  ;;  %8929 = vpow2.f32 %v3362_v14  ;;  %v13024_v28 = vld [vmem:[#allocation56_spill] sm:$0xff] }
 0x6a2   : > { %v7023_v61 = vpack.c.bf16 %v12269_v30, %v12257_v48  ;;  %v3263_v3 = vsub.f32 0.0, %v3185_v35  ;;  %v6959_v16 = vmul.f32 %v12031_v7, %v12148_v45  ;;  %v7014_v17 = vpack.c.bf16 %v6961_v50, %v6960_v4  ;;  %v12302_v53 = vpop.eup %8921  ;;  %v13027_v45 = vld [vmem:[#allocation36_spill] sm:$0xff]  ;;  %v13038_v4 = vld [vmem:[#allocation31_spill] sm:$0xff] }
 0x6a3   : > { %v12283_v11 = vpop.permute.xlu0 %6807  ;;  %7941 = vmatpush3.bf16.msra.mxu0 %v7008_v29  ;;  %8931 = vrcp.f32 %v3433_v62  ;;  %v3142_v63 = vadd.f32 %v11936_v46, %v11958_v20  ;;  %v3392_v60 = vmul.f32 1.442695, %v3266_v59  ;;  %v3264_v52 = vsub.f32 0.0, %v3190_v37  ;;  %v13035_v29 = vld [vmem:[#allocation59_spill] sm:$0xff]  ;;  %v13039_v37 = vld [vmem:[#allocation52_spill] sm:$0xff] }
 0x6a4   : > { %7942 = vmatprep.subr.bf16.mxu0 %v7015_v25  ;;  %v13025_v24 = vpack.c.bf16 %v11895_v38, %v13024_v28  ;;  %v3177_v43 = vadd.f32 %v11936_v46, %v13026_v8  ;;  %v3394_v21 = vmul.f32 1.442695, %v3267_v58  ;;  %v3265_v7 = vsub.f32 0.0, %v3193_v23  ;;  %v13030_v38 = vld [vmem:[#allocation35_spill] sm:$0xff]  ;;  %v13037_v25 = vld [vmem:[#allocation37_spill] sm:$0xff] }
 0x6a5   : > { %v12289_v1 = vpop.permute.xlu1 %6832  ;;  %v6958_v39 = vmul.f32 %v13028_v18, %v13027_v45  ;;  %8933 = vpow2.f32 %v3358_v2  ;;  %v3368_v20 = vmul.f32 1.442695, %v3254_v54  ;;  %v3153_v51 = vadd.f32 %v11936_v46, %v13029_v41  ;;  %v13096_v30 = vld [vmem:[#allocation111_spill] sm:$0xff] }
 0x6a6   : > { %v3262_v32 = vsub.f32 0.0, %v3182_v13  ;;  %v3174_v34 = vadd.f32 %v11936_v46, %v13030_v38  ;;  %v3386_v49 = vmul.f32 1.442695, %v3263_v3  ;;  %v6957_v12 = vmul.f32 %v13032_v19, %v13031_v15 }
 0x6a7   : > { %v12297_v27 = vpop.permute.xlu0 %6837  ;;  %7943 = vmatpush3.bf16.msra.mxu0 %v13025_v24  ;;  %v7013_v47 = vpack.c.bf16 %v6959_v16, %v6958_v39  ;;  %v3252_v14 = vsub.f32 0.0, %v3142_v63  ;;  %v3169_v9 = vadd.f32 %v11936_v46, %v13033_v57  ;;  %8935 = vpow2.f32 %v3392_v60  ;;  %v13040_v16 = vld [vmem:[#allocation55_spill] sm:$0xff]  ;;  %v13041_v60 = vld [vmem:[#allocation29_spill] sm:$0xff] }
 0x6a8   : > { %7944 = vmatprep.subr.bf16.mxu0 %v7014_v17  ;;  %v3388_v31 = vmul.f32 1.442695, %v3264_v52  ;;  %v13036_v55 = vpack.c.bf16 %v13034_v36, %v13035_v29  ;;  %v3261_v33 = vsub.f32 0.0, %v3177_v43  ;;  %8937 = vpow2.f32 %v3394_v21  ;;  %v13042_v52 = vld [vmem:[#allocation28_spill] sm:$0xff]  ;;  %v13044_v43 = vld [vmem:[#allocation34_spill] sm:$0xff] }
 0x6a9   : > { %v3390_v35 = vmul.f32 1.442695, %v3265_v7  ;;  %v6956_v62 = vmul.f32 %v13038_v4, %v13037_v25  ;;  %8939 = vpow2.f32 %v3368_v20  ;;  %v3255_v59 = vsub.f32 0.0, %v3153_v51  ;;  %v9123_v29 = vld [vmem:[%s12577_s3 + $0x24] ss:$16 sps:$4 sm:$0xff]  }
 0x6aa   : > { %v12310_v44 = vpop.permute.xlu1 %6822  ;;  %v3166_v58 = vadd.f32 %v11936_v46, %v13039_v37  ;;  %v3384_v23 = vmul.f32 1.442695, %v3262_v32  ;;  %v3438_v2 = vadd.f32 1.0, %v12244_v42  ;;  %v3260_v54 = vsub.f32 0.0, %v3174_v34  ;;  %v13045_v34 = vld [vmem:[#allocation30_spill] sm:$0xff] }
 0x6ab   : > { %v12318_v0 = vpop.permute.xlu0 %6827  ;;  %7945 = vmatpush3.bf16.msra.mxu0 %v13036_v55  ;;  %8941 = vpow2.f32 %v3386_v49  ;;  %v7012_v13 = vpack.c.bf16 %v6957_v12, %v6956_v62  ;;  %v3364_v3 = vmul.f32 1.442695, %v3252_v14  ;;  %v3158_v17 = vadd.f32 %v11936_v46, %v13040_v16  ;;  %v8924_v24 = vpop.eup %8923  ;;  %v13046_v49 = vld [vmem:[#allocation27_spill] sm:$0xff]  ;;  %v13048_v16 = vld [vmem:[#allocation48_spill] sm:$0xff] }
 0x6ac   : > { %7946 = vmatprep.subr.bf16.mxu0 %v7013_v47  ;;  %8943 = vpow2.f32 %v3388_v31  ;;  %v13043_v28 = vpack.c.bf16 %v13041_v60, %v13042_v52  ;;  %v3259_v8 = vsub.f32 0.0, %v3169_v9  ;;  %v3161_v21 = vadd.f32 %v11936_v46, %v13044_v43  ;;  %v12339_v7 = vpop.eup %8925 }
 0x6ad   : > { %v3382_v42 = vmul.f32 1.442695, %v3261_v33  ;;  %8945 = vpow2.f32 %v3390_v35  ;;  %v3370_v45 = vmul.f32 1.442695, %v3255_v59  ;;  %v3258_v18 = vsub.f32 0.0, %v3166_v58  ;;  %v8928_v39 = vpop.eup %8927 }
 0x6ae   : > { %v12327_v50 = vpop.permute.xlu1 %6852  ;;  %8947 = vpow2.f32 %v3384_v23  ;;  %v3380_v20 = vmul.f32 1.442695, %v3260_v54  ;;  %v8930_v41 = vpop.eup %8929  ;;  %v3439_v51 = vadd.f32 1.0, %v12291_v10  ;;  %v3256_v32 = vsub.f32 0.0, %v3158_v17  ;;  %v9122_v10 = vld [vmem:[%s12577_s3] ss:$16 sps:$4 sm:$0xff]  }
 0x6af   : > { %v12332_v63 = vpop.permute.xlu0 %6857  ;;  %7947 = vmatpush3.bf16.msra.mxu0 %v13043_v28  ;;  %8949 = vrcp.f32 %v3438_v2  ;;  %v13047_v47 = vpack.c.bf16 %v13045_v34, %v13046_v49  ;;  %v3378_v19 = vmul.f32 1.442695, %v3259_v8  ;;  %v3257_v12 = vsub.f32 0.0, %v3161_v21 }
 0x6b0   : > { %7948 = vmatprep.subr.bf16.mxu0 %v7012_v13  ;;  %8951 = vpow2.f32 %v3364_v3  ;;  %v12347_v15 = vpop.eup %8931  ;;  %v3376_v14 = vmul.f32 1.442695, %v3258_v18  ;;  %v3442_v31 = vadd.f32 1.0, %v8924_v24  ;;  %v3372_v36 = vmul.f32 1.442695, %v3256_v32 }
 0x6b1   : > { %8953 = vpow2.f32 %v3382_v42  ;;  %v3374_v33 = vmul.f32 1.442695, %v3257_v12  ;;  %v3440_v25 = vadd.f32 1.0, %v8928_v39  ;;  %v3443_v59 = vadd.f32 1.0, %v8930_v41  ;;  %v9124_v24 = vld [vmem:[%s12577_s3 + $0x20] ss:$16 sps:$4 sm:$0xff]  }
 0x6b2   : > { %v12342_v38 = vpop.permute.xlu1 %6842  ;;  %8955 = vpow2.f32 %v3370_v45  ;;  %v8934_v9 = vpop.eup %8933  ;;  %v3145_v17 = vadd.f32 %v11936_v46, %v13048_v16  ;;  %v9125_v46 = vld [vmem:[%s12577_s3 + $0xc] ss:$16 sps:$4 sm:$0xff]   ;;  %v3431_v32 = vadd.f32 1.0, %v12208_v22  ;;  %v3436_v49 = vadd.f32 1.0, %v12264_v40 }
 0x6b3   : > { %7949 = vmatpush3.bf16.msra.mxu0 %v13047_v47  ;;  %v12349_v57 = vpop.permute.xlu0 %6847  ;;  %8957 = vpow2.f32 %v3380_v20  ;;  %v3441_v3 = vadd.f32 1.0, %v8934_v9  ;;  %v3437_v22 = vadd.f32 1.0, %v12302_v53 }
 0x6b4   : > { %8959 = vrcp.f32 %v3439_v51  ;;  %v8936_v55 = vpop.eup %8935  ;;  %v3253_v39 = vsub.f32 0.0, %v3145_v17 }
 0x6b5   : > { %8961 = vpow2.f32 %v3378_v19  ;;  %v8938_v35 = vpop.eup %8937  ;;  %v3458_v58 = vadd.f32 1.0, %v8936_v55 }
 0x6b6   : > { %7069 = vmatmul.mubr.bf16.vlgmr.msra.gmra.mxu0 %v9122_v10  ;;  %8963 = vpow2.f32 %v3376_v14  ;;  %v12357_v4 = vpop.permute.xlu1 %6872  ;;  %v8940_v62 = vpop.eup %8939  ;;  %v3459_v54 = vadd.f32 1.0, %v8938_v35  ;;  %v3366_v9 = vmul.f32 1.442695, %v3253_v39 }
 0x6b7   : > { %7076 = vmatprep.mubr.bf16.mxu0 %v9123_v29  ;;  %8965 = vrcp.f32 %v3442_v31  ;;  %v12359_v23 = vpop.permute.xlu0 %6877 }
 0x6b8   : > { %v8942_v37 = vpop.eup %8941  ;;  %8967 = vpow2.f32 %v3372_v36 }
 0x6b9   : > { %v8944_v2 = vpop.eup %8943  ;;  %8969 = vpow2.f32 %v3374_v33  ;;  %v3455_v28 = vadd.f32 1.0, %v8942_v37 }
 0x6ba   : > { %v8946_v13 = vpop.eup %8945  ;;  %8971 = vrcp.f32 %v3440_v25  ;;  %v3456_v43 = vadd.f32 1.0, %v8944_v2  ;;  %v3446_v25 = vadd.f32 1.0, %v8940_v62  ;;  %v12391_v62 = vadd.f32 1.0, %v12196_v26  ;;  %v13052_v26 = vld [vmem:[#allocation109_spill] sm:$0xff] }
 0x6bb   : > { %v8948_v52 = vpop.eup %8947  ;;  %8973 = vrcp.f32 %v3443_v59  ;;  %v3457_v45 = vadd.f32 1.0, %v8946_v13 }
 0x6bc   : > { %v12368_v8 = vpop.eup %8949  ;;  %8975 = vrcp.f32 %v3458_v58  ;;  %v3454_v20 = vadd.f32 1.0, %v8948_v52 }
 0x6bd   : > { %v12363_v60 = vpop.permute.xlu1 %6892  ;;  %v8952_v42 = vpop.eup %8951  ;;  %8977 = vrcp.f32 %v3459_v54 }
 0x6be   : > { %7077 = vmatmul.mubr.bf16.gmra.mxu0 %v9124_v24  ;;  %v8954_v18 = vpop.eup %8953  ;;  %8979 = vrcp.f32 %v3441_v3  ;;  %v13049_v24 = vld [vmem:[#allocation99_spill] sm:$0xff]  ;;  %v12399_v39 = vadd.f32 1.0, %v8952_v42 }
 0x6bf   : > { %v12370_v21 = vpop.permute.xlu0 %6897  ;;  %7117 = vmatprep.mubr.bf16.mxu0 %v9125_v46  ;;  %v8956_v51 = vpop.eup %8955  ;;  %8981 = vrcp.f32 %v3455_v28  ;;  %v3453_v12 = vadd.f32 1.0, %v8954_v18  ;;  %v13050_v46 = vld [vmem:[#allocation100_spill] sm:$0xff] }
 0x6c0   : > { %v8958_v34 = vpop.eup %8957  ;;  %8983 = vrcp.f32 %v3456_v43  ;;  %v3447_v54 = vadd.f32 1.0, %v8956_v51  ;;  %v6528_v43 = vsel %vm6490_vm7, %v12347_v15, %v13049_v24  ;;  %v13053_v15 = vld [vmem:[#allocation126_spill] sm:$0xff] }
 0x6c1   : > { %v12375_v41 = vpop.permute.xlu1 %6882  ;;  %v8960_v19 = vpop.eup %8959  ;;  %8985 = vrcp.f32 %v3457_v45  ;;  %v3452_v36 = vadd.f32 1.0, %v8958_v34  ;;  %v6527_v45 = vsel %vm6490_vm7, %v12339_v7, %v13050_v46 }
 0x6c2   : > { %v8962_v14 = vpop.eup %8961  ;;  %8987 = vrcp.f32 %v3454_v20  ;;  %v13051_v20 = vld [vmem:[#allocation106_spill] sm:$0xff] }
 0x6c3   : > { %v12379_v47 = vpop.permute.xlu0 %6887  ;;  %v8964_v10 = vpop.eup %8963  ;;  %8989 = vrcp.f32 %v3431_v32  ;;  %v3451_v33 = vadd.f32 1.0, %v8962_v14  ;;  %v12404_v51 = vsel %vm6490_vm7, %v12368_v8, %v13051_v20  ;;  %v13054_v14 = vld [vmem:[#allocation125_spill] sm:$0xff] }
 0x6c4   : > { %v8966_v29 = vpop.eup %8965  ;;  %8991 = vrcp.f32 %v3436_v49  ;;  %v3450_v58 = vadd.f32 1.0, %v8964_v10  ;;  %v13055_v10 = vld [vmem:[#allocation105_spill] sm:$0xff] }
 0x6c5   : > { %v12381_v31 = vpop.permute.xlu1 %6912  ;;  %v8968_v40 = vpop.eup %8967  ;;  %8993 = vrcp.f32 %v3453_v12  ;;  %v6534_v8 = vsel %vm6490_vm7, %v8960_v19, %v13055_v10 }
 0x6c6   : > { %v8970_v35 = vpop.eup %8969  ;;  %8995 = vpow2.f32 %v3366_v9  ;;  %v3448_v17 = vadd.f32 1.0, %v8968_v40 }
 0x6c7   : > { %v12384_v55 = vpop.permute.xlu0 %6917  ;;  %v8972_v37 = vpop.eup %8971  ;;  %8997 = vrcp.f32 %v3452_v36  ;;  %v3449_v53 = vadd.f32 1.0, %v8970_v35  ;;  %v13056_v36 = vld [vmem:[#allocation110_spill] sm:$0xff] }
 0x6c8   : > { %v8974_v2 = vpop.eup %8973  ;;  %8999 = vrcp.f32 %v3437_v22  ;;  %v6537_v22 = vsel %vm6490_vm7, %v8966_v29, %v13056_v36 }
 0x6c9   : > { %v12386_v59 = vpop.permute.xlu1 %6902  ;;  %v8976_v3 = vpop.eup %8975  ;;  %9001 = vrcp.f32 %v3451_v33  ;;  %v6538_v32 = vsel %vm6490_vm7, %v8974_v2, %v13052_v26  ;;  %v13058_v2 = vld [vmem:[#allocation108_spill] sm:$0xff]  ;;  %v13063_v26 = vld [vmem:[#allocation159_spill] sm:$0xff] }
 0x6ca   : > { %v8978_v16 = vpop.eup %8977  ;;  %9003 = vrcp.f32 %v3446_v25  ;;  %v6553_v12 = vsel %vm6490_vm7, %v8976_v3, %v13053_v15  ;;  %v13057_v25 = vld [vmem:[#allocation161_spill] sm:$0xff]  ;;  %v13059_v3 = vld [vmem:[#allocation107_spill] sm:$0xff] }
 0x6cb   : > { %v12388_v13 = vpop.permute.xlu0 %6907  ;;  %v8980_v28 = vpop.eup %8979  ;;  %9005 = vrcp.f32 %v3450_v58  ;;  %v6554_v42 = vsel %vm6490_vm7, %v8978_v16, %v13054_v14  ;;  %v6603_v58 = vsel %vm6555_vm8, %v6538_v32, %v13057_v25  ;;  %v13060_v16 = vld [vmem:[#allocation121_spill] sm:$0xff] }
 0x6cc   : > { %v8982_v18 = vpop.eup %8981  ;;  %9007 = vrcp.f32 %v3447_v54  ;;  %v6535_v54 = vsel %vm6490_vm7, %v8972_v37, %v13058_v2  ;;  %v6987_v29 = vmul.f32 %v12332_v63, %v6603_v58  ;;  %v6619_v37 = vsel %vm6555_vm8, %v6554_v42, %v13063_v26  ;;  %v13068_v58 = vld [vmem:[#allocation122_spill] sm:$0xff] }
 0x6cd   : > { %v6933_v52 = vpop.permute.xlu1 %6932  ;;  %v8984_v49 = vpop.eup %8983  ;;  %9009 = vrcp.f32 %v3449_v53  ;;  %v6536_v53 = vsel %vm6490_vm7, %v8980_v28, %v13059_v3  ;;  %v6550_v19 = vsel %vm6490_vm7, %v8982_v18, %v13060_v16  ;;  %v13070_v16 = vld [vmem:[#allocation164_spill] sm:$0xff] }
 0x6ce   : > { %v8986_v9 = vpop.eup %8985  ;;  %9011 = vrcp.f32 %v3448_v17 }
 0x6cf   : > { %v6373_v34 = vpop.permute.xlu0 %6372  ;;  %v8988_v35 = vpop.eup %8987  ;;  %9013 = vrcp.f32 %v12399_v39 }
 0x6d0   : > { %v6593_v7 = vsel %vm6555_vm8, %v6528_v43, %v6373_v34  ;;  %v12428_v17 = vpop.eup %8989  ;;  %v13062_v43 = vld [vmem:[#allocation124_spill] sm:$0xff]  ;;  %v13064_v34 = vld [vmem:[#allocation162_spill] sm:$0xff]  ;;  %v6549_v42 = vsel %vm6490_vm7, %v8988_v35, %v13068_v58  ;;  %v13071_v35 = vld [vmem:[#allocation163_spill] sm:$0xff] }
 0x6d1   : > { %v12418_v40 = vmul.f32 %v12283_v11, %v6593_v7  ;;  %v6923_v33 = vpop.permute.xlu1 %6922  ;;  %v13061_v11 = vld [vmem:[#allocation160_spill] sm:$0xff]  ;;  %v6551_v46 = vsel %vm6490_vm7, %v8984_v49, %v13062_v43  ;;  %v8992_v32 = vpop.eup %8991  ;;  %v6602_v28 = vsel %vm6555_vm8, %v6537_v22, %v13064_v34  ;;  %v13065_v7 = vld [vmem:[#allocation123_spill] sm:$0xff]  ;;  %v13067_v49 = vld [vmem:[#allocation165_spill] sm:$0xff] }
 0x6d2   : > { %v6618_v24 = vsel %vm6555_vm8, %v6553_v12, %v13061_v11  ;;  %v6552_v14 = vsel %vm6490_vm7, %v8986_v9, %v13065_v7  ;;  %v8994_v63 = vpop.eup %8993  ;;  %v6986_v10 = vmul.f32 %v12327_v50, %v6602_v28  ;;  %v13066_v12 = vld [vmem:[#allocation166_spill] sm:$0xff]  ;;  %v6601_v25 = vsel %vm6555_vm8, %v6536_v53, %v13067_v49  ;;  %v13069_v22 = vld [vmem:[#allocation167_spill] sm:$0xff] }
 0x6d3   : > { %v6938_v20 = vpop.permute.xlu0 %6937  ;;  %v7002_v15 = vmul.f32 %v6933_v52, %v6618_v24  ;;  %v6600_v36 = vsel %vm6555_vm8, %v6535_v54, %v13066_v12  ;;  %v8996_v3 = vpop.eup %8995  ;;  %v6615_v52 = vsel %vm6555_vm8, %v6550_v19, %v13069_v22  ;;  %v6616_v9 = vsel %vm6555_vm8, %v6551_v46, %v13070_v16  ;;  %v13072_v34 = vld [vmem:[#allocation119_spill] sm:$0xff]  ;;  %v13075_v12 = vld [vmem:[#allocation120_spill] sm:$0xff] }
 0x6d4   : > { %v7003_v18 = vmul.f32 %v6938_v20, %v6619_v37  ;;  %v8998_v24 = vpop.eup %8997  ;;  %v7027_v43 = vpack.c.bf16 %v6987_v29, %v6986_v10  ;;  %v6985_v54 = vmul.f32 %v12349_v57, %v6601_v25  ;;  %v6617_v26 = vsel %vm6555_vm8, %v6552_v14, %v13071_v35  ;;  %v13074_v10 = vld [vmem:[#allocation169_spill] sm:$0xff]  ;;  %v13076_v58 = vld [vmem:[#allocation103_spill] sm:$0xff]  ;;  %v13081_v35 = vld [vmem:[#allocation172_spill] sm:$0xff] }
 0x6d5   : > { %v6371_v2 = vpop.permute.xlu1 %6370  ;;  %v9000_v37 = vpop.eup %8999  ;;  %v6999_v19 = vmul.f32 %v12384_v55, %v6615_v52  ;;  %v6548_v46 = vsel %vm6490_vm7, %v8994_v63, %v13072_v34  ;;  %v7000_v28 = vmul.f32 %v6923_v33, %v6616_v9  ;;  %v3445_v29 = vadd.f32 1.0, %v8996_v3  ;;  %v13077_v3 = vld [vmem:[#allocation171_spill] sm:$0xff]  ;;  %v13078_v9 = vld [vmem:[#allocation170_spill] sm:$0xff] }
 0x6d6   : > { %v7035_v11 = vpack.c.bf16 %v7003_v18, %v7002_v15  ;;  %v6592_v50 = vsel %vm6555_vm8, %v6527_v45, %v6371_v2  ;;  %v9002_v45 = vpop.eup %9001  ;;  %v6984_v57 = vmul.f32 %v12342_v38, %v6600_v36  ;;  %v13073_v18 = vld [vmem:[#allocation168_spill] sm:$0xff]  ;;  %v6599_v63 = vsel %vm6555_vm8, %v6534_v8, %v13074_v10  ;;  %v13079_v8 = vld [vmem:[#allocation117_spill] sm:$0xff]  ;;  %v13086_v10 = vld [vmem:[#allocation115_spill] sm:$0xff] }
 0x6d7   : > { %v12455_v53 = vmul.f32 %v12275_v5, %v6592_v50  ;;  %v6928_v20 = vpop.permute.xlu0 %6927  ;;  %v6614_v5 = vsel %vm6555_vm8, %v6549_v42, %v13073_v18  ;;  %v9004_v55 = vpop.eup %9003  ;;  %v6547_v49 = vsel %vm6490_vm7, %v8998_v24, %v13075_v12  ;;  %v6983_v36 = vmul.f32 %v12297_v27, %v6599_v63  ;;  %v13085_v18 = vld [vmem:[#allocation2_spill] sm:$0xff] }
 0x6d8   : > { %v7001_v15 = vmul.f32 %v6928_v20, %v6617_v26  ;;  %7962 = vmatprep.subr.bf16.mxu0 %v7035_v11  ;;  %v6998_v33 = vmul.f32 %v12381_v31, %v6614_v5  ;;  %v9006_v38 = vpop.eup %9005  ;;  %v6532_v42 = vsel %vm6490_vm7, %v9000_v37, %v13076_v58  ;;  %v7026_v2 = vpack.c.bf16 %v6985_v54, %v6984_v57  ;;  %v13080_v54 = vld [vmem:[#allocation104_spill] sm:$0xff] }
 0x6d9   : > { %v7022_v7 = vpack.c.bf16 %v12418_v40, %v12455_v53  ;;  %v12467_v14 = vpop.permute.xlu1 %6792  ;;  %7963 = vmatpush3.bf16.msra.mxu0 %v7027_v43  ;;  %v6613_v22 = vsel %vm6555_vm8, %v6548_v46, %v13077_v3  ;;  %v9008_v16 = vpop.eup %9007  ;;  %v6598_v31 = vsel %vm6555_vm8, %v12404_v51, %v13078_v9  ;;  %v6546_v11 = vsel %vm6490_vm7, %v9002_v45, %v13079_v8  ;;  %v13083_v46 = vld [vmem:[#allocation118_spill] sm:$0xff]  ;;  %v13098_v53 = vld [vmem:[#allocation95_spill] sm:$0xff] }
 0x6da   : > { %v7034_v25 = vpack.c.bf16 %v7001_v15, %v7000_v28  ;;  %v7033_v50 = vpack.c.bf16 %v6999_v19, %v6998_v33  ;;  %v6997_v24 = vmul.f32 %v12388_v13, %v6613_v22  ;;  %v9010_v27 = vpop.eup %9009  ;;  %v6982_v43 = vmul.f32 %v12289_v1, %v6598_v31  ;;  %v13082_v19 = vld [vmem:[#allocation3_spill] sm:$0xff]  ;;  %v13084_v15 = vld [vmem:[#allocation4_spill] sm:$0xff]  ;;  %v13091_v22 = vld [vmem:[#allocation9_spill] sm:$0xff] }
 0x6db   : > { %v6798_v52 = vpop.permute.xlu0 %6797  ;;  %v6531_v20 = vsel %vm6490_vm7, %v8992_v32, %v13080_v54  ;;  %v6612_v26 = vsel %vm6555_vm8, %v6547_v49, %v13081_v35  ;;  %v9012_v51 = vpop.eup %9011  ;;  %v3429_v34 = vadd.f32 1.0, %v12219_v6  ;;  %v6597_v13 = vsel %vm6555_vm8, %v6532_v42, %v13082_v19  ;;  %v13092_v31 = vld [vmem:[#allocation98_spill] sm:$0xff] }
 0x6dc   : > { %7964 = vmatprep.subr.bf16.mxu0 %v7034_v25  ;;  %v6545_v28 = vsel %vm6490_vm7, %v9006_v38, %v13083_v46  ;;  %v6996_v39 = vmul.f32 %v12386_v59, %v6612_v26  ;;  %9015 = vrcp.f32 %v3445_v29  ;;  %v7025_v1 = vpack.c.bf16 %v6983_v36, %v6982_v43  ;;  %v13087_v29 = vld [vmem:[#allocation5_spill] sm:$0xff]  ;;  %v13088_v25 = vld [vmem:[#allocation116_spill] sm:$0xff] }
 0x6dd   : > { %v6399_v37 = vpop.permute.xlu1 %6398  ;;  %7965 = vmatpush3.bf16.msra.mxu0 %v7026_v2  ;;  %v6981_v32 = vmul.f32 %v12318_v0, %v6597_v13  ;;  %v6611_v45 = vsel %vm6555_vm8, %v6546_v11, %v13084_v15  ;;  %v6596_v6 = vsel %vm6555_vm8, %v6531_v20, %v13085_v18  ;;  %v6544_v63 = vsel %vm6490_vm7, %v9010_v27, %v13086_v10  ;;  %v13089_v36 = vld [vmem:[#allocation8_spill] sm:$0xff]  ;;  %v13090_v2 = vld [vmem:[#allocation113_spill] sm:$0xff] }
 0x6de   : > { %7966 = vmatprep.subr.bf16.mxu0 %v7033_v50  ;;  %v6995_v5 = vmul.f32 %v12370_v21, %v6611_v45  ;;  %v7032_v33 = vpack.c.bf16 %v6997_v24, %v6996_v39  ;;  %9017 = vrcp.f32 %v12391_v62  ;;  %v6980_v59 = vmul.f32 %v12310_v44, %v6596_v6  ;;  %v13093_v24 = vld [vmem:[#allocation114_spill] sm:$0xff]  ;;  %v13094_v43 = vld [vmem:[#allocation97_spill] sm:$0xff]  ;;  %v13097_v45 = vld [vmem:[#allocation96_spill] sm:$0xff] }
 0x6df   : > { %v6401_v57 = vpop.permute.xlu0 %6400  ;;  %v6610_v0 = vsel %vm6555_vm8, %v6545_v28, %v13087_v29  ;;  %v6543_v38 = vsel %vm6490_vm7, %v9012_v51, %v13088_v25  ;;  %9019 = vrcp.f32 %v3429_v34  ;;  %v6609_v58 = vsel %vm6555_vm8, %v6544_v63, %v13089_v36  ;;  %v13095_v28 = vld [vmem:[#allocation112_spill] sm:$0xff]  ;;  %v9126_v29 = vld [vmem:[%s12577_s3 + $0x8] ss:$16 sps:$4 sm:$0xff]  }
 0x6e0   : > { %v6994_v49 = vmul.f32 %v12363_v60, %v6610_v0  ;;  %v7024_v21 = vpack.c.bf16 %v6981_v32, %v6980_v59  ;;  %v6993_v44 = vmul.f32 %v12379_v47, %v6609_v58  ;;  %v6542_v3 = vsel %vm6490_vm7, %v9008_v16, %v13090_v2  ;;  %v9127_v0 = vld [vmem:[%s12577_s3 + $0x2c] ss:$16 sps:$4 sm:$0xff]  }
 0x6e1   : > { %v6863_v12 = vpop.permute.xlu1 %6862  ;;  %7967 = vmatpush3.bf16.msra.mxu0 %v7025_v1  ;;  %v6608_v9 = vsel %vm6555_vm8, %v6543_v38, %v13091_v22  ;;  %v6607_v60 = vsel %vm6555_vm8, %v6542_v3, %v6401_v57  ;;  %v6525_v8 = vsel %vm6490_vm7, %v12239_v56, %v13092_v31  ;;  %v6541_v27 = vsel %vm6490_vm7, %v9004_v55, %v13093_v24  ;;  %v9014_v55 = vpop.eup %9013 }
 0x6e2   : > { %7968 = vmatprep.subr.bf16.mxu0 %v7032_v33  ;;  %v7031_v62 = vpack.c.bf16 %v6995_v5, %v6994_v49  ;;  %v6992_v50 = vmul.f32 %v12375_v41, %v6608_v9  ;;  %v6606_v16 = vsel %vm6555_vm8, %v6541_v27, %v6399_v37  ;;  %v6526_v54 = vsel %vm6490_vm7, %v12428_v17, %v13094_v43 }
 0x6e3   : > { %v6868_v42 = vpop.permute.xlu0 %6867  ;;  %v6991_v56 = vmul.f32 %v12359_v23, %v6607_v60  ;;  %v6990_v37 = vmul.f32 %v12357_v4, %v6606_v16  ;;  %v6539_v23 = vsel %vm6490_vm7, %v9014_v55, %v13095_v28 }
 0x6e4   : > { %v7030_v35 = vpack.c.bf16 %v6993_v44, %v6992_v50 }
 0x6e5   : > { %v6367_v11 = vpop.permute.xlu1 %6366  ;;  %7969 = vmatpush3.bf16.msra.mxu0 %v7024_v21  ;;  %v7029_v46 = vpack.c.bf16 %v6991_v56, %v6990_v37 }
 0x6e6   : > { %v6590_v47 = vsel %vm6555_vm8, %v6525_v8, %v6367_v11  ;;  %7970 = vmatprep.subr.bf16.mxu0 %v7031_v62 }
 0x6e7   : > { %v6369_v20 = vpop.permute.xlu0 %6368  ;;  %v6974_v41 = vmul.f32 %v12467_v14, %v6590_v47 }
 0x6e8   : > { %v6591_v26 = vsel %vm6555_vm8, %v6526_v54, %v6369_v20 }
 0x6e9   : > { %v6975_v51 = vmul.f32 %v6798_v52, %v6591_v26  ;;  %v6783_v34 = vpop.permute.xlu1 %6782  ;;  %7971 = vmatpush3.bf16.msra.mxu0 %v7023_v61  ;;  %v9016_v13 = vpop.eup %9015 }
 0x6ea   : > { %7972 = vmatprep.subr.bf16.mxu0 %v7030_v35  ;;  %v6540_v61 = vsel %vm6490_vm7, %v9016_v13, %v13096_v30 }
 0x6eb   : > { %v7021_v19 = vpack.c.bf16 %v6975_v51, %v6974_v41  ;;  %v6788_v17 = vpop.permute.xlu0 %6787  ;;  %v9018_v14 = vpop.eup %9017 }
 0x6ec   : > { %v9020_v52 = vpop.eup %9019  ;;  %v6523_v57 = vsel %vm6490_vm7, %v9018_v14, %v13097_v45 }
 0x6ed   : > { %v6395_v39 = vpop.permute.xlu1 %6394  ;;  %7973 = vmatpush3.bf16.msra.mxu0 %v7022_v7  ;;  %v6524_v7 = vsel %vm6490_vm7, %v9020_v52, %v13098_v53 }
 0x6ee   : > { %v6604_v48 = vsel %vm6555_vm8, %v6539_v23, %v6395_v39  ;;  %7974 = vmatprep.subr.bf16.mxu0 %v7029_v46 }
 0x6ef   : > { %v6397_v4 = vpop.permute.xlu0 %6396  ;;  %v6988_v32 = vmul.f32 %v6863_v12, %v6604_v48  ;;  %v9128_v12 = vld [vmem:[%s12577_s3 + $0x28] ss:$16 sps:$4 sm:$0xff]  }
 0x6f0   : > { %v6605_v1 = vsel %vm6555_vm8, %v6540_v61, %v6397_v4 }
 0x6f1   : > { %v6989_v15 = vmul.f32 %v6868_v42, %v6605_v1  ;;  %v6363_v18 = vpop.permute.xlu1 %6362  ;;  %7975 = vmatpush3.bf16.msra.mxu0 %v7021_v19 }
 0x6f2   : > { %v6588_v40 = vsel %vm6555_vm8, %v6523_v57, %v6363_v18 }
 0x6f3   : > { %v6365_v6 = vpop.permute.xlu0 %6364  ;;  %v7028_v5 = vpack.c.bf16 %v6989_v15, %v6988_v32  ;;  %v6972_v63 = vmul.f32 %v6783_v34, %v6588_v40 }
 0x6f4   : > { %v6589_v10 = vsel %vm6555_vm8, %v6524_v7, %v6365_v6 }
 0x6f5   : > { %v6973_v33 = vmul.f32 %v6788_v17, %v6589_v10  ;;  %7976 = vmatprep.subr.bf16.mxu0 %v7028_v5 }
 0x6f7   : > { %v7020_v59 = vpack.c.bf16 %v6973_v33, %v6972_v63 }
 0x6f9   : > { %7977 = vmatpush3.bf16.msra.mxu0 %v7020_v59 }
 0x6fc   : > { %7118 = vmatmul.mubr.bf16.vlgmr.msra.gmra.mxu0 %v9126_v29 }
 0x6fd   : > { %7125 = vmatprep.mubr.bf16.mxu0 %v9127_v0 }
 0x704   : > { %7126 = vmatmul.mubr.bf16.gmra.mxu0 %v9128_v12 }
 0x776   : > { %v7950_v49 = vpop.f32.mrf.mxu0 }
 0x778   : > { %v7951_v25 = vpop.f32.mrf.mxu0 }
 0x779   : > { %v7952_v3 = vadd.f32 %v7951_v25, %v7950_v49 }
 0x77a   : > { %v7953_v38 = vpop.f32.mrf.mxu0 }
 0x77c   : > { %v7954_v21 = vpop.f32.mrf.mxu0 }
 0x77d   : > { %v7955_v8 = vadd.f32 %v7954_v21, %v7953_v38 }
 0x77e   : > { %v7956_v36 = vpop.f32.mrf.mxu0 }
 0x780   : > { %v7957_v58 = vpop.f32.mrf.mxu0 }
 0x781   : > { %v7958_v47 = vadd.f32 %v7957_v58, %v7956_v36 }
 0x782   : > { %v7959_v42 = vpop.f32.mrf.mxu0 }
 0x784   : > { %v7960_v62 = vpop.f32.mrf.mxu0 }
 0x785   : > { %v7961_v35 = vadd.f32 %v7960_v62, %v7959_v42 }
 0x7bc   : > { %v7978_v44 = vpop.f32.mrf.mxu0 }
 0x7be   : > { %v7979_v2 = vpop.f32.mrf.mxu0 }
 0x7bf   : > { %v7980_v22 = vadd.f32 %v7979_v2, %v7978_v44 }
 0x7c0   : > { %v7981_v9 = vpop.f32.mrf.mxu0 }
 0x7c1   : > { %v7120_v60 = vadd.f32 %v7980_v22, %v7952_v3 }
 0x7c2   : > { %v7982_v31 = vpop.f32.mrf.mxu0 }
 0x7c3   : > { %7135 = vst.msk [vmem:[%s486_s16] sm:$0xff] %vm7134_vm9, %v7120_v60  ;;  %v7983_v11 = vadd.f32 %v7982_v31, %v7981_v9 }
 0x7c4   : > { %v7984_v50 = vpop.f32.mrf.mxu0 }
 0x7c5   : > { %v7123_v24 = vadd.f32 %v7983_v11, %v7955_v8 }
 0x7c6   : > { %v7985_v27 = vpop.f32.mrf.mxu0 }
 0x7c7   : > { %7136 = vst.msk [vmem:[%s486_s16 + $0x8] sm:$0xff] %vm7134_vm9, %v7123_v24  ;;  %v7986_v16 = vadd.f32 %v7985_v27, %v7984_v50 }
 0x7c8   : > { %v7987_v43 = vpop.f32.mrf.mxu0 }
 0x7c9   : > { %v7128_v54 = vadd.f32 %v7986_v16, %v7958_v47 }
 0x7ca   : > { %v7988_v20 = vpop.f32.mrf.mxu0 }
 0x7cb   : > { %7137 = vst.msk [vmem:[%s486_s16 + $0x10] sm:$0xff] %vm7134_vm9, %v7128_v54  ;;  %v7989_v56 = vadd.f32 %v7988_v20, %v7987_v43 }
 0x7cd   : > { %v7131_v26 = vadd.f32 %v7989_v56, %v7961_v35 }
 0x7cf   : > { %7138 = vst.msk [vmem:[%s486_s16 + $0x18] sm:$0xff] %vm7134_vm9, %v7131_v26 }
 0x7d0 PF: > { %s23_s25 = sadd.s32 1, %s9135_s25  }
 0x7d1   : > { %p20_p5 = scmp.ge.s32.totalorder %s23_s25, 4  }
 0x7d3   :  { %22 = sbr.rel (!%p20_p5) target bundleno = 1 (0x1), region = 108 }

</bundles_post_ra>
